<compile_context>
chip_gen: v5e
topology: v5e:2x2
jax: 0.10.0
libtpu: 0.0.40
codegen_flags: <defaults>
</compile_context>

<pallas_src>
import functools

import numpy as np
import jax
import jax.numpy as jnp
from jax import lax
from jax.experimental import pallas as pl
from jax.experimental.pallas import tpu as pltpu


def _rup(x, m):
    return ((x + m - 1) // m) * m


# ----------------------------- Pallas kernels ------------------------------ #

def _fused_double_conv_kernel(x_ref, xh_ref, w1_ref, s1_ref, b1_ref,
                              w2_ref, s2_ref, b2_ref,
                              z_ref, rmean_ref, csum_ref, *, TH, W):
    """Fused cv1+cv2 (two 3x3 conv + folded BN + SiLU) for one (batch, row-tile).

    x_ref:  (1, TH, W+4, C1p)   current TH rows of the (pad=2) bf16 input
    xh_ref: (1, 4,  W+4, C1p)   next 4 rows (halo)
    w1_ref: (3, 3*C1p, Cmp)     cv1 taps, dx folded into the contraction dim
    w2_ref: (3, 3*Cmp, C2p)     cv2 taps, dx folded into the contraction dim
    s*/b*:  (1, C)              folded BatchNorm scale / bias
    z_ref:     (1, TH, W, C2p)  output activation
    rmean_ref: (1, TH, C2p)     per-row mean over W   (SCSA H-gate statistics)
    csum_ref:  (1, 1, W, C2p)   per-tile column sum   (SCSA W-gate statistics)
    """
    i = pl.program_id(1)
    nb = pl.num_programs(1)
    Wp1 = W + 2                              # cv1 activation tile: cols -1 .. W
    Cm = w1_ref.shape[-1]
    C2p = z_ref.shape[-1]

    s1, b1 = s1_ref[...], b1_ref[...]
    s2, b2 = s2_ref[...], b2_ref[...]

    # cv1-activation columns -1 and W act as cv2's zero padding.
    col = lax.broadcasted_iota(jnp.int32, (Wp1, 1), 0)
    col_ok = (col >= 1) & (col <= W)

    def x_row(r):                            # row r (0..TH+3) of this tile's padded input
        return x_ref[0, r] if r < TH else xh_ref[0, r - TH]

    def im2col(row, width):                  # (L, C) -> (width, 3C): dx folded into lanes
        return jnp.concatenate([row[dx:dx + width, :] for dx in range(3)], axis=-1)

    x_cols = {}

    def x_col(r):                            # memoized im2col of padded-input row r
        if r not in x_cols:
            x_cols[r] = im2col(x_row(r), Wp1)                 # (W+2, 3*C1p) bf16
        return x_cols[r]

    y1_cols = {}

    def y1_col(r1):                          # memoized im2col of cv1-activation row r1-1
        if r1 not in y1_cols:
            acc = jnp.zeros((Wp1, Cm), jnp.float32)
            for dy in range(3):
                acc = acc + jnp.dot(x_col(r1 + dy), w1_ref[dy],
                                    preferred_element_type=jnp.float32)
            y1 = acc * s1 + b1
            y1 = y1 * jax.nn.sigmoid(y1)                      # SiLU
            y1 = jnp.where(col_ok, y1, 0.0)
            if r1 == 0:                      # row -1: real only on interior tiles
                y1 = jnp.where(i > 0, y1, 0.0)
            if r1 == TH + 1:                 # row TH: real only when not the last tile
                y1 = jnp.where(i < nb - 1, y1, 0.0)
            y1_cols[r1] = im2col(y1.astype(jnp.bfloat16), W)  # (W, 3*Cmp) bf16
        return y1_cols[r1]

    csum = jnp.zeros((W, C2p), jnp.float32)
    rmeans = []
    for r2 in range(TH):
        acc = jnp.zeros((W, C2p), jnp.float32)
        for dy in range(3):
            acc = acc + jnp.dot(y1_col(r2 + dy), w2_ref[dy],
                                preferred_element_type=jnp.float32)
        y2 = acc * s2 + b2
        y2 = y2 * jax.nn.sigmoid(y2)                          # SiLU
        z_ref[0, r2] = y2
        csum = csum + y2
        rmeans.append(jnp.mean(y2, axis=0, keepdims=True))
    rmean_ref[0] = jnp.concatenate(rmeans, axis=0)
    csum_ref[0, 0] = csum


def _gate_residual_kernel(z_ref, ah_ref, aw_ref, g_ref, x_ref, o_ref):
    """out = x + channel_gate * (z * gate_h * gate_w); x_att never hits HBM."""
    xa = z_ref[0] * ah_ref[0][:, None, :] * aw_ref[0][None, :, :]
    o_ref[0] = x_ref[0] + g_ref[0] * xa


def _gate_kernel(z_ref, ah_ref, aw_ref, g_ref, o_ref):
    """out = channel_gate * (z * gate_h * gate_w)  (no shortcut)."""
    xa = z_ref[0] * ah_ref[0][:, None, :] * aw_ref[0][None, :, :]
    o_ref[0] = g_ref[0] * xa


# --------------------- SCSA small-statistics helpers (plain JAX) ----------- #
# TODO(synk): SCSA's pooled statistics (1-D depthwise convs over <=16 elements,
# GroupNorm, 7x7-pooled channel self-attention) are sub-(8,128) shapes and stay in JAX.

def _dwconv1d(x_blc, w, b):
    """Depthwise 1-D conv, padding k//2.  x: (B, L, gc), w: (k, gc), b: (gc,)."""
    k = w.shape[0]
    pad = k // 2
    L = x_blc.shape[1]
    xp = jnp.pad(x_blc, ((0, 0), (pad, pad), (0, 0)))
    out = jnp.zeros_like(x_blc) + b
    for t in range(k):
        out = out + xp[:, t:t + L, :] * w[t]
    return out


def _multi_scale_dw(x_blc, params):
    """SCSA shared multi-scale depthwise convs over 4 channel groups (k = 3,5,7,9)."""
    gc = params["dw_w0"].shape[1]
    outs = []
    for j in range(4):
        seg = x_blc[:, :, j * gc:(j + 1) * gc]
        outs.append(_dwconv1d(seg, params[f"dw_w{j}"], params[f"dw_b{j}"]))
    return jnp.concatenate(outs, axis=-1)


def _groupnorm_blc(x, gamma, beta, groups, eps=1e-5):
    """GroupNorm over a (B, L, C) tensor (torch GroupNorm on (B, C, L) semantics)."""
    B, L, C = x.shape
    xg = x.reshape(B, L, groups, C // groups)
    mu = xg.mean(axis=(1, 3), keepdims=True)
    var = jnp.mean((xg - mu) ** 2, axis=(1, 3), keepdims=True)
    xn = ((xg - mu) / jnp.sqrt(var + eps)).reshape(B, L, C)
    return xn * gamma + beta


def _scsa_channel_gate(x_att, c2, params, head_num, window):
    """Pooled channel self-attention gate: (B, H, W, >=c2) -> sigmoid gate (B, c2)."""
    B, H, W, _ = x_att.shape
    h2, w2 = H // window, W // window
    y = x_att[:, :h2 * window, :w2 * window, :c2]
    y = y.reshape(B, h2, window, w2, window, c2).mean(axis=(2, 4))   # AvgPool2d(7, 7)
    # GroupNorm(1, C): per-sample normalization over (h2, w2, C)
    mu = y.mean(axis=(1, 2, 3), keepdims=True)
    var = jnp.mean((y - mu) ** 2, axis=(1, 2, 3), keepdims=True)
    yn = (y - mu) / jnp.sqrt(var + 1e-5)
    yn = yn * params["gn1_g"] + params["gn1_b"]
    q = yn * params["wq"]
    k = yn * params["wk"]
    v = yn * params["wv"]
    hd = c2 // head_num

    def heads(t):                               # (B, h2, w2, C) -> (B, heads, hd, N)
        return t.reshape(B, h2 * w2, head_num, hd).transpose(0, 2, 3, 1)

    attn = jnp.einsum("bhdn,bhen->bhde", heads(q), heads(k)) * (hd ** -0.5)
    attn = jax.nn.softmax(attn, axis=-1)
    o = jnp.einsum("bhde,bhen->bhdn", attn, heads(v))
    return jax.nn.sigmoid(o.mean(axis=-1).reshape(B, c2))


# ------------------------------- wrapper ----------------------------------- #

def bottleneck_forward(x_nchw, params, *, c1, c2, shortcut=True, e=0.5,
                       head_num=8, window=7):
    B, C1, H, W = x_nchw.shape
    assert C1 == c1
    c_mid = int(c2 * e)
    add = shortcut and (c1 == c2)
    assert H >= window and W >= window

    TH = 8 if H % 8 == 0 else H
    assert H % TH == 0 and TH % 4 == 0, "row tile must divide H and be a multiple of 4"
    nb = H // TH

    Cp1 = _rup(c1, 128)
    Cpm = _rup(c_mid, 128)
    Cp2 = _rup(c2, 128)
    f32 = jnp.float32

    x_nhwc = jnp.transpose(x_nchw, (0, 2, 3, 1)).astype(f32)              # (B,H,W,C1)

    # ---------------- fused cv1 + cv2 (single pallas_call) --------------------------
    x_cp = jnp.pad(x_nhwc, ((0, 0), (0, 0), (0, 0), (0, Cp1 - c1)))
    x_pad = jnp.pad(x_cp, ((0, 0), (2, 2), (2, 2), (0, 0))).astype(jnp.bfloat16)
    Wp = W + 4

    w1p = jnp.pad(params["w1"], ((0, 0), (0, Cp1 - c1), (0, Cpm - c_mid)))
    w1p = w1p.reshape(3, 3, Cp1, Cpm).reshape(3, 3 * Cp1, Cpm).astype(jnp.bfloat16)
    w2p = jnp.pad(params["w2"], ((0, 0), (0, Cpm - c_mid), (0, Cp2 - c2)))
    w2p = w2p.reshape(3, 3, Cpm, Cp2).reshape(3, 3 * Cpm, Cp2).astype(jnp.bfloat16)
    s1p = jnp.pad(params["scale1"], (0, Cpm - c_mid)).reshape(1, Cpm).astype(f32)
    b1p = jnp.pad(params["bias1"], (0, Cpm - c_mid)).reshape(1, Cpm).astype(f32)
    s2p = jnp.pad(params["scale2"], (0, Cp2 - c2)).reshape(1, Cp2).astype(f32)
    b2p = jnp.pad(params["bias2"], (0, Cp2 - c2)).reshape(1, Cp2).astype(f32)

    conv_kernel = functools.partial(_fused_double_conv_kernel, TH=TH, W=W)
    z, rmean, csum = pl.pallas_call(
        conv_kernel,
        out_shape=[jax.ShapeDtypeStruct((B, H, W, Cp2), f32),
                   jax.ShapeDtypeStruct((B, H, Cp2), f32),
                   jax.ShapeDtypeStruct((B, nb, W, Cp2), f32)],
        grid=(B, nb),
        in_specs=[
            pl.BlockSpec((1, TH, Wp, Cp1), lambda n, i: (n, i, 0, 0)),
            pl.BlockSpec((1, 4, Wp, Cp1), lambda n, i: (n, (i + 1) * (TH // 4), 0, 0)),
            pl.BlockSpec((3, 3 * Cp1, Cpm), lambda n, i: (0, 0, 0)),
            pl.BlockSpec((1, Cpm), lambda n, i: (0, 0)),
            pl.BlockSpec((1, Cpm), lambda n, i: (0, 0)),
            pl.BlockSpec((3, 3 * Cpm, Cp2), lambda n, i: (0, 0, 0)),
            pl.BlockSpec((1, Cp2), lambda n, i: (0, 0)),
            pl.BlockSpec((1, Cp2), lambda n, i: (0, 0)),
        ],
        out_specs=[
            pl.BlockSpec((1, TH, W, Cp2), lambda n, i: (n, i, 0, 0)),
            pl.BlockSpec((1, TH, Cp2), lambda n, i: (n, i, 0)),
            pl.BlockSpec((1, 1, W, Cp2), lambda n, i: (n, i, 0, 0)),
        ],
        compiler_params=pltpu.CompilerParams(
            dimension_semantics=("parallel", "parallel")),
    )(x_pad, x_pad, w1p, s1p, b1p, w2p, s2p, b2p)

    # ---------------- SCSA gates (tiny statistics in plain JAX) ---------------------
    zh = rmean[..., :c2]                                   # (B, H, C2)  mean over W
    zw = (jnp.sum(csum, axis=1) / H)[..., :c2]             # (B, W, C2)  mean over H
    ah = jax.nn.sigmoid(_groupnorm_blc(_multi_scale_dw(zh, params),
                                       params["gnh_g"], params["gnh_b"], 4))
    aw = jax.nn.sigmoid(_groupnorm_blc(_multi_scale_dw(zw, params),
                                       params["gnw_g"], params["gnw_b"], 4))

    # Channel-attention gate works on the 7x7-pooled x_att: compute x_att lazily here
    # so XLA fuses the element-wise gating into the pooling reduction (z read once,
    # x_att itself is never written to HBM).
    x_att_stats = z[..., :c2] * ah[:, :, None, :] * aw[:, None, :, :]
    gate = _scsa_channel_gate(x_att_stats, c2, params, head_num, window)   # (B, C2)

    ah_p = jnp.pad(ah, ((0, 0), (0, 0), (0, Cp2 - c2)))
    aw_p = jnp.pad(aw, ((0, 0), (0, 0), (0, Cp2 - c2)))
    gate_p = jnp.pad(gate, ((0, 0), (0, Cp2 - c2))).reshape(B, 1, Cp2)

    # ---------------- fused spatial gate * channel gate (+ residual) ----------------
    big_spec = pl.BlockSpec((1, TH, W, Cp2), lambda n, i: (n, i, 0, 0))
    ah_spec = pl.BlockSpec((1, TH, Cp2), lambda n, i: (n, i, 0))
    aw_spec = pl.BlockSpec((1, W, Cp2), lambda n, i: (n, 0, 0))
    gate_spec = pl.BlockSpec((1, 1, Cp2), lambda n, i: (n, 0, 0))

    if add:
        x_res = jnp.pad(x_nhwc, ((0, 0), (0, 0), (0, 0), (0, Cp2 - c1)))
        out_p = pl.pallas_call(
            _gate_residual_kernel,
            out_shape=jax.ShapeDtypeStruct((B, H, W, Cp2), f32),
            grid=(B, nb),
            in_specs=[big_spec, ah_spec, aw_spec, gate_spec, big_spec],
            out_specs=big_spec,
            compiler_params=pltpu.CompilerParams(
                dimension_semantics=("parallel", "parallel")),
        )(z, ah_p, aw_p, gate_p, x_res)
    else:
        out_p = pl.pallas_call(
            _gate_kernel,
            out_shape=jax.ShapeDtypeStruct((B, H, W, Cp2), f32),
            grid=(B, nb),
            in_specs=[big_spec, ah_spec, aw_spec, gate_spec],
            out_specs=big_spec,
            compiler_params=pltpu.CompilerParams(
                dimension_semantics=("parallel", "parallel")),
        )(z, ah_p, aw_p, gate_p)

    return jnp.transpose(out_p[..., :c2], (0, 3, 1, 2))                   # NHWC -> NCHW


# --------------------------- deterministic init ----------------------------- #

def init_params(key, c1, c2, e=0.5, head_num=8, bn_eps=1e-3):
    """Bottleneck(c1, c2, k=(3,3), g=1, e) + SCSA(c2, 8); eval-mode BN folded."""
    c_ = int(c2 * e)
    assert c2 % 4 == 0 and c2 % head_num == 0
    gc = c2 // 4
    ks = (3, 5, 7, 9)
    it = iter(jax.random.split(key, 40))

    def nrm(shape, s=0.2):
        return s * jax.random.normal(next(it), shape, jnp.float32)

    def fold_bn(g, b, m, v):
        scale = g / jnp.sqrt(v + bn_eps)
        return scale, b - m * scale

    w1 = nrm((9, c1, c_))                                   # cv1 taps (dy*3+dx, cin, cout)
    s1, b1 = fold_bn(1.0 + nrm((c_,), 0.1), nrm((c_,), 0.1),
                     nrm((c_,), 0.1), jnp.abs(nrm((c_,), 1.0)) + 0.5)
    w2 = nrm((9, c_, c2))                                   # cv2 taps
    s2, b2 = fold_bn(1.0 + nrm((c2,), 0.1), nrm((c2,), 0.1),
                     nrm((c2,), 0.1), jnp.abs(nrm((c2,), 1.0)) + 0.5)

    p = dict(w1=w1, scale1=s1, bias1=b1, w2=w2, scale2=s2, bias2=b2,
             gnh_g=1.0 + nrm((c2,), 0.1), gnh_b=nrm((c2,), 0.1),
             gnw_g=1.0 + nrm((c2,), 0.1), gnw_b=nrm((c2,), 0.1),
             gn1_g=1.0 + nrm((c2,), 0.1), gn1_b=nrm((c2,), 0.1),
             wq=nrm((c2,), 0.5), wk=nrm((c2,), 0.5), wv=nrm((c2,), 0.5))
    for j, k in enumerate(ks):                              # shared multi-scale dw convs
        p[f"dw_w{j}"] = nrm((k, gc), 0.3)
        p[f"dw_b{j}"] = nrm((gc,), 0.1)
    return p


# ------------------------------ JAX reference ------------------------------- #

def bottleneck_reference(x_nchw, params, *, c1, c2, shortcut=True, e=0.5,
                         head_num=8, window=7):
    c_ = int(c2 * e)
    add = shortcut and (c1 == c2)
    x = jnp.transpose(x_nchw, (0, 2, 3, 1)).astype(jnp.float32)

    def conv_bn_silu(inp, w9, scale, bias, cin, cout):
        w = w9.reshape(3, 3, cin, cout)
        y = lax.conv_general_dilated(
            inp, w, (1, 1), ((1, 1), (1, 1)),
            dimension_numbers=("NHWC", "HWIO", "NHWC"),
            precision=lax.Precision.HIGHEST)
        y = y * scale + bias
        return y * jax.nn.sigmoid(y)

    z = conv_bn_silu(x, params["w1"], params["scale1"], params["bias1"], c1, c_)
    z = conv_bn_silu(z, params["w2"], params["scale2"], params["bias2"], c_, c2)

    zh = z.mean(axis=2)                                     # (B, H, C2)
    zw = z.mean(axis=1)                                     # (B, W, C2)
    ah = jax.nn.sigmoid(_groupnorm_blc(_multi_scale_dw(zh, params),
                                       params["gnh_g"], params["gnh_b"], 4))
    aw = jax.nn.sigmoid(_groupnorm_blc(_multi_scale_dw(zw, params),
                                       params["gnw_g"], params["gnw_b"], 4))
    x_att = z * ah[:, :, None, :] * aw[:, None, :, :]

    gate = _scsa_channel_gate(x_att, c2, params, head_num, window)
    out = gate[:, None, None, :] * x_att
    if add:
        out = x + out
    return jnp.transpose(out, (0, 3, 1, 2))


# ----------------------------------- main ----------------------------------- #

if __name__ == "__main__":
    # c1 == c2 so the shortcut path is exercised; c2 divisible by 4 and 8 for SCSA(c2, 8).
    B, C1, C2, H, W = 2, 8, 8, 16, 16

    key = jax.random.PRNGKey(0)
    kp, kx = jax.random.split(key)
    params = init_params(kp, C1, C2)
    x = jax.random.normal(kx, (B, C1, H, W), jnp.float32)

    fwd = jax.jit(functools.partial(bottleneck_forward, c1=C1, c2=C2, shortcut=True))
    y = jax.block_until_ready(fwd(x, params))
    assert y.shape == (B, C2, H, W), y.shape

    y_ref = jax.block_until_ready(
        bottleneck_reference(x, params, c1=C1, c2=C2, shortcut=True))
    np.testing.assert_allclose(np.asarray(y), np.asarray(y_ref), rtol=3e-2, atol=3e-2)

    print("KERNEL_OK")
</pallas_src>

<mosaic_0001>
module attributes {stable_mosaic.version = 11 : i64} {
  func.func @_fused_double_conv_kernel(%arg0: i32, %arg1: i32, %arg2: memref<1x8x20x128xbf16, #tpu.memory_space<vmem>>, %arg3: memref<1x4x20x128xbf16, #tpu.memory_space<vmem>>, %arg4: memref<3x384x128xbf16, #tpu.memory_space<vmem>>, %arg5: memref<1x128xf32, #tpu.memory_space<vmem>>, %arg6: memref<1x128xf32, #tpu.memory_space<vmem>>, %arg7: memref<3x384x128xbf16, #tpu.memory_space<vmem>>, %arg8: memref<1x128xf32, #tpu.memory_space<vmem>>, %arg9: memref<1x128xf32, #tpu.memory_space<vmem>>, %arg10: memref<1x8x16x128xf32, #tpu.memory_space<vmem>>, %arg11: memref<1x8x128xf32, #tpu.memory_space<vmem>>, %arg12: memref<1x1x16x128xf32, #tpu.memory_space<vmem>>) attributes {dimension_semantics = [#tpu.dimension_semantics<parallel>, #tpu.dimension_semantics<parallel>], iteration_bounds = array<i64: 2, 2>, scalar_prefetch = 0 : i64, scratch_operands = 0 : i64, tpu.core_type = #tpu.core_type<tc>, window_params = [{transform_indices = @transform_0, window_bounds = array<i64: 1, 8, 20, 128>}, {transform_indices = @transform_1, window_bounds = array<i64: 1, 4, 20, 128>}, {pipeline_mode = #tpu.pipeline_mode<synchronous>, transform_indices = @transform_2, window_bounds = array<i64: 3, 384, 128>}, {pipeline_mode = #tpu.pipeline_mode<synchronous>, transform_indices = @transform_3, window_bounds = array<i64: 1, 128>}, {pipeline_mode = #tpu.pipeline_mode<synchronous>, transform_indices = @transform_4, window_bounds = array<i64: 1, 128>}, {pipeline_mode = #tpu.pipeline_mode<synchronous>, transform_indices = @transform_5, window_bounds = array<i64: 3, 384, 128>}, {pipeline_mode = #tpu.pipeline_mode<synchronous>, transform_indices = @transform_6, window_bounds = array<i64: 1, 128>}, {pipeline_mode = #tpu.pipeline_mode<synchronous>, transform_indices = @transform_7, window_bounds = array<i64: 1, 128>}, {transform_indices = @transform_8, window_bounds = array<i64: 1, 8, 16, 128>}, {transform_indices = @transform_9, window_bounds = array<i64: 1, 8, 128>}, {transform_indices = @transform_10, window_bounds = array<i64: 1, 1, 16, 128>}]} {
    %c0 = arith.constant 0 : index
    %c0_0 = arith.constant 0 : index
    %0 = vector.load %arg5[%c0, %c0_0] : memref<1x128xf32, #tpu.memory_space<vmem>>, vector<1x128xf32>
    %c0_1 = arith.constant 0 : index
    %c0_2 = arith.constant 0 : index
    %1 = vector.load %arg6[%c0_1, %c0_2] : memref<1x128xf32, #tpu.memory_space<vmem>>, vector<1x128xf32>
    %c0_3 = arith.constant 0 : index
    %c0_4 = arith.constant 0 : index
    %2 = vector.load %arg8[%c0_3, %c0_4] : memref<1x128xf32, #tpu.memory_space<vmem>>, vector<1x128xf32>
    %c0_5 = arith.constant 0 : index
    %c0_6 = arith.constant 0 : index
    %3 = vector.load %arg9[%c0_5, %c0_6] : memref<1x128xf32, #tpu.memory_space<vmem>>, vector<1x128xf32>
    %4 = tpu.iota {dimensions = array<i32: 0>} : vector<18x1xi32>
    %c1_i32 = arith.constant 1 : i32
    %5 = vector.broadcast %c1_i32 : i32 to vector<18x1xi32>
    %6 = arith.cmpi sge, %4, %5 : vector<18x1xi32>
    %c16_i32 = arith.constant 16 : i32
    %7 = vector.broadcast %c16_i32 : i32 to vector<18x1xi32>
    %8 = arith.cmpi sle, %4, %7 : vector<18x1xi32>
    %9 = arith.andi %6, %8 : vector<18x1xi1>
    %cst = arith.constant 0.000000e+00 : f32
    %10 = vector.broadcast %cst : f32 to vector<16x128xf32>
    %cst_7 = arith.constant 0.000000e+00 : f32
    %11 = vector.broadcast %cst_7 : f32 to vector<16x128xf32>
    %cst_8 = arith.constant 0.000000e+00 : f32
    %12 = vector.broadcast %cst_8 : f32 to vector<18x128xf32>
    %c0_9 = arith.constant 0 : index
    %c0_10 = arith.constant 0 : index
    %c0_11 = arith.constant 0 : index
    %c0_12 = arith.constant 0 : index
    %13 = vector.load %arg2[%c0_9, %c0_10, %c0_11, %c0_12] : memref<1x8x20x128xbf16, #tpu.memory_space<vmem>>, vector<1x1x20x128xbf16>
    %14 = vector.shape_cast %13 : vector<1x1x20x128xbf16> to vector<20x128xbf16>
    %15 = vector.extract_strided_slice %14 {offsets = [0, 0], sizes = [18, 128], strides = [1, 1]} : vector<20x128xbf16> to vector<18x128xbf16>
    %16 = vector.extract_strided_slice %14 {offsets = [1, 0], sizes = [18, 128], strides = [1, 1]} : vector<20x128xbf16> to vector<18x128xbf16>
    %17 = vector.extract_strided_slice %14 {offsets = [2, 0], sizes = [18, 128], strides = [1, 1]} : vector<20x128xbf16> to vector<18x128xbf16>
    %18 = tpu.concatenate %15, %16, %17 in 1 : vector<18x128xbf16>, vector<18x128xbf16>, vector<18x128xbf16> -> vector<18x384xbf16>
    %c0_13 = arith.constant 0 : index
    %c0_14 = arith.constant 0 : index
    %c0_15 = arith.constant 0 : index
    %19 = vector.load %arg4[%c0_13, %c0_14, %c0_15] : memref<3x384x128xbf16, #tpu.memory_space<vmem>>, vector<1x384x128xbf16>
    %20 = vector.shape_cast %19 : vector<1x384x128xbf16> to vector<384x128xbf16>
    %cst_16 = arith.constant dense<0.000000e+00> : vector<18x128xf32>
    %21 = tpu.matmul %18, %20, %cst_16 {dimension_numbers = #tpu.dot_dimension_numbers<[1], [0], [0], [1], [0, 0, 1, 1], [], []>} : vector<18x384xbf16>, vector<384x128xbf16>, vector<18x128xf32> -> vector<18x128xf32>
    %22 = arith.addf %12, %21 : vector<18x128xf32>
    %c0_17 = arith.constant 0 : index
    %c1 = arith.constant 1 : index
    %c0_18 = arith.constant 0 : index
    %c0_19 = arith.constant 0 : index
    %23 = vector.load %arg2[%c0_17, %c1, %c0_18, %c0_19] : memref<1x8x20x128xbf16, #tpu.memory_space<vmem>>, vector<1x1x20x128xbf16>
    %24 = vector.shape_cast %23 : vector<1x1x20x128xbf16> to vector<20x128xbf16>
    %25 = vector.extract_strided_slice %24 {offsets = [0, 0], sizes = [18, 128], strides = [1, 1]} : vector<20x128xbf16> to vector<18x128xbf16>
    %26 = vector.extract_strided_slice %24 {offsets = [1, 0], sizes = [18, 128], strides = [1, 1]} : vector<20x128xbf16> to vector<18x128xbf16>
    %27 = vector.extract_strided_slice %24 {offsets = [2, 0], sizes = [18, 128], strides = [1, 1]} : vector<20x128xbf16> to vector<18x128xbf16>
    %28 = tpu.concatenate %25, %26, %27 in 1 : vector<18x128xbf16>, vector<18x128xbf16>, vector<18x128xbf16> -> vector<18x384xbf16>
    %c1_20 = arith.constant 1 : index
    %c0_21 = arith.constant 0 : index
    %c0_22 = arith.constant 0 : index
    %29 = vector.load %arg4[%c1_20, %c0_21, %c0_22] : memref<3x384x128xbf16, #tpu.memory_space<vmem>>, vector<1x384x128xbf16>
    %30 = vector.shape_cast %29 : vector<1x384x128xbf16> to vector<384x128xbf16>
    %cst_23 = arith.constant dense<0.000000e+00> : vector<18x128xf32>
    %31 = tpu.matmul %28, %30, %cst_23 {dimension_numbers = #tpu.dot_dimension_numbers<[1], [0], [0], [1], [0, 0, 1, 1], [], []>} : vector<18x384xbf16>, vector<384x128xbf16>, vector<18x128xf32> -> vector<18x128xf32>
    %32 = arith.addf %22, %31 : vector<18x128xf32>
    %c0_24 = arith.constant 0 : index
    %c2 = arith.constant 2 : index
    %c0_25 = arith.constant 0 : index
    %c0_26 = arith.constant 0 : index
    %33 = vector.load %arg2[%c0_24, %c2, %c0_25, %c0_26] : memref<1x8x20x128xbf16, #tpu.memory_space<vmem>>, vector<1x1x20x128xbf16>
    %34 = vector.shape_cast %33 : vector<1x1x20x128xbf16> to vector<20x128xbf16>
    %35 = vector.extract_strided_slice %34 {offsets = [0, 0], sizes = [18, 128], strides = [1, 1]} : vector<20x128xbf16> to vector<18x128xbf16>
    %36 = vector.extract_strided_slice %34 {offsets = [1, 0], sizes = [18, 128], strides = [1, 1]} : vector<20x128xbf16> to vector<18x128xbf16>
    %37 = vector.extract_strided_slice %34 {offsets = [2, 0], sizes = [18, 128], strides = [1, 1]} : vector<20x128xbf16> to vector<18x128xbf16>
    %38 = tpu.concatenate %35, %36, %37 in 1 : vector<18x128xbf16>, vector<18x128xbf16>, vector<18x128xbf16> -> vector<18x384xbf16>
    %c2_27 = arith.constant 2 : index
    %c0_28 = arith.constant 0 : index
    %c0_29 = arith.constant 0 : index
    %39 = vector.load %arg4[%c2_27, %c0_28, %c0_29] : memref<3x384x128xbf16, #tpu.memory_space<vmem>>, vector<1x384x128xbf16>
    %40 = vector.shape_cast %39 : vector<1x384x128xbf16> to vector<384x128xbf16>
    %cst_30 = arith.constant dense<0.000000e+00> : vector<18x128xf32>
    %41 = tpu.matmul %38, %40, %cst_30 {dimension_numbers = #tpu.dot_dimension_numbers<[1], [0], [0], [1], [0, 0, 1, 1], [], []>} : vector<18x384xbf16>, vector<384x128xbf16>, vector<18x128xf32> -> vector<18x128xf32>
    %42 = arith.addf %32, %41 : vector<18x128xf32>
    %43 = vector.broadcast %0 : vector<1x128xf32> to vector<18x128xf32>
    %44 = arith.mulf %42, %43 : vector<18x128xf32>
    %45 = vector.broadcast %1 : vector<1x128xf32> to vector<18x128xf32>
    %46 = arith.addf %44, %45 : vector<18x128xf32>
    %47 = arith.negf %46 : vector<18x128xf32>
    %48 = math.exp %47 : vector<18x128xf32>
    %cst_31 = arith.constant 1.000000e+00 : f32
    %49 = vector.broadcast %cst_31 : f32 to vector<18x128xf32>
    %50 = arith.addf %49, %48 : vector<18x128xf32>
    %51 = arith.divf %49, %50 : vector<18x128xf32>
    %52 = arith.mulf %46, %51 : vector<18x128xf32>
    %cst_32 = arith.constant 0.000000e+00 : f32
    %53 = vector.shape_cast %9 : vector<18x1xi1> to vector<18x1xi1>
    %54 = vector.broadcast %53 : vector<18x1xi1> to vector<18x128xi1>
    %55 = vector.broadcast %cst_32 : f32 to vector<18x128xf32>
    %56 = arith.select %54, %52, %55 : vector<18x128xi1>, vector<18x128xf32>
    %c0_i32 = arith.constant 0 : i32
    %57 = arith.cmpi sgt, %arg1, %c0_i32 : i32
    %cst_33 = arith.constant 0.000000e+00 : f32
    %58 = vector.broadcast %cst_33 : f32 to vector<18x128xf32>
    %59 = arith.select %57, %56, %58 : vector<18x128xf32>
    %60 = arith.truncf %59 : vector<18x128xf32> to vector<18x128xbf16>
    %61 = vector.extract_strided_slice %60 {offsets = [0, 0], sizes = [16, 128], strides = [1, 1]} : vector<18x128xbf16> to vector<16x128xbf16>
    %62 = vector.extract_strided_slice %60 {offsets = [1, 0], sizes = [16, 128], strides = [1, 1]} : vector<18x128xbf16> to vector<16x128xbf16>
    %63 = vector.extract_strided_slice %60 {offsets = [2, 0], sizes = [16, 128], strides = [1, 1]} : vector<18x128xbf16> to vector<16x128xbf16>
    %64 = tpu.concatenate %61, %62, %63 in 1 : vector<16x128xbf16>, vector<16x128xbf16>, vector<16x128xbf16> -> vector<16x384xbf16>
    %c0_34 = arith.constant 0 : index
    %c0_35 = arith.constant 0 : index
    %c0_36 = arith.constant 0 : index
    %65 = vector.load %arg7[%c0_34, %c0_35, %c0_36] : memref<3x384x128xbf16, #tpu.memory_space<vmem>>, vector<1x384x128xbf16>
    %66 = vector.shape_cast %65 : vector<1x384x128xbf16> to vector<384x128xbf16>
    %cst_37 = arith.constant dense<0.000000e+00> : vector<16x128xf32>
    %67 = tpu.matmul %64, %66, %cst_37 {dimension_numbers = #tpu.dot_dimension_numbers<[1], [0], [0], [1], [0, 0, 1, 1], [], []>} : vector<16x384xbf16>, vector<384x128xbf16>, vector<16x128xf32> -> vector<16x128xf32>
    %68 = arith.addf %11, %67 : vector<16x128xf32>
    %cst_38 = arith.constant 0.000000e+00 : f32
    %69 = vector.broadcast %cst_38 : f32 to vector<18x128xf32>
    %c0_39 = arith.constant 0 : index
    %c0_40 = arith.constant 0 : index
    %c0_41 = arith.constant 0 : index
    %70 = vector.load %arg4[%c0_39, %c0_40, %c0_41] : memref<3x384x128xbf16, #tpu.memory_space<vmem>>, vector<1x384x128xbf16>
    %71 = vector.shape_cast %70 : vector<1x384x128xbf16> to vector<384x128xbf16>
    %cst_42 = arith.constant dense<0.000000e+00> : vector<18x128xf32>
    %72 = tpu.matmul %28, %71, %cst_42 {dimension_numbers = #tpu.dot_dimension_numbers<[1], [0], [0], [1], [0, 0, 1, 1], [], []>} : vector<18x384xbf16>, vector<384x128xbf16>, vector<18x128xf32> -> vector<18x128xf32>
    %73 = arith.addf %69, %72 : vector<18x128xf32>
    %c1_43 = arith.constant 1 : index
    %c0_44 = arith.constant 0 : index
    %c0_45 = arith.constant 0 : index
    %74 = vector.load %arg4[%c1_43, %c0_44, %c0_45] : memref<3x384x128xbf16, #tpu.memory_space<vmem>>, vector<1x384x128xbf16>
    %75 = vector.shape_cast %74 : vector<1x384x128xbf16> to vector<384x128xbf16>
    %cst_46 = arith.constant dense<0.000000e+00> : vector<18x128xf32>
    %76 = tpu.matmul %38, %75, %cst_46 {dimension_numbers = #tpu.dot_dimension_numbers<[1], [0], [0], [1], [0, 0, 1, 1], [], []>} : vector<18x384xbf16>, vector<384x128xbf16>, vector<18x128xf32> -> vector<18x128xf32>
    %77 = arith.addf %73, %76 : vector<18x128xf32>
    %c0_47 = arith.constant 0 : index
    %c3 = arith.constant 3 : index
    %c0_48 = arith.constant 0 : index
    %c0_49 = arith.constant 0 : index
    %78 = vector.load %arg2[%c0_47, %c3, %c0_48, %c0_49] : memref<1x8x20x128xbf16, #tpu.memory_space<vmem>>, vector<1x1x20x128xbf16>
    %79 = vector.shape_cast %78 : vector<1x1x20x128xbf16> to vector<20x128xbf16>
    %80 = vector.extract_strided_slice %79 {offsets = [0, 0], sizes = [18, 128], strides = [1, 1]} : vector<20x128xbf16> to vector<18x128xbf16>
    %81 = vector.extract_strided_slice %79 {offsets = [1, 0], sizes = [18, 128], strides = [1, 1]} : vector<20x128xbf16> to vector<18x128xbf16>
    %82 = vector.extract_strided_slice %79 {offsets = [2, 0], sizes = [18, 128], strides = [1, 1]} : vector<20x128xbf16> to vector<18x128xbf16>
    %83 = tpu.concatenate %80, %81, %82 in 1 : vector<18x128xbf16>, vector<18x128xbf16>, vector<18x128xbf16> -> vector<18x384xbf16>
    %c2_50 = arith.constant 2 : index
    %c0_51 = arith.constant 0 : index
    %c0_52 = arith.constant 0 : index
    %84 = vector.load %arg4[%c2_50, %c0_51, %c0_52] : memref<3x384x128xbf16, #tpu.memory_space<vmem>>, vector<1x384x128xbf16>
    %85 = vector.shape_cast %84 : vector<1x384x128xbf16> to vector<384x128xbf16>
    %cst_53 = arith.constant dense<0.000000e+00> : vector<18x128xf32>
    %86 = tpu.matmul %83, %85, %cst_53 {dimension_numbers = #tpu.dot_dimension_numbers<[1], [0], [0], [1], [0, 0, 1, 1], [], []>} : vector<18x384xbf16>, vector<384x128xbf16>, vector<18x128xf32> -> vector<18x128xf32>
    %87 = arith.addf %77, %86 : vector<18x128xf32>
    %88 = vector.broadcast %0 : vector<1x128xf32> to vector<18x128xf32>
    %89 = arith.mulf %87, %88 : vector<18x128xf32>
    %90 = vector.broadcast %1 : vector<1x128xf32> to vector<18x128xf32>
    %91 = arith.addf %89, %90 : vector<18x128xf32>
    %92 = arith.negf %91 : vector<18x128xf32>
    %93 = math.exp %92 : vector<18x128xf32>
    %cst_54 = arith.constant 1.000000e+00 : f32
    %94 = vector.broadcast %cst_54 : f32 to vector<18x128xf32>
    %95 = arith.addf %94, %93 : vector<18x128xf32>
    %96 = arith.divf %94, %95 : vector<18x128xf32>
    %97 = arith.mulf %91, %96 : vector<18x128xf32>
    %cst_55 = arith.constant 0.000000e+00 : f32
    %98 = vector.shape_cast %9 : vector<18x1xi1> to vector<18x1xi1>
    %99 = vector.broadcast %98 : vector<18x1xi1> to vector<18x128xi1>
    %100 = vector.broadcast %cst_55 : f32 to vector<18x128xf32>
    %101 = arith.select %99, %97, %100 : vector<18x128xi1>, vector<18x128xf32>
    %102 = arith.truncf %101 : vector<18x128xf32> to vector<18x128xbf16>
    %103 = vector.extract_strided_slice %102 {offsets = [0, 0], sizes = [16, 128], strides = [1, 1]} : vector<18x128xbf16> to vector<16x128xbf16>
    %104 = vector.extract_strided_slice %102 {offsets = [1, 0], sizes = [16, 128], strides = [1, 1]} : vector<18x128xbf16> to vector<16x128xbf16>
    %105 = vector.extract_strided_slice %102 {offsets = [2, 0], sizes = [16, 128], strides = [1, 1]} : vector<18x128xbf16> to vector<16x128xbf16>
    %106 = tpu.concatenate %103, %104, %105 in 1 : vector<16x128xbf16>, vector<16x128xbf16>, vector<16x128xbf16> -> vector<16x384xbf16>
    %c1_56 = arith.constant 1 : index
    %c0_57 = arith.constant 0 : index
    %c0_58 = arith.constant 0 : index
    %107 = vector.load %arg7[%c1_56, %c0_57, %c0_58] : memref<3x384x128xbf16, #tpu.memory_space<vmem>>, vector<1x384x128xbf16>
    %108 = vector.shape_cast %107 : vector<1x384x128xbf16> to vector<384x128xbf16>
    %cst_59 = arith.constant dense<0.000000e+00> : vector<16x128xf32>
    %109 = tpu.matmul %106, %108, %cst_59 {dimension_numbers = #tpu.dot_dimension_numbers<[1], [0], [0], [1], [0, 0, 1, 1], [], []>} : vector<16x384xbf16>, vector<384x128xbf16>, vector<16x128xf32> -> vector<16x128xf32>
    %110 = arith.addf %68, %109 : vector<16x128xf32>
    %cst_60 = arith.constant 0.000000e+00 : f32
    %111 = vector.broadcast %cst_60 : f32 to vector<18x128xf32>
    %c0_61 = arith.constant 0 : index
    %c0_62 = arith.constant 0 : index
    %c0_63 = arith.constant 0 : index
    %112 = vector.load %arg4[%c0_61, %c0_62, %c0_63] : memref<3x384x128xbf16, #tpu.memory_space<vmem>>, vector<1x384x128xbf16>
    %113 = vector.shape_cast %112 : vector<1x384x128xbf16> to vector<384x128xbf16>
    %cst_64 = arith.constant dense<0.000000e+00> : vector<18x128xf32>
    %114 = tpu.matmul %38, %113, %cst_64 {dimension_numbers = #tpu.dot_dimension_numbers<[1], [0], [0], [1], [0, 0, 1, 1], [], []>} : vector<18x384xbf16>, vector<384x128xbf16>, vector<18x128xf32> -> vector<18x128xf32>
    %115 = arith.addf %111, %114 : vector<18x128xf32>
    %c1_65 = arith.constant 1 : index
    %c0_66 = arith.constant 0 : index
    %c0_67 = arith.constant 0 : index
    %116 = vector.load %arg4[%c1_65, %c0_66, %c0_67] : memref<3x384x128xbf16, #tpu.memory_space<vmem>>, vector<1x384x128xbf16>
    %117 = vector.shape_cast %116 : vector<1x384x128xbf16> to vector<384x128xbf16>
    %cst_68 = arith.constant dense<0.000000e+00> : vector<18x128xf32>
    %118 = tpu.matmul %83, %117, %cst_68 {dimension_numbers = #tpu.dot_dimension_numbers<[1], [0], [0], [1], [0, 0, 1, 1], [], []>} : vector<18x384xbf16>, vector<384x128xbf16>, vector<18x128xf32> -> vector<18x128xf32>
    %119 = arith.addf %115, %118 : vector<18x128xf32>
    %c0_69 = arith.constant 0 : index
    %c4 = arith.constant 4 : index
    %c0_70 = arith.constant 0 : index
    %c0_71 = arith.constant 0 : index
    %120 = vector.load %arg2[%c0_69, %c4, %c0_70, %c0_71] : memref<1x8x20x128xbf16, #tpu.memory_space<vmem>>, vector<1x1x20x128xbf16>
    %121 = vector.shape_cast %120 : vector<1x1x20x128xbf16> to vector<20x128xbf16>
    %122 = vector.extract_strided_slice %121 {offsets = [0, 0], sizes = [18, 128], strides = [1, 1]} : vector<20x128xbf16> to vector<18x128xbf16>
    %123 = vector.extract_strided_slice %121 {offsets = [1, 0], sizes = [18, 128], strides = [1, 1]} : vector<20x128xbf16> to vector<18x128xbf16>
    %124 = vector.extract_strided_slice %121 {offsets = [2, 0], sizes = [18, 128], strides = [1, 1]} : vector<20x128xbf16> to vector<18x128xbf16>
    %125 = tpu.concatenate %122, %123, %124 in 1 : vector<18x128xbf16>, vector<18x128xbf16>, vector<18x128xbf16> -> vector<18x384xbf16>
    %c2_72 = arith.constant 2 : index
    %c0_73 = arith.constant 0 : index
    %c0_74 = arith.constant 0 : index
    %126 = vector.load %arg4[%c2_72, %c0_73, %c0_74] : memref<3x384x128xbf16, #tpu.memory_space<vmem>>, vector<1x384x128xbf16>
    %127 = vector.shape_cast %126 : vector<1x384x128xbf16> to vector<384x128xbf16>
    %cst_75 = arith.constant dense<0.000000e+00> : vector<18x128xf32>
    %128 = tpu.matmul %125, %127, %cst_75 {dimension_numbers = #tpu.dot_dimension_numbers<[1], [0], [0], [1], [0, 0, 1, 1], [], []>} : vector<18x384xbf16>, vector<384x128xbf16>, vector<18x128xf32> -> vector<18x128xf32>
    %129 = arith.addf %119, %128 : vector<18x128xf32>
    %130 = vector.broadcast %0 : vector<1x128xf32> to vector<18x128xf32>
    %131 = arith.mulf %129, %130 : vector<18x128xf32>
    %132 = vector.broadcast %1 : vector<1x128xf32> to vector<18x128xf32>
    %133 = arith.addf %131, %132 : vector<18x128xf32>
    %134 = arith.negf %133 : vector<18x128xf32>
    %135 = math.exp %134 : vector<18x128xf32>
    %cst_76 = arith.constant 1.000000e+00 : f32
    %136 = vector.broadcast %cst_76 : f32 to vector<18x128xf32>
    %137 = arith.addf %136, %135 : vector<18x128xf32>
    %138 = arith.divf %136, %137 : vector<18x128xf32>
    %139 = arith.mulf %133, %138 : vector<18x128xf32>
    %cst_77 = arith.constant 0.000000e+00 : f32
    %140 = vector.shape_cast %9 : vector<18x1xi1> to vector<18x1xi1>
    %141 = vector.broadcast %140 : vector<18x1xi1> to vector<18x128xi1>
    %142 = vector.broadcast %cst_77 : f32 to vector<18x128xf32>
    %143 = arith.select %141, %139, %142 : vector<18x128xi1>, vector<18x128xf32>
    %144 = arith.truncf %143 : vector<18x128xf32> to vector<18x128xbf16>
    %145 = vector.extract_strided_slice %144 {offsets = [0, 0], sizes = [16, 128], strides = [1, 1]} : vector<18x128xbf16> to vector<16x128xbf16>
    %146 = vector.extract_strided_slice %144 {offsets = [1, 0], sizes = [16, 128], strides = [1, 1]} : vector<18x128xbf16> to vector<16x128xbf16>
    %147 = vector.extract_strided_slice %144 {offsets = [2, 0], sizes = [16, 128], strides = [1, 1]} : vector<18x128xbf16> to vector<16x128xbf16>
    %148 = tpu.concatenate %145, %146, %147 in 1 : vector<16x128xbf16>, vector<16x128xbf16>, vector<16x128xbf16> -> vector<16x384xbf16>
    %c2_78 = arith.constant 2 : index
    %c0_79 = arith.constant 0 : index
    %c0_80 = arith.constant 0 : index
    %149 = vector.load %arg7[%c2_78, %c0_79, %c0_80] : memref<3x384x128xbf16, #tpu.memory_space<vmem>>, vector<1x384x128xbf16>
    %150 = vector.shape_cast %149 : vector<1x384x128xbf16> to vector<384x128xbf16>
    %cst_81 = arith.constant dense<0.000000e+00> : vector<16x128xf32>
    %151 = tpu.matmul %148, %150, %cst_81 {dimension_numbers = #tpu.dot_dimension_numbers<[1], [0], [0], [1], [0, 0, 1, 1], [], []>} : vector<16x384xbf16>, vector<384x128xbf16>, vector<16x128xf32> -> vector<16x128xf32>
    %152 = arith.addf %110, %151 : vector<16x128xf32>
    %153 = vector.broadcast %2 : vector<1x128xf32> to vector<16x128xf32>
    %154 = arith.mulf %152, %153 : vector<16x128xf32>
    %155 = vector.broadcast %3 : vector<1x128xf32> to vector<16x128xf32>
    %156 = arith.addf %154, %155 : vector<16x128xf32>
    %157 = arith.negf %156 : vector<16x128xf32>
    %158 = math.exp %157 : vector<16x128xf32>
    %cst_82 = arith.constant 1.000000e+00 : f32
    %159 = vector.broadcast %cst_82 : f32 to vector<16x128xf32>
    %160 = arith.addf %159, %158 : vector<16x128xf32>
    %161 = arith.divf %159, %160 : vector<16x128xf32>
    %162 = arith.mulf %156, %161 : vector<16x128xf32>
    %c0_83 = arith.constant 0 : index
    %c0_84 = arith.constant 0 : index
    %c0_85 = arith.constant 0 : index
    %c0_86 = arith.constant 0 : index
    %163 = vector.load %arg10[%c0_83, %c0_84, %c0_85, %c0_86] : memref<1x8x16x128xf32, #tpu.memory_space<vmem>>, vector<1x1x16x128xf32>
    %164 = vector.shape_cast %163 : vector<1x1x16x128xf32> to vector<16x128xf32>
    %165 = vector.shape_cast %162 : vector<16x128xf32> to vector<1x1x16x128xf32>
    tpu.vector_store %arg10[%c0_83, %c0_84, %c0_85, %c0_86], %165 {strides = array<i32>} : memref<1x8x16x128xf32, #tpu.memory_space<vmem>>, vector<1x1x16x128xf32>,
    %166 = arith.addf %10, %162 : vector<16x128xf32>
    %cst_87 = arith.constant dense<0.000000e+00> : vector<128xf32>
    %167 = vector.multi_reduction <add>, %162, %cst_87 [0] : vector<16x128xf32> to vector<128xf32>
    %168 = vector.shape_cast %167 : vector<128xf32> to vector<1x128xf32>
    %cst_88 = arith.constant 1.600000e+01 : f32
    %169 = vector.broadcast %cst_88 : f32 to vector<1x128xf32>
    %170 = arith.divf %168, %169 : vector<1x128xf32>
    %cst_89 = arith.constant 0.000000e+00 : f32
    %171 = vector.broadcast %cst_89 : f32 to vector<16x128xf32>
    %c0_90 = arith.constant 0 : index
    %c0_91 = arith.constant 0 : index
    %c0_92 = arith.constant 0 : index
    %172 = vector.load %arg7[%c0_90, %c0_91, %c0_92] : memref<3x384x128xbf16, #tpu.memory_space<vmem>>, vector<1x384x128xbf16>
    %173 = vector.shape_cast %172 : vector<1x384x128xbf16> to vector<384x128xbf16>
    %cst_93 = arith.constant dense<0.000000e+00> : vector<16x128xf32>
    %174 = tpu.matmul %106, %173, %cst_93 {dimension_numbers = #tpu.dot_dimension_numbers<[1], [0], [0], [1], [0, 0, 1, 1], [], []>} : vector<16x384xbf16>, vector<384x128xbf16>, vector<16x128xf32> -> vector<16x128xf32>
    %175 = arith.addf %171, %174 : vector<16x128xf32>
    %c1_94 = arith.constant 1 : index
    %c0_95 = arith.constant 0 : index
    %c0_96 = arith.constant 0 : index
    %176 = vector.load %arg7[%c1_94, %c0_95, %c0_96] : memref<3x384x128xbf16, #tpu.memory_space<vmem>>, vector<1x384x128xbf16>
    %177 = vector.shape_cast %176 : vector<1x384x128xbf16> to vector<384x128xbf16>
    %cst_97 = arith.constant dense<0.000000e+00> : vector<16x128xf32>
    %178 = tpu.matmul %148, %177, %cst_97 {dimension_numbers = #tpu.dot_dimension_numbers<[1], [0], [0], [1], [0, 0, 1, 1], [], []>} : vector<16x384xbf16>, vector<384x128xbf16>, vector<16x128xf32> -> vector<16x128xf32>
    %179 = arith.addf %175, %178 : vector<16x128xf32>
    %cst_98 = arith.constant 0.000000e+00 : f32
    %180 = vector.broadcast %cst_98 : f32 to vector<18x128xf32>
    %c0_99 = arith.constant 0 : index
    %c0_100 = arith.constant 0 : index
    %c0_101 = arith.constant 0 : index
    %181 = vector.load %arg4[%c0_99, %c0_100, %c0_101] : memref<3x384x128xbf16, #tpu.memory_space<vmem>>, vector<1x384x128xbf16>
    %182 = vector.shape_cast %181 : vector<1x384x128xbf16> to vector<384x128xbf16>
    %cst_102 = arith.constant dense<0.000000e+00> : vector<18x128xf32>
    %183 = tpu.matmul %83, %182, %cst_102 {dimension_numbers = #tpu.dot_dimension_numbers<[1], [0], [0], [1], [0, 0, 1, 1], [], []>} : vector<18x384xbf16>, vector<384x128xbf16>, vector<18x128xf32> -> vector<18x128xf32>
    %184 = arith.addf %180, %183 : vector<18x128xf32>
    %c1_103 = arith.constant 1 : index
    %c0_104 = arith.constant 0 : index
    %c0_105 = arith.constant 0 : index
    %185 = vector.load %arg4[%c1_103, %c0_104, %c0_105] : memref<3x384x128xbf16, #tpu.memory_space<vmem>>, vector<1x384x128xbf16>
    %186 = vector.shape_cast %185 : vector<1x384x128xbf16> to vector<384x128xbf16>
    %cst_106 = arith.constant dense<0.000000e+00> : vector<18x128xf32>
    %187 = tpu.matmul %125, %186, %cst_106 {dimension_numbers = #tpu.dot_dimension_numbers<[1], [0], [0], [1], [0, 0, 1, 1], [], []>} : vector<18x384xbf16>, vector<384x128xbf16>, vector<18x128xf32> -> vector<18x128xf32>
    %188 = arith.addf %184, %187 : vector<18x128xf32>
    %c0_107 = arith.constant 0 : index
    %c5 = arith.constant 5 : index
    %c0_108 = arith.constant 0 : index
    %c0_109 = arith.constant 0 : index
    %189 = vector.load %arg2[%c0_107, %c5, %c0_108, %c0_109] : memref<1x8x20x128xbf16, #tpu.memory_space<vmem>>, vector<1x1x20x128xbf16>
    %190 = vector.shape_cast %189 : vector<1x1x20x128xbf16> to vector<20x128xbf16>
    %191 = vector.extract_strided_slice %190 {offsets = [0, 0], sizes = [18, 128], strides = [1, 1]} : vector<20x128xbf16> to vector<18x128xbf16>
    %192 = vector.extract_strided_slice %190 {offsets = [1, 0], sizes = [18, 128], strides = [1, 1]} : vector<20x128xbf16> to vector<18x128xbf16>
    %193 = vector.extract_strided_slice %190 {offsets = [2, 0], sizes = [18, 128], strides = [1, 1]} : vector<20x128xbf16> to vector<18x128xbf16>
    %194 = tpu.concatenate %191, %192, %193 in 1 : vector<18x128xbf16>, vector<18x128xbf16>, vector<18x128xbf16> -> vector<18x384xbf16>
    %c2_110 = arith.constant 2 : index
    %c0_111 = arith.constant 0 : index
    %c0_112 = arith.constant 0 : index
    %195 = vector.load %arg4[%c2_110, %c0_111, %c0_112] : memref<3x384x128xbf16, #tpu.memory_space<vmem>>, vector<1x384x128xbf16>
    %196 = vector.shape_cast %195 : vector<1x384x128xbf16> to vector<384x128xbf16>
    %cst_113 = arith.constant dense<0.000000e+00> : vector<18x128xf32>
    %197 = tpu.matmul %194, %196, %cst_113 {dimension_numbers = #tpu.dot_dimension_numbers<[1], [0], [0], [1], [0, 0, 1, 1], [], []>} : vector<18x384xbf16>, vector<384x128xbf16>, vector<18x128xf32> -> vector<18x128xf32>
    %198 = arith.addf %188, %197 : vector<18x128xf32>
    %199 = vector.broadcast %0 : vector<1x128xf32> to vector<18x128xf32>
    %200 = arith.mulf %198, %199 : vector<18x128xf32>
    %201 = vector.broadcast %1 : vector<1x128xf32> to vector<18x128xf32>
    %202 = arith.addf %200, %201 : vector<18x128xf32>
    %203 = arith.negf %202 : vector<18x128xf32>
    %204 = math.exp %203 : vector<18x128xf32>
    %cst_114 = arith.constant 1.000000e+00 : f32
    %205 = vector.broadcast %cst_114 : f32 to vector<18x128xf32>
    %206 = arith.addf %205, %204 : vector<18x128xf32>
    %207 = arith.divf %205, %206 : vector<18x128xf32>
    %208 = arith.mulf %202, %207 : vector<18x128xf32>
    %cst_115 = arith.constant 0.000000e+00 : f32
    %209 = vector.shape_cast %9 : vector<18x1xi1> to vector<18x1xi1>
    %210 = vector.broadcast %209 : vector<18x1xi1> to vector<18x128xi1>
    %211 = vector.broadcast %cst_115 : f32 to vector<18x128xf32>
    %212 = arith.select %210, %208, %211 : vector<18x128xi1>, vector<18x128xf32>
    %213 = arith.truncf %212 : vector<18x128xf32> to vector<18x128xbf16>
    %214 = vector.extract_strided_slice %213 {offsets = [0, 0], sizes = [16, 128], strides = [1, 1]} : vector<18x128xbf16> to vector<16x128xbf16>
    %215 = vector.extract_strided_slice %213 {offsets = [1, 0], sizes = [16, 128], strides = [1, 1]} : vector<18x128xbf16> to vector<16x128xbf16>
    %216 = vector.extract_strided_slice %213 {offsets = [2, 0], sizes = [16, 128], strides = [1, 1]} : vector<18x128xbf16> to vector<16x128xbf16>
    %217 = tpu.concatenate %214, %215, %216 in 1 : vector<16x128xbf16>, vector<16x128xbf16>, vector<16x128xbf16> -> vector<16x384xbf16>
    %c2_116 = arith.constant 2 : index
    %c0_117 = arith.constant 0 : index
    %c0_118 = arith.constant 0 : index
    %218 = vector.load %arg7[%c2_116, %c0_117, %c0_118] : memref<3x384x128xbf16, #tpu.memory_space<vmem>>, vector<1x384x128xbf16>
    %219 = vector.shape_cast %218 : vector<1x384x128xbf16> to vector<384x128xbf16>
    %cst_119 = arith.constant dense<0.000000e+00> : vector<16x128xf32>
    %220 = tpu.matmul %217, %219, %cst_119 {dimension_numbers = #tpu.dot_dimension_numbers<[1], [0], [0], [1], [0, 0, 1, 1], [], []>} : vector<16x384xbf16>, vector<384x128xbf16>, vector<16x128xf32> -> vector<16x128xf32>
    %221 = arith.addf %179, %220 : vector<16x128xf32>
    %222 = vector.broadcast %2 : vector<1x128xf32> to vector<16x128xf32>
    %223 = arith.mulf %221, %222 : vector<16x128xf32>
    %224 = vector.broadcast %3 : vector<1x128xf32> to vector<16x128xf32>
    %225 = arith.addf %223, %224 : vector<16x128xf32>
    %226 = arith.negf %225 : vector<16x128xf32>
    %227 = math.exp %226 : vector<16x128xf32>
    %cst_120 = arith.constant 1.000000e+00 : f32
    %228 = vector.broadcast %cst_120 : f32 to vector<16x128xf32>
    %229 = arith.addf %228, %227 : vector<16x128xf32>
    %230 = arith.divf %228, %229 : vector<16x128xf32>
    %231 = arith.mulf %225, %230 : vector<16x128xf32>
    %c0_121 = arith.constant 0 : index
    %c1_122 = arith.constant 1 : index
    %c0_123 = arith.constant 0 : index
    %c0_124 = arith.constant 0 : index
    %232 = vector.load %arg10[%c0_121, %c1_122, %c0_123, %c0_124] : memref<1x8x16x128xf32, #tpu.memory_space<vmem>>, vector<1x1x16x128xf32>
    %233 = vector.shape_cast %232 : vector<1x1x16x128xf32> to vector<16x128xf32>
    %234 = vector.shape_cast %231 : vector<16x128xf32> to vector<1x1x16x128xf32>
    tpu.vector_store %arg10[%c0_121, %c1_122, %c0_123, %c0_124], %234 {strides = array<i32>} : memref<1x8x16x128xf32, #tpu.memory_space<vmem>>, vector<1x1x16x128xf32>,
    %235 = arith.addf %166, %231 : vector<16x128xf32>
    %cst_125 = arith.constant dense<0.000000e+00> : vector<128xf32>
    %236 = vector.multi_reduction <add>, %231, %cst_125 [0] : vector<16x128xf32> to vector<128xf32>
    %237 = vector.shape_cast %236 : vector<128xf32> to vector<1x128xf32>
    %cst_126 = arith.constant 1.600000e+01 : f32
    %238 = vector.broadcast %cst_126 : f32 to vector<1x128xf32>
    %239 = arith.divf %237, %238 : vector<1x128xf32>
    %cst_127 = arith.constant 0.000000e+00 : f32
    %240 = vector.broadcast %cst_127 : f32 to vector<16x128xf32>
    %c0_128 = arith.constant 0 : index
    %c0_129 = arith.constant 0 : index
    %c0_130 = arith.constant 0 : index
    %241 = vector.load %arg7[%c0_128, %c0_129, %c0_130] : memref<3x384x128xbf16, #tpu.memory_space<vmem>>, vector<1x384x128xbf16>
    %242 = vector.shape_cast %241 : vector<1x384x128xbf16> to vector<384x128xbf16>
    %cst_131 = arith.constant dense<0.000000e+00> : vector<16x128xf32>
    %243 = tpu.matmul %148, %242, %cst_131 {dimension_numbers = #tpu.dot_dimension_numbers<[1], [0], [0], [1], [0, 0, 1, 1], [], []>} : vector<16x384xbf16>, vector<384x128xbf16>, vector<16x128xf32> -> vector<16x128xf32>
    %244 = arith.addf %240, %243 : vector<16x128xf32>
    %c1_132 = arith.constant 1 : index
    %c0_133 = arith.constant 0 : index
    %c0_134 = arith.constant 0 : index
    %245 = vector.load %arg7[%c1_132, %c0_133, %c0_134] : memref<3x384x128xbf16, #tpu.memory_space<vmem>>, vector<1x384x128xbf16>
    %246 = vector.shape_cast %245 : vector<1x384x128xbf16> to vector<384x128xbf16>
    %cst_135 = arith.constant dense<0.000000e+00> : vector<16x128xf32>
    %247 = tpu.matmul %217, %246, %cst_135 {dimension_numbers = #tpu.dot_dimension_numbers<[1], [0], [0], [1], [0, 0, 1, 1], [], []>} : vector<16x384xbf16>, vector<384x128xbf16>, vector<16x128xf32> -> vector<16x128xf32>
    %248 = arith.addf %244, %247 : vector<16x128xf32>
    %cst_136 = arith.constant 0.000000e+00 : f32
    %249 = vector.broadcast %cst_136 : f32 to vector<18x128xf32>
    %c0_137 = arith.constant 0 : index
    %c0_138 = arith.constant 0 : index
    %c0_139 = arith.constant 0 : index
    %250 = vector.load %arg4[%c0_137, %c0_138, %c0_139] : memref<3x384x128xbf16, #tpu.memory_space<vmem>>, vector<1x384x128xbf16>
    %251 = vector.shape_cast %250 : vector<1x384x128xbf16> to vector<384x128xbf16>
    %cst_140 = arith.constant dense<0.000000e+00> : vector<18x128xf32>
    %252 = tpu.matmul %125, %251, %cst_140 {dimension_numbers = #tpu.dot_dimension_numbers<[1], [0], [0], [1], [0, 0, 1, 1], [], []>} : vector<18x384xbf16>, vector<384x128xbf16>, vector<18x128xf32> -> vector<18x128xf32>
    %253 = arith.addf %249, %252 : vector<18x128xf32>
    %c1_141 = arith.constant 1 : index
    %c0_142 = arith.constant 0 : index
    %c0_143 = arith.constant 0 : index
    %254 = vector.load %arg4[%c1_141, %c0_142, %c0_143] : memref<3x384x128xbf16, #tpu.memory_space<vmem>>, vector<1x384x128xbf16>
    %255 = vector.shape_cast %254 : vector<1x384x128xbf16> to vector<384x128xbf16>
    %cst_144 = arith.constant dense<0.000000e+00> : vector<18x128xf32>
    %256 = tpu.matmul %194, %255, %cst_144 {dimension_numbers = #tpu.dot_dimension_numbers<[1], [0], [0], [1], [0, 0, 1, 1], [], []>} : vector<18x384xbf16>, vector<384x128xbf16>, vector<18x128xf32> -> vector<18x128xf32>
    %257 = arith.addf %253, %256 : vector<18x128xf32>
    %c0_145 = arith.constant 0 : index
    %c6 = arith.constant 6 : index
    %c0_146 = arith.constant 0 : index
    %c0_147 = arith.constant 0 : index
    %258 = vector.load %arg2[%c0_145, %c6, %c0_146, %c0_147] : memref<1x8x20x128xbf16, #tpu.memory_space<vmem>>, vector<1x1x20x128xbf16>
    %259 = vector.shape_cast %258 : vector<1x1x20x128xbf16> to vector<20x128xbf16>
    %260 = vector.extract_strided_slice %259 {offsets = [0, 0], sizes = [18, 128], strides = [1, 1]} : vector<20x128xbf16> to vector<18x128xbf16>
    %261 = vector.extract_strided_slice %259 {offsets = [1, 0], sizes = [18, 128], strides = [1, 1]} : vector<20x128xbf16> to vector<18x128xbf16>
    %262 = vector.extract_strided_slice %259 {offsets = [2, 0], sizes = [18, 128], strides = [1, 1]} : vector<20x128xbf16> to vector<18x128xbf16>
    %263 = tpu.concatenate %260, %261, %262 in 1 : vector<18x128xbf16>, vector<18x128xbf16>, vector<18x128xbf16> -> vector<18x384xbf16>
    %c2_148 = arith.constant 2 : index
    %c0_149 = arith.constant 0 : index
    %c0_150 = arith.constant 0 : index
    %264 = vector.load %arg4[%c2_148, %c0_149, %c0_150] : memref<3x384x128xbf16, #tpu.memory_space<vmem>>, vector<1x384x128xbf16>
    %265 = vector.shape_cast %264 : vector<1x384x128xbf16> to vector<384x128xbf16>
    %cst_151 = arith.constant dense<0.000000e+00> : vector<18x128xf32>
    %266 = tpu.matmul %263, %265, %cst_151 {dimension_numbers = #tpu.dot_dimension_numbers<[1], [0], [0], [1], [0, 0, 1, 1], [], []>} : vector<18x384xbf16>, vector<384x128xbf16>, vector<18x128xf32> -> vector<18x128xf32>
    %267 = arith.addf %257, %266 : vector<18x128xf32>
    %268 = vector.broadcast %0 : vector<1x128xf32> to vector<18x128xf32>
    %269 = arith.mulf %267, %268 : vector<18x128xf32>
    %270 = vector.broadcast %1 : vector<1x128xf32> to vector<18x128xf32>
    %271 = arith.addf %269, %270 : vector<18x128xf32>
    %272 = arith.negf %271 : vector<18x128xf32>
    %273 = math.exp %272 : vector<18x128xf32>
    %cst_152 = arith.constant 1.000000e+00 : f32
    %274 = vector.broadcast %cst_152 : f32 to vector<18x128xf32>
    %275 = arith.addf %274, %273 : vector<18x128xf32>
    %276 = arith.divf %274, %275 : vector<18x128xf32>
    %277 = arith.mulf %271, %276 : vector<18x128xf32>
    %cst_153 = arith.constant 0.000000e+00 : f32
    %278 = vector.shape_cast %9 : vector<18x1xi1> to vector<18x1xi1>
    %279 = vector.broadcast %278 : vector<18x1xi1> to vector<18x128xi1>
    %280 = vector.broadcast %cst_153 : f32 to vector<18x128xf32>
    %281 = arith.select %279, %277, %280 : vector<18x128xi1>, vector<18x128xf32>
    %282 = arith.truncf %281 : vector<18x128xf32> to vector<18x128xbf16>
    %283 = vector.extract_strided_slice %282 {offsets = [0, 0], sizes = [16, 128], strides = [1, 1]} : vector<18x128xbf16> to vector<16x128xbf16>
    %284 = vector.extract_strided_slice %282 {offsets = [1, 0], sizes = [16, 128], strides = [1, 1]} : vector<18x128xbf16> to vector<16x128xbf16>
    %285 = vector.extract_strided_slice %282 {offsets = [2, 0], sizes = [16, 128], strides = [1, 1]} : vector<18x128xbf16> to vector<16x128xbf16>
    %286 = tpu.concatenate %283, %284, %285 in 1 : vector<16x128xbf16>, vector<16x128xbf16>, vector<16x128xbf16> -> vector<16x384xbf16>
    %c2_154 = arith.constant 2 : index
    %c0_155 = arith.constant 0 : index
    %c0_156 = arith.constant 0 : index
    %287 = vector.load %arg7[%c2_154, %c0_155, %c0_156] : memref<3x384x128xbf16, #tpu.memory_space<vmem>>, vector<1x384x128xbf16>
    %288 = vector.shape_cast %287 : vector<1x384x128xbf16> to vector<384x128xbf16>
    %cst_157 = arith.constant dense<0.000000e+00> : vector<16x128xf32>
    %289 = tpu.matmul %286, %288, %cst_157 {dimension_numbers = #tpu.dot_dimension_numbers<[1], [0], [0], [1], [0, 0, 1, 1], [], []>} : vector<16x384xbf16>, vector<384x128xbf16>, vector<16x128xf32> -> vector<16x128xf32>
    %290 = arith.addf %248, %289 : vector<16x128xf32>
    %291 = vector.broadcast %2 : vector<1x128xf32> to vector<16x128xf32>
    %292 = arith.mulf %290, %291 : vector<16x128xf32>
    %293 = vector.broadcast %3 : vector<1x128xf32> to vector<16x128xf32>
    %294 = arith.addf %292, %293 : vector<16x128xf32>
    %295 = arith.negf %294 : vector<16x128xf32>
    %296 = math.exp %295 : vector<16x128xf32>
    %cst_158 = arith.constant 1.000000e+00 : f32
    %297 = vector.broadcast %cst_158 : f32 to vector<16x128xf32>
    %298 = arith.addf %297, %296 : vector<16x128xf32>
    %299 = arith.divf %297, %298 : vector<16x128xf32>
    %300 = arith.mulf %294, %299 : vector<16x128xf32>
    %c0_159 = arith.constant 0 : index
    %c2_160 = arith.constant 2 : index
    %c0_161 = arith.constant 0 : index
    %c0_162 = arith.constant 0 : index
    %301 = vector.load %arg10[%c0_159, %c2_160, %c0_161, %c0_162] : memref<1x8x16x128xf32, #tpu.memory_space<vmem>>, vector<1x1x16x128xf32>
    %302 = vector.shape_cast %301 : vector<1x1x16x128xf32> to vector<16x128xf32>
    %303 = vector.shape_cast %300 : vector<16x128xf32> to vector<1x1x16x128xf32>
    tpu.vector_store %arg10[%c0_159, %c2_160, %c0_161, %c0_162], %303 {strides = array<i32>} : memref<1x8x16x128xf32, #tpu.memory_space<vmem>>, vector<1x1x16x128xf32>,
    %304 = arith.addf %235, %300 : vector<16x128xf32>
    %cst_163 = arith.constant dense<0.000000e+00> : vector<128xf32>
    %305 = vector.multi_reduction <add>, %300, %cst_163 [0] : vector<16x128xf32> to vector<128xf32>
    %306 = vector.shape_cast %305 : vector<128xf32> to vector<1x128xf32>
    %cst_164 = arith.constant 1.600000e+01 : f32
    %307 = vector.broadcast %cst_164 : f32 to vector<1x128xf32>
    %308 = arith.divf %306, %307 : vector<1x128xf32>
    %cst_165 = arith.constant 0.000000e+00 : f32
    %309 = vector.broadcast %cst_165 : f32 to vector<16x128xf32>
    %c0_166 = arith.constant 0 : index
    %c0_167 = arith.constant 0 : index
    %c0_168 = arith.constant 0 : index
    %310 = vector.load %arg7[%c0_166, %c0_167, %c0_168] : memref<3x384x128xbf16, #tpu.memory_space<vmem>>, vector<1x384x128xbf16>
    %311 = vector.shape_cast %310 : vector<1x384x128xbf16> to vector<384x128xbf16>
    %cst_169 = arith.constant dense<0.000000e+00> : vector<16x128xf32>
    %312 = tpu.matmul %217, %311, %cst_169 {dimension_numbers = #tpu.dot_dimension_numbers<[1], [0], [0], [1], [0, 0, 1, 1], [], []>} : vector<16x384xbf16>, vector<384x128xbf16>, vector<16x128xf32> -> vector<16x128xf32>
    %313 = arith.addf %309, %312 : vector<16x128xf32>
    %c1_170 = arith.constant 1 : index
    %c0_171 = arith.constant 0 : index
    %c0_172 = arith.constant 0 : index
    %314 = vector.load %arg7[%c1_170, %c0_171, %c0_172] : memref<3x384x128xbf16, #tpu.memory_space<vmem>>, vector<1x384x128xbf16>
    %315 = vector.shape_cast %314 : vector<1x384x128xbf16> to vector<384x128xbf16>
    %cst_173 = arith.constant dense<0.000000e+00> : vector<16x128xf32>
    %316 = tpu.matmul %286, %315, %cst_173 {dimension_numbers = #tpu.dot_dimension_numbers<[1], [0], [0], [1], [0, 0, 1, 1], [], []>} : vector<16x384xbf16>, vector<384x128xbf16>, vector<16x128xf32> -> vector<16x128xf32>
    %317 = arith.addf %313, %316 : vector<16x128xf32>
    %cst_174 = arith.constant 0.000000e+00 : f32
    %318 = vector.broadcast %cst_174 : f32 to vector<18x128xf32>
    %c0_175 = arith.constant 0 : index
    %c0_176 = arith.constant 0 : index
    %c0_177 = arith.constant 0 : index
    %319 = vector.load %arg4[%c0_175, %c0_176, %c0_177] : memref<3x384x128xbf16, #tpu.memory_space<vmem>>, vector<1x384x128xbf16>
    %320 = vector.shape_cast %319 : vector<1x384x128xbf16> to vector<384x128xbf16>
    %cst_178 = arith.constant dense<0.000000e+00> : vector<18x128xf32>
    %321 = tpu.matmul %194, %320, %cst_178 {dimension_numbers = #tpu.dot_dimension_numbers<[1], [0], [0], [1], [0, 0, 1, 1], [], []>} : vector<18x384xbf16>, vector<384x128xbf16>, vector<18x128xf32> -> vector<18x128xf32>
    %322 = arith.addf %318, %321 : vector<18x128xf32>
    %c1_179 = arith.constant 1 : index
    %c0_180 = arith.constant 0 : index
    %c0_181 = arith.constant 0 : index
    %323 = vector.load %arg4[%c1_179, %c0_180, %c0_181] : memref<3x384x128xbf16, #tpu.memory_space<vmem>>, vector<1x384x128xbf16>
    %324 = vector.shape_cast %323 : vector<1x384x128xbf16> to vector<384x128xbf16>
    %cst_182 = arith.constant dense<0.000000e+00> : vector<18x128xf32>
    %325 = tpu.matmul %263, %324, %cst_182 {dimension_numbers = #tpu.dot_dimension_numbers<[1], [0], [0], [1], [0, 0, 1, 1], [], []>} : vector<18x384xbf16>, vector<384x128xbf16>, vector<18x128xf32> -> vector<18x128xf32>
    %326 = arith.addf %322, %325 : vector<18x128xf32>
    %c0_183 = arith.constant 0 : index
    %c7 = arith.constant 7 : index
    %c0_184 = arith.constant 0 : index
    %c0_185 = arith.constant 0 : index
    %327 = vector.load %arg2[%c0_183, %c7, %c0_184, %c0_185] : memref<1x8x20x128xbf16, #tpu.memory_space<vmem>>, vector<1x1x20x128xbf16>
    %328 = vector.shape_cast %327 : vector<1x1x20x128xbf16> to vector<20x128xbf16>
    %329 = vector.extract_strided_slice %328 {offsets = [0, 0], sizes = [18, 128], strides = [1, 1]} : vector<20x128xbf16> to vector<18x128xbf16>
    %330 = vector.extract_strided_slice %328 {offsets = [1, 0], sizes = [18, 128], strides = [1, 1]} : vector<20x128xbf16> to vector<18x128xbf16>
    %331 = vector.extract_strided_slice %328 {offsets = [2, 0], sizes = [18, 128], strides = [1, 1]} : vector<20x128xbf16> to vector<18x128xbf16>
    %332 = tpu.concatenate %329, %330, %331 in 1 : vector<18x128xbf16>, vector<18x128xbf16>, vector<18x128xbf16> -> vector<18x384xbf16>
    %c2_186 = arith.constant 2 : index
    %c0_187 = arith.constant 0 : index
    %c0_188 = arith.constant 0 : index
    %333 = vector.load %arg4[%c2_186, %c0_187, %c0_188] : memref<3x384x128xbf16, #tpu.memory_space<vmem>>, vector<1x384x128xbf16>
    %334 = vector.shape_cast %333 : vector<1x384x128xbf16> to vector<384x128xbf16>
    %cst_189 = arith.constant dense<0.000000e+00> : vector<18x128xf32>
    %335 = tpu.matmul %332, %334, %cst_189 {dimension_numbers = #tpu.dot_dimension_numbers<[1], [0], [0], [1], [0, 0, 1, 1], [], []>} : vector<18x384xbf16>, vector<384x128xbf16>, vector<18x128xf32> -> vector<18x128xf32>
    %336 = arith.addf %326, %335 : vector<18x128xf32>
    %337 = vector.broadcast %0 : vector<1x128xf32> to vector<18x128xf32>
    %338 = arith.mulf %336, %337 : vector<18x128xf32>
    %339 = vector.broadcast %1 : vector<1x128xf32> to vector<18x128xf32>
    %340 = arith.addf %338, %339 : vector<18x128xf32>
    %341 = arith.negf %340 : vector<18x128xf32>
    %342 = math.exp %341 : vector<18x128xf32>
    %cst_190 = arith.constant 1.000000e+00 : f32
    %343 = vector.broadcast %cst_190 : f32 to vector<18x128xf32>
    %344 = arith.addf %343, %342 : vector<18x128xf32>
    %345 = arith.divf %343, %344 : vector<18x128xf32>
    %346 = arith.mulf %340, %345 : vector<18x128xf32>
    %cst_191 = arith.constant 0.000000e+00 : f32
    %347 = vector.shape_cast %9 : vector<18x1xi1> to vector<18x1xi1>
    %348 = vector.broadcast %347 : vector<18x1xi1> to vector<18x128xi1>
    %349 = vector.broadcast %cst_191 : f32 to vector<18x128xf32>
    %350 = arith.select %348, %346, %349 : vector<18x128xi1>, vector<18x128xf32>
    %351 = arith.truncf %350 : vector<18x128xf32> to vector<18x128xbf16>
    %352 = vector.extract_strided_slice %351 {offsets = [0, 0], sizes = [16, 128], strides = [1, 1]} : vector<18x128xbf16> to vector<16x128xbf16>
    %353 = vector.extract_strided_slice %351 {offsets = [1, 0], sizes = [16, 128], strides = [1, 1]} : vector<18x128xbf16> to vector<16x128xbf16>
    %354 = vector.extract_strided_slice %351 {offsets = [2, 0], sizes = [16, 128], strides = [1, 1]} : vector<18x128xbf16> to vector<16x128xbf16>
    %355 = tpu.concatenate %352, %353, %354 in 1 : vector<16x128xbf16>, vector<16x128xbf16>, vector<16x128xbf16> -> vector<16x384xbf16>
    %c2_192 = arith.constant 2 : index
    %c0_193 = arith.constant 0 : index
    %c0_194 = arith.constant 0 : index
    %356 = vector.load %arg7[%c2_192, %c0_193, %c0_194] : memref<3x384x128xbf16, #tpu.memory_space<vmem>>, vector<1x384x128xbf16>
    %357 = vector.shape_cast %356 : vector<1x384x128xbf16> to vector<384x128xbf16>
    %cst_195 = arith.constant dense<0.000000e+00> : vector<16x128xf32>
    %358 = tpu.matmul %355, %357, %cst_195 {dimension_numbers = #tpu.dot_dimension_numbers<[1], [0], [0], [1], [0, 0, 1, 1], [], []>} : vector<16x384xbf16>, vector<384x128xbf16>, vector<16x128xf32> -> vector<16x128xf32>
    %359 = arith.addf %317, %358 : vector<16x128xf32>
    %360 = vector.broadcast %2 : vector<1x128xf32> to vector<16x128xf32>
    %361 = arith.mulf %359, %360 : vector<16x128xf32>
    %362 = vector.broadcast %3 : vector<1x128xf32> to vector<16x128xf32>
    %363 = arith.addf %361, %362 : vector<16x128xf32>
    %364 = arith.negf %363 : vector<16x128xf32>
    %365 = math.exp %364 : vector<16x128xf32>
    %cst_196 = arith.constant 1.000000e+00 : f32
    %366 = vector.broadcast %cst_196 : f32 to vector<16x128xf32>
    %367 = arith.addf %366, %365 : vector<16x128xf32>
    %368 = arith.divf %366, %367 : vector<16x128xf32>
    %369 = arith.mulf %363, %368 : vector<16x128xf32>
    %c0_197 = arith.constant 0 : index
    %c3_198 = arith.constant 3 : index
    %c0_199 = arith.constant 0 : index
    %c0_200 = arith.constant 0 : index
    %370 = vector.load %arg10[%c0_197, %c3_198, %c0_199, %c0_200] : memref<1x8x16x128xf32, #tpu.memory_space<vmem>>, vector<1x1x16x128xf32>
    %371 = vector.shape_cast %370 : vector<1x1x16x128xf32> to vector<16x128xf32>
    %372 = vector.shape_cast %369 : vector<16x128xf32> to vector<1x1x16x128xf32>
    tpu.vector_store %arg10[%c0_197, %c3_198, %c0_199, %c0_200], %372 {strides = array<i32>} : memref<1x8x16x128xf32, #tpu.memory_space<vmem>>, vector<1x1x16x128xf32>,
    %373 = arith.addf %304, %369 : vector<16x128xf32>
    %cst_201 = arith.constant dense<0.000000e+00> : vector<128xf32>
    %374 = vector.multi_reduction <add>, %369, %cst_201 [0] : vector<16x128xf32> to vector<128xf32>
    %375 = vector.shape_cast %374 : vector<128xf32> to vector<1x128xf32>
    %cst_202 = arith.constant 1.600000e+01 : f32
    %376 = vector.broadcast %cst_202 : f32 to vector<1x128xf32>
    %377 = arith.divf %375, %376 : vector<1x128xf32>
    %cst_203 = arith.constant 0.000000e+00 : f32
    %378 = vector.broadcast %cst_203 : f32 to vector<16x128xf32>
    %c0_204 = arith.constant 0 : index
    %c0_205 = arith.constant 0 : index
    %c0_206 = arith.constant 0 : index
    %379 = vector.load %arg7[%c0_204, %c0_205, %c0_206] : memref<3x384x128xbf16, #tpu.memory_space<vmem>>, vector<1x384x128xbf16>
    %380 = vector.shape_cast %379 : vector<1x384x128xbf16> to vector<384x128xbf16>
    %cst_207 = arith.constant dense<0.000000e+00> : vector<16x128xf32>
    %381 = tpu.matmul %286, %380, %cst_207 {dimension_numbers = #tpu.dot_dimension_numbers<[1], [0], [0], [1], [0, 0, 1, 1], [], []>} : vector<16x384xbf16>, vector<384x128xbf16>, vector<16x128xf32> -> vector<16x128xf32>
    %382 = arith.addf %378, %381 : vector<16x128xf32>
    %c1_208 = arith.constant 1 : index
    %c0_209 = arith.constant 0 : index
    %c0_210 = arith.constant 0 : index
    %383 = vector.load %arg7[%c1_208, %c0_209, %c0_210] : memref<3x384x128xbf16, #tpu.memory_space<vmem>>, vector<1x384x128xbf16>
    %384 = vector.shape_cast %383 : vector<1x384x128xbf16> to vector<384x128xbf16>
    %cst_211 = arith.constant dense<0.000000e+00> : vector<16x128xf32>
    %385 = tpu.matmul %355, %384, %cst_211 {dimension_numbers = #tpu.dot_dimension_numbers<[1], [0], [0], [1], [0, 0, 1, 1], [], []>} : vector<16x384xbf16>, vector<384x128xbf16>, vector<16x128xf32> -> vector<16x128xf32>
    %386 = arith.addf %382, %385 : vector<16x128xf32>
    %cst_212 = arith.constant 0.000000e+00 : f32
    %387 = vector.broadcast %cst_212 : f32 to vector<18x128xf32>
    %c0_213 = arith.constant 0 : index
    %c0_214 = arith.constant 0 : index
    %c0_215 = arith.constant 0 : index
    %388 = vector.load %arg4[%c0_213, %c0_214, %c0_215] : memref<3x384x128xbf16, #tpu.memory_space<vmem>>, vector<1x384x128xbf16>
    %389 = vector.shape_cast %388 : vector<1x384x128xbf16> to vector<384x128xbf16>
    %cst_216 = arith.constant dense<0.000000e+00> : vector<18x128xf32>
    %390 = tpu.matmul %263, %389, %cst_216 {dimension_numbers = #tpu.dot_dimension_numbers<[1], [0], [0], [1], [0, 0, 1, 1], [], []>} : vector<18x384xbf16>, vector<384x128xbf16>, vector<18x128xf32> -> vector<18x128xf32>
    %391 = arith.addf %387, %390 : vector<18x128xf32>
    %c1_217 = arith.constant 1 : index
    %c0_218 = arith.constant 0 : index
    %c0_219 = arith.constant 0 : index
    %392 = vector.load %arg4[%c1_217, %c0_218, %c0_219] : memref<3x384x128xbf16, #tpu.memory_space<vmem>>, vector<1x384x128xbf16>
    %393 = vector.shape_cast %392 : vector<1x384x128xbf16> to vector<384x128xbf16>
    %cst_220 = arith.constant dense<0.000000e+00> : vector<18x128xf32>
    %394 = tpu.matmul %332, %393, %cst_220 {dimension_numbers = #tpu.dot_dimension_numbers<[1], [0], [0], [1], [0, 0, 1, 1], [], []>} : vector<18x384xbf16>, vector<384x128xbf16>, vector<18x128xf32> -> vector<18x128xf32>
    %395 = arith.addf %391, %394 : vector<18x128xf32>
    %c0_221 = arith.constant 0 : index
    %c0_222 = arith.constant 0 : index
    %c0_223 = arith.constant 0 : index
    %c0_224 = arith.constant 0 : index
    %396 = vector.load %arg3[%c0_221, %c0_222, %c0_223, %c0_224] : memref<1x4x20x128xbf16, #tpu.memory_space<vmem>>, vector<1x1x20x128xbf16>
    %397 = vector.shape_cast %396 : vector<1x1x20x128xbf16> to vector<20x128xbf16>
    %398 = vector.extract_strided_slice %397 {offsets = [0, 0], sizes = [18, 128], strides = [1, 1]} : vector<20x128xbf16> to vector<18x128xbf16>
    %399 = vector.extract_strided_slice %397 {offsets = [1, 0], sizes = [18, 128], strides = [1, 1]} : vector<20x128xbf16> to vector<18x128xbf16>
    %400 = vector.extract_strided_slice %397 {offsets = [2, 0], sizes = [18, 128], strides = [1, 1]} : vector<20x128xbf16> to vector<18x128xbf16>
    %401 = tpu.concatenate %398, %399, %400 in 1 : vector<18x128xbf16>, vector<18x128xbf16>, vector<18x128xbf16> -> vector<18x384xbf16>
    %c2_225 = arith.constant 2 : index
    %c0_226 = arith.constant 0 : index
    %c0_227 = arith.constant 0 : index
    %402 = vector.load %arg4[%c2_225, %c0_226, %c0_227] : memref<3x384x128xbf16, #tpu.memory_space<vmem>>, vector<1x384x128xbf16>
    %403 = vector.shape_cast %402 : vector<1x384x128xbf16> to vector<384x128xbf16>
    %cst_228 = arith.constant dense<0.000000e+00> : vector<18x128xf32>
    %404 = tpu.matmul %401, %403, %cst_228 {dimension_numbers = #tpu.dot_dimension_numbers<[1], [0], [0], [1], [0, 0, 1, 1], [], []>} : vector<18x384xbf16>, vector<384x128xbf16>, vector<18x128xf32> -> vector<18x128xf32>
    %405 = arith.addf %395, %404 : vector<18x128xf32>
    %406 = vector.broadcast %0 : vector<1x128xf32> to vector<18x128xf32>
    %407 = arith.mulf %405, %406 : vector<18x128xf32>
    %408 = vector.broadcast %1 : vector<1x128xf32> to vector<18x128xf32>
    %409 = arith.addf %407, %408 : vector<18x128xf32>
    %410 = arith.negf %409 : vector<18x128xf32>
    %411 = math.exp %410 : vector<18x128xf32>
    %cst_229 = arith.constant 1.000000e+00 : f32
    %412 = vector.broadcast %cst_229 : f32 to vector<18x128xf32>
    %413 = arith.addf %412, %411 : vector<18x128xf32>
    %414 = arith.divf %412, %413 : vector<18x128xf32>
    %415 = arith.mulf %409, %414 : vector<18x128xf32>
    %cst_230 = arith.constant 0.000000e+00 : f32
    %416 = vector.shape_cast %9 : vector<18x1xi1> to vector<18x1xi1>
    %417 = vector.broadcast %416 : vector<18x1xi1> to vector<18x128xi1>
    %418 = vector.broadcast %cst_230 : f32 to vector<18x128xf32>
    %419 = arith.select %417, %415, %418 : vector<18x128xi1>, vector<18x128xf32>
    %420 = arith.truncf %419 : vector<18x128xf32> to vector<18x128xbf16>
    %421 = vector.extract_strided_slice %420 {offsets = [0, 0], sizes = [16, 128], strides = [1, 1]} : vector<18x128xbf16> to vector<16x128xbf16>
    %422 = vector.extract_strided_slice %420 {offsets = [1, 0], sizes = [16, 128], strides = [1, 1]} : vector<18x128xbf16> to vector<16x128xbf16>
    %423 = vector.extract_strided_slice %420 {offsets = [2, 0], sizes = [16, 128], strides = [1, 1]} : vector<18x128xbf16> to vector<16x128xbf16>
    %424 = tpu.concatenate %421, %422, %423 in 1 : vector<16x128xbf16>, vector<16x128xbf16>, vector<16x128xbf16> -> vector<16x384xbf16>
    %c2_231 = arith.constant 2 : index
    %c0_232 = arith.constant 0 : index
    %c0_233 = arith.constant 0 : index
    %425 = vector.load %arg7[%c2_231, %c0_232, %c0_233] : memref<3x384x128xbf16, #tpu.memory_space<vmem>>, vector<1x384x128xbf16>
    %426 = vector.shape_cast %425 : vector<1x384x128xbf16> to vector<384x128xbf16>
    %cst_234 = arith.constant dense<0.000000e+00> : vector<16x128xf32>
    %427 = tpu.matmul %424, %426, %cst_234 {dimension_numbers = #tpu.dot_dimension_numbers<[1], [0], [0], [1], [0, 0, 1, 1], [], []>} : vector<16x384xbf16>, vector<384x128xbf16>, vector<16x128xf32> -> vector<16x128xf32>
    %428 = arith.addf %386, %427 : vector<16x128xf32>
    %429 = vector.broadcast %2 : vector<1x128xf32> to vector<16x128xf32>
    %430 = arith.mulf %428, %429 : vector<16x128xf32>
    %431 = vector.broadcast %3 : vector<1x128xf32> to vector<16x128xf32>
    %432 = arith.addf %430, %431 : vector<16x128xf32>
    %433 = arith.negf %432 : vector<16x128xf32>
    %434 = math.exp %433 : vector<16x128xf32>
    %cst_235 = arith.constant 1.000000e+00 : f32
    %435 = vector.broadcast %cst_235 : f32 to vector<16x128xf32>
    %436 = arith.addf %435, %434 : vector<16x128xf32>
    %437 = arith.divf %435, %436 : vector<16x128xf32>
    %438 = arith.mulf %432, %437 : vector<16x128xf32>
    %c0_236 = arith.constant 0 : index
    %c4_237 = arith.constant 4 : index
    %c0_238 = arith.constant 0 : index
    %c0_239 = arith.constant 0 : index
    %439 = vector.load %arg10[%c0_236, %c4_237, %c0_238, %c0_239] : memref<1x8x16x128xf32, #tpu.memory_space<vmem>>, vector<1x1x16x128xf32>
    %440 = vector.shape_cast %439 : vector<1x1x16x128xf32> to vector<16x128xf32>
    %441 = vector.shape_cast %438 : vector<16x128xf32> to vector<1x1x16x128xf32>
    tpu.vector_store %arg10[%c0_236, %c4_237, %c0_238, %c0_239], %441 {strides = array<i32>} : memref<1x8x16x128xf32, #tpu.memory_space<vmem>>, vector<1x1x16x128xf32>,
    %442 = arith.addf %373, %438 : vector<16x128xf32>
    %cst_240 = arith.constant dense<0.000000e+00> : vector<128xf32>
    %443 = vector.multi_reduction <add>, %438, %cst_240 [0] : vector<16x128xf32> to vector<128xf32>
    %444 = vector.shape_cast %443 : vector<128xf32> to vector<1x128xf32>
    %cst_241 = arith.constant 1.600000e+01 : f32
    %445 = vector.broadcast %cst_241 : f32 to vector<1x128xf32>
    %446 = arith.divf %444, %445 : vector<1x128xf32>
    %cst_242 = arith.constant 0.000000e+00 : f32
    %447 = vector.broadcast %cst_242 : f32 to vector<16x128xf32>
    %c0_243 = arith.constant 0 : index
    %c0_244 = arith.constant 0 : index
    %c0_245 = arith.constant 0 : index
    %448 = vector.load %arg7[%c0_243, %c0_244, %c0_245] : memref<3x384x128xbf16, #tpu.memory_space<vmem>>, vector<1x384x128xbf16>
    %449 = vector.shape_cast %448 : vector<1x384x128xbf16> to vector<384x128xbf16>
    %cst_246 = arith.constant dense<0.000000e+00> : vector<16x128xf32>
    %450 = tpu.matmul %355, %449, %cst_246 {dimension_numbers = #tpu.dot_dimension_numbers<[1], [0], [0], [1], [0, 0, 1, 1], [], []>} : vector<16x384xbf16>, vector<384x128xbf16>, vector<16x128xf32> -> vector<16x128xf32>
    %451 = arith.addf %447, %450 : vector<16x128xf32>
    %c1_247 = arith.constant 1 : index
    %c0_248 = arith.constant 0 : index
    %c0_249 = arith.constant 0 : index
    %452 = vector.load %arg7[%c1_247, %c0_248, %c0_249] : memref<3x384x128xbf16, #tpu.memory_space<vmem>>, vector<1x384x128xbf16>
    %453 = vector.shape_cast %452 : vector<1x384x128xbf16> to vector<384x128xbf16>
    %cst_250 = arith.constant dense<0.000000e+00> : vector<16x128xf32>
    %454 = tpu.matmul %424, %453, %cst_250 {dimension_numbers = #tpu.dot_dimension_numbers<[1], [0], [0], [1], [0, 0, 1, 1], [], []>} : vector<16x384xbf16>, vector<384x128xbf16>, vector<16x128xf32> -> vector<16x128xf32>
    %455 = arith.addf %451, %454 : vector<16x128xf32>
    %cst_251 = arith.constant 0.000000e+00 : f32
    %456 = vector.broadcast %cst_251 : f32 to vector<18x128xf32>
    %c0_252 = arith.constant 0 : index
    %c0_253 = arith.constant 0 : index
    %c0_254 = arith.constant 0 : index
    %457 = vector.load %arg4[%c0_252, %c0_253, %c0_254] : memref<3x384x128xbf16, #tpu.memory_space<vmem>>, vector<1x384x128xbf16>
    %458 = vector.shape_cast %457 : vector<1x384x128xbf16> to vector<384x128xbf16>
    %cst_255 = arith.constant dense<0.000000e+00> : vector<18x128xf32>
    %459 = tpu.matmul %332, %458, %cst_255 {dimension_numbers = #tpu.dot_dimension_numbers<[1], [0], [0], [1], [0, 0, 1, 1], [], []>} : vector<18x384xbf16>, vector<384x128xbf16>, vector<18x128xf32> -> vector<18x128xf32>
    %460 = arith.addf %456, %459 : vector<18x128xf32>
    %c1_256 = arith.constant 1 : index
    %c0_257 = arith.constant 0 : index
    %c0_258 = arith.constant 0 : index
    %461 = vector.load %arg4[%c1_256, %c0_257, %c0_258] : memref<3x384x128xbf16, #tpu.memory_space<vmem>>, vector<1x384x128xbf16>
    %462 = vector.shape_cast %461 : vector<1x384x128xbf16> to vector<384x128xbf16>
    %cst_259 = arith.constant dense<0.000000e+00> : vector<18x128xf32>
    %463 = tpu.matmul %401, %462, %cst_259 {dimension_numbers = #tpu.dot_dimension_numbers<[1], [0], [0], [1], [0, 0, 1, 1], [], []>} : vector<18x384xbf16>, vector<384x128xbf16>, vector<18x128xf32> -> vector<18x128xf32>
    %464 = arith.addf %460, %463 : vector<18x128xf32>
    %c0_260 = arith.constant 0 : index
    %c1_261 = arith.constant 1 : index
    %c0_262 = arith.constant 0 : index
    %c0_263 = arith.constant 0 : index
    %465 = vector.load %arg3[%c0_260, %c1_261, %c0_262, %c0_263] : memref<1x4x20x128xbf16, #tpu.memory_space<vmem>>, vector<1x1x20x128xbf16>
    %466 = vector.shape_cast %465 : vector<1x1x20x128xbf16> to vector<20x128xbf16>
    %467 = vector.extract_strided_slice %466 {offsets = [0, 0], sizes = [18, 128], strides = [1, 1]} : vector<20x128xbf16> to vector<18x128xbf16>
    %468 = vector.extract_strided_slice %466 {offsets = [1, 0], sizes = [18, 128], strides = [1, 1]} : vector<20x128xbf16> to vector<18x128xbf16>
    %469 = vector.extract_strided_slice %466 {offsets = [2, 0], sizes = [18, 128], strides = [1, 1]} : vector<20x128xbf16> to vector<18x128xbf16>
    %470 = tpu.concatenate %467, %468, %469 in 1 : vector<18x128xbf16>, vector<18x128xbf16>, vector<18x128xbf16> -> vector<18x384xbf16>
    %c2_264 = arith.constant 2 : index
    %c0_265 = arith.constant 0 : index
    %c0_266 = arith.constant 0 : index
    %471 = vector.load %arg4[%c2_264, %c0_265, %c0_266] : memref<3x384x128xbf16, #tpu.memory_space<vmem>>, vector<1x384x128xbf16>
    %472 = vector.shape_cast %471 : vector<1x384x128xbf16> to vector<384x128xbf16>
    %cst_267 = arith.constant dense<0.000000e+00> : vector<18x128xf32>
    %473 = tpu.matmul %470, %472, %cst_267 {dimension_numbers = #tpu.dot_dimension_numbers<[1], [0], [0], [1], [0, 0, 1, 1], [], []>} : vector<18x384xbf16>, vector<384x128xbf16>, vector<18x128xf32> -> vector<18x128xf32>
    %474 = arith.addf %464, %473 : vector<18x128xf32>
    %475 = vector.broadcast %0 : vector<1x128xf32> to vector<18x128xf32>
    %476 = arith.mulf %474, %475 : vector<18x128xf32>
    %477 = vector.broadcast %1 : vector<1x128xf32> to vector<18x128xf32>
    %478 = arith.addf %476, %477 : vector<18x128xf32>
    %479 = arith.negf %478 : vector<18x128xf32>
    %480 = math.exp %479 : vector<18x128xf32>
    %cst_268 = arith.constant 1.000000e+00 : f32
    %481 = vector.broadcast %cst_268 : f32 to vector<18x128xf32>
    %482 = arith.addf %481, %480 : vector<18x128xf32>
    %483 = arith.divf %481, %482 : vector<18x128xf32>
    %484 = arith.mulf %478, %483 : vector<18x128xf32>
    %cst_269 = arith.constant 0.000000e+00 : f32
    %485 = vector.shape_cast %9 : vector<18x1xi1> to vector<18x1xi1>
    %486 = vector.broadcast %485 : vector<18x1xi1> to vector<18x128xi1>
    %487 = vector.broadcast %cst_269 : f32 to vector<18x128xf32>
    %488 = arith.select %486, %484, %487 : vector<18x128xi1>, vector<18x128xf32>
    %489 = arith.truncf %488 : vector<18x128xf32> to vector<18x128xbf16>
    %490 = vector.extract_strided_slice %489 {offsets = [0, 0], sizes = [16, 128], strides = [1, 1]} : vector<18x128xbf16> to vector<16x128xbf16>
    %491 = vector.extract_strided_slice %489 {offsets = [1, 0], sizes = [16, 128], strides = [1, 1]} : vector<18x128xbf16> to vector<16x128xbf16>
    %492 = vector.extract_strided_slice %489 {offsets = [2, 0], sizes = [16, 128], strides = [1, 1]} : vector<18x128xbf16> to vector<16x128xbf16>
    %493 = tpu.concatenate %490, %491, %492 in 1 : vector<16x128xbf16>, vector<16x128xbf16>, vector<16x128xbf16> -> vector<16x384xbf16>
    %c2_270 = arith.constant 2 : index
    %c0_271 = arith.constant 0 : index
    %c0_272 = arith.constant 0 : index
    %494 = vector.load %arg7[%c2_270, %c0_271, %c0_272] : memref<3x384x128xbf16, #tpu.memory_space<vmem>>, vector<1x384x128xbf16>
    %495 = vector.shape_cast %494 : vector<1x384x128xbf16> to vector<384x128xbf16>
    %cst_273 = arith.constant dense<0.000000e+00> : vector<16x128xf32>
    %496 = tpu.matmul %493, %495, %cst_273 {dimension_numbers = #tpu.dot_dimension_numbers<[1], [0], [0], [1], [0, 0, 1, 1], [], []>} : vector<16x384xbf16>, vector<384x128xbf16>, vector<16x128xf32> -> vector<16x128xf32>
    %497 = arith.addf %455, %496 : vector<16x128xf32>
    %498 = vector.broadcast %2 : vector<1x128xf32> to vector<16x128xf32>
    %499 = arith.mulf %497, %498 : vector<16x128xf32>
    %500 = vector.broadcast %3 : vector<1x128xf32> to vector<16x128xf32>
    %501 = arith.addf %499, %500 : vector<16x128xf32>
    %502 = arith.negf %501 : vector<16x128xf32>
    %503 = math.exp %502 : vector<16x128xf32>
    %cst_274 = arith.constant 1.000000e+00 : f32
    %504 = vector.broadcast %cst_274 : f32 to vector<16x128xf32>
    %505 = arith.addf %504, %503 : vector<16x128xf32>
    %506 = arith.divf %504, %505 : vector<16x128xf32>
    %507 = arith.mulf %501, %506 : vector<16x128xf32>
    %c0_275 = arith.constant 0 : index
    %c5_276 = arith.constant 5 : index
    %c0_277 = arith.constant 0 : index
    %c0_278 = arith.constant 0 : index
    %508 = vector.load %arg10[%c0_275, %c5_276, %c0_277, %c0_278] : memref<1x8x16x128xf32, #tpu.memory_space<vmem>>, vector<1x1x16x128xf32>
    %509 = vector.shape_cast %508 : vector<1x1x16x128xf32> to vector<16x128xf32>
    %510 = vector.shape_cast %507 : vector<16x128xf32> to vector<1x1x16x128xf32>
    tpu.vector_store %arg10[%c0_275, %c5_276, %c0_277, %c0_278], %510 {strides = array<i32>} : memref<1x8x16x128xf32, #tpu.memory_space<vmem>>, vector<1x1x16x128xf32>,
    %511 = arith.addf %442, %507 : vector<16x128xf32>
    %cst_279 = arith.constant dense<0.000000e+00> : vector<128xf32>
    %512 = vector.multi_reduction <add>, %507, %cst_279 [0] : vector<16x128xf32> to vector<128xf32>
    %513 = vector.shape_cast %512 : vector<128xf32> to vector<1x128xf32>
    %cst_280 = arith.constant 1.600000e+01 : f32
    %514 = vector.broadcast %cst_280 : f32 to vector<1x128xf32>
    %515 = arith.divf %513, %514 : vector<1x128xf32>
    %cst_281 = arith.constant 0.000000e+00 : f32
    %516 = vector.broadcast %cst_281 : f32 to vector<16x128xf32>
    %c0_282 = arith.constant 0 : index
    %c0_283 = arith.constant 0 : index
    %c0_284 = arith.constant 0 : index
    %517 = vector.load %arg7[%c0_282, %c0_283, %c0_284] : memref<3x384x128xbf16, #tpu.memory_space<vmem>>, vector<1x384x128xbf16>
    %518 = vector.shape_cast %517 : vector<1x384x128xbf16> to vector<384x128xbf16>
    %cst_285 = arith.constant dense<0.000000e+00> : vector<16x128xf32>
    %519 = tpu.matmul %424, %518, %cst_285 {dimension_numbers = #tpu.dot_dimension_numbers<[1], [0], [0], [1], [0, 0, 1, 1], [], []>} : vector<16x384xbf16>, vector<384x128xbf16>, vector<16x128xf32> -> vector<16x128xf32>
    %520 = arith.addf %516, %519 : vector<16x128xf32>
    %c1_286 = arith.constant 1 : index
    %c0_287 = arith.constant 0 : index
    %c0_288 = arith.constant 0 : index
    %521 = vector.load %arg7[%c1_286, %c0_287, %c0_288] : memref<3x384x128xbf16, #tpu.memory_space<vmem>>, vector<1x384x128xbf16>
    %522 = vector.shape_cast %521 : vector<1x384x128xbf16> to vector<384x128xbf16>
    %cst_289 = arith.constant dense<0.000000e+00> : vector<16x128xf32>
    %523 = tpu.matmul %493, %522, %cst_289 {dimension_numbers = #tpu.dot_dimension_numbers<[1], [0], [0], [1], [0, 0, 1, 1], [], []>} : vector<16x384xbf16>, vector<384x128xbf16>, vector<16x128xf32> -> vector<16x128xf32>
    %524 = arith.addf %520, %523 : vector<16x128xf32>
    %cst_290 = arith.constant 0.000000e+00 : f32
    %525 = vector.broadcast %cst_290 : f32 to vector<18x128xf32>
    %c0_291 = arith.constant 0 : index
    %c0_292 = arith.constant 0 : index
    %c0_293 = arith.constant 0 : index
    %526 = vector.load %arg4[%c0_291, %c0_292, %c0_293] : memref<3x384x128xbf16, #tpu.memory_space<vmem>>, vector<1x384x128xbf16>
    %527 = vector.shape_cast %526 : vector<1x384x128xbf16> to vector<384x128xbf16>
    %cst_294 = arith.constant dense<0.000000e+00> : vector<18x128xf32>
    %528 = tpu.matmul %401, %527, %cst_294 {dimension_numbers = #tpu.dot_dimension_numbers<[1], [0], [0], [1], [0, 0, 1, 1], [], []>} : vector<18x384xbf16>, vector<384x128xbf16>, vector<18x128xf32> -> vector<18x128xf32>
    %529 = arith.addf %525, %528 : vector<18x128xf32>
    %c1_295 = arith.constant 1 : index
    %c0_296 = arith.constant 0 : index
    %c0_297 = arith.constant 0 : index
    %530 = vector.load %arg4[%c1_295, %c0_296, %c0_297] : memref<3x384x128xbf16, #tpu.memory_space<vmem>>, vector<1x384x128xbf16>
    %531 = vector.shape_cast %530 : vector<1x384x128xbf16> to vector<384x128xbf16>
    %cst_298 = arith.constant dense<0.000000e+00> : vector<18x128xf32>
    %532 = tpu.matmul %470, %531, %cst_298 {dimension_numbers = #tpu.dot_dimension_numbers<[1], [0], [0], [1], [0, 0, 1, 1], [], []>} : vector<18x384xbf16>, vector<384x128xbf16>, vector<18x128xf32> -> vector<18x128xf32>
    %533 = arith.addf %529, %532 : vector<18x128xf32>
    %c0_299 = arith.constant 0 : index
    %c2_300 = arith.constant 2 : index
    %c0_301 = arith.constant 0 : index
    %c0_302 = arith.constant 0 : index
    %534 = vector.load %arg3[%c0_299, %c2_300, %c0_301, %c0_302] : memref<1x4x20x128xbf16, #tpu.memory_space<vmem>>, vector<1x1x20x128xbf16>
    %535 = vector.shape_cast %534 : vector<1x1x20x128xbf16> to vector<20x128xbf16>
    %536 = vector.extract_strided_slice %535 {offsets = [0, 0], sizes = [18, 128], strides = [1, 1]} : vector<20x128xbf16> to vector<18x128xbf16>
    %537 = vector.extract_strided_slice %535 {offsets = [1, 0], sizes = [18, 128], strides = [1, 1]} : vector<20x128xbf16> to vector<18x128xbf16>
    %538 = vector.extract_strided_slice %535 {offsets = [2, 0], sizes = [18, 128], strides = [1, 1]} : vector<20x128xbf16> to vector<18x128xbf16>
    %539 = tpu.concatenate %536, %537, %538 in 1 : vector<18x128xbf16>, vector<18x128xbf16>, vector<18x128xbf16> -> vector<18x384xbf16>
    %c2_303 = arith.constant 2 : index
    %c0_304 = arith.constant 0 : index
    %c0_305 = arith.constant 0 : index
    %540 = vector.load %arg4[%c2_303, %c0_304, %c0_305] : memref<3x384x128xbf16, #tpu.memory_space<vmem>>, vector<1x384x128xbf16>
    %541 = vector.shape_cast %540 : vector<1x384x128xbf16> to vector<384x128xbf16>
    %cst_306 = arith.constant dense<0.000000e+00> : vector<18x128xf32>
    %542 = tpu.matmul %539, %541, %cst_306 {dimension_numbers = #tpu.dot_dimension_numbers<[1], [0], [0], [1], [0, 0, 1, 1], [], []>} : vector<18x384xbf16>, vector<384x128xbf16>, vector<18x128xf32> -> vector<18x128xf32>
    %543 = arith.addf %533, %542 : vector<18x128xf32>
    %544 = vector.broadcast %0 : vector<1x128xf32> to vector<18x128xf32>
    %545 = arith.mulf %543, %544 : vector<18x128xf32>
    %546 = vector.broadcast %1 : vector<1x128xf32> to vector<18x128xf32>
    %547 = arith.addf %545, %546 : vector<18x128xf32>
    %548 = arith.negf %547 : vector<18x128xf32>
    %549 = math.exp %548 : vector<18x128xf32>
    %cst_307 = arith.constant 1.000000e+00 : f32
    %550 = vector.broadcast %cst_307 : f32 to vector<18x128xf32>
    %551 = arith.addf %550, %549 : vector<18x128xf32>
    %552 = arith.divf %550, %551 : vector<18x128xf32>
    %553 = arith.mulf %547, %552 : vector<18x128xf32>
    %cst_308 = arith.constant 0.000000e+00 : f32
    %554 = vector.shape_cast %9 : vector<18x1xi1> to vector<18x1xi1>
    %555 = vector.broadcast %554 : vector<18x1xi1> to vector<18x128xi1>
    %556 = vector.broadcast %cst_308 : f32 to vector<18x128xf32>
    %557 = arith.select %555, %553, %556 : vector<18x128xi1>, vector<18x128xf32>
    %558 = arith.truncf %557 : vector<18x128xf32> to vector<18x128xbf16>
    %559 = vector.extract_strided_slice %558 {offsets = [0, 0], sizes = [16, 128], strides = [1, 1]} : vector<18x128xbf16> to vector<16x128xbf16>
    %560 = vector.extract_strided_slice %558 {offsets = [1, 0], sizes = [16, 128], strides = [1, 1]} : vector<18x128xbf16> to vector<16x128xbf16>
    %561 = vector.extract_strided_slice %558 {offsets = [2, 0], sizes = [16, 128], strides = [1, 1]} : vector<18x128xbf16> to vector<16x128xbf16>
    %562 = tpu.concatenate %559, %560, %561 in 1 : vector<16x128xbf16>, vector<16x128xbf16>, vector<16x128xbf16> -> vector<16x384xbf16>
    %c2_309 = arith.constant 2 : index
    %c0_310 = arith.constant 0 : index
    %c0_311 = arith.constant 0 : index
    %563 = vector.load %arg7[%c2_309, %c0_310, %c0_311] : memref<3x384x128xbf16, #tpu.memory_space<vmem>>, vector<1x384x128xbf16>
    %564 = vector.shape_cast %563 : vector<1x384x128xbf16> to vector<384x128xbf16>
    %cst_312 = arith.constant dense<0.000000e+00> : vector<16x128xf32>
    %565 = tpu.matmul %562, %564, %cst_312 {dimension_numbers = #tpu.dot_dimension_numbers<[1], [0], [0], [1], [0, 0, 1, 1], [], []>} : vector<16x384xbf16>, vector<384x128xbf16>, vector<16x128xf32> -> vector<16x128xf32>
    %566 = arith.addf %524, %565 : vector<16x128xf32>
    %567 = vector.broadcast %2 : vector<1x128xf32> to vector<16x128xf32>
    %568 = arith.mulf %566, %567 : vector<16x128xf32>
    %569 = vector.broadcast %3 : vector<1x128xf32> to vector<16x128xf32>
    %570 = arith.addf %568, %569 : vector<16x128xf32>
    %571 = arith.negf %570 : vector<16x128xf32>
    %572 = math.exp %571 : vector<16x128xf32>
    %cst_313 = arith.constant 1.000000e+00 : f32
    %573 = vector.broadcast %cst_313 : f32 to vector<16x128xf32>
    %574 = arith.addf %573, %572 : vector<16x128xf32>
    %575 = arith.divf %573, %574 : vector<16x128xf32>
    %576 = arith.mulf %570, %575 : vector<16x128xf32>
    %c0_314 = arith.constant 0 : index
    %c6_315 = arith.constant 6 : index
    %c0_316 = arith.constant 0 : index
    %c0_317 = arith.constant 0 : index
    %577 = vector.load %arg10[%c0_314, %c6_315, %c0_316, %c0_317] : memref<1x8x16x128xf32, #tpu.memory_space<vmem>>, vector<1x1x16x128xf32>
    %578 = vector.shape_cast %577 : vector<1x1x16x128xf32> to vector<16x128xf32>
    %579 = vector.shape_cast %576 : vector<16x128xf32> to vector<1x1x16x128xf32>
    tpu.vector_store %arg10[%c0_314, %c6_315, %c0_316, %c0_317], %579 {strides = array<i32>} : memref<1x8x16x128xf32, #tpu.memory_space<vmem>>, vector<1x1x16x128xf32>,
    %580 = arith.addf %511, %576 : vector<16x128xf32>
    %cst_318 = arith.constant dense<0.000000e+00> : vector<128xf32>
    %581 = vector.multi_reduction <add>, %576, %cst_318 [0] : vector<16x128xf32> to vector<128xf32>
    %582 = vector.shape_cast %581 : vector<128xf32> to vector<1x128xf32>
    %cst_319 = arith.constant 1.600000e+01 : f32
    %583 = vector.broadcast %cst_319 : f32 to vector<1x128xf32>
    %584 = arith.divf %582, %583 : vector<1x128xf32>
    %cst_320 = arith.constant 0.000000e+00 : f32
    %585 = vector.broadcast %cst_320 : f32 to vector<16x128xf32>
    %c0_321 = arith.constant 0 : index
    %c0_322 = arith.constant 0 : index
    %c0_323 = arith.constant 0 : index
    %586 = vector.load %arg7[%c0_321, %c0_322, %c0_323] : memref<3x384x128xbf16, #tpu.memory_space<vmem>>, vector<1x384x128xbf16>
    %587 = vector.shape_cast %586 : vector<1x384x128xbf16> to vector<384x128xbf16>
    %cst_324 = arith.constant dense<0.000000e+00> : vector<16x128xf32>
    %588 = tpu.matmul %493, %587, %cst_324 {dimension_numbers = #tpu.dot_dimension_numbers<[1], [0], [0], [1], [0, 0, 1, 1], [], []>} : vector<16x384xbf16>, vector<384x128xbf16>, vector<16x128xf32> -> vector<16x128xf32>
    %589 = arith.addf %585, %588 : vector<16x128xf32>
    %c1_325 = arith.constant 1 : index
    %c0_326 = arith.constant 0 : index
    %c0_327 = arith.constant 0 : index
    %590 = vector.load %arg7[%c1_325, %c0_326, %c0_327] : memref<3x384x128xbf16, #tpu.memory_space<vmem>>, vector<1x384x128xbf16>
    %591 = vector.shape_cast %590 : vector<1x384x128xbf16> to vector<384x128xbf16>
    %cst_328 = arith.constant dense<0.000000e+00> : vector<16x128xf32>
    %592 = tpu.matmul %562, %591, %cst_328 {dimension_numbers = #tpu.dot_dimension_numbers<[1], [0], [0], [1], [0, 0, 1, 1], [], []>} : vector<16x384xbf16>, vector<384x128xbf16>, vector<16x128xf32> -> vector<16x128xf32>
    %593 = arith.addf %589, %592 : vector<16x128xf32>
    %cst_329 = arith.constant 0.000000e+00 : f32
    %594 = vector.broadcast %cst_329 : f32 to vector<18x128xf32>
    %c0_330 = arith.constant 0 : index
    %c0_331 = arith.constant 0 : index
    %c0_332 = arith.constant 0 : index
    %595 = vector.load %arg4[%c0_330, %c0_331, %c0_332] : memref<3x384x128xbf16, #tpu.memory_space<vmem>>, vector<1x384x128xbf16>
    %596 = vector.shape_cast %595 : vector<1x384x128xbf16> to vector<384x128xbf16>
    %cst_333 = arith.constant dense<0.000000e+00> : vector<18x128xf32>
    %597 = tpu.matmul %470, %596, %cst_333 {dimension_numbers = #tpu.dot_dimension_numbers<[1], [0], [0], [1], [0, 0, 1, 1], [], []>} : vector<18x384xbf16>, vector<384x128xbf16>, vector<18x128xf32> -> vector<18x128xf32>
    %598 = arith.addf %594, %597 : vector<18x128xf32>
    %c1_334 = arith.constant 1 : index
    %c0_335 = arith.constant 0 : index
    %c0_336 = arith.constant 0 : index
    %599 = vector.load %arg4[%c1_334, %c0_335, %c0_336] : memref<3x384x128xbf16, #tpu.memory_space<vmem>>, vector<1x384x128xbf16>
    %600 = vector.shape_cast %599 : vector<1x384x128xbf16> to vector<384x128xbf16>
    %cst_337 = arith.constant dense<0.000000e+00> : vector<18x128xf32>
    %601 = tpu.matmul %539, %600, %cst_337 {dimension_numbers = #tpu.dot_dimension_numbers<[1], [0], [0], [1], [0, 0, 1, 1], [], []>} : vector<18x384xbf16>, vector<384x128xbf16>, vector<18x128xf32> -> vector<18x128xf32>
    %602 = arith.addf %598, %601 : vector<18x128xf32>
    %c0_338 = arith.constant 0 : index
    %c3_339 = arith.constant 3 : index
    %c0_340 = arith.constant 0 : index
    %c0_341 = arith.constant 0 : index
    %603 = vector.load %arg3[%c0_338, %c3_339, %c0_340, %c0_341] : memref<1x4x20x128xbf16, #tpu.memory_space<vmem>>, vector<1x1x20x128xbf16>
    %604 = vector.shape_cast %603 : vector<1x1x20x128xbf16> to vector<20x128xbf16>
    %605 = vector.extract_strided_slice %604 {offsets = [0, 0], sizes = [18, 128], strides = [1, 1]} : vector<20x128xbf16> to vector<18x128xbf16>
    %606 = vector.extract_strided_slice %604 {offsets = [1, 0], sizes = [18, 128], strides = [1, 1]} : vector<20x128xbf16> to vector<18x128xbf16>
    %607 = vector.extract_strided_slice %604 {offsets = [2, 0], sizes = [18, 128], strides = [1, 1]} : vector<20x128xbf16> to vector<18x128xbf16>
    %608 = tpu.concatenate %605, %606, %607 in 1 : vector<18x128xbf16>, vector<18x128xbf16>, vector<18x128xbf16> -> vector<18x384xbf16>
    %c2_342 = arith.constant 2 : index
    %c0_343 = arith.constant 0 : index
    %c0_344 = arith.constant 0 : index
    %609 = vector.load %arg4[%c2_342, %c0_343, %c0_344] : memref<3x384x128xbf16, #tpu.memory_space<vmem>>, vector<1x384x128xbf16>
    %610 = vector.shape_cast %609 : vector<1x384x128xbf16> to vector<384x128xbf16>
    %cst_345 = arith.constant dense<0.000000e+00> : vector<18x128xf32>
    %611 = tpu.matmul %608, %610, %cst_345 {dimension_numbers = #tpu.dot_dimension_numbers<[1], [0], [0], [1], [0, 0, 1, 1], [], []>} : vector<18x384xbf16>, vector<384x128xbf16>, vector<18x128xf32> -> vector<18x128xf32>
    %612 = arith.addf %602, %611 : vector<18x128xf32>
    %613 = vector.broadcast %0 : vector<1x128xf32> to vector<18x128xf32>
    %614 = arith.mulf %612, %613 : vector<18x128xf32>
    %615 = vector.broadcast %1 : vector<1x128xf32> to vector<18x128xf32>
    %616 = arith.addf %614, %615 : vector<18x128xf32>
    %617 = arith.negf %616 : vector<18x128xf32>
    %618 = math.exp %617 : vector<18x128xf32>
    %cst_346 = arith.constant 1.000000e+00 : f32
    %619 = vector.broadcast %cst_346 : f32 to vector<18x128xf32>
    %620 = arith.addf %619, %618 : vector<18x128xf32>
    %621 = arith.divf %619, %620 : vector<18x128xf32>
    %622 = arith.mulf %616, %621 : vector<18x128xf32>
    %cst_347 = arith.constant 0.000000e+00 : f32
    %623 = vector.shape_cast %9 : vector<18x1xi1> to vector<18x1xi1>
    %624 = vector.broadcast %623 : vector<18x1xi1> to vector<18x128xi1>
    %625 = vector.broadcast %cst_347 : f32 to vector<18x128xf32>
    %626 = arith.select %624, %622, %625 : vector<18x128xi1>, vector<18x128xf32>
    %c1_i32_348 = arith.constant 1 : i32
    %627 = arith.cmpi slt, %arg1, %c1_i32_348 : i32
    %cst_349 = arith.constant 0.000000e+00 : f32
    %628 = vector.broadcast %cst_349 : f32 to vector<18x128xf32>
    %629 = arith.select %627, %626, %628 : vector<18x128xf32>
    %630 = arith.truncf %629 : vector<18x128xf32> to vector<18x128xbf16>
    %631 = vector.extract_strided_slice %630 {offsets = [0, 0], sizes = [16, 128], strides = [1, 1]} : vector<18x128xbf16> to vector<16x128xbf16>
    %632 = vector.extract_strided_slice %630 {offsets = [1, 0], sizes = [16, 128], strides = [1, 1]} : vector<18x128xbf16> to vector<16x128xbf16>
    %633 = vector.extract_strided_slice %630 {offsets = [2, 0], sizes = [16, 128], strides = [1, 1]} : vector<18x128xbf16> to vector<16x128xbf16>
    %634 = tpu.concatenate %631, %632, %633 in 1 : vector<16x128xbf16>, vector<16x128xbf16>, vector<16x128xbf16> -> vector<16x384xbf16>
    %c2_350 = arith.constant 2 : index
    %c0_351 = arith.constant 0 : index
    %c0_352 = arith.constant 0 : index
    %635 = vector.load %arg7[%c2_350, %c0_351, %c0_352] : memref<3x384x128xbf16, #tpu.memory_space<vmem>>, vector<1x384x128xbf16>
    %636 = vector.shape_cast %635 : vector<1x384x128xbf16> to vector<384x128xbf16>
    %cst_353 = arith.constant dense<0.000000e+00> : vector<16x128xf32>
    %637 = tpu.matmul %634, %636, %cst_353 {dimension_numbers = #tpu.dot_dimension_numbers<[1], [0], [0], [1], [0, 0, 1, 1], [], []>} : vector<16x384xbf16>, vector<384x128xbf16>, vector<16x128xf32> -> vector<16x128xf32>
    %638 = arith.addf %593, %637 : vector<16x128xf32>
    %639 = vector.broadcast %2 : vector<1x128xf32> to vector<16x128xf32>
    %640 = arith.mulf %638, %639 : vector<16x128xf32>
    %641 = vector.broadcast %3 : vector<1x128xf32> to vector<16x128xf32>
    %642 = arith.addf %640, %641 : vector<16x128xf32>
    %643 = arith.negf %642 : vector<16x128xf32>
    %644 = math.exp %643 : vector<16x128xf32>
    %cst_354 = arith.constant 1.000000e+00 : f32
    %645 = vector.broadcast %cst_354 : f32 to vector<16x128xf32>
    %646 = arith.addf %645, %644 : vector<16x128xf32>
    %647 = arith.divf %645, %646 : vector<16x128xf32>
    %648 = arith.mulf %642, %647 : vector<16x128xf32>
    %c0_355 = arith.constant 0 : index
    %c7_356 = arith.constant 7 : index
    %c0_357 = arith.constant 0 : index
    %c0_358 = arith.constant 0 : index
    %649 = vector.load %arg10[%c0_355, %c7_356, %c0_357, %c0_358] : memref<1x8x16x128xf32, #tpu.memory_space<vmem>>, vector<1x1x16x128xf32>
    %650 = vector.shape_cast %649 : vector<1x1x16x128xf32> to vector<16x128xf32>
    %651 = vector.shape_cast %648 : vector<16x128xf32> to vector<1x1x16x128xf32>
    tpu.vector_store %arg10[%c0_355, %c7_356, %c0_357, %c0_358], %651 {strides = array<i32>} : memref<1x8x16x128xf32, #tpu.memory_space<vmem>>, vector<1x1x16x128xf32>,
    %652 = arith.addf %580, %648 : vector<16x128xf32>
    %cst_359 = arith.constant dense<0.000000e+00> : vector<128xf32>
    %653 = vector.multi_reduction <add>, %648, %cst_359 [0] : vector<16x128xf32> to vector<128xf32>
    %654 = vector.shape_cast %653 : vector<128xf32> to vector<1x128xf32>
    %cst_360 = arith.constant 1.600000e+01 : f32
    %655 = vector.broadcast %cst_360 : f32 to vector<1x128xf32>
    %656 = arith.divf %654, %655 : vector<1x128xf32>
    %657 = tpu.concatenate %170, %239, %308, %377, %446, %515, %584, %656 in 0 : vector<1x128xf32>, vector<1x128xf32>, vector<1x128xf32>, vector<1x128xf32>, vector<1x128xf32>, vector<1x128xf32>, vector<1x128xf32>, vector<1x128xf32> -> vector<8x128xf32>
    %c0_361 = arith.constant 0 : index
    %c0_362 = arith.constant 0 : index
    %c0_363 = arith.constant 0 : index
    %658 = vector.load %arg11[%c0_361, %c0_362, %c0_363] : memref<1x8x128xf32, #tpu.memory_space<vmem>>, vector<1x8x128xf32>
    %659 = vector.shape_cast %658 : vector<1x8x128xf32> to vector<8x128xf32>
    %660 = vector.shape_cast %657 : vector<8x128xf32> to vector<1x8x128xf32>
    tpu.vector_store %arg11[%c0_361, %c0_362, %c0_363], %660 {strides = array<i32>} : memref<1x8x128xf32, #tpu.memory_space<vmem>>, vector<1x8x128xf32>,
    %c0_364 = arith.constant 0 : index
    %c0_365 = arith.constant 0 : index
    %c0_366 = arith.constant 0 : index
    %c0_367 = arith.constant 0 : index
    %661 = vector.load %arg12[%c0_364, %c0_365, %c0_366, %c0_367] : memref<1x1x16x128xf32, #tpu.memory_space<vmem>>, vector<1x1x16x128xf32>
    %662 = vector.shape_cast %661 : vector<1x1x16x128xf32> to vector<16x128xf32>
    %663 = vector.shape_cast %652 : vector<16x128xf32> to vector<1x1x16x128xf32>
    tpu.vector_store %arg12[%c0_364, %c0_365, %c0_366, %c0_367], %663 {strides = array<i32>} : memref<1x1x16x128xf32, #tpu.memory_space<vmem>>, vector<1x1x16x128xf32>,
    return
  }
  func.func @transform_0(%arg0: i32, %arg1: i32) -> (i32, i32, i32, i32) {
    %c0_i32 = arith.constant 0 : i32
    %c0_i32_0 = arith.constant 0 : i32
    %c0_i32_1 = arith.constant 0 : i32
    return %arg0, %arg1, %c0_i32, %c0_i32_0 : i32, i32, i32, i32
  }
  func.func @transform_1(%arg0: i32, %arg1: i32) -> (i32, i32, i32, i32) {
    %c1_i32 = arith.constant 1 : i32
    %0 = arith.addi %arg1, %c1_i32 : i32
    %c2_i32 = arith.constant 2 : i32
    %1 = arith.muli %0, %c2_i32 : i32
    %c0_i32 = arith.constant 0 : i32
    %c0_i32_0 = arith.constant 0 : i32
    %c0_i32_1 = arith.constant 0 : i32
    return %arg0, %1, %c0_i32, %c0_i32_0 : i32, i32, i32, i32
  }
  func.func @transform_2(%arg0: i32, %arg1: i32) -> (i32, i32, i32) {
    %c0_i32 = arith.constant 0 : i32
    %c0_i32_0 = arith.constant 0 : i32
    %c0_i32_1 = arith.constant 0 : i32
    %c0_i32_2 = arith.constant 0 : i32
    return %c0_i32, %c0_i32_0, %c0_i32_1 : i32, i32, i32
  }
  func.func @transform_3(%arg0: i32, %arg1: i32) -> (i32, i32) {
    %c0_i32 = arith.constant 0 : i32
    %c0_i32_0 = arith.constant 0 : i32
    %c0_i32_1 = arith.constant 0 : i32
    return %c0_i32, %c0_i32_0 : i32, i32
  }
  func.func @transform_4(%arg0: i32, %arg1: i32) -> (i32, i32) {
    %c0_i32 = arith.constant 0 : i32
    %c0_i32_0 = arith.constant 0 : i32
    %c0_i32_1 = arith.constant 0 : i32
    return %c0_i32, %c0_i32_0 : i32, i32
  }
  func.func @transform_5(%arg0: i32, %arg1: i32) -> (i32, i32, i32) {
    %c0_i32 = arith.constant 0 : i32
    %c0_i32_0 = arith.constant 0 : i32
    %c0_i32_1 = arith.constant 0 : i32
    %c0_i32_2 = arith.constant 0 : i32
    return %c0_i32, %c0_i32_0, %c0_i32_1 : i32, i32, i32
  }
  func.func @transform_6(%arg0: i32, %arg1: i32) -> (i32, i32) {
    %c0_i32 = arith.constant 0 : i32
    %c0_i32_0 = arith.constant 0 : i32
    %c0_i32_1 = arith.constant 0 : i32
    return %c0_i32, %c0_i32_0 : i32, i32
  }
  func.func @transform_7(%arg0: i32, %arg1: i32) -> (i32, i32) {
    %c0_i32 = arith.constant 0 : i32
    %c0_i32_0 = arith.constant 0 : i32
    %c0_i32_1 = arith.constant 0 : i32
    return %c0_i32, %c0_i32_0 : i32, i32
  }
  func.func @transform_8(%arg0: i32, %arg1: i32) -> (i32, i32, i32, i32) {
    %c0_i32 = arith.constant 0 : i32
    %c0_i32_0 = arith.constant 0 : i32
    %c0_i32_1 = arith.constant 0 : i32
    return %arg0, %arg1, %c0_i32, %c0_i32_0 : i32, i32, i32, i32
  }
  func.func @transform_9(%arg0: i32, %arg1: i32) -> (i32, i32, i32) {
    %c0_i32 = arith.constant 0 : i32
    %c0_i32_0 = arith.constant 0 : i32
    return %arg0, %arg1, %c0_i32 : i32, i32, i32
  }
  func.func @transform_10(%arg0: i32, %arg1: i32) -> (i32, i32, i32, i32) {
    %c0_i32 = arith.constant 0 : i32
    %c0_i32_0 = arith.constant 0 : i32
    %c0_i32_1 = arith.constant 0 : i32
    return %arg0, %arg1, %c0_i32, %c0_i32_0 : i32, i32, i32, i32
  }
}

module attributes {stable_mosaic.version = 11 : i64} {
  func.func @_gate_residual_kernel(%arg0: i32, %arg1: i32, %arg2: memref<1x8x16x128xf32, #tpu.memory_space<vmem>>, %arg3: memref<1x8x128xf32, #tpu.memory_space<vmem>>, %arg4: memref<1x16x128xf32, #tpu.memory_space<vmem>>, %arg5: memref<1x1x128xf32, #tpu.memory_space<vmem>>, %arg6: memref<1x8x16x128xf32, #tpu.memory_space<vmem>>, %arg7: memref<1x8x16x128xf32, #tpu.memory_space<vmem>>) attributes {dimension_semantics = [#tpu.dimension_semantics<parallel>, #tpu.dimension_semantics<parallel>], iteration_bounds = array<i64: 2, 2>, scalar_prefetch = 0 : i64, scratch_operands = 0 : i64, tpu.core_type = #tpu.core_type<tc>, window_params = [{transform_indices = @transform_0, window_bounds = array<i64: 1, 8, 16, 128>}, {transform_indices = @transform_1, window_bounds = array<i64: 1, 8, 128>}, {transform_indices = @transform_2, window_bounds = array<i64: 1, 16, 128>}, {transform_indices = @transform_3, window_bounds = array<i64: 1, 1, 128>}, {transform_indices = @transform_4, window_bounds = array<i64: 1, 8, 16, 128>}, {transform_indices = @transform_5, window_bounds = array<i64: 1, 8, 16, 128>}]} {
    %c0 = arith.constant 0 : index
    %c0_0 = arith.constant 0 : index
    %c0_1 = arith.constant 0 : index
    %c0_2 = arith.constant 0 : index
    %0 = vector.load %arg2[%c0, %c0_0, %c0_1, %c0_2] : memref<1x8x16x128xf32, #tpu.memory_space<vmem>>, vector<1x8x16x128xf32>
    %1 = vector.shape_cast %0 : vector<1x8x16x128xf32> to vector<8x16x128xf32>
    %c0_3 = arith.constant 0 : index
    %c0_4 = arith.constant 0 : index
    %c0_5 = arith.constant 0 : index
    %2 = vector.load %arg3[%c0_3, %c0_4, %c0_5] : memref<1x8x128xf32, #tpu.memory_space<vmem>>, vector<1x8x128xf32>
    %3 = vector.shape_cast %2 : vector<1x8x128xf32> to vector<8x128xf32>
    %4 = vector.shape_cast %3 : vector<8x128xf32> to vector<8x1x128xf32>
    %5 = vector.broadcast %4 : vector<8x1x128xf32> to vector<8x16x128xf32>
    %6 = arith.mulf %1, %5 : vector<8x16x128xf32>
    %c0_6 = arith.constant 0 : index
    %c0_7 = arith.constant 0 : index
    %c0_8 = arith.constant 0 : index
    %7 = vector.load %arg4[%c0_6, %c0_7, %c0_8] : memref<1x16x128xf32, #tpu.memory_space<vmem>>, vector<1x16x128xf32>
    %8 = vector.shape_cast %7 : vector<1x16x128xf32> to vector<16x128xf32>
    %9 = vector.shape_cast %8 : vector<16x128xf32> to vector<1x16x128xf32>
    %10 = vector.broadcast %9 : vector<1x16x128xf32> to vector<8x16x128xf32>
    %11 = arith.mulf %6, %10 : vector<8x16x128xf32>
    %c0_9 = arith.constant 0 : index
    %c0_10 = arith.constant 0 : index
    %c0_11 = arith.constant 0 : index
    %c0_12 = arith.constant 0 : index
    %12 = vector.load %arg6[%c0_9, %c0_10, %c0_11, %c0_12] : memref<1x8x16x128xf32, #tpu.memory_space<vmem>>, vector<1x8x16x128xf32>
    %13 = vector.shape_cast %12 : vector<1x8x16x128xf32> to vector<8x16x128xf32>
    %c0_13 = arith.constant 0 : index
    %c0_14 = arith.constant 0 : index
    %c0_15 = arith.constant 0 : index
    %14 = vector.load %arg5[%c0_13, %c0_14, %c0_15] : memref<1x1x128xf32, #tpu.memory_space<vmem>>, vector<1x1x128xf32>
    %15 = vector.shape_cast %14 : vector<1x1x128xf32> to vector<1x128xf32>
    %16 = vector.shape_cast %15 : vector<1x128xf32> to vector<1x1x128xf32>
    %17 = vector.broadcast %16 : vector<1x1x128xf32> to vector<8x16x128xf32>
    %18 = arith.mulf %17, %11 : vector<8x16x128xf32>
    %19 = arith.addf %13, %18 : vector<8x16x128xf32>
    %c0_16 = arith.constant 0 : index
    %c0_17 = arith.constant 0 : index
    %c0_18 = arith.constant 0 : index
    %c0_19 = arith.constant 0 : index
    %20 = vector.load %arg7[%c0_16, %c0_17, %c0_18, %c0_19] : memref<1x8x16x128xf32, #tpu.memory_space<vmem>>, vector<1x8x16x128xf32>
    %21 = vector.shape_cast %20 : vector<1x8x16x128xf32> to vector<8x16x128xf32>
    %22 = vector.shape_cast %19 : vector<8x16x128xf32> to vector<1x8x16x128xf32>
    tpu.vector_store %arg7[%c0_16, %c0_17, %c0_18, %c0_19], %22 {strides = array<i32>} : memref<1x8x16x128xf32, #tpu.memory_space<vmem>>, vector<1x8x16x128xf32>,
    return
  }
  func.func @transform_0(%arg0: i32, %arg1: i32) -> (i32, i32, i32, i32) {
    %c0_i32 = arith.constant 0 : i32
    %c0_i32_0 = arith.constant 0 : i32
    %c0_i32_1 = arith.constant 0 : i32
    return %arg0, %arg1, %c0_i32, %c0_i32_0 : i32, i32, i32, i32
  }
  func.func @transform_1(%arg0: i32, %arg1: i32) -> (i32, i32, i32) {
    %c0_i32 = arith.constant 0 : i32
    %c0_i32_0 = arith.constant 0 : i32
    return %arg0, %arg1, %c0_i32 : i32, i32, i32
  }
  func.func @transform_2(%arg0: i32, %arg1: i32) -> (i32, i32, i32) {
    %c0_i32 = arith.constant 0 : i32
    %c0_i32_0 = arith.constant 0 : i32
    %c0_i32_1 = arith.constant 0 : i32
    return %arg0, %c0_i32, %c0_i32_0 : i32, i32, i32
  }
  func.func @transform_3(%arg0: i32, %arg1: i32) -> (i32, i32, i32) {
    %c0_i32 = arith.constant 0 : i32
    %c0_i32_0 = arith.constant 0 : i32
    %c0_i32_1 = arith.constant 0 : i32
    return %arg0, %c0_i32, %c0_i32_0 : i32, i32, i32
  }
  func.func @transform_4(%arg0: i32, %arg1: i32) -> (i32, i32, i32, i32) {
    %c0_i32 = arith.constant 0 : i32
    %c0_i32_0 = arith.constant 0 : i32
    %c0_i32_1 = arith.constant 0 : i32
    return %arg0, %arg1, %c0_i32, %c0_i32_0 : i32, i32, i32, i32
  }
  func.func @transform_5(%arg0: i32, %arg1: i32) -> (i32, i32, i32, i32) {
    %c0_i32 = arith.constant 0 : i32
    %c0_i32_0 = arith.constant 0 : i32
    %c0_i32_1 = arith.constant 0 : i32
    return %arg0, %arg1, %c0_i32, %c0_i32_0 : i32, i32, i32, i32
  }
}

</mosaic_0001>

<bundles_post_ra>
// kernel: bottleneck_forward.3
= control target key start
LH: loop header
LB: loop body
LE: loop exit
PB: predicated region body
PF: predicated region fallthrough
CT: control target
= control target key end

     0   :  { %s810_s18 = smov 0   ;;  %s812_s19 = smov 0   ;;  %s980_s0 = inlined_call_operand.vmem [shape: f32[2,16,16,128], index: 0, kind: input, shape index: {}]   ;;  %s981_s1 = inlined_call_operand.vmem [shape: f32[2,16,128], index: 1, kind: input, shape index: {}]   ;;  %s982_s2 = inlined_call_operand.vmem [shape: f32[2,16,128], index: 2, kind: input, shape index: {}]   ;;  %s983_s3 = inlined_call_operand.vmem [shape: f32[2,1,128], index: 3, kind: input, shape index: {}]   ;;  %s984_s4 = inlined_call_operand.vmem [shape: f32[2,16,16,128], index: 4, kind: input, shape index: {}]   ;;  %s985_s5 = inlined_call_operand.vmem [shape: f32[2,16,16,128], index: 5, kind: output, shape index: {}]  }
   0x1   :  { %s814_s20 = smov 0   ;;  %s816_s21 = smov 0  }
   0x2   :  { %s818_s22 = smov 0  }
   0x3 LB: > { %s24_s23 = sadd.s32 1, %s770_s20  ;;  %s27_s24 = sadd.s32 1, %s774_s21  ;;  %s778_s22 = sphi %s818_s22, %s15_s22   ;;  %s774_s21 = sphi %s816_s21, %s989_s21   ;;  %s770_s20 = sphi %s814_s20, %s988_s20   ;;  %s766_s19 = sphi %s812_s19, %s987_s19   ;;  %s762_s18 = sphi %s810_s18, %s986_s18  }
   0x4   : > { %p25_p0 = scmp.ge.s32.totalorder %s24_s23, 2  ;;  %p679_p1 = scmp.ge.s32.totalorder %s778_s22, 1 }
   0x5   : > { %p260_p2 = scmp.lt.s32.totalorder %s778_s22, 5 }
   0x6   : > { %s991_s23 = smov (%p25_p0, %s24_s23), 0  ;;  %s993_s24 = smov (!%p25_p0, %s27_s24), %s774_s21 }
   0x7   : > { %p261_p3 = pnand %p679_p1, %p260_p2  ;;  %p29_p4 = scmp.ge.s32.totalorder %s993_s24, 2 }
   0x8   : > { %s680_s25 = sshll.u32 (!%p261_p3), %s762_s18, 3  ;;  %p325_p5 = scmp.lt.s32.totalorder (!%p261_p3), %s766_s19, 1 }
   0x9   : > { %s995_s24 = smov (%p29_p4, %s993_s24), 0  ;;  %264 = sbr.rel (%p261_p3) target bundleno = 51 (0x33), region = 40 }
   0xa   : > { %p327_p6 = scmp.lt.s32.totalorder (!%p261_p3), %s680_s25, 15  ;;  %p337_p7 = scmp.lt.s32.totalorder (!%p261_p3), %s762_s18, 1 }
   0xe   : > { %s997_s19 = smov (!%p325_p5, %s766_s19), 1  ;;  %s999_s25 = smov (!%p327_p6, %s680_s25), 15 }
   0xf   : > { %s682_s26 = sshll.u32 %s997_s19, 5  ;;  %s681_s27 = sshll.u32 %s999_s25, 1 }
  0x10   : > { %s331_s28 = sadd.s32 %s682_s26, %s681_s27  ;;  %s698_s29 = sshll.u32 %s997_s19, 4 }
  0x11   : > { %s350_s7 = scalar_lea.vmem %s983_s3, %s997_s19  ;;  %s843_s8 = sshll.u32 %s331_s28, 3 }
  0x12   : > { %s684_s9 = sshll.u32 %s997_s19, 1  ;;  %s1001_s18 = smov (!%p337_p7, %s762_s18), 1  ;;  %v866_v6 = vld [vmem:[%s350_s7] ss:$0 sm:$0xff] }
  0x13   : > { %s347_s12 = scalar_lea.vmem %s982_s2, %s698_s29  ;;  %s852_s15 = scalar_lea.vmem %s980_s0, %s843_s8 }
  0x14   : > { %s340_s16 = sadd.s32 %s684_s9, %s1001_s18  ;;  %v373_v0 = vld [vmem:[%s852_s15] sm:$0xff]  ;;  %v374_v3 = vld [vmem:[%s852_s15 + $0x8] sm:$0xff]  ;;  %v375_v10 = vld [vmem:[%s852_s15 + $0x10] sm:$0xff]  ;;  %s881_s28 = scalar_lea.vmem %s984_s4, %s843_s8 }
  0x15   : > { %s685_s17 = sshll.u32 %s340_s16, 3  ;;  %v860_v2 = vld [vmem:[%s347_s12] sm:$0xff]  ;;  %v863_v4 = vld [vmem:[%s347_s12 + $0x8] sm:$0xff]  ;;  %v376_v11 = vld [vmem:[%s852_s15 + $0x18] sm:$0xff]  ;;  %s899_s6 = scalar_lea.vmem %s985_s5, %s843_s8 }
  0x16   : > { %s342_s19 = scalar_lea.vmem %s981_s1, %s685_s17  ;;  %v377_v12 = vld [vmem:[%s852_s15 + $0x20] sm:$0xff]  ;;  %v378_v20 = vld [vmem:[%s852_s15 + $0x28] sm:$0xff]  ;;  %v379_v21 = vld [vmem:[%s852_s15 + $0x30] sm:$0xff] }
  0x17   : > { %v858_v1 = vld [vmem:[%s342_s19] sm:$0xff]  ;;  %v380_v22 = vld [vmem:[%s852_s15 + $0x38] sm:$0xff]  ;;  %v449_v32 = vld [vmem:[%s881_s28 + $0x8] sm:$0xff] }
  0x18   : > { %v398_v5 = vperm.slane %v858_v1, 0  ;;  %v391_v7 = vrot.slane %v858_v1, 1  ;;  %v392_v8 = vrot.slane %v858_v1, 2  ;;  %v393_v9 = vrot.slane %v858_v1, 3  ;;  %v448_v31 = vld [vmem:[%s881_s28] sm:$0xff]  ;;  %v450_v40 = vld [vmem:[%s881_s28 + $0x10] sm:$0xff] }
  0x19   : > { %v394_v13 = vrot.slane %v858_v1, 4  ;;  %v395_v14 = vrot.slane %v858_v1, 5  ;;  %v396_v15 = vrot.slane %v858_v1, 6  ;;  %v451_v42 = vld [vmem:[%s881_s28 + $0x18] sm:$0xff]  ;;  %v381_v47 = vld [vmem:[%s852_s15 + $0x40] sm:$0xff]  ;;  %v382_v48 = vld [vmem:[%s852_s15 + $0x48] sm:$0xff] }
  0x1a   : > { %v414_v16 = vmul.f32 %v398_v5, %v373_v0  ;;  %v415_v17 = vmul.f32 %v398_v5, %v374_v3  ;;  %v399_v18 = vperm.slane %v391_v7, 0  ;;  %v400_v19 = vperm.slane %v392_v8, 0  ;;  %v452_v53 = vld [vmem:[%s881_s28 + $0x20] sm:$0xff]  ;;  %v453_v54 = vld [vmem:[%s881_s28 + $0x28] sm:$0xff]  ;;  %v454_v55 = vld [vmem:[%s881_s28 + $0x30] sm:$0xff] }
  0x1b   : > { %v401_v23 = vperm.slane %v393_v9, 0  ;;  %v402_v24 = vperm.slane %v394_v13, 0  ;;  %v403_v25 = vperm.slane %v395_v14, 0  ;;  %v404_v26 = vperm.slane %v396_v15, 0  ;;  %v383_v60 = vld [vmem:[%s852_s15 + $0x50] sm:$0xff]  ;;  %v384_v61 = vld [vmem:[%s852_s15 + $0x58] sm:$0xff] }
  0x1c   : > { %v432_v27 = vmul.f32 %v860_v2, %v414_v16  ;;  %v433_v28 = vmul.f32 %v863_v4, %v415_v17  ;;  %v416_v29 = vmul.f32 %v399_v18, %v375_v10  ;;  %v417_v30 = vmul.f32 %v399_v18, %v376_v11  ;;  %v455_v0 = vld [vmem:[%s881_s28 + $0x38] sm:$0xff]  ;;  %v385_v7 = vld [vmem:[%s852_s15 + $0x60] sm:$0xff]  ;;  %v386_v8 = vld [vmem:[%s852_s15 + $0x68] sm:$0xff] }
  0x1d   : > { %v418_v33 = vmul.f32 %v400_v19, %v377_v12  ;;  %v419_v34 = vmul.f32 %v400_v19, %v378_v20  ;;  %v420_v35 = vmul.f32 %v401_v23, %v379_v21  ;;  %v421_v36 = vmul.f32 %v401_v23, %v380_v22  ;;  %v456_v17 = vld [vmem:[%s881_s28 + $0x40] sm:$0xff]  ;;  %v457_v18 = vld [vmem:[%s881_s28 + $0x48] sm:$0xff] }
  0x1e   : > { %v468_v37 = vmul.f32 %v866_v6, %v432_v27  ;;  %v469_v38 = vmul.f32 %v866_v6, %v433_v28  ;;  %v434_v39 = vmul.f32 %v860_v2, %v416_v29  ;;  %v435_v41 = vmul.f32 %v863_v4, %v417_v30  ;;  %v387_v27 = vld [vmem:[%s852_s15 + $0x70] sm:$0xff]  ;;  %v388_v28 = vld [vmem:[%s852_s15 + $0x78] sm:$0xff] }
  0x1f   : > { %v436_v43 = vmul.f32 %v860_v2, %v418_v33  ;;  %v437_v44 = vmul.f32 %v863_v4, %v419_v34  ;;  %v438_v45 = vmul.f32 %v860_v2, %v420_v35  ;;  %v439_v46 = vmul.f32 %v863_v4, %v421_v36  ;;  %v458_v29 = vld [vmem:[%s881_s28 + $0x50] sm:$0xff]  ;;  %v459_v30 = vld [vmem:[%s881_s28 + $0x58] sm:$0xff]  ;;  %v460_v36 = vld [vmem:[%s881_s28 + $0x60] sm:$0xff] }
  0x20   : > { %v484_v49 = vadd.f32 %v468_v37, %v448_v31  ;;  %v485_v50 = vadd.f32 %v469_v38, %v449_v32  ;;  %v470_v51 = vmul.f32 %v866_v6, %v434_v39  ;;  %v471_v52 = vmul.f32 %v866_v6, %v435_v41  ;;  %v461_v37 = vld [vmem:[%s881_s28 + $0x68] sm:$0xff] }
  0x21   : > { %v472_v56 = vmul.f32 %v866_v6, %v436_v43  ;;  %v473_v57 = vmul.f32 %v866_v6, %v437_v44  ;;  %v474_v58 = vmul.f32 %v866_v6, %v438_v45  ;;  %v475_v59 = vmul.f32 %v866_v6, %v439_v46 }
  0x22   : > { %500 = vst [vmem:[%s899_s6] sm:$0xff] %v484_v49  ;;  %v486_v62 = vadd.f32 %v470_v51, %v450_v40  ;;  %v487_v63 = vadd.f32 %v471_v52, %v451_v42  ;;  %v422_v3 = vmul.f32 %v402_v24, %v381_v47  ;;  %v423_v5 = vmul.f32 %v402_v24, %v382_v48  ;;  %v462_v48 = vld [vmem:[%s881_s28 + $0x70] sm:$0xff]  ;;  %v463_v49 = vld [vmem:[%s881_s28 + $0x78] sm:$0xff] }
  0x23   : > { %501 = vst [vmem:[%s899_s6 + $0x8] sm:$0xff] %v485_v50  ;;  %v488_v9 = vadd.f32 %v472_v56, %v452_v53  ;;  %v489_v10 = vadd.f32 %v473_v57, %v453_v54  ;;  %v490_v11 = vadd.f32 %v474_v58, %v454_v55  ;;  %v424_v14 = vmul.f32 %v403_v25, %v383_v60 }
  0x24   : > { %502 = vst [vmem:[%s899_s6 + $0x10] sm:$0xff] %v486_v62  ;;  %v440_v12 = vmul.f32 %v860_v2, %v422_v3  ;;  %v441_v13 = vmul.f32 %v863_v4, %v423_v5  ;;  %v425_v15 = vmul.f32 %v403_v25, %v384_v61  ;;  %v491_v16 = vadd.f32 %v475_v59, %v455_v0 }
  0x25   : > { %503 = vst [vmem:[%s899_s6 + $0x18] sm:$0xff] %v487_v63  ;;  %v426_v19 = vmul.f32 %v404_v26, %v385_v7  ;;  %v427_v20 = vmul.f32 %v404_v26, %v386_v8  ;;  %v397_v21 = vrot.slane %v858_v1, 7  ;;  %v442_v24 = vmul.f32 %v860_v2, %v424_v14 }
  0x26   : > { %504 = vst [vmem:[%s899_s6 + $0x20] sm:$0xff] %v488_v9  ;;  %v476_v22 = vmul.f32 %v866_v6, %v440_v12  ;;  %v477_v23 = vmul.f32 %v866_v6, %v441_v13  ;;  %v443_v25 = vmul.f32 %v863_v4, %v425_v15 }
  0x27   : > { %505 = vst [vmem:[%s899_s6 + $0x28] sm:$0xff] %v489_v10  ;;  %v444_v1 = vmul.f32 %v860_v2, %v426_v19  ;;  %v445_v26 = vmul.f32 %v863_v4, %v427_v20  ;;  %v405_v31 = vperm.slane %v397_v21, 0  ;;  %v478_v34 = vmul.f32 %v866_v6, %v442_v24 }
  0x28   : > { %506 = vst [vmem:[%s899_s6 + $0x30] sm:$0xff] %v490_v11  ;;  %v492_v32 = vadd.f32 %v476_v22, %v456_v17  ;;  %v493_v33 = vadd.f32 %v477_v23, %v457_v18  ;;  %v479_v35 = vmul.f32 %v866_v6, %v443_v25 }
  0x29   : > { %507 = vst [vmem:[%s899_s6 + $0x38] sm:$0xff] %v491_v16  ;;  %v480_v38 = vmul.f32 %v866_v6, %v444_v1  ;;  %v481_v39 = vmul.f32 %v866_v6, %v445_v26  ;;  %v428_v40 = vmul.f32 %v405_v31, %v387_v27  ;;  %v429_v41 = vmul.f32 %v405_v31, %v388_v28 }
  0x2a   : > { %508 = vst [vmem:[%s899_s6 + $0x40] sm:$0xff] %v492_v32  ;;  %v494_v42 = vadd.f32 %v478_v34, %v458_v29  ;;  %v495_v43 = vadd.f32 %v479_v35, %v459_v30 }
  0x2b   : > { %509 = vst [vmem:[%s899_s6 + $0x48] sm:$0xff] %v493_v33  ;;  %v496_v44 = vadd.f32 %v480_v38, %v460_v36  ;;  %v497_v45 = vadd.f32 %v481_v39, %v461_v37  ;;  %v446_v46 = vmul.f32 %v860_v2, %v428_v40  ;;  %v447_v47 = vmul.f32 %v863_v4, %v429_v41 }
  0x2c   : > { %510 = vst [vmem:[%s899_s6 + $0x50] sm:$0xff] %v494_v42 }
  0x2d   : > { %511 = vst [vmem:[%s899_s6 + $0x58] sm:$0xff] %v495_v43  ;;  %v482_v50 = vmul.f32 %v866_v6, %v446_v46  ;;  %v483_v51 = vmul.f32 %v866_v6, %v447_v47 }
  0x2e   : > { %512 = vst [vmem:[%s899_s6 + $0x60] sm:$0xff] %v496_v44 }
  0x2f   : > { %513 = vst [vmem:[%s899_s6 + $0x68] sm:$0xff] %v497_v45  ;;  %v498_v52 = vadd.f32 %v482_v50, %v462_v48  ;;  %v499_v53 = vadd.f32 %v483_v51, %v463_v49 }
  0x31   : > { %514 = vst [vmem:[%s899_s6 + $0x70] sm:$0xff] %v498_v52 }
  0x32   : > { %515 = vst [vmem:[%s899_s6 + $0x78] sm:$0xff] %v499_v53 }
  0x33 PF: > { %s15_s22 = sadd.s32 1, %s778_s22   ;;  %s986_s18 = smov %s770_s20 }
  0x34   : > { %p12_p8 = scmp.ge.s32.totalorder %s15_s22, 6   ;;  %s987_s19 = smov %s774_s21 }
  0x35   : > { %s988_s20 = smov %s991_s23  ;;  %s989_s21 = smov %s995_s24 }
  0x36   :  { %14 = sbr.rel (!%p12_p8) target bundleno = 3 (0x3), region = 82 }

// kernel: bottleneck_forward.2
= control target key start
LH: loop header
LB: loop body
LE: loop exit
PB: predicated region body
PF: predicated region fallthrough
CT: control target
= control target key end

     0   :  { %s22486_s13 = smov 0   ;;  %s22488_s14 = smov 0   ;;  %s28114_s0 = inlined_call_operand.vmem [shape: bf16[2,20,20,128], index: 0, kind: input, shape index: {}, may-alias: {0,1}]   ;;  %s28115_s1 = inlined_call_operand.vmem [shape: bf16[2,20,20,128], index: 1, kind: input, shape index: {}, may-alias: {0,1}]   ;;  %s28116_s2 = inlined_call_operand.vmem [shape: bf16[3,384,128], index: 2, kind: input, shape index: {}]   ;;  %s28117_s3 = inlined_call_operand.vmem [shape: f32[1,128], index: 3, kind: input, shape index: {}]   ;;  %s28118_s4 = inlined_call_operand.vmem [shape: f32[1,128], index: 4, kind: input, shape index: {}]   ;;  %s28119_s5 = inlined_call_operand.vmem [shape: bf16[3,384,128], index: 5, kind: input, shape index: {}]   ;;  %s28120_s6 = inlined_call_operand.vmem [shape: f32[1,128], index: 6, kind: input, shape index: {}]   ;;  %s28121_s7 = inlined_call_operand.vmem [shape: f32[1,128], index: 7, kind: input, shape index: {}]   ;;  %s28122_s8 = inlined_call_operand.vmem [shape: f32[2,16,16,128], index: 8, kind: output, shape index: {0}]   ;;  %s28123_s9 = inlined_call_operand.vmem [shape: f32[2,16,128], index: 9, kind: output, shape index: {1}]   ;;  %s28124_s10 = inlined_call_operand.vmem [shape: f32[2,2,16,128], index: 10, kind: output, shape index: {2}]  }
   0x1   :  { %s22490_s15 = smov 0   ;;  %s22492_s16 = smov 0  }
   0x2   :  { %s22494_s17 = smov 0  }
   0x3 LB: > { %s30_s18 = sadd.s32 1, %s22420_s15  ;;  %s33_s19 = sadd.s32 1, %s22424_s16  ;;  %s22428_s17 = sphi %s22494_s17, %s21_s17   ;;  %s22424_s16 = sphi %s22492_s16, %s28202_s16   ;;  %s22420_s15 = sphi %s22490_s15, %s28201_s15   ;;  %s22416_s14 = sphi %s22488_s14, %s28200_s14   ;;  %s22412_s13 = sphi %s22486_s13, %s28199_s13  }
   0x4   : > { %p31_p0 = scmp.ge.s32.totalorder %s30_s18, 2  ;;  %p14585_p1 = scmp.ge.s32.totalorder %s22428_s17, 1 }
   0x5   : > { %p379_p2 = scmp.lt.s32.totalorder %s22428_s17, 5 }
   0x6   : > { %s28204_s18 = smov (%p31_p0, %s30_s18), 0  ;;  %s28206_s19 = smov (!%p31_p0, %s33_s19), %s22424_s16 }
   0x7   : > { %p380_p3 = pnand %p14585_p1, %p379_p2  ;;  %p35_p4 = scmp.ge.s32.totalorder %s28206_s19, 2 }
   0x9   : > { %s28208_s19 = smov (%p35_p4, %s28206_s19), 0  ;;  %383 = sbr.rel (%p380_p3) target bundleno = 2871 (0xb37), region = 52 }
   0xe   : > { %v22521_v0 = vld [vmem:[%s28116_s2 + $0xf8] sm:$0xff]  ;;  %s22534_s26 = sshll.u32 %s22412_s13, 3  ;;  %p467_p5 = scmp.lt.s32.totalorder %s22416_s14, 1  ;;  %v22547_v4 = vld [vmem:[%s28116_s2 + $0xf0] sm:$0xff]  ;;  %v22575_v8 = vld [vmem:[%s28116_s2 + $0xe8] sm:$0xff]  ;;  %vm573_vm1 = vcmask 1046528  }
   0xf   : > { %v22526_v1 = vld [vmem:[%s28116_s2 + $0x138] sm:$0xff]  ;;  %p469_p6 = scmp.lt.s32.totalorder %s22534_s26, 19  ;;  %856 = vmatpush.bf16.msra.mxu0 %v22521_v0  ;;  %v22552_v5 = vld [vmem:[%s28116_s2 + $0x130] sm:$0xff]  ;;  %v22580_v9 = vld [vmem:[%s28116_s2 + $0x128] sm:$0xff]  ;;  %vm555_vm0 = vsmask.f32 7424 }
  0x10   : > { %v22531_v2 = vld [vmem:[%s28116_s2 + $0x178] sm:$0xff]  ;;  %874 = vmatpush.bf16.msra.mxu1 %v22526_v1  ;;  %s28210_s14 = smov (!%p467_p5, %s22416_s14), 1  ;;  %v22561_v6 = vld [vmem:[%s28116_s2 + $0x170] sm:$0xff]  ;;  %v22587_v10 = vld [vmem:[%s28116_s2 + $0x168] sm:$0xff]  ;;  %p1475_p7 = scmp.gt.s32.totalorder %s22412_s13, 0 }
  0x11   : > { %v22539_v3 = vld [vmem:[%s28116_s2 + $0x38] sm:$0xff]  ;;  %892 = vmatpush.bf16.msra.mxu2 %v22531_v2  ;;  %v22566_v7 = vld [vmem:[%s28116_s2 + $0x30] sm:$0xff]  ;;  %s470_s24 = scalar_select %p469_p6, %s22534_s26, 19  ;;  %v22592_v11 = vld [vmem:[%s28116_s2 + $0x28] sm:$0xff] }
  0x12   : > { %1054 = vmatpush.bf16.msra.mxu3 %v22539_v3  ;;  %s28149_s25 = smul.u32 60, %s28210_s14  ;;  %v22606_v12 = vld [vmem:[%s28116_s2 + $0xe0] sm:$0xff]  ;;  %v22631_v17 = vld [vmem:[%s28116_s2 + $0xd8] sm:$0xff]  ;;  %v22658_v23 = vld [vmem:[%s28116_s2 + $0xd0] sm:$0xff]  ;;  %p500_p8 = scmp.lt.s32.totalorder %s22534_s26, 15 }
  0x13   : > { %s22057_s27 = smul.u32 3, %s470_s24  ;;  %857 = vmatpush.bf16.msra.mxu0 %v22547_v4  ;;  %v22611_v13 = vld [vmem:[%s28116_s2 + $0x120] sm:$0xff]  ;;  %v22636_v18 = vld [vmem:[%s28116_s2 + $0x118] sm:$0xff]  ;;  %v22663_v24 = vld [vmem:[%s28116_s2 + $0x110] sm:$0xff]  ;;  %s14593_s12 = sshll.u32 %s28210_s14, 5 }
  0x14   : > { %875 = vmatpush.bf16.msra.mxu1 %v22552_v5  ;;  %v22618_v14 = vld [vmem:[%s28116_s2 + $0x160] sm:$0xff]  ;;  %v22646_v21 = vld [vmem:[%s28116_s2 + $0x158] sm:$0xff]  ;;  %v22673_v27 = vld [vmem:[%s28116_s2 + $0x150] sm:$0xff]  ;;  %s1476_s20 = scalar_select %p1475_p7, 1, 0 }
  0x15   : > { %893 = vmatpush.bf16.msra.mxu2 %v22561_v6  ;;  %s473_s23 = sadd.s32 %s28149_s25, %s22057_s27  ;;  %v22623_v15 = vld [vmem:[%s28116_s2 + $0x20] sm:$0xff]  ;;  %v22651_v22 = vld [vmem:[%s28116_s2 + $0x18] sm:$0xff]  ;;  %v22678_v28 = vld [vmem:[%s28116_s2 + $0x10] sm:$0xff]  ;;  %s28196_s25 = smul.u32 60, %s28210_s14 }
  0x16   : > { %1055 = vmatpush.bf16.msra.mxu3 %v22566_v7  ;;  %s14587_s24 = sshll.u32 %s473_s23, 2  ;;  %28152 = vst [vmem:[#allocation4_spill] sm:$0xff] %v22678_v28  ;;  %v22685_v29 = vld [vmem:[%s28116_s2 + $0xc8] sm:$0xff]  ;;  %v22711_v36 = vld [vmem:[%s28116_s2 + $0xc0] sm:$0xff]  ;;  %v22737_v44 = vld [vmem:[%s28116_s2 + $0x78] sm:$0xff]  ;;  %p510_p10 = scmp.lt.s32.totalorder %s22412_s13, 1 }
  0x17   : > { %s22599_s30 = scalar_lea.vmem %s28114_s0, %s14587_s24  ;;  %858 = vmatpush.bf16.msra.mxu0 %v22575_v8  ;;  %v22690_v30 = vld [vmem:[%s28116_s2 + $0x108] sm:$0xff]  ;;  %v22716_v37 = vld [vmem:[%s28116_s2 + $0x100] sm:$0xff]  ;;  %v22742_v45 = vld [vmem:[%s28116_s2 + $0xb8] sm:$0xff]  ;;  %s22056_s24 = sadd.s32 8, %s22534_s26 }
  0x18   : > { %876 = vmatpush.bf16.msra.mxu1 %v22580_v9  ;;  %v14606_v16 = vld [vmem:[%s22599_s30 + $0x14] sm:$0x3]  ;;  %v22639_v19 = vld [vmem:[%s22599_s30 + $0xc] sm:$0xff]  ;;  %v22723_v40 = vld [vmem:[%s28116_s2 + $0x140] sm:$0xff]  ;;  %s501_s29 = scalar_select %p500_p8, %s22534_s26, 15 }
  0x19   : > { %894 = vmatpush.bf16.msra.mxu2 %v22587_v10  ;;  %28150 = vst [vmem:[#allocation2_spill] sm:$0xff] %v22639_v19  ;;  %v636_v20 = vunpack.c.l.b16 %v14606_v16  ;;  %v644_v26 = vshll.u32 %v22639_v19, 16  ;;  %v642_v31 = vshrl.u32 %v22639_v19, 16  ;;  %v22699_v34 = vld [vmem:[%s28116_s2 + $0x148] sm:$0xff]  ;;  %v22728_v41 = vld [vmem:[%s28116_s2] sm:$0xff]  ;;  %v658_v42 = vrot.slane %v22639_v19, 1 }
  0x1a   : > { %1056 = vmatpush.bf16.msra.mxu3 %v22592_v11  ;;  %v22704_v35 = vld [vmem:[%s28116_s2 + $0x8] sm:$0xff]  ;;  %28154 = vst [vmem:[#allocation6_spill] sm:$0xff] %v22728_v41  ;;  %v22750_v47 = vld [vmem:[%s22599_s30] sm:$0xff]  ;;  %v22761_v49 = vld [vmem:[%s28116_s2 + $0x1b8] sm:$0xff]  ;;  %s14592_s11 = sshll.u32 %s501_s29, 1  ;;  %p487_p9 = scmp.lt.s32.totalorder %s22056_s24, 19 }
  0x1b   : > { %859 = vmatpush.bf16.msra.mxu0 %v22606_v12  ;;  %v22665_v25 = vpack.c.b16 %v636_v20, %v636_v20  ;;  %v646_v32 = vrot.slane %v644_v26, 1  ;;  %28153 = vst [vmem:[#allocation5_spill] sm:$0xff] %v22704_v35  ;;  %v22766_v50 = vld [vmem:[%s28116_s2 + $0x1f8] sm:$0xff]  ;;  %v22773_v51 = vld [vmem:[%s28116_s2 + $0x70] sm:$0xff]  ;;  %v22801_v55 = vld [vmem:[%s28116_s2 + $0x68] sm:$0xff]  ;;  %s28214_s13 = smov (!%p510_p10, %s22412_s13), 1 }
  0x1c   : > { %877 = vmatpush.bf16.msra.mxu1 %v22611_v13  ;;  %28158 = vst [vmem:[#allocation10_spill] sm:$0xff] %v22766_v50  ;;  %v22778_v52 = vld [vmem:[%s28116_s2 + $0xb0] sm:$0xff]  ;;  %v22806_v56 = vld [vmem:[%s28116_s2 + $0xa8] sm:$0xff]  ;;  %v22826_v60 = vld [vmem:[%s28116_s2 + $0x60] sm:$0xff]  ;;  %s28212_s24 = smov (!%p487_p9, %s22056_s24), 19  ;;  %s14597_s29 = sshll.u32 %s28214_s13, 1 }
  0x1d   : > { %895 = vmatpush.bf16.msra.mxu2 %v22618_v14  ;;  %28151 = vst [vmem:[#allocation3_spill] sm:$0xff] %v22665_v25  ;;  %v649_v33 = vshll.u32 %v22665_v25, 16  ;;  %v647_v38 = vor.u32 %v646_v32, %v642_v31  ;;  %v22732_v43 = vrot.slane %v22665_v25, 1  ;;  %v22789_v53 = vld [vmem:[%s28116_s2 + $0x1b0] sm:$0xff]  ;;  %v22813_v57 = vld [vmem:[%s28116_s2 + $0x1a8] sm:$0xff]  ;;  %v22831_v61 = vld [vmem:[%s28116_s2 + $0xa0] sm:$0xff] }
  0x1e   : > { %1057 = vmatpush.bf16.msra.mxu3 %v22623_v15  ;;  %v22794_v54 = vld [vmem:[%s28116_s2 + $0x1f0] sm:$0xff]  ;;  %v22818_v58 = vld [vmem:[%s28116_s2 + $0x1e8] sm:$0xff]  ;;  %v653_v62 = vshrl.u32 %v22665_v25, 16  ;;  %v22839_v16 = vld [vmem:[%s28116_s2 + $0x1a0] sm:$0xff] }
  0x1f   : > { %860 = vmatpush.bf16.msra.mxu0 %v22631_v17  ;;  %v651_v39 = vrot.slane %v649_v33, 1  ;;  %28155 = vst [vmem:[#allocation7_spill] sm:$0xff] %v22732_v43  ;;  %v22756_v48 = vsel %vm573_vm1, %v658_v42, %v22732_v43  ;;  %v544_v59 = vld [vmem:[%s22599_s30 + $0x8] sm:$0x3]  ;;  %v22844_v20 = vld [vmem:[%s28116_s2 + $0x1e0] sm:$0xff]  ;;  %v22851_v26 = vld [vmem:[%s28116_s2 + $0x58] sm:$0xff] }
  0x20   : > { %878 = vmatpush.bf16.msra.mxu1 %v22636_v18  ;;  %28157 = vst [vmem:[#allocation9_spill] sm:$0xff] %v22756_v48  ;;  %v550_v63 = vunpack.c.l.b16 %v544_v59  ;;  %v22856_v31 = vld [vmem:[%s28116_s2 + $0x98] sm:$0xff]  ;;  %v14853_v32 = vld [vmem:[%s22599_s30 + $0x20] sm:$0x3] }
  0x21   : > { %896 = vmatpush.bf16.msra.mxu2 %v22646_v21  ;;  %v22747_v46 = vsel %vm555_vm0, %v647_v38, %v651_v39  ;;  %28159 = vst [vmem:[#allocation11_spill] sm:$0xff] %v22794_v54  ;;  %v22859_v33 = vor.u32 %v653_v62, %v651_v39  ;;  %v22868_v42 = vld [vmem:[%s28116_s2 + $0x198] sm:$0xff]  ;;  %v1117_v39 = vunpack.c.l.b16 %v14853_v32  ;;  %v22883_v62 = vld [vmem:[%s28116_s2 + $0x50] sm:$0xff]  ;;  %v559_v32 = vshll.u32 %v22750_v47, 16 }
  0x22   : > { %1058 = vmatpush.bf16.msra.mxu3 %v22651_v22  ;;  %28156 = vst [vmem:[#allocation8_spill] sm:$0xff] %v22747_v46  ;;  %v22861_v38 = vpack.c.b16 %v550_v63, %v550_v63  ;;  %v22873_v59 = vld [vmem:[%s28116_s2 + $0x1d8] sm:$0xff]  ;;  %v22888_v63 = vld [vmem:[%s28116_s2 + $0x90] sm:$0xff] }
  0x23   : > { %861 = vmatpush.bf16.msra.mxu0 %v22658_v23  ;;  %28160 = vst [vmem:[#allocation12_spill] sm:$0xff] %v22818_v58 }
  0x24   : > { %879 = vmatpush.bf16.msra.mxu1 %v22663_v24  ;;  %28161 = vst [vmem:[#allocation13_spill] sm:$0xff] %v22844_v20 }
  0x25   : > { %897 = vmatpush.bf16.msra.mxu2 %v22673_v27  ;;  %28162 = vst [vmem:[#allocation14_spill] sm:$0xff] %v22859_v33 }
  0x26   : > { %1059 = vmatpush.bf16.msra.mxu3 %v22678_v28  ;;  %28163 = vst [vmem:[#allocation15_spill] sm:$0xff] %v22868_v42  ;;  %v22962_v28 = vld [vmem:[%s28116_s2 + $0x180] sm:$0xff] }
  0x27   : > { %862 = vmatpush.bf16.msra.mxu0 %v22685_v29  ;;  %28164 = vst [vmem:[#allocation16_spill] sm:$0xff] %v22873_v59 }
  0x28   : > { %880 = vmatpush.bf16.msra.mxu1 %v22690_v30  ;;  %28165 = vst [vmem:[#allocation17_spill] sm:$0xff] %v22883_v62 }
  0x29   : > { %898 = vmatpush.bf16.msra.mxu2 %v22699_v34  ;;  %28166 = vst [vmem:[#allocation18_spill] sm:$0xff] %v22888_v63 }
  0x2a   : > { %1060 = vmatpush.bf16.msra.mxu3 %v22704_v35 }
  0x2b   : > { %863 = vmatpush.bf16.msra.mxu0 %v22711_v36 }
  0x2c   : > { %881 = vmatpush.bf16.msra.mxu1 %v22716_v37 }
  0x2d   : > { %899 = vmatpush.bf16.msra.mxu2 %v22723_v40 }
  0x2e   : > { %1061 = vmatpush.bf16.msra.mxu3 %v22728_v41  ;;  %864 = vmatmul.bf16.vlgmr.msra.gmra.mxu0 %v22639_v19  ;;  %v564_v19 = vshll.u32 %v22861_v38, 16 }
  0x2f   : > { %1072 = vmatpush.bf16.msrb.mxu0 %v22737_v44  ;;  %882 = vmatmul.bf16.vlgmr.msra.gmra.mxu1 %v22747_v46  ;;  %v557_v46 = vshrl.u32 %v22750_v47, 16 }
  0x30   : > { %1090 = vmatpush.bf16.msrb.mxu1 %v22742_v45  ;;  %900 = vmatmul.bf16.vlgmr.msra.gmra.mxu2 %v22756_v48  ;;  %v22920_v48 = vld [vmem:[%s28116_s2 + $0x88] sm:$0xff] }
  0x31   : > { %1062 = vmatmul.bf16.vlgmr.msra.gmra.mxu3 %v22750_v47  ;;  %1337 = vmatpush.bf16.msrb.mxu2 %v22761_v49  ;;  %28170 = vst [vmem:[#allocation22_spill] sm:$0xff] %v22920_v48 }
  0x32   : > { %1355 = vmatpush.bf16.msrb.mxu3 %v22766_v50  ;;  %v22934_v50 = vld [vmem:[%s28116_s2 + $0x1c8] sm:$0xff] }
  0x33   : > { %1073 = vmatpush.bf16.msrb.mxu0 %v22773_v51  ;;  %28171 = vst [vmem:[#allocation23_spill] sm:$0xff] %v22934_v50 }
  0x34   : > { %1091 = vmatpush.bf16.msrb.mxu1 %v22778_v52 }
  0x35   : > { %1338 = vmatpush.bf16.msrb.mxu2 %v22789_v53 }
  0x36   : > { %1356 = vmatpush.bf16.msrb.mxu3 %v22794_v54  ;;  %v22929_v54 = vld [vmem:[%s28116_s2 + $0x188] sm:$0xff] }
  0x37   : > { %1074 = vmatpush.bf16.msrb.mxu0 %v22801_v55 }
  0x38   : > { %1092 = vmatpush.bf16.msrb.mxu1 %v22806_v56 }
  0x39   : > { %1339 = vmatpush.bf16.msrb.mxu2 %v22813_v57 }
  0x3a   : > { %1357 = vmatpush.bf16.msrb.mxu3 %v22818_v58  ;;  %v22876_v58 = vld [vmem:[%s22599_s30 + $0x18] sm:$0xff] }
  0x3b   : > { %1075 = vmatpush.bf16.msrb.mxu0 %v22826_v60  ;;  %v1123_v41 = vshrl.u32 %v22876_v58, 16 }
  0x3c   : > { %1093 = vmatpush.bf16.msrb.mxu1 %v22831_v61 }
  0x3d   : > { %1340 = vmatpush.bf16.msrb.mxu2 %v22839_v16 }
  0x3e   : > { %1358 = vmatpush.bf16.msrb.mxu3 %v22844_v20  ;;  %869 = vmatmul.bf16.gmra.mxu0 %v22665_v25  ;;  %v22900_v20 = vld [vmem:[%s28116_s2 + $0x190] sm:$0xff] }
  0x3f   : > { %1076 = vmatpush.bf16.msrb.mxu0 %v22851_v26  ;;  %887 = vmatmul.bf16.gmra.mxu1 %v22859_v33  ;;  %28167 = vst [vmem:[#allocation19_spill] sm:$0xff] %v22900_v20  ;;  %v22905_v25 = vld [vmem:[%s28116_s2 + $0x1d0] sm:$0xff]  ;;  %v22907_v33 = vpack.c.b16 %v1117_v39, %v1117_v39  ;;  %v561_v39 = vrot.slane %v559_v32, 1 }
  0x40   : > { %1094 = vmatpush.bf16.msrb.mxu1 %v22856_v31  ;;  %905 = vmatmul.bf16.gmra.mxu2 %v22732_v43  ;;  %28168 = vst [vmem:[#allocation20_spill] sm:$0xff] %v22905_v25  ;;  %v1125_v43 = vshll.u32 %v22876_v58, 16 }
  0x41   : > { %1067 = vmatmul.bf16.gmra.mxu3 %v22861_v38  ;;  %1341 = vmatpush.bf16.msrb.mxu2 %v22868_v42  ;;  %v1130_v32 = vshll.u32 %v22907_v33, 16  ;;  %v22967_v42 = vld [vmem:[%s28116_s2 + $0x1c0] sm:$0xff] }
  0x42   : > { %1359 = vmatpush.bf16.msrb.mxu3 %v22873_v59  ;;  %v22915_v59 = vld [vmem:[%s28116_s2 + $0x48] sm:$0xff]  ;;  %v1127_v35 = vrot.slane %v1125_v43, 1  ;;  %v22953_v43 = vld [vmem:[%s28116_s2 + $0x238] sm:$0xff] }
  0x43   : > { %1077 = vmatpush.bf16.msrb.mxu0 %v22883_v62  ;;  %28169 = vst [vmem:[#allocation21_spill] sm:$0xff] %v22915_v59  ;;  %v566_v62 = vrot.slane %v564_v19, 1  ;;  %v1132_v19 = vrot.slane %v1130_v32, 1 }
  0x44   : > { %1095 = vmatpush.bf16.msrb.mxu1 %v22888_v63  ;;  %v562_v63 = vor.u32 %v561_v39, %v557_v46  ;;  %v1128_v46 = vor.u32 %v1127_v35, %v1123_v41  ;;  %v22983_v35 = vld [vmem:[%s28116_s2 + $0x230] sm:$0xff]  ;;  %v1134_v41 = vshrl.u32 %v22907_v33, 16 }
  0x45   : > { %1342 = vmatpush.bf16.msrb.mxu2 %v22900_v20  ;;  %v22948_v20 = vld [vmem:[%s28116_s2 + $0x80] sm:$0xff] }
  0x46   : > { %1360 = vmatpush.bf16.msrb.mxu3 %v22905_v25  ;;  %v22943_v25 = vld [vmem:[%s28116_s2 + $0x40] sm:$0xff] }
  0x47   : > { %1078 = vmatpush.bf16.msrb.mxu0 %v22915_v59  ;;  %v574_v59 = vrot.slane %v22750_v47, 1  ;;  %v567_v47 = vsel %vm555_vm0, %v562_v63, %v566_v62  ;;  %v28193_v63 = vld [vmem:[#allocation23_spill] sm:$0xff] }
  0x48   : > { %1096 = vmatpush.bf16.msrb.mxu1 %v22920_v48  ;;  %v575_v48 = vrot.slane %v22861_v38, 1 }
  0x49   : > { %1343 = vmatpush.bf16.msrb.mxu2 %v22929_v54 }
  0x4a   : > { %1361 = vmatpush.bf16.msrb.mxu3 %v22934_v50  ;;  %v576_v39 = vsel %vm573_vm1, %v574_v59, %v575_v48  ;;  %v22978_v50 = vsel %vm555_vm0, %v1128_v46, %v1132_v19  ;;  %v23018_v59 = vor.u32 %v1134_v41, %v1132_v19 }
  0x4b   : > { %1079 = vmatpush.bf16.msrb.mxu0 %v22943_v25 }
  0x4c   : > { %1097 = vmatpush.bf16.msrb.mxu1 %v22948_v20 }
  0x4d   : > { %1344 = vmatpush.bf16.msrb.mxu2 %v22962_v28 }
  0x4e   : > { %1362 = vmatpush.bf16.msrb.mxu3 %v22967_v42  ;;  %1080 = vmatmul.bf16.vlgmr.msrb.gmra.mxu0 %v567_v47 }
  0x4f   : > { %1373 = vmatpush.bf16.msra.mxu0 %v22953_v43  ;;  %1098 = vmatmul.bf16.vlgmr.msrb.gmra.mxu1 %v576_v39 }
  0x50   : > { %1559 = vmatpush.bf16.msra.mxu1 %v22521_v0  ;;  %1345 = vmatmul.bf16.vlgmr.msrb.gmra.mxu2 %v22876_v58  ;;  %v22994_v0 = vld [vmem:[%s28116_s2 + $0x228] sm:$0xff] }
  0x51   : > { %1577 = vmatpush.bf16.msra.mxu2 %v22526_v1  ;;  %1363 = vmatmul.bf16.vlgmr.msrb.gmra.mxu3 %v22978_v50 }
  0x52   : > { %1595 = vmatpush.bf16.msra.mxu3 %v22531_v2  ;;  %v23003_v2 = vld [vmem:[%s28116_s2 + $0x220] sm:$0xff] }
  0x53   : > { %1374 = vmatpush.bf16.msra.mxu0 %v22983_v35 }
  0x54   : > { %1560 = vmatpush.bf16.msra.mxu1 %v22547_v4  ;;  %v568_v4 = vshrl.u32 %v22861_v38, 16  ;;  %v28192_v38 = vld [vmem:[#allocation7_spill] sm:$0xff] }
  0x55   : > { %1578 = vmatpush.bf16.msra.mxu2 %v22552_v5 }
  0x56   : > { %1596 = vmatpush.bf16.msra.mxu3 %v22561_v6  ;;  %v23014_v6 = vld [vmem:[%s28116_s2 + $0x218] sm:$0xff] }
  0x57   : > { %1375 = vmatpush.bf16.msra.mxu0 %v22994_v0 }
  0x58   : > { %1561 = vmatpush.bf16.msra.mxu1 %v22575_v8  ;;  %v570_v8 = vor.u32 %v568_v4, %v566_v62 }
  0x59   : > { %1579 = vmatpush.bf16.msra.mxu2 %v22580_v9 }
  0x5a   : > { %1597 = vmatpush.bf16.msra.mxu3 %v22587_v10  ;;  %v23025_v10 = vld [vmem:[%s28116_s2 + $0x210] sm:$0xff] }
  0x5b   : > { %1376 = vmatpush.bf16.msra.mxu0 %v23003_v2 }
  0x5c   : > { %1562 = vmatpush.bf16.msra.mxu1 %v22606_v12  ;;  %v23036_v12 = vld [vmem:[%s28116_s2 + $0x208] sm:$0xff] }
  0x5d   : > { %1580 = vmatpush.bf16.msra.mxu2 %v22611_v13 }
  0x5e   : > { %1598 = vmatpush.bf16.msra.mxu3 %v22618_v14  ;;  %1085 = vmatmul.bf16.gmra.mxu0 %v570_v8  ;;  %v23045_v14 = vld [vmem:[%s28116_s2 + $0x200] sm:$0xff] }
  0x5f   : > { %1377 = vmatpush.bf16.msra.mxu0 %v23014_v6  ;;  %1103 = vmatmul.bf16.gmra.mxu1 %v575_v48  ;;  %v28182_v48 = vld [vmem:[#allocation11_spill] sm:$0xff] }
  0x60   : > { %1563 = vmatpush.bf16.msra.mxu1 %v22631_v17  ;;  %1350 = vmatmul.bf16.gmra.mxu2 %v22907_v33  ;;  %v1139_v17 = vrot.slane %v22876_v58, 1 }
  0x61   : > { %1581 = vmatpush.bf16.msra.mxu2 %v22636_v18  ;;  %1368 = vmatmul.bf16.gmra.mxu3 %v23018_v59 }
  0x62   : > { %1599 = vmatpush.bf16.msra.mxu3 %v22646_v21  ;;  %v23051_v21 = vrot.slane %v22907_v33, 1 }
  0x63   : > { %1378 = vmatpush.bf16.msra.mxu0 %v23025_v10 }
  0x64   : > { %1564 = vmatpush.bf16.msra.mxu1 %v22658_v23  ;;  %v23061_v23 = vsel %vm573_vm1, %v1139_v17, %v23051_v21 }
  0x65   : > { %1582 = vmatpush.bf16.msra.mxu2 %v22663_v24 }
  0x66   : > { %1600 = vmatpush.bf16.msra.mxu3 %v22673_v27  ;;  %v28177_v27 = vld [vmem:[#allocation5_spill] sm:$0xff] }
  0x67   : > { %1379 = vmatpush.bf16.msra.mxu0 %v23036_v12 }
  0x68   : > { %1565 = vmatpush.bf16.msra.mxu1 %v22685_v29  ;;  %v28178_v29 = vld [vmem:[#allocation21_spill] sm:$0xff] }
  0x69   : > { %1583 = vmatpush.bf16.msra.mxu2 %v22690_v30 }
  0x6a   : > { %1601 = vmatpush.bf16.msra.mxu3 %v22699_v34  ;;  %v28179_v34 = vld [vmem:[#allocation22_spill] sm:$0xff] }
  0x6b   : > { %1380 = vmatpush.bf16.msra.mxu0 %v23045_v14 }
  0x6c   : > { %1566 = vmatpush.bf16.msra.mxu1 %v22711_v36  ;;  %v28180_v36 = vld [vmem:[#allocation6_spill] sm:$0xff] }
  0x6d   : > { %1584 = vmatpush.bf16.msra.mxu2 %v22716_v37 }
  0x6e   : > { %1602 = vmatpush.bf16.msra.mxu3 %v22723_v40  ;;  %1381 = vmatmul.bf16.vlgmr.msra.gmra.mxu0 %v23061_v23  ;;  %v28181_v40 = vld [vmem:[#allocation10_spill] sm:$0xff] }
  0x6f   : > { %1613 = vmatpush.bf16.msrb.mxu0 %v22539_v3  ;;  %1567 = vmatmul.bf16.vlgmr.msra.gmra.mxu1 %v22876_v58  ;;  %v28172_v3 = vld [vmem:[#allocation15_spill] sm:$0xff]  ;;  %v28189_v58 = vld [vmem:[#allocation20_spill] sm:$0xff] }
  0x70   : > { %1631 = vmatpush.bf16.msrb.mxu1 %v22737_v44  ;;  %1585 = vmatmul.bf16.vlgmr.msra.gmra.mxu2 %v22978_v50  ;;  %v23104_v44 = vld [vmem:[%s22599_s30 + $0x24] sm:$0xff] }
  0x71   : > { %1649 = vmatpush.bf16.msrb.mxu2 %v22742_v45  ;;  %1603 = vmatmul.bf16.vlgmr.msra.gmra.mxu3 %v23061_v23  ;;  %v1684_v62 = vshll.u32 %v23104_v44, 16  ;;  %v1682_v32 = vshrl.u32 %v23104_v44, 16  ;;  %v1698_v39 = vrot.slane %v23104_v44, 1 }
  0x72   : > { %1703 = vmatpush.bf16.msrb.mxu3 %v22761_v49  ;;  %v28183_v49 = vld [vmem:[#allocation2_spill] sm:$0xff] }
  0x73   : > { %1614 = vmatpush.bf16.msrb.mxu0 %v22566_v7  ;;  %v28173_v7 = vld [vmem:[#allocation4_spill] sm:$0xff] }
  0x74   : > { %1632 = vmatpush.bf16.msrb.mxu1 %v22773_v51  ;;  %v28184_v51 = vld [vmem:[#allocation8_spill] sm:$0xff] }
  0x75   : > { %1650 = vmatpush.bf16.msrb.mxu2 %v22778_v52 }
  0x76   : > { %1704 = vmatpush.bf16.msrb.mxu3 %v22789_v53  ;;  %v28185_v53 = vld [vmem:[#allocation9_spill] sm:$0xff] }
  0x77   : > { %1615 = vmatpush.bf16.msrb.mxu0 %v22592_v11  ;;  %v28174_v11 = vld [vmem:[#allocation17_spill] sm:$0xff] }
  0x78   : > { %1633 = vmatpush.bf16.msrb.mxu1 %v22801_v55  ;;  %v28188_v55 = vld [vmem:[#allocation16_spill] sm:$0xff] }
  0x79   : > { %1651 = vmatpush.bf16.msrb.mxu2 %v22806_v56 }
  0x7a   : > { %1705 = vmatpush.bf16.msrb.mxu3 %v22813_v57 }
  0x7b   : > { %1616 = vmatpush.bf16.msrb.mxu0 %v22623_v15  ;;  %v28175_v15 = vld [vmem:[#allocation18_spill] sm:$0xff] }
  0x7c   : > { %1634 = vmatpush.bf16.msrb.mxu1 %v22826_v60  ;;  %v28190_v60 = vld [vmem:[#allocation3_spill] sm:$0xff] }
  0x7d   : > { %1652 = vmatpush.bf16.msrb.mxu2 %v22831_v61 }
  0x7e   : > { %1706 = vmatpush.bf16.msrb.mxu3 %v22839_v16  ;;  %1386 = vmatmul.bf16.gmra.mxu0 %v23051_v21  ;;  %v28191_v16 = vld [vmem:[#allocation14_spill] sm:$0xff] }
  0x7f   : > { %1617 = vmatpush.bf16.msrb.mxu0 %v22651_v22  ;;  %1572 = vmatmul.bf16.gmra.mxu1 %v22907_v33  ;;  %v28176_v22 = vld [vmem:[#allocation19_spill] sm:$0xff] }
  0x80   : > { %1635 = vmatpush.bf16.msrb.mxu1 %v22851_v26  ;;  %1590 = vmatmul.bf16.gmra.mxu2 %v23018_v59 }
  0x81   : > { %1653 = vmatpush.bf16.msrb.mxu2 %v22856_v31  ;;  %1608 = vmatmul.bf16.gmra.mxu3 %v23051_v21 }
  0x82   : > { %1707 = vmatpush.bf16.msrb.mxu3 %v28172_v3 }
  0x83   : > { %1618 = vmatpush.bf16.msrb.mxu0 %v28173_v7 }
  0x84   : > { %1636 = vmatpush.bf16.msrb.mxu1 %v28174_v11 }
  0x85   : > { %1654 = vmatpush.bf16.msrb.mxu2 %v28175_v15 }
  0x86   : > { %1708 = vmatpush.bf16.msrb.mxu3 %v28176_v22 }
  0x87   : > { %1619 = vmatpush.bf16.msrb.mxu0 %v28177_v27 }
  0x88   : > { %1637 = vmatpush.bf16.msrb.mxu1 %v28178_v29 }
  0x89   : > { %1655 = vmatpush.bf16.msrb.mxu2 %v28179_v34 }
  0x8a   : > { %1709 = vmatpush.bf16.msrb.mxu3 %v22929_v54  ;;  %v28187_v54 = vld [vmem:[#allocation13_spill] sm:$0xff] }
  0x8b   : > { %1620 = vmatpush.bf16.msrb.mxu0 %v28180_v36 }
  0x8c   : > { %1638 = vmatpush.bf16.msrb.mxu1 %v22943_v25  ;;  %v28186_v25 = vld [vmem:[#allocation12_spill] sm:$0xff] }
  0x8d   : > { %1656 = vmatpush.bf16.msrb.mxu2 %v22948_v20 }
  0x8e   : > { %1710 = vmatpush.bf16.msrb.mxu3 %v22962_v28  ;;  %1621 = vmatmul.bf16.vlgmr.msrb.gmra.mxu0 %v28183_v49  ;;  %v15007_v28 = vld [vmem:[%s22599_s30 + $0x2c] sm:$0x3] }
  0x8f   : > { %1721 = vmatpush.bf16.msra.mxu0 %v28181_v40  ;;  %1639 = vmatmul.bf16.vlgmr.msrb.gmra.mxu1 %v28184_v51  ;;  %v1676_v57 = vunpack.c.l.b16 %v15007_v28 }
  0x90   : > { %1739 = vmatpush.bf16.msra.mxu1 %v22953_v43  ;;  %1657 = vmatmul.bf16.vlgmr.msrb.gmra.mxu2 %v28185_v53  ;;  %v1686_v43 = vrot.slane %v1684_v62, 1 }
  0x91   : > { %1711 = vmatmul.bf16.vlgmr.msrb.gmra.mxu3 %v23104_v44  ;;  %v23122_v26 = vpack.c.b16 %v1676_v57, %v1676_v57 }
  0x92   : > { %v1687_v19 = vor.u32 %v1686_v43, %v1682_v32 }
  0x93   : > { %1722 = vmatpush.bf16.msra.mxu0 %v28182_v48  ;;  %v1689_v46 = vshll.u32 %v23122_v26, 16 }
  0x94   : > { %1740 = vmatpush.bf16.msra.mxu1 %v22983_v35  ;;  %v23136_v35 = vrot.slane %v23122_v26, 1 }
  0x95   : > { %v1691_v47 = vrot.slane %v1689_v46, 1  ;;  %v20973_v46 = vld [vmem:[%s28119_s5 + $0x38] sm:$0xff] }
  0x96   : > { %v23143_v41 = vsel %vm573_vm1, %v1698_v39, %v23136_v35 }
  0x97   : > { %1723 = vmatpush.bf16.msra.mxu0 %v28186_v25  ;;  %v23139_v4 = vsel %vm555_vm0, %v1687_v19, %v1691_v47 }
  0x98   : > { %1741 = vmatpush.bf16.msra.mxu1 %v22994_v0 }
  0x9b   : > { %1724 = vmatpush.bf16.msra.mxu0 %v28187_v54 }
  0x9c   : > { %1742 = vmatpush.bf16.msra.mxu1 %v23003_v2 }
  0x9e   : > { %1626 = vmatmul.bf16.gmra.mxu0 %v28190_v60 }
  0x9f   : > { %1725 = vmatpush.bf16.msra.mxu0 %v28188_v55  ;;  %1644 = vmatmul.bf16.gmra.mxu1 %v28191_v16 }
  0xa0   : > { %1743 = vmatpush.bf16.msra.mxu1 %v23014_v6  ;;  %1662 = vmatmul.bf16.gmra.mxu2 %v28192_v38 }
  0xa1   : > { %1716 = vmatmul.bf16.gmra.mxu3 %v23122_v26 }
  0xa3   : > { %1726 = vmatpush.bf16.msra.mxu0 %v28189_v58 }
  0xa4   : > { %1744 = vmatpush.bf16.msra.mxu1 %v23025_v10 }
  0xa7   : > { %1727 = vmatpush.bf16.msra.mxu0 %v28193_v63 }
  0xa8   : > { %1745 = vmatpush.bf16.msra.mxu1 %v23036_v12  ;;  %v1693_v12 = vshrl.u32 %v23122_v26, 16 }
  0xaa   : > { %v23148_v3 = vor.u32 %v1693_v12, %v1691_v47 }
  0xab   : > { %1728 = vmatpush.bf16.msra.mxu0 %v22967_v42  ;;  %v865_v0 = vpop.f32.mrf.mxu0 }
  0xac   : > { %1746 = vmatpush.bf16.msra.mxu1 %v23045_v14  ;;  %v883_v2 = vpop.f32.mrf.mxu1 }
  0xad   : > { %v884_v43 = vadd.f32 %v883_v2, %v865_v0  ;;  %v20971_v2 = vld [vmem:[%s28119_s5 + $0x28] sm:$0xff] }
  0xae   : > { %1729 = vmatmul.bf16.vlgmr.msra.gmra.mxu0 %v23139_v4 }
  0xaf   : > { %1747 = vmatmul.bf16.vlgmr.msra.gmra.mxu1 %v23143_v41 }
  0xb0   : > { %2237 = vmatpush.bf16.msrb.mxu1 %v20973_v46 }
  0xb3   : > { %v901_v42 = vpop.f32.mrf.mxu2  ;;  %v867_v8 = vpop.f32.mrf.mxu0 }
  0xb4   : > { %v1063_v6 = vpop.f32.mrf.mxu3  ;;  %v885_v10 = vpop.f32.mrf.mxu1  ;;  %v902_v19 = vadd.f32 %v901_v42, %v884_v43 }
  0xbb   : > { %v903_v14 = vpop.f32.mrf.mxu2  ;;  %v870_v7 = vpop.f32.mrf.mxu0 }
  0xbc   : > { %v1065_v17 = vpop.f32.mrf.mxu3  ;;  %v888_v11 = vpop.f32.mrf.mxu1 }
  0xbd   : > { %v889_v22 = vadd.f32 %v888_v11, %v870_v7 }
  0xbe   : > { %1734 = vmatmul.bf16.gmra.mxu0 %v23148_v3 }
  0xbf   : > { %1752 = vmatmul.bf16.gmra.mxu1 %v23136_v35 }
  0xc3   : > { %v906_v27 = vpop.f32.mrf.mxu2  ;;  %v872_v40 = vpop.f32.mrf.mxu0 }
  0xc4   : > { %v1068_v29 = vpop.f32.mrf.mxu3  ;;  %v907_v36 = vadd.f32 %v906_v27, %v889_v22  ;;  %v890_v48 = vpop.f32.mrf.mxu1  ;;  %v20972_v22 = vld [vmem:[%s28119_s5 + $0x30] sm:$0xff]  ;;  %v1064_v27 = vadd.f32 %v1063_v6, %v902_v19  ;;  %v23166_v6 = vld [vmem:[%s28117_s3] ss:$0 sm:$0xff] }
  0xc5   : > { %2238 = vmatpush.bf16.msrb.mxu1 %v20972_v22 }
  0xc6   : > { %v1069_v49 = vadd.f32 %v1068_v29, %v907_v36  ;;  %v886_v29 = vadd.f32 %v885_v10, %v867_v8  ;;  %v20970_v8 = vld [vmem:[%s28119_s5 + $0x20] sm:$0xff] }
  0xc8   : > { %v904_v42 = vadd.f32 %v903_v14, %v886_v29  ;;  %v23174_v14 = vld [vmem:[%s28118_s4] ss:$0 sm:$0xff] }
  0xc9   : > { %2239 = vmatpush.bf16.msrb.mxu1 %v20971_v2 }
  0xca   : > { %v1066_v10 = vadd.f32 %v1065_v17, %v904_v42 }
  0xcb   : > { %v908_v51 = vpop.f32.mrf.mxu2  ;;  %v1081_v25 = vpop.f32.mrf.mxu0 }
  0xcc   : > { %v1070_v53 = vpop.f32.mrf.mxu3  ;;  %v1099_v54 = vpop.f32.mrf.mxu1  ;;  %v1082_v36 = vadd.f32 %v1081_v25, %v1064_v27 }
  0xcd   : > { %2240 = vmatpush.bf16.msrb.mxu1 %v20970_v8 }
  0xce   : > { %v1100_v53 = vadd.f32 %v1099_v54, %v1082_v36 }
  0xd3   : > { %v1346_v28 = vpop.f32.mrf.mxu2  ;;  %v1083_v57 = vpop.f32.mrf.mxu0 }
  0xd4   : > { %v1364_v55 = vpop.f32.mrf.mxu3  ;;  %v1101_v58 = vpop.f32.mrf.mxu1 }
  0xd5   : > { %v1365_v0 = vadd.f32 %v1364_v55, %v1346_v28  ;;  %v1084_v28 = vadd.f32 %v1083_v57, %v1066_v10  ;;  %v20969_v55 = vld [vmem:[%s28119_s5 + $0x18] sm:$0xff] }
  0xd6   : > { %2241 = vmatpush.bf16.msrb.mxu1 %v20969_v55 }
  0xdb   : > { %v1348_v60 = vpop.f32.mrf.mxu2  ;;  %v1086_v38 = vpop.f32.mrf.mxu0 }
  0xdc   : > { %v1366_v16 = vpop.f32.mrf.mxu3  ;;  %v1104_v62 = vpop.f32.mrf.mxu1  ;;  %v1087_v63 = vadd.f32 %v1086_v38, %v1069_v49 }
  0xde   : > { %v1105_v32 = vadd.f32 %v1104_v62, %v1087_v63  ;;  %v1367_v62 = vadd.f32 %v1366_v16, %v1348_v60 }
  0xe3   : > { %v1351_v47 = vpop.f32.mrf.mxu2  ;;  %v1088_v12 = vpop.f32.mrf.mxu0 }
  0xe4   : > { %v1369_v39 = vpop.f32.mrf.mxu3  ;;  %v1106_v7 = vpop.f32.mrf.mxu1  ;;  %v20968_v12 = vld [vmem:[%s28119_s5 + $0x10] sm:$0xff] }
  0xe5   : > { %v1370_v11 = vadd.f32 %v1369_v39, %v1351_v47  ;;  %v1102_v47 = vadd.f32 %v1101_v58, %v1084_v28  ;;  %2242 = vmatpush.bf16.msrb.mxu1 %v20968_v12  ;;  %v20967_v7 = vld [vmem:[%s28119_s5 + $0x8] sm:$0xff] }
  0xe9   : > { %2243 = vmatpush.bf16.msrb.mxu1 %v20967_v7 }
  0xeb   : > { %v1353_v40 = vpop.f32.mrf.mxu2  ;;  %v1382_v49 = vpop.f32.mrf.mxu0 }
  0xec   : > { %v1371_v48 = vpop.f32.mrf.mxu3  ;;  %v23161_v51 = vpop.f32.mrf.mxu1  ;;  %v1383_v38 = vadd.f32 %v1382_v49, %v1365_v0 }
  0xed   : > { %v20966_v48 = vld [vmem:[%s28119_s5] sm:$0xff] }
  0xee   : > { %v1391_v25 = vadd.f32 %v1383_v38, %v1100_v53  ;;  %2244 = vmatpush.bf16.msrb.mxu1 %v20966_v48 }
  0xf0   : > { %v1397_v54 = vmul.f32 %v23166_v6, %v1391_v25 }
  0xf2   : > { %v23181_v63 = vadd.f32 %v23174_v14, %v1397_v54  ;;  %2297 = vmatpush.bf16.msra.mxu1 %v22526_v1 }
  0xf3   : > { %v23183_v43 = vpop.f32.mrf.mxu2  ;;  %v1384_v46 = vpop.f32.mrf.mxu0 }
  0xf4   : > { %v23185_v17 = vpop.f32.mrf.mxu3  ;;  %v23187_v19 = vpop.f32.mrf.mxu1  ;;  %v15002_v57 = vmul.f32 -1.442695, %v23181_v63  ;;  %v1385_v39 = vadd.f32 %v1384_v46, %v1367_v62  ;;  %v529_v46 = vlaneseq }
  0xf6   : > { %22105 = vpow2.f32 %v15002_v57  ;;  %v1392_v60 = vadd.f32 %v1385_v39, %v1102_v47  ;;  %2298 = vmatpush.bf16.msra.mxu1 %v22552_v5 }
  0xf8   : > { %v1398_v16 = vmul.f32 %v23166_v6, %v1392_v60 }
  0xfa   : > { %v23198_v22 = vadd.f32 %v23174_v14, %v1398_v16  ;;  %2299 = vmatpush.bf16.msra.mxu1 %v22580_v9  ;;  %v20997_v9 = vld [vmem:[%s28119_s5 + $0xf0] sm:$0xff] }
  0xfb   : > { %v23200_v58 = vpop.f32.mrf.mxu2  ;;  %v1387_v29 = vpop.f32.mrf.mxu0 }
  0xfc   : > { %v23202_v27 = vpop.f32.mrf.mxu3  ;;  %v23204_v36 = vpop.f32.mrf.mxu1  ;;  %v15003_v2 = vmul.f32 -1.442695, %v23198_v22  ;;  %v1388_v42 = vadd.f32 %v1387_v29, %v1370_v11 }
  0xfd   : > { %v22106_v0 = vpop.eup %22105 }
  0xfe   : > { %v1415_v40 = vadd.f32 1.0, %v22106_v0  ;;  %22107 = vpow2.f32 %v15003_v2  ;;  %v1393_v49 = vadd.f32 %v1388_v42, %v1105_v32  ;;  %v20998_v32 = vld [vmem:[%s28119_s5 + $0xf8] sm:$0xff]  ;;  %v23230_v0 = vshrl.u32 %v529_v46, 7  ;;  %2300 = vmatpush.bf16.msra.mxu1 %v22611_v13  ;;  %v20996_v13 = vld [vmem:[%s28119_s5 + $0xe8] sm:$0xff] }
  0xff   : > { %2051 = vmatpush.bf16.msra.mxu2 %v20998_v32 }
 0x100   : > { %22109 = vrcp.f32 %v1415_v40  ;;  %v1399_v53 = vmul.f32 %v23166_v6, %v1393_v49  ;;  %v1429_v57 = vand.u32 2147483648, %v1415_v40  ;;  %v1427_v12 = vand.u32 2147483647, %v1415_v40 }
 0x101   : > { %vm1423_vm3 = vweird.f32 %v1415_v40  ;;  %vm533_vm6 = vcmp.ge.s32.totalorder %v23230_v0, 1 }
 0x102   : > { %v23213_v38 = vadd.f32 %v23174_v14, %v1399_v53  ;;  %v1430_v48 = vor.u32 1.1754944e-38, %v1429_v57  ;;  %vm1428_vm5 = vcmp.eq.f32.partialorder %v1427_v12, 8.507059e+37  ;;  %2301 = vmatpush.bf16.msra.mxu1 %v22636_v18 }
 0x103   : > { %v23215_v8 = vpop.f32.mrf.mxu2  ;;  %v1389_v10 = vpop.f32.mrf.mxu0  ;;  %2052 = vmatpush.bf16.msra.mxu2 %v20997_v9 }
 0x104   : > { %v23217_v11 = vpop.f32.mrf.mxu3  ;;  %v1575_v25 = vpop.f32.mrf.mxu1  ;;  %v15004_v54 = vmul.f32 -1.442695, %v23213_v38 }
 0x105   : > { %v22108_v28 = vpop.eup %22107 }
 0x106   : > { %v22110_v1 = vpop.eup %22109  ;;  %v1416_v55 = vadd.f32 1.0, %v22108_v28  ;;  %22111 = vpow2.f32 %v15004_v54  ;;  %v1477_v28 = vstv %s1476_s20  ;;  %2302 = vmatpush.bf16.msra.mxu1 %v22663_v24  ;;  %v20994_v24 = vld [vmem:[%s28119_s5 + $0xd8] sm:$0xff]  ;;  %s504_s20 = sadd.s32 %s14593_s12, %s14592_s11  ;;  %s22059_s11 = smul.u32 3, %s28212_s24 }
 0x107   : > { %v1419_v62 = vmul.f32 %v22110_v1, %v1415_v40  ;;  %vm1424_vm2 = vweird.f32 %v22110_v1  ;;  %2053 = vmatpush.bf16.msra.mxu2 %v20996_v13  ;;  %vm23251_vm8 = vcmp.eq.s32.totalorder %v1477_v28, 1  ;;  %s14594_s21 = sshll.u32 %s504_s20, 3 }
 0x108   : > { %22113 = vrcp.f32 %v1416_v55  ;;  %vm1425_vm4 = vmor %vm1423_vm3, %vm1424_vm2  ;;  %v1444_v54 = vand.u32 2147483648, %v1416_v55  ;;  %vm1438_vm9 = vweird.f32 %v1416_v55  ;;  %s24309_s23 = scalar_lea.vmem %s28122_s8, %s14594_s21  ;;  %s491_s12 = sadd.s32 %s22059_s11, %s28196_s25 }
 0x109   : > { %v1420_v47 = vsub.f32 1.0, %v1419_v62  ;;  %v1442_v62 = vand.u32 2147483647, %v1416_v55  ;;  %s14590_s22 = sshll.u32 %s491_s12, 2  ;;  %s14595_s12 = sshll.u32 %s28210_s14, 1 }
 0x10a   : > { %2303 = vmatpush.bf16.msra.mxu1 %v22690_v30  ;;  %s26027_s21 = scalar_lea.vmem %s28115_s1, %s14590_s22  ;;  %s513_s26 = sadd.s32 %s14595_s12, %s28214_s13 }
 0x10b   : > { %v1421_v39 = vmul.f32 %v22110_v1, %v1420_v47  ;;  %v1593_v60 = vpop.f32.mrf.mxu2  ;;  %v23226_v7 = vpop.f32.mrf.mxu0  ;;  %vm1443_vm11 = vcmp.eq.f32.partialorder %v1442_v62, 8.507059e+37  ;;  %s14014_s24 = scalar_select %p510_p10, 1, 0 }
 0x10c   : > { %v1611_v16 = vpop.f32.mrf.mxu3  ;;  %v23228_v5 = vpop.f32.mrf.mxu1  ;;  %v20995_v60 = vld [vmem:[%s28119_s5 + $0xe0] sm:$0xff]  ;;  %s14596_s27 = sshll.u32 %s513_s26, 3 }
 0x10d   : > { %v22112_v29 = vpop.eup %22111  ;;  %v1422_v2 = vadd.f32 %v22110_v1, %v1421_v39  ;;  %2054 = vmatpush.bf16.msra.mxu2 %v20995_v60 }
 0x10e   : > { %v22114_v42 = vpop.eup %22113  ;;  %v23238_v49 = vadd.f32 1.0, %v22112_v29  ;;  %v1445_v29 = vor.u32 1.1754944e-38, %v1444_v54  ;;  %v21005_v54 = vld [vmem:[%s28119_s5 + $0x130] sm:$0xff]  ;;  %2304 = vmatpush.bf16.msra.mxu1 %v22716_v37  ;;  %v20992_v37 = vld [vmem:[%s28119_s5 + $0xc8] sm:$0xff] }
 0x10f   : > { %v1426_v53 = vsel %vm1425_vm4, %v22110_v1, %v1422_v2  ;;  %v1434_v10 = vmul.f32 %v22114_v42, %v1416_v55  ;;  %vm1439_vm7 = vweird.f32 %v22114_v42  ;;  %v21006_v55 = vld [vmem:[%s28119_s5 + $0x138] sm:$0xff] }
 0x110   : > { %v1431_v25 = vsel %vm1428_vm5, %v1430_v48, %v1426_v53  ;;  %22115 = vrcp.f32 %v23238_v49  ;;  %vm1440_vm10 = vmor %vm1438_vm9, %vm1439_vm7  ;;  %2065 = vmatpush.bf16.msra.mxu3 %v21006_v55  ;;  %v1457_v28 = vand.u32 2147483647, %v23238_v49  ;;  %vm1453_vm13 = vweird.f32 %v23238_v49 }
 0x111   : > { %v1463_v40 = vmul.f32 %v1431_v25, %v23181_v63  ;;  %v1435_v32 = vsub.f32 1.0, %v1434_v10  ;;  %2055 = vmatpush.bf16.msra.mxu2 %v20994_v24  ;;  %v21014_v24 = vld [vmem:[%s28119_s5 + $0x178] sm:$0xff] }
 0x112   : > { %vm1458_vm15 = vcmp.eq.f32.partialorder %v1457_v28, 8.507059e+37  ;;  %2079 = vmatpush.bf16.msrb.mxu0 %v21014_v24  ;;  %v20981_v63 = vld [vmem:[%s28119_s5 + $0x78] sm:$0xff] }
 0x113   : > { %v1436_v1 = vmul.f32 %v22114_v42, %v1435_v32  ;;  %v23247_v46 = vpop.f32.mrf.mxu2  ;;  %v1472_v47 = vsel %vm533_vm6, %v1463_v40, 0.0  ;;  %v23255_v57 = vpop.f32.mrf.mxu0 }
 0x114   : > { %v23257_v39 = vpop.f32.mrf.mxu1  ;;  %v23259_v18 = vpop.f32.mrf.mxu3  ;;  %v1479_v48 = vsel %vm23251_vm8, %v1472_v47, 0.0  ;;  %2066 = vmatpush.bf16.msra.mxu3 %v21005_v54 }
 0x115   : > { %v1437_v12 = vadd.f32 %v22114_v42, %v1436_v1  ;;  %v1482_v40 = vpack.c.bf16 %v1479_v48, %v1479_v48  ;;  %v23286_v1 = vadd.s32 16, %v23230_v0 }
 0x116   : > { %v22116_v16 = vpop.eup %22115 }
 0x117   : > { %v1441_v2 = vsel %vm1440_vm10, %v22114_v42, %v1437_v12  ;;  %v1449_v9 = vmul.f32 %v22116_v16, %v23238_v49  ;;  %v1459_v42 = vand.u32 2147483648, %v23238_v49  ;;  %vm1454_vm12 = vweird.f32 %v22116_v16  ;;  %v21004_v49 = vld [vmem:[%s28119_s5 + $0x128] sm:$0xff] }
 0x118   : > { %v1446_v53 = vsel %vm1443_vm11, %v1445_v29, %v1441_v2  ;;  %v20993_v29 = vld [vmem:[%s28119_s5 + $0xd0] sm:$0xff]  ;;  %vm1455_vm14 = vmor %vm1453_vm13, %vm1454_vm12  ;;  %vm538_vm2 = vcmp.le.s32.totalorder %v23286_v1, 16  ;;  %2067 = vmatpush.bf16.msra.mxu3 %v21004_v49  ;;  %v21012_v49 = vld [vmem:[%s28119_s5 + $0x168] sm:$0xff] }
 0x119   : > { %v1464_v10 = vmul.f32 %v1446_v53, %v23198_v22  ;;  %v1450_v25 = vsub.f32 1.0, %v1449_v9  ;;  %v1460_v2 = vor.u32 1.1754944e-38, %v1459_v42  ;;  %v1487_v9 = vunpack.c.l.b16 %v1482_v40  ;;  %2056 = vmatpush.bf16.msra.mxu2 %v20993_v29  ;;  %v21002_v29 = vld [vmem:[%s28119_s5 + $0x118] sm:$0xff] }
 0x11b   : > { %v1451_v32 = vmul.f32 %v22116_v16, %v1450_v25  ;;  %v23278_v13 = vpop.f32.mrf.mxu2  ;;  %v1480_v22 = vsel %vm23251_vm8, %v1464_v10, 0.0  ;;  %v23288_v30 = vpop.f32.mrf.mxu0 }
 0x11c   : > { %v23290_v62 = vpop.f32.mrf.mxu1  ;;  %v1483_v47 = vpack.c.bf16 %v1480_v22, %v1480_v22  ;;  %v23293_v60 = vpop.f32.mrf.mxu3  ;;  %v20991_v22 = vld [vmem:[%s28119_s5 + $0xc0] sm:$0xff] }
 0x11d   : > { %v1452_v12 = vadd.f32 %v22116_v16, %v1451_v32  ;;  %2057 = vmatpush.bf16.msra.mxu2 %v20992_v37 }
 0x11e   : > { %v1488_v48 = vunpack.c.l.b16 %v1483_v47 }
 0x11f   : > { %v1456_v55 = vsel %vm1455_vm14, %v22116_v16, %v1452_v12  ;;  %v1587_v16 = vadd.f32 %v23183_v43, %v23161_v51 }
 0x120   : > { %v1461_v53 = vsel %vm1458_vm15, %v1460_v2, %v1456_v55  ;;  %v1489_v10 = vpack.c.b16 %v1488_v48, %v1487_v9  ;;  %v1589_v55 = vadd.f32 %v23200_v58, %v23187_v19 }
 0x121   : > { %v1465_v25 = vmul.f32 %v1461_v53, %v23213_v38  ;;  %v21003_v38 = vld [vmem:[%s28119_s5 + $0x120] sm:$0xff]  ;;  %v1605_v12 = vadd.f32 %v23185_v17, %v1587_v16  ;;  %2058 = vmatpush.bf16.msra.mxu2 %v20991_v22  ;;  %v20980_v53 = vld [vmem:[%s28119_s5 + $0x70] sm:$0xff] }
 0x122   : > { %2245 = vmatmul.bf16.vlgmr.msrb.gmra.mxu1 %v1489_v10  ;;  %2068 = vmatpush.bf16.msra.mxu3 %v21003_v38  ;;  %v1497_v47 = vshll.u32 %v1489_v10, 16  ;;  %v1507_v16 = vrot.slane %v1489_v10, 1 }
 0x123   : > { %v1474_v42 = vsel %vm538_vm2, %v1465_v25, 0.0  ;;  %v23315_v40 = vpop.f32.mrf.mxu2  ;;  %2369 = vmatpush.bf16.msrb.mxu1 %v22742_v45  ;;  %v1629_v43 = vpop.f32.mrf.mxu0  ;;  %v21013_v45 = vld [vmem:[%s28119_s5 + $0x170] sm:$0xff]  ;;  %v1623_v9 = vadd.f32 %v23226_v7, %v1605_v12  ;;  %v1495_v7 = vshrl.u32 %v1489_v10, 16  ;;  %v21011_v10 = vld [vmem:[%s28119_s5 + $0x160] sm:$0xff] }
 0x124   : > { %v1481_v51 = vsel %vm23251_vm8, %v1474_v42, 0.0  ;;  %v1647_v32 = vpop.f32.mrf.mxu1  ;;  %v23323_v28 = vpop.f32.mrf.mxu3  ;;  %2080 = vmatpush.bf16.msrb.mxu0 %v21013_v45  ;;  %v1499_v48 = vrot.slane %v1497_v47, 1  ;;  %v21000_v47 = vld [vmem:[%s28119_s5 + $0x108] sm:$0xff] }
 0x125   : > { %v1484_v54 = vpack.c.bf16 %v1481_v51, %v1481_v51  ;;  %2251 = vmatpush.bf16.msrb.mxu2 %v20981_v63  ;;  %v1641_v19 = vadd.f32 %v23228_v5, %v1623_v9  ;;  %v1607_v5 = vadd.f32 %v23202_v27, %v1589_v55  ;;  %v21010_v27 = vld [vmem:[%s28119_s5 + $0x158] sm:$0xff] }
 0x126   : > { %2069 = vmatpush.bf16.msra.mxu3 %v21002_v29  ;;  %v1500_v43 = vor.u32 %v1499_v48, %v1495_v7  ;;  %v1592_v29 = vadd.f32 %v23215_v8, %v23204_v36  ;;  %v20977_v55 = vld [vmem:[%s28119_s5 + $0x58] sm:$0xff] }
 0x127   : > { %v1492_v2 = vunpack.c.l.b16 %v1484_v54  ;;  %2370 = vmatpush.bf16.msrb.mxu1 %v22778_v52  ;;  %v21001_v52 = vld [vmem:[%s28119_s5 + $0x110] sm:$0xff]  ;;  %v1659_v54 = vadd.f32 %v23247_v46, %v1641_v19  ;;  %v1625_v45 = vadd.f32 %v23255_v57, %v1607_v5  ;;  %v20978_v46 = vld [vmem:[%s28119_s5 + $0x60] sm:$0xff] }
 0x128   : > { %2081 = vmatpush.bf16.msrb.mxu0 %v21012_v49  ;;  %v20999_v57 = vld [vmem:[%s28119_s5 + $0x100] sm:$0xff]  ;;  %v1610_v49 = vadd.f32 %v23217_v11, %v1592_v29  ;;  %v21008_v11 = vld [vmem:[%s28119_s5 + $0x148] sm:$0xff]  ;;  %v20984_v29 = vld [vmem:[%s28119_s5 + $0x90] sm:$0xff] }
 0x129   : > { %v1493_v17 = vpack.c.b16 %v1492_v2, %v1492_v2  ;;  %2252 = vmatpush.bf16.msrb.mxu2 %v20980_v53  ;;  %v1643_v48 = vadd.f32 %v23257_v39, %v1625_v45  ;;  %v22292_v45 = vld [vmem:[%s28116_s2 + $0xf0] sm:$0xff] }
 0x12a   : > { %2070 = vmatpush.bf16.msra.mxu3 %v21001_v52  ;;  %v1628_v52 = vadd.f32 %v23288_v30, %v1610_v49  ;;  %v20987_v30 = vld [vmem:[%s28119_s5 + $0xa8] sm:$0xff] }
 0x12b   : > { %v1665_v25 = vpop.f32.mrf.mxu2  ;;  %v1502_v37 = vshll.u32 %v1493_v17, 16  ;;  %v1508_v24 = vrot.slane %v1493_v17, 1  ;;  %2371 = vmatpush.bf16.msrb.mxu1 %v22806_v56  ;;  %v1730_v58 = vpop.f32.mrf.mxu0  ;;  %v20979_v56 = vld [vmem:[%s28119_s5 + $0x68] sm:$0xff]  ;;  %v20989_v17 = vld [vmem:[%s28119_s5 + $0xb8] sm:$0xff]  ;;  %v1661_v53 = vadd.f32 %v23278_v13, %v1643_v48  ;;  %v20976_v13 = vld [vmem:[%s28119_s5 + $0x50] sm:$0xff] }
 0x12c   : > { %v1748_v42 = vpop.f32.mrf.mxu1  ;;  %v1731_v38 = vadd.f32 %v1730_v58, %v23259_v18  ;;  %v1719_v51 = vpop.f32.mrf.mxu3  ;;  %2082 = vmatpush.bf16.msrb.mxu0 %v21011_v10 }
 0x12d   : > { %v1504_v32 = vrot.slane %v1502_v37, 1  ;;  %v23355_v22 = vsel %vm573_vm1, %v1507_v16, %v1508_v24  ;;  %2253 = vmatpush.bf16.msrb.mxu2 %v20979_v56  ;;  %v1646_v24 = vadd.f32 %v23290_v62, %v1628_v52  ;;  %v22291_v56 = vld [vmem:[%s28116_s2 + $0xf8] sm:$0xff] }
 0x12e   : > { %v1749_v18 = vadd.f32 %v1748_v42, %v1731_v38  ;;  %2071 = vmatpush.bf16.msra.mxu3 %v21000_v47  ;;  %v20975_v42 = vld [vmem:[%s28119_s5 + $0x48] sm:$0xff] }
 0x12f   : > { %v23369_v12 = vsel %vm555_vm0, %v1500_v43, %v1504_v32  ;;  %2372 = vmatpush.bf16.msrb.mxu1 %v22831_v61  ;;  %v1664_v51 = vadd.f32 %v23315_v40, %v1646_v24  ;;  %v22296_v24 = vld [vmem:[%s28116_s2 + $0xd0] sm:$0xff] }
 0x130   : > { %v1757_v63 = vadd.f32 %v1749_v18, %v1659_v54  ;;  %2083 = vmatpush.bf16.msrb.mxu0 %v21010_v27  ;;  %v20985_v18 = vld [vmem:[%s28119_s5 + $0x98] sm:$0xff] }
 0x131   : > { %2254 = vmatpush.bf16.msrb.mxu2 %v20978_v46 }
 0x132   : > { %2305 = vmatmul.bf16.vlgmr.msra.gmra.mxu1 %v23139_v4  ;;  %v1760_v61 = vmul.f32 %v23166_v6, %v1757_v63  ;;  %2072 = vmatpush.bf16.msra.mxu3 %v20999_v57 }
 0x133   : > { %2373 = vmatpush.bf16.msrb.mxu1 %v22856_v31  ;;  %v1732_v2 = vpop.f32.mrf.mxu0  ;;  %v21009_v31 = vld [vmem:[%s28119_s5 + $0x150] sm:$0xff] }
 0x134   : > { %v1750_v9 = vpop.f32.mrf.mxu1  ;;  %v23392_v36 = vadd.f32 %v23174_v14, %v1760_v61  ;;  %v1733_v8 = vadd.f32 %v1732_v2, %v23293_v60  ;;  %2084 = vmatpush.bf16.msrb.mxu0 %v21009_v31  ;;  %v20988_v60 = vld [vmem:[%s28119_s5 + $0xb0] sm:$0xff] }
 0x135   : > { %2255 = vmatpush.bf16.msrb.mxu2 %v20977_v55 }
 0x136   : > { %2265 = vmatpush.bf16.msrb.mxu3 %v20989_v17  ;;  %v15012_v39 = vmul.f32 -1.442695, %v23392_v36  ;;  %v1751_v25 = vadd.f32 %v1750_v9, %v1733_v8  ;;  %v20983_v9 = vld [vmem:[%s28119_s5 + $0x88] sm:$0xff]  ;;  %v22294_v8 = vld [vmem:[%s28116_s2 + $0xe0] sm:$0xff] }
 0x137   : > { %2374 = vmatpush.bf16.msrb.mxu1 %v28175_v15 }
 0x138   : > { %22117 = vpow2.f32 %v15012_v39  ;;  %v1758_v7 = vadd.f32 %v1751_v25, %v1661_v53  ;;  %2085 = vmatpush.bf16.msrb.mxu0 %v21008_v11  ;;  %v20982_v25 = vld [vmem:[%s28119_s5 + $0x80] sm:$0xff] }
 0x139   : > { %2256 = vmatpush.bf16.msrb.mxu2 %v20976_v13 }
 0x13a   : > { %2266 = vmatpush.bf16.msrb.mxu3 %v20988_v60  ;;  %v1761_v15 = vmul.f32 %v23166_v6, %v1758_v7  ;;  %v22295_v7 = vld [vmem:[%s28116_s2 + $0xd8] sm:$0xff] }
 0x13b   : > { %2375 = vmatpush.bf16.msrb.mxu1 %v28179_v34  ;;  %v1735_v37 = vpop.f32.mrf.mxu0  ;;  %v21007_v34 = vld [vmem:[%s28119_s5 + $0x140] sm:$0xff] }
 0x13c   : > { %v1753_v16 = vpop.f32.mrf.mxu1  ;;  %v23422_v19 = vadd.f32 %v23174_v14, %v1761_v15  ;;  %v1736_v58 = vadd.f32 %v1735_v37, %v23323_v28  ;;  %2086 = vmatpush.bf16.msrb.mxu0 %v21007_v34  ;;  %v20986_v28 = vld [vmem:[%s28119_s5 + $0xa0] sm:$0xff] }
 0x13d   : > { %2257 = vmatpush.bf16.msrb.mxu2 %v20975_v42 }
 0x13e   : > { %2267 = vmatpush.bf16.msrb.mxu3 %v20987_v30  ;;  %v22118_v38 = vpop.eup %22117  ;;  %v15013_v43 = vmul.f32 -1.442695, %v23422_v19  ;;  %v1754_v62 = vadd.f32 %v1753_v16, %v1736_v58 }
 0x13f   : > { %2376 = vmatpush.bf16.msrb.mxu1 %v22948_v20  ;;  %v1775_v32 = vadd.f32 1.0, %v22118_v38  ;;  %v20974_v20 = vld [vmem:[%s28119_s5 + $0x40] sm:$0xff] }
 0x140   : > { %22119 = vpow2.f32 %v15013_v43  ;;  %v1759_v10 = vadd.f32 %v1754_v62, %v1664_v51  ;;  %2279 = vmatpush.bf16.msra.mxu0 %v22291_v56  ;;  %v22297_v51 = vld [vmem:[%s28116_s2 + $0xc8] sm:$0xff] }
 0x141   : > { %22121 = vrcp.f32 %v1775_v32  ;;  %2258 = vmatpush.bf16.msrb.mxu2 %v20974_v20  ;;  %v1789_v2 = vand.u32 2147483648, %v1775_v32  ;;  %v1787_v48 = vand.u32 2147483647, %v1775_v32  ;;  %vm1783_vm4 = vweird.f32 %v1775_v32 }
 0x142   : > { %2268 = vmatpush.bf16.msrb.mxu3 %v20986_v28  ;;  %2310 = vmatmul.bf16.gmra.mxu1 %v23148_v3  ;;  %v1762_v40 = vmul.f32 %v23166_v6, %v1759_v10 }
 0x143   : > { %v1737_v5 = vpop.f32.mrf.mxu0  ;;  %v1790_v53 = vor.u32 1.1754944e-38, %v1789_v2  ;;  %vm1788_vm7 = vcmp.eq.f32.partialorder %v1787_v48, 8.507059e+37  ;;  %v22300_v2 = vld [vmem:[%s28116_s2 + $0x170] sm:$0xff] }
 0x144   : > { %v1755_v54 = vpop.f32.mrf.mxu1  ;;  %v23449_v47 = vadd.f32 %v23174_v14, %v1762_v40  ;;  %2280 = vmatpush.bf16.msra.mxu0 %v22292_v45  ;;  %v22293_v14 = vld [vmem:[%s28116_s2 + $0xe8] sm:$0xff]  ;;  %v22298_v5 = vld [vmem:[%s28116_s2 + $0xc0] sm:$0xff] }
 0x146   : > { %2269 = vmatpush.bf16.msrb.mxu3 %v20985_v18  ;;  %v22120_v63 = vpop.eup %22119  ;;  %v15014_v27 = vmul.f32 -1.442695, %v23449_v47 }
 0x147   : > { %v22122_v6 = vpop.eup %22121  ;;  %v1776_v46 = vadd.f32 1.0, %v22120_v63 }
 0x148   : > { %v1779_v61 = vmul.f32 %v22122_v6, %v1775_v32  ;;  %22123 = vpow2.f32 %v15014_v27  ;;  %2281 = vmatpush.bf16.msra.mxu0 %v22293_v14  ;;  %vm1784_vm3 = vweird.f32 %v22122_v6 }
 0x149   : > { %22125 = vrcp.f32 %v1776_v46  ;;  %vm1785_vm5 = vmor %vm1783_vm4, %vm1784_vm3  ;;  %v1804_v37 = vand.u32 2147483648, %v1776_v46  ;;  %v1802_v30 = vand.u32 2147483647, %v1776_v46  ;;  %vm1798_vm9 = vweird.f32 %v1776_v46 }
 0x14a   : > { %2270 = vmatpush.bf16.msrb.mxu3 %v20984_v29  ;;  %v1780_v57 = vsub.f32 1.0, %v1779_v61  ;;  %v22299_v29 = vld [vmem:[%s28116_s2 + $0x178] sm:$0xff] }
 0x14b   : > { %vm1803_vm11 = vcmp.eq.f32.partialorder %v1802_v30, 8.507059e+37  ;;  %v22311_v30 = vld [vmem:[%s28116_s2 + $0x148] sm:$0xff] }
 0x14c   : > { %v1781_v17 = vmul.f32 %v22122_v6, %v1780_v57  ;;  %2282 = vmatpush.bf16.msra.mxu0 %v22294_v8 }
 0x14e   : > { %2271 = vmatpush.bf16.msrb.mxu3 %v20983_v9  ;;  %v22124_v31 = vpop.eup %22123  ;;  %v1782_v55 = vadd.f32 %v22122_v6, %v1781_v17  ;;  %v22301_v17 = vld [vmem:[%s28116_s2 + $0x168] sm:$0xff] }
 0x14f   : > { %v22126_v49 = vpop.eup %22125  ;;  %v1777_v39 = vadd.f32 1.0, %v22124_v31 }
 0x150   : > { %v1786_v60 = vsel %vm1785_vm5, %v22122_v6, %v1782_v55  ;;  %v1794_v52 = vmul.f32 %v22126_v49, %v1776_v46  ;;  %2283 = vmatpush.bf16.msra.mxu0 %v22295_v7  ;;  %vm1799_vm8 = vweird.f32 %v22126_v49  ;;  %v22304_v7 = vld [vmem:[%s28116_s2 + $0x38] sm:$0xff] }
 0x151   : > { %v1791_v11 = vsel %vm1788_vm7, %v1790_v53, %v1786_v60  ;;  %22127 = vrcp.f32 %v1777_v39  ;;  %vm1800_vm10 = vmor %vm1798_vm9, %vm1799_vm8  ;;  %v1819_v10 = vand.u32 2147483648, %v1777_v39  ;;  %v1817_v40 = vand.u32 2147483647, %v1777_v39 }
 0x152   : > { %2272 = vmatpush.bf16.msrb.mxu3 %v20982_v25  ;;  %2377 = vmatmul.bf16.vlgmr.msrb.gmra.mxu1 %v23061_v23  ;;  %v1795_v13 = vsub.f32 1.0, %v1794_v52  ;;  %v1823_v15 = vmul.f32 %v1791_v11, %v23392_v36  ;;  %v1805_v23 = vor.u32 1.1754944e-38, %v1804_v37  ;;  %vm1813_vm13 = vweird.f32 %v1777_v39  ;;  %v22302_v25 = vld [vmem:[%s28116_s2 + $0x160] sm:$0xff]  ;;  %v22303_v52 = vld [vmem:[%s28116_s2 + $0x78] sm:$0xff]  ;;  %v22308_v37 = vld [vmem:[%s28116_s2 + $0x150] sm:$0xff] }
 0x153   : > { %v1820_v63 = vor.u32 1.1754944e-38, %v1819_v10  ;;  %vm1818_vm15 = vcmp.eq.f32.partialorder %v1817_v40, 8.507059e+37  ;;  %v22305_v11 = vld [vmem:[%s28116_s2 + $0x158] sm:$0xff] }
 0x154   : > { %v1796_v16 = vmul.f32 %v22126_v49, %v1795_v13  ;;  %2284 = vmatpush.bf16.msra.mxu0 %v22296_v24  ;;  %v1826_v42 = vsel %vm533_vm6, %v1823_v15, 0.0  ;;  %v22306_v13 = vld [vmem:[%s28116_s2 + $0x70] sm:$0xff]  ;;  %v22312_v24 = vld [vmem:[%s28116_s2 + $0x60] sm:$0xff]  ;;  %v22326_v10 = vld [vmem:[%s28116_s2 + $0x238] sm:$0xff] }
 0x155   : > { %v1829_v62 = vpack.c.bf16 %v1826_v42, %v1826_v42  ;;  %v22307_v15 = vld [vmem:[%s28116_s2 + $0x30] sm:$0xff]  ;;  %v22315_v42 = vld [vmem:[%s28116_s2 + $0x58] sm:$0xff] }
 0x156   : > { %v1797_v58 = vadd.f32 %v22126_v49, %v1796_v16  ;;  %v22310_v16 = vld [vmem:[%s28116_s2 + $0x28] sm:$0xff]  ;;  %v22329_v40 = vld [vmem:[%s22599_s30 + $0x18] sm:$0xff] }
 0x157   : > { %v22128_v34 = vpop.eup %22127  ;;  %v1834_v54 = vunpack.c.l.b16 %v1829_v62  ;;  %v22323_v62 = vld [vmem:[%s28116_s2 + $0x8] sm:$0xff] }
 0x158   : > { %v1801_v38 = vsel %vm1800_vm10, %v22126_v49, %v1797_v58  ;;  %v1809_v36 = vmul.f32 %v22128_v34, %v1777_v39  ;;  %2285 = vmatpush.bf16.msra.mxu0 %v22297_v51  ;;  %vm1814_vm12 = vweird.f32 %v22128_v34  ;;  %v22313_v58 = vld [vmem:[%s28116_s2 + $0x20] sm:$0xff]  ;;  %v22321_v51 = vld [vmem:[%s28116_s2 + $0x48] sm:$0xff] }
 0x159   : > { %v1806_v43 = vsel %vm1803_vm11, %v1805_v23, %v1801_v38  ;;  %vm1815_vm14 = vmor %vm1813_vm13, %vm1814_vm12  ;;  %v22316_v23 = vld [vmem:[%s28116_s2 + $0x1b8] sm:$0xff]  ;;  %v22318_v38 = vld [vmem:[%s28116_s2 + $0x50] sm:$0xff] }
 0x15a   : > { %v1824_v32 = vmul.f32 %v1806_v43, %v23422_v19  ;;  %v1810_v28 = vsub.f32 1.0, %v1809_v36  ;;  %v22320_v36 = vld [vmem:[%s28116_s2 + $0x10] sm:$0xff]  ;;  %v22322_v43 = vld [vmem:[%s28116_s2 + $0x1a8] sm:$0xff] }
 0x15c   : > { %v1830_v56 = vpack.c.bf16 %v1824_v32, %v1824_v32  ;;  %v1811_v20 = vmul.f32 %v22128_v34, %v1810_v28  ;;  %2286 = vmatpush.bf16.msra.mxu0 %v22298_v5  ;;  %v22324_v32 = vld [vmem:[%s28116_s2 + $0x40] sm:$0xff]  ;;  %v22330_v5 = vld [vmem:[%s28116_s2 + $0x198] sm:$0xff] }
 0x15d   : > { %v22325_v28 = vld [vmem:[%s28116_s2 + $0x1a0] sm:$0xff] }
 0x15e   : > { %v1835_v18 = vunpack.c.l.b16 %v1830_v56  ;;  %v1812_v45 = vadd.f32 %v22128_v34, %v1811_v20  ;;  %v22327_v56 = vld [vmem:[%s28116_s2] sm:$0xff]  ;;  %v22328_v20 = vld [vmem:[%s28116_s2 + $0x1f8] sm:$0xff] }
 0x160   : > { %v1816_v27 = vsel %vm1815_vm14, %v22128_v34, %v1812_v45  ;;  %v23487_v19 = vpack.c.b16 %v1835_v18, %v1834_v54  ;;  %v22314_v34 = vld [vmem:[%s28116_s2 + $0x140] sm:$0xff]  ;;  %v22331_v54 = vld [vmem:[%s28116_s2 + $0x230] sm:$0xff] }
 0x161   : > { %v1821_v6 = vsel %vm1818_vm15, %v1820_v63, %v1816_v27  ;;  %v22332_v18 = vld [vmem:[%s28116_s2 + $0x1f0] sm:$0xff]  ;;  %v22334_v63 = vld [vmem:[%s28116_s2 + $0x228] sm:$0xff] }
 0x162   : > { %2382 = vmatmul.bf16.gmra.mxu1 %v23051_v21  ;;  %v1825_v46 = vmul.f32 %v1821_v6, %v23449_v47  ;;  %2059 = vmatmul.bf16.vlgmr.msra.gmra.mxu2 %v23487_v19  ;;  %v1844_v57 = vshll.u32 %v23487_v19, 16  ;;  %v1854_v48 = vrot.slane %v23487_v19, 1  ;;  %v1842_v31 = vshrl.u32 %v23487_v19, 16  ;;  %v22333_v45 = vld [vmem:[%s28116_s2 + $0x190] sm:$0xff]  ;;  %v22335_v27 = vld [vmem:[%s28116_s2 + $0x1e8] sm:$0xff] }
 0x163   : > { %2315 = vmatpush.bf16.msra.mxu2 %v22299_v29  ;;  %v22336_v6 = vld [vmem:[%s28116_s2 + $0x188] sm:$0xff]  ;;  %v22338_v29 = vld [vmem:[%s28116_s2 + $0x1e0] sm:$0xff] }
 0x164   : > { %v1828_v61 = vsel %vm538_vm2, %v1825_v46, 0.0  ;;  %v1846_v9 = vrot.slane %v1844_v57, 1  ;;  %v22337_v46 = vld [vmem:[%s28116_s2 + $0x220] sm:$0xff]  ;;  %v23634_v57 = vld [vmem:[%s22599_s30 + $0x30] sm:$0xff] }
 0x165   : > { %v1831_v14 = vpack.c.bf16 %v1828_v61, %v1828_v61  ;;  %v15257_v61 = vld [vmem:[%s22599_s30 + $0x38] sm:$0x3] }
 0x166   : > { %v1847_v53 = vor.u32 %v1846_v9, %v1842_v31 }
 0x167   : > { %2316 = vmatpush.bf16.msra.mxu2 %v22300_v2  ;;  %v1839_v21 = vunpack.c.l.b16 %v1831_v14  ;;  %v22339_v14 = vld [vmem:[%s28116_s2 + $0x180] sm:$0xff]  ;;  %v22340_v2 = vld [vmem:[%s28116_s2 + $0x218] sm:$0xff] }
 0x169   : > { %v1840_v47 = vpack.c.b16 %v1839_v21, %v1839_v21  ;;  %v2396_v21 = vunpack.c.l.b16 %v15257_v61 }
 0x16b   : > { %2317 = vmatpush.bf16.msra.mxu2 %v22301_v17  ;;  %v1855_v8 = vrot.slane %v1840_v47, 1  ;;  %v1849_v55 = vshll.u32 %v1840_v47, 16  ;;  %v22341_v47 = vld [vmem:[%s28116_s2 + $0x1d8] sm:$0xff]  ;;  %v23644_v9 = vpack.c.b16 %v2396_v21, %v2396_v21  ;;  %v2404_v17 = vshll.u32 %v23634_v57, 16 }
 0x16d   : > { %v23507_v49 = vsel %vm573_vm1, %v1854_v48, %v1855_v8  ;;  %v1851_v39 = vrot.slane %v1849_v55, 1  ;;  %v22342_v48 = vld [vmem:[%s28116_s2 + $0x210] sm:$0xff]  ;;  %v2402_v8 = vshrl.u32 %v23634_v57, 16  ;;  %v2406_v31 = vrot.slane %v2404_v17, 1  ;;  %v22344_v55 = vld [vmem:[%s28116_s2 + $0x208] sm:$0xff] }
 0x16e   : > { %2087 = vmatmul.bf16.vlgmr.msrb.gmra.mxu0 %v23507_v49 }
 0x16f   : > { %2318 = vmatpush.bf16.msra.mxu2 %v22302_v25  ;;  %v23514_v60 = vsel %vm555_vm0, %v1847_v53, %v1851_v39  ;;  %2351 = vmatpush.bf16.msrb.mxu0 %v22303_v52  ;;  %v22345_v53 = vld [vmem:[%s28116_s2 + $0x1c8] sm:$0xff]  ;;  %v2407_v39 = vor.u32 %v2406_v31, %v2402_v8  ;;  %v22346_v52 = vld [vmem:[%s28116_s2 + $0x200] sm:$0xff] }
 0x170   : > { %2073 = vmatmul.bf16.vlgmr.msra.gmra.mxu3 %v23514_v60 }
 0x171   : > { %2333 = vmatpush.bf16.msra.mxu3 %v22304_v7  ;;  %v22347_v7 = vld [vmem:[%s28116_s2 + $0x1c0] sm:$0xff] }
 0x172   : > { %2259 = vmatmul.bf16.vlgmr.msrb.gmra.mxu2 %v23369_v12  ;;  %v22309_v12 = vld [vmem:[%s28116_s2 + $0x68] sm:$0xff] }
 0x173   : > { %2319 = vmatpush.bf16.msra.mxu2 %v22305_v11  ;;  %2352 = vmatpush.bf16.msrb.mxu0 %v22306_v13  ;;  %v2418_v13 = vrot.slane %v23634_v57, 1 }
 0x175   : > { %2334 = vmatpush.bf16.msra.mxu3 %v22307_v15  ;;  %v23676_v15 = vrot.slane %v23644_v9, 1 }
 0x177   : > { %2320 = vmatpush.bf16.msra.mxu2 %v22308_v37  ;;  %2353 = vmatpush.bf16.msrb.mxu0 %v22309_v12  ;;  %v2413_v37 = vshrl.u32 %v23644_v9, 16  ;;  %v23681_v12 = vsel %vm573_vm1, %v2418_v13, %v23676_v15 }
 0x179   : > { %2335 = vmatpush.bf16.msra.mxu3 %v22310_v16 }
 0x17b   : > { %2321 = vmatpush.bf16.msra.mxu2 %v22311_v30  ;;  %2354 = vmatpush.bf16.msrb.mxu0 %v22312_v24 }
 0x17d   : > { %2336 = vmatpush.bf16.msra.mxu3 %v22313_v58 }
 0x17e   : > { %2287 = vmatmul.bf16.vlgmr.msra.gmra.mxu0 %v23104_v44  ;;  %v22317_v44 = vld [vmem:[%s28116_s2 + $0x18] sm:$0xff] }
 0x17f   : > { %2322 = vmatpush.bf16.msra.mxu2 %v22314_v34  ;;  %2355 = vmatpush.bf16.msrb.mxu0 %v22315_v42 }
 0x180   : > { %2273 = vmatmul.bf16.vlgmr.msrb.gmra.mxu3 %v23355_v22  ;;  %v22319_v22 = vld [vmem:[%s28116_s2 + $0x1b0] sm:$0xff] }
 0x181   : > { %2337 = vmatpush.bf16.msra.mxu3 %v22317_v44 }
 0x182   : > { %2323 = vmatmul.bf16.vlgmr.msra.gmra.mxu2 %v23143_v41 }
 0x183   : > { %2423 = vmatpush.bf16.msrb.mxu2 %v22316_v23  ;;  %2356 = vmatpush.bf16.msrb.mxu0 %v22318_v38 }
 0x185   : > { %2338 = vmatpush.bf16.msra.mxu3 %v22320_v36 }
 0x187   : > { %2424 = vmatpush.bf16.msrb.mxu2 %v22319_v22  ;;  %2357 = vmatpush.bf16.msrb.mxu0 %v22321_v51 }
 0x189   : > { %2339 = vmatpush.bf16.msra.mxu3 %v22323_v62 }
 0x18b   : > { %2425 = vmatpush.bf16.msrb.mxu2 %v22322_v43  ;;  %2358 = vmatpush.bf16.msrb.mxu0 %v22324_v32 }
 0x18d   : > { %2340 = vmatpush.bf16.msra.mxu3 %v22327_v56 }
 0x18e   : > { %2292 = vmatmul.bf16.gmra.mxu0 %v23122_v26 }
 0x18f   : > { %2426 = vmatpush.bf16.msrb.mxu2 %v22325_v28  ;;  %2459 = vmatpush.bf16.msra.mxu0 %v22326_v10 }
 0x190   : > { %2341 = vmatmul.bf16.vlgmr.msra.gmra.mxu3 %v22329_v40 }
 0x191   : > { %2441 = vmatpush.bf16.msrb.mxu3 %v22328_v20 }
 0x192   : > { %2328 = vmatmul.bf16.gmra.mxu2 %v23136_v35 }
 0x193   : > { %2427 = vmatpush.bf16.msrb.mxu2 %v22330_v5  ;;  %2460 = vmatpush.bf16.msra.mxu0 %v22331_v54 }
 0x195   : > { %2442 = vmatpush.bf16.msrb.mxu3 %v22332_v18 }
 0x197   : > { %2428 = vmatpush.bf16.msrb.mxu2 %v22333_v45  ;;  %2461 = vmatpush.bf16.msra.mxu0 %v22334_v63 }
 0x199   : > { %2443 = vmatpush.bf16.msrb.mxu3 %v22335_v27 }
 0x19b   : > { %2429 = vmatpush.bf16.msrb.mxu2 %v22336_v6  ;;  %2462 = vmatpush.bf16.msra.mxu0 %v22337_v46 }
 0x19d   : > { %2444 = vmatpush.bf16.msrb.mxu3 %v22338_v29 }
 0x19e   : > { %2359 = vmatmul.bf16.vlgmr.msrb.gmra.mxu0 %v22978_v50  ;;  %v22343_v50 = vld [vmem:[%s28116_s2 + $0x1d0] sm:$0xff] }
 0x19f   : > { %2430 = vmatpush.bf16.msrb.mxu2 %v22339_v14  ;;  %2463 = vmatpush.bf16.msra.mxu0 %v22340_v2  ;;  %v21023_v2 = vld [vmem:[%s28119_s5 + $0x1b8] sm:$0xff] }
 0x1a0   : > { %2346 = vmatmul.bf16.gmra.mxu3 %v22907_v33  ;;  %v2409_v33 = vshll.u32 %v23644_v9, 16  ;;  %2771 = vmatpush.bf16.msra.mxu1 %v21023_v2  ;;  %v21036_v2 = vld [vmem:[%s28119_s5 + $0x220] sm:$0xff] }
 0x1a1   : > { %2445 = vmatpush.bf16.msrb.mxu3 %v22341_v47 }
 0x1a2   : > { %2431 = vmatmul.bf16.vlgmr.msrb.gmra.mxu2 %v23634_v57  ;;  %v2411_v25 = vrot.slane %v2409_v33, 1 }
 0x1a3   : > { %2464 = vmatpush.bf16.msra.mxu0 %v22342_v48  ;;  %v21022_v48 = vld [vmem:[%s28119_s5 + $0x1b0] sm:$0xff] }
 0x1a4   : > { %v23669_v11 = vsel %vm555_vm0, %v2407_v39, %v2411_v25  ;;  %v23683_v16 = vor.u32 %v2413_v37, %v2411_v25  ;;  %2772 = vmatpush.bf16.msra.mxu1 %v21022_v48  ;;  %v21021_v39 = vld [vmem:[%s28119_s5 + $0x1a8] sm:$0xff]  ;;  %v21071_v37 = vld [vmem:[%s28119_s5 + $0xf8] sm:$0xff] }
 0x1a5   : > { %2446 = vmatpush.bf16.msrb.mxu3 %v22343_v50 }
 0x1a7   : > { %2465 = vmatpush.bf16.msra.mxu0 %v22344_v55 }
 0x1a8   : > { %2773 = vmatpush.bf16.msra.mxu1 %v21021_v39  ;;  %v21078_v39 = vld [vmem:[%s28119_s5 + $0x130] sm:$0xff] }
 0x1a9   : > { %2447 = vmatpush.bf16.msrb.mxu3 %v22345_v53 }
 0x1ab   : > { %2466 = vmatpush.bf16.msra.mxu0 %v22346_v52  ;;  %v21020_v52 = vld [vmem:[%s28119_s5 + $0x1a0] sm:$0xff] }
 0x1ac   : > { %2774 = vmatpush.bf16.msra.mxu1 %v21020_v52  ;;  %v21066_v52 = vld [vmem:[%s28119_s5 + $0xd0] sm:$0xff] }
 0x1ad   : > { %2448 = vmatpush.bf16.msrb.mxu3 %v22347_v7 }
 0x1ae   : > { %2364 = vmatmul.bf16.gmra.mxu0 %v23018_v59  ;;  %v2246_v59 = vpop.f32.mrf.mxu1 }
 0x1af   : > { %3124 = vmatpush.bf16.msrb.mxu0 %v21071_v37 }
 0x1b0   : > { %2449 = vmatmul.bf16.vlgmr.msrb.gmra.mxu3 %v23669_v11 }
 0x1b2   : > { %2436 = vmatmul.bf16.gmra.mxu2 %v23644_v9 }
 0x1b6   : > { %v23688_v30 = vpop.f32.mrf.mxu1 }
 0x1be   : > { %2467 = vmatmul.bf16.vlgmr.msra.gmra.mxu0 %v23681_v12  ;;  %v2306_v24 = vpop.f32.mrf.mxu1 }
 0x1c0   : > { %2454 = vmatmul.bf16.gmra.mxu3 %v23683_v16 }
 0x1c6   : > { %v23690_v58 = vpop.f32.mrf.mxu1 }
 0x1ce   : > { %2472 = vmatmul.bf16.gmra.mxu0 %v23676_v15  ;;  %v23692_v23 = vpop.f32.mrf.mxu1 }
 0x1d6   : > { %v2313_v51 = vpop.f32.mrf.mxu1 }
 0x1d7   : > { %v21038_v51 = vld [vmem:[%s28119_s5 + $0x230] sm:$0xff] }
 0x1de   : > { %v2378_v20 = vpop.f32.mrf.mxu1 }
 0x1e5   : > { %v2060_v34 = vpop.f32.mrf.mxu2 }
 0x1e6   : > { %v23706_v45 = vpop.f32.mrf.mxu1 }
 0x1eb   : > { %v2088_v42 = vpop.f32.mrf.mxu0 }
 0x1ed   : > { %v23694_v44 = vpop.f32.mrf.mxu2 }
 0x1ee   : > { %v23712_v46 = vpop.f32.mrf.mxu1 }
 0x1f3   : > { %v2074_v38 = vpop.f32.mrf.mxu3  ;;  %v23696_v22 = vpop.f32.mrf.mxu0 }
 0x1f4   : > { %v2075_v36 = vadd.f32 %v2074_v38, %v2060_v34  ;;  %v21070_v38 = vld [vmem:[%s28119_s5 + $0xf0] sm:$0xff] }
 0x1f5   : > { %v2260_v43 = vpop.f32.mrf.mxu2  ;;  %3125 = vmatpush.bf16.msrb.mxu0 %v21070_v38  ;;  %v21077_v38 = vld [vmem:[%s28119_s5 + $0x128] sm:$0xff] }
 0x1f6   : > { %v2089_v62 = vadd.f32 %v2088_v42, %v2075_v36  ;;  %v2385_v21 = vpop.f32.mrf.mxu1  ;;  %v21019_v42 = vld [vmem:[%s28119_s5 + $0x198] sm:$0xff]  ;;  %v21030_v36 = vld [vmem:[%s28119_s5 + $0x1f0] sm:$0xff] }
 0x1f7   : > { %2775 = vmatpush.bf16.msra.mxu1 %v21019_v42  ;;  %v21016_v21 = vld [vmem:[%s28119_s5 + $0x180] sm:$0xff] }
 0x1f8   : > { %v2247_v32 = vadd.f32 %v2246_v59, %v2089_v62  ;;  %v21031_v59 = vld [vmem:[%s28119_s5 + $0x1f8] sm:$0xff] }
 0x1f9   : > { %2785 = vmatpush.bf16.msra.mxu2 %v21031_v59  ;;  %v21026_v59 = vld [vmem:[%s28119_s5 + $0x1d0] sm:$0xff] }
 0x1fa   : > { %v2261_v28 = vadd.f32 %v2260_v43, %v2247_v32  ;;  %v21018_v43 = vld [vmem:[%s28119_s5 + $0x190] sm:$0xff] }
 0x1fb   : > { %v23698_v10 = vpop.f32.mrf.mxu3  ;;  %v2288_v56 = vpop.f32.mrf.mxu0  ;;  %2776 = vmatpush.bf16.msra.mxu1 %v21018_v43 }
 0x1fc   : > { %v2307_v17 = vadd.f32 %v2306_v24, %v2288_v56  ;;  %v21039_v24 = vld [vmem:[%s28119_s5 + $0x238] sm:$0xff]  ;;  %v21029_v56 = vld [vmem:[%s28119_s5 + $0x1e8] sm:$0xff] }
 0x1fd   : > { %v23700_v40 = vpop.f32.mrf.mxu2  ;;  %2799 = vmatpush.bf16.msra.mxu3 %v21039_v24  ;;  %2786 = vmatpush.bf16.msra.mxu2 %v21030_v36  ;;  %v21034_v24 = vld [vmem:[%s28119_s5 + $0x210] sm:$0xff] }
 0x201   : > { %2800 = vmatpush.bf16.msra.mxu3 %v21038_v51  ;;  %2787 = vmatpush.bf16.msra.mxu2 %v21029_v56  ;;  %v21065_v51 = vld [vmem:[%s28119_s5 + $0xc8] sm:$0xff] }
 0x203   : > { %v2274_v5 = vpop.f32.mrf.mxu3  ;;  %v23702_v54 = vpop.f32.mrf.mxu0 }
 0x204   : > { %v23704_v18 = vadd.f32 %v2274_v5, %v2261_v28  ;;  %v21069_v28 = vld [vmem:[%s28119_s5 + $0xe8] sm:$0xff]  ;;  %v2309_v42 = vadd.f32 %v23690_v58, %v23702_v54 }
 0x205   : > { %v2324_v63 = vpop.f32.mrf.mxu2  ;;  %3126 = vmatpush.bf16.msrb.mxu0 %v21069_v28  ;;  %v21025_v58 = vld [vmem:[%s28119_s5 + $0x1c8] sm:$0xff] }
 0x206   : > { %v2325_v50 = vadd.f32 %v2324_v63, %v2307_v17  ;;  %v21017_v63 = vld [vmem:[%s28119_s5 + $0x188] sm:$0xff]  ;;  %v21079_v17 = vld [vmem:[%s28119_s5 + $0x138] sm:$0xff] }
 0x207   : > { %2777 = vmatpush.bf16.msra.mxu1 %v21017_v63  ;;  %v21033_v54 = vld [vmem:[%s28119_s5 + $0x208] sm:$0xff]  ;;  %v21064_v63 = vld [vmem:[%s28119_s5 + $0xc0] sm:$0xff] }
 0x20b   : > { %v23708_v27 = vpop.f32.mrf.mxu3  ;;  %v23710_v6 = vpop.f32.mrf.mxu0  ;;  %2778 = vmatpush.bf16.msra.mxu1 %v21016_v21  ;;  %v21087_v21 = vld [vmem:[%s28119_s5 + $0x178] sm:$0xff] }
 0x20d   : > { %v23714_v29 = vpop.f32.mrf.mxu2 }
 0x20e   : > { %v2327_v43 = vadd.f32 %v23714_v29, %v2309_v42  ;;  %v21076_v29 = vld [vmem:[%s28119_s5 + $0x120] sm:$0xff]  ;;  %v21046_v42 = vld [vmem:[%s28119_s5 + $0x30] sm:$0xff] }
 0x20f   : > { %3138 = vmatpush.bf16.msrb.mxu1 %v21079_v17  ;;  %v21047_v17 = vld [vmem:[%s28119_s5 + $0x38] sm:$0xff] }
 0x213   : > { %v2295_v61 = vpop.f32.mrf.mxu0  ;;  %v2342_v14 = vpop.f32.mrf.mxu3  ;;  %3139 = vmatpush.bf16.msrb.mxu1 %v21078_v39 }
 0x214   : > { %v2343_v8 = vadd.f32 %v2342_v14, %v2325_v50  ;;  %v21068_v61 = vld [vmem:[%s28119_s5 + $0xe0] sm:$0xff] }
 0x215   : > { %v23719_v47 = vpop.f32.mrf.mxu2  ;;  %v21028_v14 = vld [vmem:[%s28119_s5 + $0x1e0] sm:$0xff]  ;;  %3127 = vmatpush.bf16.msrb.mxu0 %v21068_v61 }
 0x216   : > { %2788 = vmatpush.bf16.msra.mxu2 %v21028_v14  ;;  %v23843_v14 = vld [vmem:[%s28117_s3] ss:$0 sm:$0xff] }
 0x217   : > { %3140 = vmatpush.bf16.msrb.mxu1 %v21077_v38  ;;  %v21074_v38 = vld [vmem:[%s28119_s5 + $0x110] sm:$0xff] }
 0x21b   : > { %v23724_v31 = vpop.f32.mrf.mxu3  ;;  %v2360_v33 = vpop.f32.mrf.mxu0  ;;  %3141 = vmatpush.bf16.msrb.mxu1 %v21076_v29 }
 0x21c   : > { %v2361_v55 = vadd.f32 %v2360_v33, %v2343_v8  ;;  %v21067_v8 = vld [vmem:[%s28119_s5 + $0xd8] sm:$0xff]  ;;  %v2345_v56 = vadd.f32 %v23724_v31, %v2327_v43  ;;  %v21085_v43 = vld [vmem:[%s28119_s5 + $0x168] sm:$0xff] }
 0x21d   : > { %v2331_v53 = vpop.f32.mrf.mxu2  ;;  %v21027_v33 = vld [vmem:[%s28119_s5 + $0x1d8] sm:$0xff]  ;;  %3128 = vmatpush.bf16.msrb.mxu0 %v21067_v8  ;;  %v22349_v8 = vld [vmem:[%s28118_s4] ss:$0 sm:$0xff] }
 0x21e   : > { %v23729_v25 = vadd.f32 %v2378_v20, %v2361_v55  ;;  %v21037_v20 = vld [vmem:[%s28119_s5 + $0x228] sm:$0xff]  ;;  %v21035_v55 = vld [vmem:[%s28119_s5 + $0x218] sm:$0xff]  ;;  %2789 = vmatpush.bf16.msra.mxu2 %v21027_v33 }
 0x21f   : > { %2801 = vmatpush.bf16.msra.mxu3 %v21037_v20 }
 0x221   : > { %3129 = vmatpush.bf16.msrb.mxu0 %v21066_v52 }
 0x222   : > { %2790 = vmatpush.bf16.msra.mxu2 %v21026_v59  ;;  %v21054_v59 = vld [vmem:[%s28119_s5 + $0x70] sm:$0xff] }
 0x223   : > { %v23734_v7 = vpop.f32.mrf.mxu3  ;;  %v23736_v13 = vpop.f32.mrf.mxu0  ;;  %2802 = vmatpush.bf16.msra.mxu3 %v21036_v2  ;;  %v21032_v2 = vld [vmem:[%s28119_s5 + $0x200] sm:$0xff] }
 0x224   : > { %v2363_v61 = vadd.f32 %v23736_v13, %v2345_v56  ;;  %v21055_v13 = vld [vmem:[%s28119_s5 + $0x78] sm:$0xff] }
 0x225   : > { %v2432_v34 = vpop.f32.mrf.mxu2  ;;  %3130 = vmatpush.bf16.msrb.mxu0 %v21065_v51 }
 0x226   : > { %2791 = vmatpush.bf16.msra.mxu2 %v21025_v58 }
 0x227   : > { %2803 = vmatpush.bf16.msra.mxu3 %v21035_v55  ;;  %v21075_v55 = vld [vmem:[%s28119_s5 + $0x118] sm:$0xff] }
 0x228   : > { %3142 = vmatpush.bf16.msrb.mxu1 %v21075_v55 }
 0x229   : > { %3131 = vmatpush.bf16.msrb.mxu0 %v21064_v63  ;;  %v21052_v63 = vld [vmem:[%s28119_s5 + $0x60] sm:$0xff] }
 0x22b   : > { %v2349_v62 = vpop.f32.mrf.mxu3  ;;  %v23762_v32 = vpop.f32.mrf.mxu0  ;;  %2804 = vmatpush.bf16.msra.mxu3 %v21034_v24  ;;  %v21086_v24 = vld [vmem:[%s28119_s5 + $0x170] sm:$0xff] }
 0x22c   : > { %3143 = vmatpush.bf16.msrb.mxu1 %v21074_v38 }
 0x22d   : > { %v23773_v5 = vpop.f32.mrf.mxu2  ;;  %3324 = vmatpush.bf16.msra.mxu0 %v21055_v13 }
 0x22f   : > { %2805 = vmatpush.bf16.msra.mxu3 %v21033_v54 }
 0x231   : > { %3325 = vmatpush.bf16.msra.mxu0 %v21054_v59 }
 0x233   : > { %v2367_v48 = vpop.f32.mrf.mxu0  ;;  %v2450_v50 = vpop.f32.mrf.mxu3  ;;  %2806 = vmatpush.bf16.msra.mxu3 %v21032_v2  ;;  %v21072_v2 = vld [vmem:[%s28119_s5 + $0x100] sm:$0xff] }
 0x234   : > { %v2451_v37 = vadd.f32 %v2450_v50, %v2432_v34  ;;  %v2312_v48 = vadd.f32 %v23692_v23, %v23710_v6  ;;  %v2381_v6 = vadd.f32 %v23706_v45, %v2363_v61 }
 0x235   : > { %v23802_v53 = vpop.f32.mrf.mxu2 }
 0x236   : > { %v2330_v23 = vadd.f32 %v23719_v47, %v2312_v48  ;;  %v21043_v48 = vld [vmem:[%s28119_s5 + $0x18] sm:$0xff] }
 0x237   : > { %3310 = vmatpush.bf16.msrb.mxu3 %v21047_v17  ;;  %v21083_v17 = vld [vmem:[%s28119_s5 + $0x158] sm:$0xff] }
 0x238   : > { %v2348_v47 = vadd.f32 %v23734_v7, %v2330_v23  ;;  %v21053_v7 = vld [vmem:[%s28119_s5 + $0x68] sm:$0xff] }
 0x239   : > { %3326 = vmatpush.bf16.msra.mxu0 %v21053_v7  ;;  %v21048_v7 = vld [vmem:[%s28119_s5 + $0x40] sm:$0xff] }
 0x23b   : > { %v2452_v34 = vpop.f32.mrf.mxu3  ;;  %v2468_v36 = vpop.f32.mrf.mxu0  ;;  %3311 = vmatpush.bf16.msrb.mxu3 %v21046_v42 }
 0x23c   : > { %v2469_v62 = vadd.f32 %v2468_v36, %v2451_v37  ;;  %v2453_v50 = vadd.f32 %v2452_v34, %v23773_v5  ;;  %v2366_v34 = vadd.f32 %v23762_v32, %v2348_v47  ;;  %v21073_v32 = vld [vmem:[%s28119_s5 + $0x108] sm:$0xff] }
 0x23d   : > { %v2439_v28 = vpop.f32.mrf.mxu2  ;;  %3144 = vmatpush.bf16.msrb.mxu1 %v21073_v32  ;;  %3327 = vmatpush.bf16.msra.mxu0 %v21052_v63  ;;  %v21081_v47 = vld [vmem:[%s28119_s5 + $0x148] sm:$0xff] }
 0x23e   : > { %v2477_v20 = vadd.f32 %v2469_v62, %v23729_v25  ;;  %v21024_v25 = vld [vmem:[%s28119_s5 + $0x1c0] sm:$0xff]  ;;  %v21045_v62 = vld [vmem:[%s28119_s5 + $0x28] sm:$0xff]  ;;  %v2384_v56 = vadd.f32 %v23712_v46, %v2366_v34 }
 0x23f   : > { %2792 = vmatpush.bf16.msra.mxu2 %v21024_v25  ;;  %3312 = vmatpush.bf16.msrb.mxu3 %v21045_v62  ;;  %v21044_v25 = vld [vmem:[%s28119_s5 + $0x20] sm:$0xff] }
 0x240   : > { %v2480_v31 = vmul.f32 %v23843_v14, %v2477_v20 }
 0x241   : > { %3145 = vmatpush.bf16.msrb.mxu1 %v21072_v2 }
 0x242   : > { %v23867_v33 = vadd.f32 %v22349_v8, %v2480_v31  ;;  %v21084_v31 = vld [vmem:[%s28119_s5 + $0x160] sm:$0xff] }
 0x243   : > { %v2455_v39 = vpop.f32.mrf.mxu3  ;;  %v2470_v52 = vpop.f32.mrf.mxu0  ;;  %3152 = vmatpush.bf16.msrb.mxu2 %v21087_v21  ;;  %3313 = vmatpush.bf16.msrb.mxu3 %v21044_v25  ;;  %v21051_v21 = vld [vmem:[%s28119_s5 + $0x58] sm:$0xff] }
 0x244   : > { %v15262_v5 = vmul.f32 -1.442695, %v23867_v33  ;;  %v2471_v37 = vadd.f32 %v2470_v52, %v2453_v50  ;;  %v2456_v36 = vadd.f32 %v2455_v39, %v23802_v53  ;;  %3328 = vmatpush.bf16.msra.mxu0 %v21051_v21  ;;  %v21050_v52 = vld [vmem:[%s28119_s5 + $0x50] sm:$0xff] }
 0x246   : > { %22129 = vpow2.f32 %v15262_v5  ;;  %v2478_v45 = vadd.f32 %v2471_v37, %v2381_v6  ;;  %v21082_v5 = vld [vmem:[%s28119_s5 + $0x150] sm:$0xff] }
 0x247   : > { %3153 = vmatpush.bf16.msrb.mxu2 %v21086_v24  ;;  %3314 = vmatpush.bf16.msrb.mxu3 %v21043_v48  ;;  %v21049_v24 = vld [vmem:[%s28119_s5 + $0x48] sm:$0xff] }
 0x248   : > { %v2481_v51 = vmul.f32 %v23843_v14, %v2478_v45  ;;  %3329 = vmatpush.bf16.msra.mxu0 %v21050_v52  ;;  %v21041_v45 = vld [vmem:[%s28119_s5 + $0x8] sm:$0xff] }
 0x24a   : > { %v23900_v58 = vadd.f32 %v22349_v8, %v2481_v51 }
 0x24b   : > { %v2457_v53 = vpop.f32.mrf.mxu3  ;;  %v2473_v54 = vpop.f32.mrf.mxu0  ;;  %3154 = vmatpush.bf16.msrb.mxu2 %v21085_v43 }
 0x24c   : > { %v22130_v28 = vpop.eup %22129  ;;  %v15263_v20 = vmul.f32 -1.442695, %v23900_v58  ;;  %v2474_v29 = vadd.f32 %v2473_v54, %v2456_v36  ;;  %3330 = vmatpush.bf16.msra.mxu0 %v21049_v24  ;;  %v21080_v53 = vld [vmem:[%s28119_s5 + $0x140] sm:$0xff] }
 0x24d   : > { %v2495_v61 = vadd.f32 1.0, %v22130_v28  ;;  %v21040_v54 = vld [vmem:[%s28119_s5] sm:$0xff] }
 0x24e   : > { %22131 = vpow2.f32 %v15263_v20  ;;  %v2479_v46 = vadd.f32 %v2474_v29, %v2384_v56 }
 0x24f   : > { %22133 = vrcp.f32 %v2495_v61  ;;  %3155 = vmatpush.bf16.msrb.mxu2 %v21084_v31  ;;  %v2509_v42 = vand.u32 2147483648, %v2495_v61  ;;  %v2507_v34 = vand.u32 2147483647, %v2495_v61  ;;  %vm2503_vm4 = vweird.f32 %v2495_v61 }
 0x250   : > { %v2482_v13 = vmul.f32 %v23843_v14, %v2479_v46  ;;  %3331 = vmatpush.bf16.msra.mxu0 %v21048_v7 }
 0x251   : > { %v2510_v62 = vor.u32 1.1754944e-38, %v2509_v42  ;;  %vm2508_vm7 = vcmp.eq.f32.partialorder %v2507_v34, 8.507059e+37  ;;  %v21063_v42 = vld [vmem:[%s28119_s5 + $0xb8] sm:$0xff] }
 0x252   : > { %v23929_v50 = vadd.f32 %v22349_v8, %v2482_v13  ;;  %v21042_v8 = vld [vmem:[%s28119_s5 + $0x10] sm:$0xff] }
 0x253   : > { %v2475_v55 = vpop.f32.mrf.mxu0  ;;  %3156 = vmatpush.bf16.msrb.mxu2 %v21083_v17  ;;  %3315 = vmatpush.bf16.msrb.mxu3 %v21042_v8 }
 0x254   : > { %v22132_v14 = vpop.eup %22131  ;;  %v15264_v39 = vmul.f32 -1.442695, %v23929_v50 }
 0x255   : > { %v22134_v23 = vpop.eup %22133  ;;  %v2496_v6 = vadd.f32 1.0, %v22132_v14 }
 0x256   : > { %v2499_v37 = vmul.f32 %v22134_v23, %v2495_v61  ;;  %22135 = vpow2.f32 %v15264_v39  ;;  %vm2504_vm3 = vweird.f32 %v22134_v23 }
 0x257   : > { %22137 = vrcp.f32 %v2496_v6  ;;  %3157 = vmatpush.bf16.msrb.mxu2 %v21082_v5  ;;  %3316 = vmatpush.bf16.msrb.mxu3 %v21041_v45  ;;  %vm2505_vm5 = vmor %vm2503_vm4, %vm2504_vm3  ;;  %v2524_v61 = vand.u32 2147483648, %v2496_v6  ;;  %v2522_v25 = vand.u32 2147483647, %v2496_v6  ;;  %vm2518_vm9 = vweird.f32 %v2496_v6 }
 0x258   : > { %v2500_v59 = vsub.f32 1.0, %v2499_v37 }
 0x259   : > { %v2525_v21 = vor.u32 1.1754944e-38, %v2524_v61  ;;  %vm2523_vm11 = vcmp.eq.f32.partialorder %v2522_v25, 8.507059e+37  ;;  %v21132_v25 = vld [vmem:[%s28116_s2 + $0x160] sm:$0xff] }
 0x25a   : > { %v2501_v38 = vmul.f32 %v22134_v23, %v2500_v59 }
 0x25b   : > { %3158 = vmatpush.bf16.msrb.mxu2 %v21081_v47  ;;  %3317 = vmatpush.bf16.msrb.mxu3 %v21040_v54 }
 0x25c   : > { %v22136_v36 = vpop.eup %22135  ;;  %v2502_v51 = vadd.f32 %v22134_v23, %v2501_v38 }
 0x25d   : > { %v22138_v43 = vpop.eup %22137  ;;  %v2497_v32 = vadd.f32 1.0, %v22136_v36  ;;  %v21062_v36 = vld [vmem:[%s28119_s5 + $0xb0] sm:$0xff] }
 0x25e   : > { %v2506_v28 = vsel %vm2505_vm5, %v22134_v23, %v2502_v51  ;;  %v2514_v56 = vmul.f32 %v22138_v43, %v2496_v6  ;;  %vm2519_vm8 = vweird.f32 %v22138_v43  ;;  %v21134_v51 = vld [vmem:[%s28116_s2 + $0x170] sm:$0xff] }
 0x25f   : > { %v2511_v20 = vsel %vm2508_vm7, %v2510_v62, %v2506_v28  ;;  %22139 = vrcp.f32 %v2497_v32  ;;  %3159 = vmatpush.bf16.msrb.mxu2 %v21080_v53  ;;  %vm2520_vm10 = vmor %vm2518_vm9, %vm2519_vm8  ;;  %v2539_v52 = vand.u32 2147483648, %v2497_v32  ;;  %v2537_v8 = vand.u32 2147483647, %v2497_v32  ;;  %v21133_v53 = vld [vmem:[%s28116_s2 + $0x168] sm:$0xff] }
 0x260   : > { %v2515_v29 = vsub.f32 1.0, %v2514_v56  ;;  %v2543_v63 = vmul.f32 %v2511_v20, %v23867_v33  ;;  %vm2533_vm13 = vweird.f32 %v2497_v32 }
 0x261   : > { %v2540_v24 = vor.u32 1.1754944e-38, %v2539_v52  ;;  %vm2538_vm15 = vcmp.eq.f32.partialorder %v2537_v8, 8.507059e+37  ;;  %v21125_v52 = vld [vmem:[%s28116_s2 + $0x128] sm:$0xff]  ;;  %v21124_v8 = vld [vmem:[%s28116_s2 + $0x120] sm:$0xff] }
 0x262   : > { %v2516_v31 = vmul.f32 %v22138_v43, %v2515_v29  ;;  %v2546_v13 = vsel %vm533_vm6, %v2543_v63, 0.0  ;;  %v21060_v29 = vld [vmem:[%s28119_s5 + $0xa0] sm:$0xff] }
 0x263   : > { %v2549_v14 = vpack.c.bf16 %v2546_v13, %v2546_v13 }
 0x264   : > { %v2517_v46 = vadd.f32 %v22138_v43, %v2516_v31  ;;  %v21127_v31 = vld [vmem:[%s28116_s2 + $0x138] sm:$0xff] }
 0x265   : > { %v22140_v2 = vpop.eup %22139  ;;  %v2554_v6 = vunpack.c.l.b16 %v2549_v14  ;;  %v21131_v14 = vld [vmem:[%s28116_s2 + $0x158] sm:$0xff] }
 0x266   : > { %v2521_v17 = vsel %vm2520_vm10, %v22138_v43, %v2517_v46  ;;  %v2529_v48 = vmul.f32 %v22140_v2, %v2497_v32  ;;  %vm2534_vm12 = vweird.f32 %v22140_v2  ;;  %v21061_v32 = vld [vmem:[%s28119_s5 + $0xa8] sm:$0xff] }
 0x267   : > { %v2526_v55 = vsel %vm2523_vm11, %v2525_v21, %v2521_v17  ;;  %vm2535_vm14 = vmor %vm2533_vm13, %vm2534_vm12  ;;  %v21119_v21 = vld [vmem:[%s28116_s2 + $0xf8] sm:$0xff] }
 0x268   : > { %v2544_v39 = vmul.f32 %v2526_v55, %v23900_v58  ;;  %v2530_v33 = vsub.f32 1.0, %v2529_v48  ;;  %v21135_v58 = vld [vmem:[%s28116_s2 + $0x178] sm:$0xff]  ;;  %v21126_v55 = vld [vmem:[%s28116_s2 + $0x130] sm:$0xff] }
 0x269   : > { %v21059_v48 = vld [vmem:[%s28119_s5 + $0x98] sm:$0xff] }
 0x26a   : > { %v2550_v23 = vpack.c.bf16 %v2544_v39, %v2544_v39  ;;  %v2531_v5 = vmul.f32 %v22140_v2, %v2530_v33  ;;  %v21118_v39 = vld [vmem:[%s28116_s2 + $0xf0] sm:$0xff] }
 0x26b   : > { %v21058_v33 = vld [vmem:[%s28119_s5 + $0x90] sm:$0xff] }
 0x26c   : > { %v2555_v37 = vunpack.c.l.b16 %v2550_v23  ;;  %v2532_v59 = vadd.f32 %v22140_v2, %v2531_v5  ;;  %v21130_v23 = vld [vmem:[%s28116_s2 + $0x150] sm:$0xff]  ;;  %v21057_v5 = vld [vmem:[%s28119_s5 + $0x88] sm:$0xff] }
 0x26e   : > { %v23969_v47 = vpack.c.b16 %v2555_v37, %v2554_v6  ;;  %v2536_v45 = vsel %vm2535_vm14, %v22140_v2, %v2532_v59  ;;  %v21129_v6 = vld [vmem:[%s28116_s2 + $0x148] sm:$0xff]  ;;  %v21116_v37 = vld [vmem:[%s28116_s2 + $0xe0] sm:$0xff] }
 0x26f   : > { %v2541_v38 = vsel %vm2538_vm15, %v2540_v24, %v2536_v45  ;;  %v21056_v59 = vld [vmem:[%s28119_s5 + $0x80] sm:$0xff]  ;;  %v21123_v24 = vld [vmem:[%s28116_s2 + $0x118] sm:$0xff] }
 0x270   : > { %v2545_v34 = vmul.f32 %v2541_v38, %v23929_v50  ;;  %2779 = vmatmul.bf16.vlgmr.msra.gmra.mxu1 %v23969_v47  ;;  %3132 = vmatmul.bf16.vlgmr.msrb.gmra.mxu0 %v23969_v47  ;;  %v2564_v50 = vshll.u32 %v23969_v47, 16  ;;  %v2574_v56 = vrot.slane %v23969_v47, 1  ;;  %v2562_v63 = vshrl.u32 %v23969_v47, 16  ;;  %v21128_v45 = vld [vmem:[%s28116_s2 + $0x140] sm:$0xff]  ;;  %v21122_v38 = vld [vmem:[%s28116_s2 + $0x110] sm:$0xff] }
 0x271   : > { %3338 = vmatpush.bf16.msra.mxu1 %v21063_v42  ;;  %3628 = vmatpush.bf16.msrb.mxu0 %v21135_v58  ;;  %v21095_v42 = vld [vmem:[%s28116_s2 + $0x38] sm:$0xff] }
 0x272   : > { %v2548_v7 = vsel %vm538_vm2, %v2545_v34, 0.0  ;;  %v2566_v28 = vrot.slane %v2564_v50, 1  ;;  %v21115_v58 = vld [vmem:[%s28116_s2 + $0xd8] sm:$0xff]  ;;  %v21094_v34 = vld [vmem:[%s28116_s2 + $0x30] sm:$0xff] }
 0x273   : > { %v2551_v43 = vpack.c.bf16 %v2548_v7, %v2548_v7  ;;  %v21113_v7 = vld [vmem:[%s28116_s2 + $0xc8] sm:$0xff]  ;;  %v21111_v50 = vld [vmem:[%s28116_s2 + $0xb8] sm:$0xff] }
 0x274   : > { %v2567_v2 = vor.u32 %v2566_v28, %v2562_v63  ;;  %v21110_v28 = vld [vmem:[%s28116_s2 + $0xb0] sm:$0xff]  ;;  %v21109_v63 = vld [vmem:[%s28116_s2 + $0xa8] sm:$0xff] }
 0x275   : > { %v2559_v62 = vunpack.c.l.b16 %v2551_v43  ;;  %3339 = vmatpush.bf16.msra.mxu1 %v21062_v36  ;;  %3629 = vmatpush.bf16.msrb.mxu0 %v21134_v51  ;;  %v21114_v36 = vld [vmem:[%s28116_s2 + $0xd0] sm:$0xff]  ;;  %v21093_v51 = vld [vmem:[%s28116_s2 + $0x28] sm:$0xff]  ;;  %v21092_v43 = vld [vmem:[%s28116_s2 + $0x20] sm:$0xff] }
 0x277   : > { %v2560_v54 = vpack.c.b16 %v2559_v62, %v2559_v62  ;;  %v21112_v62 = vld [vmem:[%s28116_s2 + $0xc0] sm:$0xff] }
 0x279   : > { %3340 = vmatpush.bf16.msra.mxu1 %v21061_v32  ;;  %v2575_v20 = vrot.slane %v2560_v54, 1  ;;  %v2569_v61 = vshll.u32 %v2560_v54, 16  ;;  %3630 = vmatpush.bf16.msrb.mxu0 %v21133_v53  ;;  %v21103_v32 = vld [vmem:[%s28116_s2 + $0x78] sm:$0xff] }
 0x27a   : > { %v21144_v53 = vld [vmem:[%s28116_s2 + $0x1b8] sm:$0xff] }
 0x27b   : > { %v24001_v46 = vsel %vm573_vm1, %v2574_v56, %v2575_v20  ;;  %v2571_v13 = vrot.slane %v2569_v61, 1  ;;  %v21091_v54 = vld [vmem:[%s28116_s2 + $0x18] sm:$0xff]  ;;  %v21102_v56 = vld [vmem:[%s28116_s2 + $0x70] sm:$0xff]  ;;  %v21101_v61 = vld [vmem:[%s28116_s2 + $0x68] sm:$0xff] }
 0x27c   : > { %2807 = vmatmul.bf16.vlgmr.msra.gmra.mxu3 %v24001_v46  ;;  %v21090_v20 = vld [vmem:[%s28116_s2 + $0x10] sm:$0xff] }
 0x27d   : > { %3341 = vmatpush.bf16.msra.mxu1 %v21060_v29  ;;  %v24008_v17 = vsel %vm555_vm0, %v2567_v2, %v2571_v13  ;;  %3610 = vmatpush.bf16.msra.mxu3 %v21127_v31  ;;  %v21143_v29 = vld [vmem:[%s28116_s2 + $0x1b0] sm:$0xff]  ;;  %v21089_v31 = vld [vmem:[%s28116_s2 + $0x8] sm:$0xff]  ;;  %v21100_v2 = vld [vmem:[%s28116_s2 + $0x60] sm:$0xff] }
 0x27e   : > { %2793 = vmatmul.bf16.vlgmr.msra.gmra.mxu2 %v24008_v17  ;;  %3631 = vmatpush.bf16.msrb.mxu0 %v21132_v25  ;;  %v21108_v25 = vld [vmem:[%s28116_s2 + $0xa0] sm:$0xff] }
 0x27f   : > { %3592 = vmatpush.bf16.msra.mxu2 %v21119_v21  ;;  %v21141_v13 = vld [vmem:[%s28116_s2 + $0x1a0] sm:$0xff] }
 0x280   : > { %3146 = vmatmul.bf16.vlgmr.msrb.gmra.mxu1 %v24008_v17  ;;  %3332 = vmatmul.bf16.vlgmr.msra.gmra.mxu0 %v23514_v60  ;;  %v21117_v60 = vld [vmem:[%s28116_s2 + $0xe8] sm:$0xff]  ;;  %v21088_v21 = vld [vmem:[%s28116_s2] sm:$0xff] }
 0x281   : > { %3342 = vmatpush.bf16.msra.mxu1 %v21059_v48  ;;  %3611 = vmatpush.bf16.msra.mxu3 %v21126_v55  ;;  %v21107_v48 = vld [vmem:[%s28116_s2 + $0x98] sm:$0xff] }
 0x282   : > { %3632 = vmatpush.bf16.msrb.mxu0 %v21131_v14  ;;  %v21152_v55 = vld [vmem:[%s28116_s2 + $0x1f8] sm:$0xff] }
 0x283   : > { %3593 = vmatpush.bf16.msra.mxu2 %v21118_v39  ;;  %v21099_v14 = vld [vmem:[%s28116_s2 + $0x58] sm:$0xff] }
 0x284   : > { %v21140_v39 = vld [vmem:[%s28116_s2 + $0x198] sm:$0xff] }
 0x285   : > { %3343 = vmatpush.bf16.msra.mxu1 %v21058_v33  ;;  %3612 = vmatpush.bf16.msra.mxu3 %v21125_v52  ;;  %v21106_v33 = vld [vmem:[%s28116_s2 + $0x90] sm:$0xff] }
 0x286   : > { %3633 = vmatpush.bf16.msrb.mxu0 %v21130_v23  ;;  %v21151_v52 = vld [vmem:[%s28116_s2 + $0x1f0] sm:$0xff] }
 0x287   : > { %3594 = vmatpush.bf16.msra.mxu2 %v21117_v60  ;;  %v21098_v23 = vld [vmem:[%s28116_s2 + $0x50] sm:$0xff]  ;;  %v22350_v60 = vld [vmem:[%s22599_s30 + $0x24] sm:$0xff] }
 0x289   : > { %3344 = vmatpush.bf16.msra.mxu1 %v21057_v5  ;;  %3613 = vmatpush.bf16.msra.mxu3 %v21124_v8  ;;  %v21139_v5 = vld [vmem:[%s28116_s2 + $0x190] sm:$0xff]  ;;  %v21105_v8 = vld [vmem:[%s28116_s2 + $0x88] sm:$0xff] }
 0x28a   : > { %3634 = vmatpush.bf16.msrb.mxu0 %v21129_v6  ;;  %v21150_v6 = vld [vmem:[%s28116_s2 + $0x1e8] sm:$0xff] }
 0x28b   : > { %3595 = vmatpush.bf16.msra.mxu2 %v21116_v37  ;;  %v21097_v37 = vld [vmem:[%s28116_s2 + $0x48] sm:$0xff] }
 0x28c   : > { %3318 = vmatmul.bf16.vlgmr.msrb.gmra.mxu3 %v23487_v19  ;;  %v21121_v19 = vld [vmem:[%s28116_s2 + $0x108] sm:$0xff] }
 0x28d   : > { %3345 = vmatpush.bf16.msra.mxu1 %v21056_v59  ;;  %3614 = vmatpush.bf16.msra.mxu3 %v21123_v24  ;;  %v21138_v59 = vld [vmem:[%s28116_s2 + $0x188] sm:$0xff]  ;;  %v21104_v24 = vld [vmem:[%s28116_s2 + $0x80] sm:$0xff] }
 0x28e   : > { %3160 = vmatmul.bf16.vlgmr.msrb.gmra.mxu2 %v24001_v46  ;;  %3635 = vmatpush.bf16.msrb.mxu0 %v21128_v45  ;;  %v21160_v45 = vld [vmem:[%s28116_s2 + $0x238] sm:$0xff] }
 0x28f   : > { %3596 = vmatpush.bf16.msra.mxu2 %v21115_v58  ;;  %v21096_v58 = vld [vmem:[%s28116_s2 + $0x40] sm:$0xff] }
 0x290   : > { %3346 = vmatmul.bf16.vlgmr.msra.gmra.mxu1 %v23507_v49  ;;  %v21120_v49 = vld [vmem:[%s28116_s2 + $0x100] sm:$0xff] }
 0x291   : > { %3790 = vmatpush.bf16.msrb.mxu1 %v21095_v42  ;;  %3615 = vmatpush.bf16.msra.mxu3 %v21122_v38  ;;  %v21149_v42 = vld [vmem:[%s28116_s2 + $0x1e0] sm:$0xff] }
 0x292   : > { %3636 = vmatmul.bf16.vlgmr.msrb.gmra.mxu0 %v23681_v12  ;;  %v21137_v38 = vld [vmem:[%s28116_s2 + $0x180] sm:$0xff] }
 0x293   : > { %3597 = vmatpush.bf16.msra.mxu2 %v21114_v36  ;;  %4072 = vmatpush.bf16.msra.mxu0 %v21144_v53  ;;  %v15893_v36 = vld [vmem:[%s22599_s30 + $0x44] sm:$0x3] }
 0x295   : > { %3791 = vmatpush.bf16.msrb.mxu1 %v21094_v34  ;;  %3616 = vmatpush.bf16.msra.mxu3 %v21121_v19  ;;  %v21148_v34 = vld [vmem:[%s28116_s2 + $0x1d8] sm:$0xff]  ;;  %v21159_v19 = vld [vmem:[%s28116_s2 + $0x230] sm:$0xff] }
 0x297   : > { %3598 = vmatpush.bf16.msra.mxu2 %v21113_v7  ;;  %4073 = vmatpush.bf16.msra.mxu0 %v21143_v29  ;;  %v3853_v7 = vunpack.c.l.b16 %v15893_v36  ;;  %v21155_v29 = vld [vmem:[%s28116_s2 + $0x210] sm:$0xff] }
 0x299   : > { %3792 = vmatpush.bf16.msrb.mxu1 %v21093_v51  ;;  %3617 = vmatpush.bf16.msra.mxu3 %v21120_v49  ;;  %v24208_v51 = vld [vmem:[%s22599_s30 + $0x3c] sm:$0xff]  ;;  %v21147_v49 = vld [vmem:[%s28116_s2 + $0x1d0] sm:$0xff] }
 0x29b   : > { %3599 = vmatpush.bf16.msra.mxu2 %v21112_v62  ;;  %v3861_v62 = vshll.u32 %v24208_v51, 16 }
 0x29c   : > { %3618 = vmatmul.bf16.vlgmr.msra.gmra.mxu3 %v23669_v11 }
 0x29d   : > { %3793 = vmatpush.bf16.msrb.mxu1 %v21092_v43  ;;  %3826 = vmatpush.bf16.msrb.mxu3 %v21111_v50  ;;  %v21158_v43 = vld [vmem:[%s28116_s2 + $0x228] sm:$0xff]  ;;  %v24220_v50 = vpack.c.b16 %v3853_v7, %v3853_v7  ;;  %v3863_v53 = vrot.slane %v3861_v62, 1 }
 0x29e   : > { %3600 = vmatmul.bf16.vlgmr.msra.gmra.mxu2 %v23634_v57  ;;  %v21142_v57 = vld [vmem:[%s28116_s2 + $0x1a8] sm:$0xff] }
 0x29f   : > { %3808 = vmatpush.bf16.msrb.mxu2 %v21103_v32  ;;  %4074 = vmatpush.bf16.msra.mxu0 %v21142_v57  ;;  %v3859_v32 = vshrl.u32 %v24208_v51, 16  ;;  %v21153_v57 = vld [vmem:[%s28116_s2 + $0x200] sm:$0xff] }
 0x2a1   : > { %3794 = vmatpush.bf16.msrb.mxu1 %v21091_v54  ;;  %3827 = vmatpush.bf16.msrb.mxu3 %v21110_v28  ;;  %v3866_v54 = vshll.u32 %v24220_v50, 16  ;;  %v21156_v28 = vld [vmem:[%s28116_s2 + $0x218] sm:$0xff] }
 0x2a2   : > { %3641 = vmatmul.bf16.gmra.mxu0 %v23676_v15 }
 0x2a3   : > { %3809 = vmatpush.bf16.msrb.mxu2 %v21102_v56  ;;  %4075 = vmatpush.bf16.msra.mxu0 %v21141_v13  ;;  %v3864_v56 = vor.u32 %v3863_v53, %v3859_v32 }
 0x2a5   : > { %3795 = vmatpush.bf16.msrb.mxu1 %v21090_v20  ;;  %3828 = vmatpush.bf16.msrb.mxu3 %v21109_v63  ;;  %v3868_v20 = vrot.slane %v3866_v54, 1 }
 0x2a7   : > { %3810 = vmatpush.bf16.msrb.mxu2 %v21101_v61  ;;  %4076 = vmatpush.bf16.msra.mxu0 %v21140_v39  ;;  %v24241_v63 = vsel %vm555_vm0, %v3864_v56, %v3868_v20  ;;  %v21154_v61 = vld [vmem:[%s28116_s2 + $0x208] sm:$0xff] }
 0x2a9   : > { %3796 = vmatpush.bf16.msrb.mxu1 %v21089_v31  ;;  %3829 = vmatpush.bf16.msrb.mxu3 %v21108_v25  ;;  %v3870_v31 = vshrl.u32 %v24220_v50, 16  ;;  %v24256_v25 = vrot.slane %v24220_v50, 1 }
 0x2ab   : > { %3811 = vmatpush.bf16.msrb.mxu2 %v21100_v2  ;;  %4077 = vmatpush.bf16.msra.mxu0 %v21139_v5  ;;  %v24258_v2 = vor.u32 %v3870_v31, %v3868_v20 }
 0x2ac   : > { %3623 = vmatmul.bf16.gmra.mxu3 %v23683_v16 }
 0x2ad   : > { %3797 = vmatpush.bf16.msrb.mxu1 %v21088_v21  ;;  %3830 = vmatpush.bf16.msrb.mxu3 %v21107_v48 }
 0x2ae   : > { %3605 = vmatmul.bf16.gmra.mxu2 %v23644_v9 }
 0x2af   : > { %3812 = vmatpush.bf16.msrb.mxu2 %v21099_v14  ;;  %4078 = vmatpush.bf16.msra.mxu0 %v21138_v59 }
 0x2b0   : > { %3798 = vmatmul.bf16.vlgmr.msrb.gmra.mxu1 %v22350_v60 }
 0x2b1   : > { %4090 = vmatpush.bf16.msra.mxu1 %v21152_v55  ;;  %3831 = vmatpush.bf16.msrb.mxu3 %v21106_v33  ;;  %v2077_v33 = vadd.f32 %v23698_v10, %v23694_v44 }
 0x2b3   : > { %3813 = vmatpush.bf16.msrb.mxu2 %v21098_v23  ;;  %4079 = vmatpush.bf16.msra.mxu0 %v21137_v38  ;;  %v2091_v5 = vadd.f32 %v23696_v22, %v2077_v33 }
 0x2b5   : > { %4091 = vmatpush.bf16.msra.mxu1 %v21151_v52  ;;  %3832 = vmatpush.bf16.msrb.mxu3 %v21105_v8  ;;  %v2249_v59 = vadd.f32 %v23688_v30, %v2091_v5 }
 0x2b6   : > { %4080 = vmatmul.bf16.vlgmr.msra.gmra.mxu0 %v24208_v51 }
 0x2b7   : > { %3814 = vmatpush.bf16.msrb.mxu2 %v21097_v37  ;;  %v22103_v37 = vld [vmem:[%s28120_s6] ss:$0 sm:$0xff]  ;;  %v2263_v22 = vadd.f32 %v23700_v40, %v2249_v59 }
 0x2b9   : > { %4092 = vmatpush.bf16.msra.mxu1 %v21150_v6  ;;  %3833 = vmatpush.bf16.msrb.mxu3 %v21104_v24  ;;  %v2277_v36 = vadd.f32 %v23708_v27, %v2263_v22 }
 0x2bb   : > { %3815 = vmatpush.bf16.msrb.mxu2 %v21096_v58 }
 0x2bc   : > { %3834 = vmatmul.bf16.vlgmr.msrb.gmra.mxu3 %v23143_v41  ;;  %v21146_v41 = vld [vmem:[%s28116_s2 + $0x1c8] sm:$0xff] }
 0x2bd   : > { %4093 = vmatpush.bf16.msra.mxu1 %v21149_v42  ;;  %v22104_v42 = vld [vmem:[%s28121_s7] ss:$0 sm:$0xff] }
 0x2be   : > { %3816 = vmatmul.bf16.vlgmr.msrb.gmra.mxu2 %v23139_v4  ;;  %v21145_v4 = vld [vmem:[%s28116_s2 + $0x1c0] sm:$0xff] }
 0x2bf   : > { %4108 = vmatpush.bf16.msra.mxu2 %v21160_v45 }
 0x2c0   : > { %3803 = vmatmul.bf16.gmra.mxu1 %v23122_v26  ;;  %v21157_v26 = vld [vmem:[%s28116_s2 + $0x220] sm:$0xff] }
 0x2c1   : > { %4094 = vmatpush.bf16.msra.mxu1 %v21148_v34 }
 0x2c3   : > { %4109 = vmatpush.bf16.msra.mxu2 %v21159_v19 }
 0x2c5   : > { %4095 = vmatpush.bf16.msra.mxu1 %v21147_v49 }
 0x2c6   : > { %4085 = vmatmul.bf16.gmra.mxu0 %v24220_v50 }
 0x2c7   : > { %4110 = vmatpush.bf16.msra.mxu2 %v21158_v43 }
 0x2c9   : > { %4096 = vmatpush.bf16.msra.mxu1 %v21146_v41 }
 0x2cb   : > { %4111 = vmatpush.bf16.msra.mxu2 %v21157_v26 }
 0x2cc   : > { %3839 = vmatmul.bf16.gmra.mxu3 %v23136_v35  ;;  %v3875_v35 = vrot.slane %v24208_v51, 1 }
 0x2cd   : > { %4097 = vmatpush.bf16.msra.mxu1 %v21145_v4 }
 0x2ce   : > { %3821 = vmatmul.bf16.gmra.mxu2 %v23148_v3  ;;  %v24262_v13 = vsel %vm573_vm1, %v3875_v35, %v24256_v25 }
 0x2cf   : > { %4112 = vmatpush.bf16.msra.mxu2 %v21156_v28 }
 0x2d0   : > { %4098 = vmatmul.bf16.vlgmr.msra.gmra.mxu1 %v24241_v63 }
 0x2d3   : > { %4113 = vmatpush.bf16.msra.mxu2 %v21155_v29 }
 0x2d7   : > { %4114 = vmatpush.bf16.msra.mxu2 %v21154_v61 }
 0x2db   : > { %4115 = vmatpush.bf16.msra.mxu2 %v21153_v57 }
 0x2de   : > { %4116 = vmatmul.bf16.vlgmr.msra.gmra.mxu2 %v24262_v13 }
 0x2e0   : > { %4103 = vmatmul.bf16.gmra.mxu1 %v24258_v2 }
 0x2ed   : > { %v2780_v3 = vpop.f32.mrf.mxu1  ;;  %v3133_v21 = vpop.f32.mrf.mxu0 }
 0x2ee   : > { %4121 = vmatmul.bf16.gmra.mxu2 %v24256_v25 }
 0x2f5   : > { %v2782_v48 = vpop.f32.mrf.mxu1  ;;  %v24267_v55 = vpop.f32.mrf.mxu0 }
 0x2fd   : > { %v3147_v14 = vpop.f32.mrf.mxu1  ;;  %v3333_v39 = vpop.f32.mrf.mxu0 }
 0x2fe   : > { %v3148_v52 = vadd.f32 %v3147_v14, %v3133_v21 }
 0x2ff   : > { %v2808_v23 = vpop.f32.mrf.mxu3 }
 0x301   : > { %v2794_v60 = vpop.f32.mrf.mxu2 }
 0x302   : > { %v2795_v8 = vadd.f32 %v2794_v60, %v2780_v3 }
 0x304   : > { %v2809_v6 = vadd.f32 %v2808_v23, %v2795_v8 }
 0x305   : > { %v24280_v44 = vpop.f32.mrf.mxu0  ;;  %v24284_v30 = vpop.f32.mrf.mxu1 }
 0x306   : > { %v2813_v24 = vadd.f32 %v2809_v6, %v23704_v18 }
 0x307   : > { %v2810_v10 = vpop.f32.mrf.mxu3 }
 0x308   : > { %v2818_v58 = vmul.f32 %v22103_v37, %v2813_v24 }
 0x309   : > { %v2796_v45 = vpop.f32.mrf.mxu2 }
 0x30a   : > { %v2823_v38 = vadd.f32 %v22104_v42, %v2818_v58  ;;  %v2797_v34 = vadd.f32 %v2796_v45, %v2782_v48 }
 0x30c   : > { %v15409_v19 = vmul.f32 -1.442695, %v2823_v38  ;;  %v2811_v18 = vadd.f32 %v2810_v10, %v2797_v34 }
 0x30d   : > { %v3347_v4 = vpop.f32.mrf.mxu1 }
 0x30e   : > { %22141 = vpow2.f32 %v15409_v19  ;;  %v2814_v7 = vadd.f32 %v2811_v18, %v2277_v36 }
 0x30f   : > { %v3319_v49 = vpop.f32.mrf.mxu3  ;;  %v3637_v43 = vpop.f32.mrf.mxu0 }
 0x310   : > { %v2819_v62 = vmul.f32 %v22103_v37, %v2814_v7 }
 0x311   : > { %v3161_v41 = vpop.f32.mrf.mxu2 }
 0x312   : > { %v24286_v26 = vadd.f32 %v22104_v42, %v2819_v62  ;;  %v3162_v32 = vadd.f32 %v3161_v41, %v3148_v52 }
 0x314   : > { %v22142_v40 = vpop.eup %22141  ;;  %v15410_v53 = vmul.f32 -1.442695, %v24286_v26  ;;  %v3320_v54 = vadd.f32 %v3319_v49, %v3162_v32 }
 0x315   : > { %v2831_v27 = vadd.f32 1.0, %v22142_v40  ;;  %v24302_v60 = vpop.f32.mrf.mxu1 }
 0x316   : > { %22143 = vpow2.f32 %v15410_v53  ;;  %v3334_v28 = vadd.f32 %v3333_v39, %v3320_v54 }
 0x317   : > { %22145 = vrcp.f32 %v2831_v27  ;;  %v24290_v56 = vpop.f32.mrf.mxu3  ;;  %v24292_v20 = vpop.f32.mrf.mxu0  ;;  %v2844_v39 = vand.u32 2147483648, %v2831_v27  ;;  %v2842_v23 = vand.u32 2147483647, %v2831_v27  ;;  %vm2838_vm4 = vweird.f32 %v2831_v27 }
 0x318   : > { %v24294_v29 = vadd.f32 %v3347_v4, %v3334_v28 }
 0x319   : > { %v24296_v61 = vpop.f32.mrf.mxu2  ;;  %v2845_v59 = vor.u32 1.1754944e-38, %v2844_v39  ;;  %vm2843_vm7 = vcmp.eq.f32.partialorder %v2842_v23, 8.507059e+37  ;;  %v21166_v39 = vld [vmem:[%s28119_s5 + $0x1a8] sm:$0xff]  ;;  %v21165_v23 = vld [vmem:[%s28119_s5 + $0x1a0] sm:$0xff] }
 0x31c   : > { %v22144_v57 = vpop.eup %22143 }
 0x31d   : > { %v22146_v31 = vpop.eup %22145  ;;  %v2832_v35 = vadd.f32 1.0, %v22144_v57  ;;  %v21168_v57 = vld [vmem:[%s28119_s5 + $0x1b8] sm:$0xff] }
 0x31e   : > { %v2834_v3 = vmul.f32 %v22146_v31, %v2831_v27  ;;  %vm2839_vm3 = vweird.f32 %v22146_v31  ;;  %4419 = vmatpush.bf16.msra.mxu3 %v21168_v57  ;;  %v21173_v57 = vld [vmem:[%s28119_s5 + $0x1e0] sm:$0xff] }
 0x31f   : > { %22147 = vrcp.f32 %v2832_v35  ;;  %v3619_v21 = vpop.f32.mrf.mxu3  ;;  %v24300_v48 = vpop.f32.mrf.mxu0  ;;  %vm2840_vm5 = vmor %vm2838_vm4, %vm2839_vm3  ;;  %v2859_v36 = vand.u32 2147483648, %v2832_v35  ;;  %v2857_v7 = vand.u32 2147483647, %v2832_v35  ;;  %vm2853_vm9 = vweird.f32 %v2832_v35 }
 0x320   : > { %v2835_v14 = vsub.f32 1.0, %v2834_v3 }
 0x321   : > { %v3601_v33 = vpop.f32.mrf.mxu2  ;;  %v2860_v62 = vor.u32 1.1754944e-38, %v2859_v36  ;;  %vm2858_vm11 = vcmp.eq.f32.partialorder %v2857_v7, 8.507059e+37  ;;  %v21214_v36 = vld [vmem:[%s28119_s5 + $0xe8] sm:$0xff] }
 0x322   : > { %v2836_v52 = vmul.f32 %v22146_v31, %v2835_v14  ;;  %v3620_v5 = vadd.f32 %v3619_v21, %v3601_v33 }
 0x324   : > { %v2837_v8 = vadd.f32 %v22146_v31, %v2836_v52  ;;  %v24304_v6 = vadd.f32 %v3637_v43, %v3620_v5  ;;  %v21216_v52 = vld [vmem:[%s28119_s5 + $0xf8] sm:$0xff] }
 0x325   : > { %v22148_v37 = vpop.eup %22147  ;;  %4760 = vmatpush.bf16.msrb.mxu2 %v21216_v52 }
 0x326   : > { %v2841_v24 = vsel %vm2840_vm5, %v22146_v31, %v2837_v8  ;;  %v2849_v42 = vmul.f32 %v22148_v37, %v2832_v35  ;;  %vm2854_vm8 = vweird.f32 %v22148_v37 }
 0x327   : > { %v2846_v10 = vsel %vm2843_vm7, %v2845_v59, %v2841_v24  ;;  %v24311_v58 = vpop.f32.mrf.mxu3  ;;  %v3644_v45 = vpop.f32.mrf.mxu0  ;;  %vm2855_vm10 = vmor %vm2853_vm9, %vm2854_vm8  ;;  %v21176_v59 = vld [vmem:[%s28119_s5 + $0x1f8] sm:$0xff] }
 0x328   : > { %v2863_v22 = vmul.f32 %v2846_v10, %v2823_v38  ;;  %v2850_v34 = vsub.f32 1.0, %v2849_v42  ;;  %v21184_v24 = vld [vmem:[%s28119_s5 + $0x238] sm:$0xff]  ;;  %v21215_v42 = vld [vmem:[%s28119_s5 + $0xf0] sm:$0xff]  ;;  %4433 = vmatpush.bf16.msrb.mxu0 %v21176_v59 }
 0x329   : > { %v24313_v19 = vpop.f32.mrf.mxu2  ;;  %v21164_v10 = vld [vmem:[%s28119_s5 + $0x198] sm:$0xff]  ;;  %4447 = vmatpush.bf16.msrb.mxu1 %v21184_v24  ;;  %4761 = vmatpush.bf16.msrb.mxu2 %v21215_v42 }
 0x32a   : > { %2865 = vst [vmem:[%s24309_s23] sm:$0xff] %v2863_v22  ;;  %v2851_v18 = vmul.f32 %v22148_v37, %v2850_v34  ;;  %v21175_v22 = vld [vmem:[%s28119_s5 + $0x1f0] sm:$0xff]  ;;  %v21172_v24 = vld [vmem:[%s28119_s5 + $0x1d8] sm:$0xff] }
 0x32b   : > { %v21183_v34 = vld [vmem:[%s28119_s5 + $0x230] sm:$0xff]  ;;  %v21180_v42 = vld [vmem:[%s28119_s5 + $0x218] sm:$0xff] }
 0x32c   : > { %v2852_v43 = vadd.f32 %v22148_v37, %v2851_v18  ;;  %v21163_v18 = vld [vmem:[%s28119_s5 + $0x190] sm:$0xff]  ;;  %4434 = vmatpush.bf16.msrb.mxu0 %v21175_v22 }
 0x32d   : > { %v24316_v49 = vpop.f32.mrf.mxu1  ;;  %4448 = vmatpush.bf16.msrb.mxu1 %v21183_v34  ;;  %4762 = vmatpush.bf16.msrb.mxu2 %v21214_v36  ;;  %v21223_v34 = vld [vmem:[%s28119_s5 + $0x130] sm:$0xff]  ;;  %v3622_v36 = vadd.f32 %v24311_v58, %v24313_v19  ;;  %v21222_v58 = vld [vmem:[%s28119_s5 + $0x128] sm:$0xff] }
 0x32e   : > { %v2856_v41 = vsel %vm2855_vm10, %v22148_v37, %v2852_v43  ;;  %v3800_v22 = vadd.f32 %v24316_v49, %v24304_v6  ;;  %v21179_v6 = vld [vmem:[%s28119_s5 + $0x210] sm:$0xff]  ;;  %v21210_v49 = vld [vmem:[%s28119_s5 + $0xc8] sm:$0xff] }
 0x32f   : > { %v2861_v32 = vsel %vm2858_vm11, %v2860_v62, %v2856_v41  ;;  %v24318_v40 = vpop.f32.mrf.mxu3  ;;  %v21174_v41 = vld [vmem:[%s28119_s5 + $0x1e8] sm:$0xff]  ;;  %v3640_v19 = vadd.f32 %v24292_v20, %v3622_v36 }
 0x330   : > { %v2864_v38 = vmul.f32 %v2861_v32, %v24286_v26  ;;  %v21167_v26 = vld [vmem:[%s28119_s5 + $0x1b0] sm:$0xff]  ;;  %v21182_v32 = vld [vmem:[%s28119_s5 + $0x228] sm:$0xff]  ;;  %4435 = vmatpush.bf16.msrb.mxu0 %v21174_v41 }
 0x331   : > { %v24321_v53 = vpop.f32.mrf.mxu2  ;;  %4420 = vmatpush.bf16.msra.mxu3 %v21167_v26  ;;  %4449 = vmatpush.bf16.msrb.mxu1 %v21182_v32  ;;  %v21181_v26 = vld [vmem:[%s28119_s5 + $0x220] sm:$0xff]  ;;  %v21171_v41 = vld [vmem:[%s28119_s5 + $0x1d0] sm:$0xff] }
 0x332   : > { %2866 = vst [vmem:[%s24309_s23 + $0x8] sm:$0xff] %v2864_v38  ;;  %v21213_v38 = vld [vmem:[%s28119_s5 + $0xe0] sm:$0xff] }
 0x333   : > { %v24326_v28 = vpop.f32.mrf.mxu0  ;;  %4763 = vmatpush.bf16.msrb.mxu2 %v21213_v38  ;;  %v21170_v38 = vld [vmem:[%s28119_s5 + $0x1c8] sm:$0xff] }
 0x334   : > { %4436 = vmatpush.bf16.msrb.mxu0 %v21173_v57 }
 0x335   : > { %v24324_v54 = vpop.f32.mrf.mxu1  ;;  %4421 = vmatpush.bf16.msra.mxu3 %v21166_v39  ;;  %v21161_v39 = vld [vmem:[%s28119_s5 + $0x180] sm:$0xff]  ;;  %4450 = vmatpush.bf16.msrb.mxu1 %v21181_v26 }
 0x336   : > { %v3802_v20 = vadd.f32 %v24324_v54, %v3640_v19  ;;  %v21221_v26 = vld [vmem:[%s28119_s5 + $0x120] sm:$0xff] }
 0x337   : > { %v3626_v27 = vpop.f32.mrf.mxu3  ;;  %v22351_v54 = vld [vmem:[%s28117_s3] ss:$0 sm:$0xff] }
 0x338   : > { %v21162_v27 = vld [vmem:[%s28119_s5 + $0x188] sm:$0xff]  ;;  %4437 = vmatpush.bf16.msrb.mxu0 %v21172_v24  ;;  %v21177_v24 = vld [vmem:[%s28119_s5 + $0x200] sm:$0xff] }
 0x339   : > { %v3608_v4 = vpop.f32.mrf.mxu2  ;;  %4422 = vmatpush.bf16.msra.mxu3 %v21165_v23  ;;  %v21224_v23 = vld [vmem:[%s28119_s5 + $0x138] sm:$0xff]  ;;  %4451 = vmatpush.bf16.msrb.mxu1 %v21180_v42 }
 0x33a   : > { %v21232_v42 = vld [vmem:[%s28119_s5 + $0x178] sm:$0xff] }
 0x33b   : > { %v24338_v21 = vpop.f32.mrf.mxu0 }
 0x33c   : > { %4438 = vmatpush.bf16.msrb.mxu0 %v21171_v41 }
 0x33d   : > { %v24331_v31 = vpop.f32.mrf.mxu1  ;;  %4423 = vmatpush.bf16.msra.mxu3 %v21164_v10  ;;  %v21211_v10 = vld [vmem:[%s28119_s5 + $0xd0] sm:$0xff]  ;;  %4452 = vmatpush.bf16.msrb.mxu1 %v21179_v6 }
 0x33f   : > { %v24336_v35 = vpop.f32.mrf.mxu3 }
 0x340   : > { %4439 = vmatpush.bf16.msrb.mxu0 %v21170_v38 }
 0x341   : > { %v3817_v3 = vpop.f32.mrf.mxu2  ;;  %4424 = vmatpush.bf16.msra.mxu3 %v21163_v18 }
 0x342   : > { %v3818_v18 = vadd.f32 %v3817_v3, %v3800_v22  ;;  %v21199_v22 = vld [vmem:[%s28119_s5 + $0x70] sm:$0xff] }
 0x343   : > { %v24353_v8 = vpop.f32.mrf.mxu0 }
 0x345   : > { %v3806_v14 = vpop.f32.mrf.mxu1  ;;  %4425 = vmatpush.bf16.msra.mxu3 %v21162_v27  ;;  %v21178_v27 = vld [vmem:[%s28119_s5 + $0x208] sm:$0xff] }
 0x346   : > { %v21212_v14 = vld [vmem:[%s28119_s5 + $0xd8] sm:$0xff]  ;;  %4453 = vmatpush.bf16.msrb.mxu1 %v21178_v27 }
 0x347   : > { %v24343_v33 = vpop.f32.mrf.mxu3  ;;  %4764 = vmatpush.bf16.msrb.mxu2 %v21212_v14  ;;  %v3625_v14 = vadd.f32 %v24318_v40, %v24321_v53  ;;  %v22352_v53 = vld [vmem:[%s28118_s4] ss:$0 sm:$0xff] }
 0x349   : > { %v24351_v5 = vpop.f32.mrf.mxu2  ;;  %4426 = vmatpush.bf16.msra.mxu3 %v21161_v39 }
 0x34a   : > { %v3820_v39 = vadd.f32 %v24351_v5, %v3802_v20  ;;  %4454 = vmatpush.bf16.msrb.mxu1 %v21177_v24  ;;  %v21228_v24 = vld [vmem:[%s28119_s5 + $0x158] sm:$0xff] }
 0x34b   : > { %v4088_v43 = vpop.f32.mrf.mxu0  ;;  %4765 = vmatpush.bf16.msrb.mxu2 %v21211_v10  ;;  %v21192_v10 = vld [vmem:[%s28119_s5 + $0x38] sm:$0xff] }
 0x34c   : > { %v3838_v36 = vadd.f32 %v24343_v33, %v3820_v39  ;;  %v21198_v33 = vld [vmem:[%s28119_s5 + $0x68] sm:$0xff]  ;;  %v21217_v39 = vld [vmem:[%s28119_s5 + $0x100] sm:$0xff] }
 0x34d   : > { %v4099_v37 = vpop.f32.mrf.mxu1  ;;  %4774 = vmatpush.bf16.msrb.mxu3 %v21224_v23  ;;  %v21169_v23 = vld [vmem:[%s28119_s5 + $0x1c0] sm:$0xff] }
 0x34e   : > { %v4100_v43 = vadd.f32 %v4099_v37, %v24326_v28  ;;  %v3836_v28 = vadd.f32 %v24336_v35, %v3818_v18  ;;  %v21200_v35 = vld [vmem:[%s28119_s5 + $0x78] sm:$0xff]  ;;  %4440 = vmatpush.bf16.msrb.mxu0 %v21169_v23  ;;  %4946 = vmatpush.bf16.msra.mxu1 %v21192_v10 }
 0x34f   : > { %v24367_v45 = vpop.f32.mrf.mxu3  ;;  %4766 = vmatpush.bf16.msrb.mxu2 %v21210_v49  ;;  %v21231_v49 = vld [vmem:[%s28119_s5 + $0x170] sm:$0xff] }
 0x351   : > { %v24381_v7 = vpop.f32.mrf.mxu2  ;;  %4775 = vmatpush.bf16.msrb.mxu3 %v21223_v34 }
 0x352   : > { %4788 = vmatpush.bf16.msra.mxu0 %v21232_v42  ;;  %v21195_v42 = vld [vmem:[%s28119_s5 + $0x50] sm:$0xff] }
 0x355   : > { %v24383_v62 = vpop.f32.mrf.mxu1  ;;  %4776 = vmatpush.bf16.msrb.mxu3 %v21222_v58 }
 0x356   : > { %v4102_v40 = vadd.f32 %v24383_v62, %v24338_v21  ;;  %v21220_v21 = vld [vmem:[%s28119_s5 + $0x118] sm:$0xff]  ;;  %v3643_v62 = vadd.f32 %v24300_v48, %v3625_v14  ;;  %v21191_v48 = vld [vmem:[%s28119_s5 + $0x30] sm:$0xff]  ;;  %4789 = vmatpush.bf16.msra.mxu0 %v21231_v49  ;;  %v21189_v14 = vld [vmem:[%s28119_s5 + $0x20] sm:$0xff] }
 0x357   : > { %v3842_v4 = vpop.f32.mrf.mxu3  ;;  %4947 = vmatpush.bf16.msra.mxu1 %v21191_v48  ;;  %v21186_v49 = vld [vmem:[%s28119_s5 + $0x8] sm:$0xff]  ;;  %v21193_v48 = vld [vmem:[%s28119_s5 + $0x40] sm:$0xff] }
 0x358   : > { %v21209_v4 = vld [vmem:[%s28119_s5 + $0xc0] sm:$0xff]  ;;  %v3805_v41 = vadd.f32 %v24331_v31, %v3643_v62  ;;  %v21227_v62 = vld [vmem:[%s28119_s5 + $0x150] sm:$0xff] }
 0x359   : > { %v3824_v52 = vpop.f32.mrf.mxu2  ;;  %4767 = vmatpush.bf16.msrb.mxu2 %v21209_v4  ;;  %4777 = vmatpush.bf16.msrb.mxu3 %v21221_v26  ;;  %v21229_v26 = vld [vmem:[%s28119_s5 + $0x160] sm:$0xff] }
 0x35a   : > { %v3823_v31 = vadd.f32 %v24381_v7, %v3805_v41  ;;  %v21197_v7 = vld [vmem:[%s28119_s5 + $0x60] sm:$0xff] }
 0x35c   : > { %v3841_v27 = vadd.f32 %v24367_v45, %v3823_v31  ;;  %v21196_v45 = vld [vmem:[%s28119_s5 + $0x58] sm:$0xff] }
 0x35d   : > { %v24412_v59 = vpop.f32.mrf.mxu1  ;;  %4960 = vmatpush.bf16.msra.mxu2 %v21200_v35  ;;  %4778 = vmatpush.bf16.msrb.mxu3 %v21220_v21 }
 0x35e   : > { %v4105_v58 = vadd.f32 %v24412_v59, %v24353_v8  ;;  %v21218_v59 = vld [vmem:[%s28119_s5 + $0x108] sm:$0xff] }
 0x361   : > { %v4117_v32 = vpop.f32.mrf.mxu2  ;;  %4961 = vmatpush.bf16.msra.mxu2 %v21199_v22 }
 0x362   : > { %v4118_v3 = vadd.f32 %v4117_v32, %v4100_v43  ;;  %v21219_v32 = vld [vmem:[%s28119_s5 + $0x110] sm:$0xff] }
 0x363   : > { %4779 = vmatpush.bf16.msrb.mxu3 %v21219_v32 }
 0x364   : > { %v4126_v57 = vadd.f32 %v4118_v3, %v3836_v28  ;;  %v21230_v3 = vld [vmem:[%s28119_s5 + $0x168] sm:$0xff] }
 0x365   : > { %v4106_v37 = vpop.f32.mrf.mxu1  ;;  %4962 = vmatpush.bf16.msra.mxu2 %v21198_v33  ;;  %4790 = vmatpush.bf16.msra.mxu0 %v21230_v3 }
 0x366   : > { %v4129_v52 = vmul.f32 %v22351_v54, %v4126_v57  ;;  %v21190_v37 = vld [vmem:[%s28119_s5 + $0x28] sm:$0xff] }
 0x367   : > { %4948 = vmatpush.bf16.msra.mxu1 %v21190_v37  ;;  %4780 = vmatpush.bf16.msrb.mxu3 %v21218_v59  ;;  %v21225_v59 = vld [vmem:[%s28119_s5 + $0x140] sm:$0xff] }
 0x368   : > { %v24478_v5 = vadd.f32 %v22352_v53, %v4129_v52 }
 0x369   : > { %v4119_v34 = vpop.f32.mrf.mxu2  ;;  %4963 = vmatpush.bf16.msra.mxu2 %v21197_v7  ;;  %4791 = vmatpush.bf16.msra.mxu0 %v21229_v26 }
 0x36a   : > { %v16042_v18 = vmul.f32 -1.442695, %v24478_v5  ;;  %v4120_v43 = vadd.f32 %v4119_v34, %v4102_v40  ;;  %v21188_v40 = vld [vmem:[%s28119_s5 + $0x18] sm:$0xff] }
 0x36b   : > { %4949 = vmatpush.bf16.msra.mxu1 %v21189_v14  ;;  %4781 = vmatpush.bf16.msrb.mxu3 %v21217_v39 }
 0x36c   : > { %22149 = vpow2.f32 %v16042_v18  ;;  %v4127_v6 = vadd.f32 %v4120_v43, %v3838_v36  ;;  %v21187_v36 = vld [vmem:[%s28119_s5 + $0x10] sm:$0xff]  ;;  %v21194_v18 = vld [vmem:[%s28119_s5 + $0x48] sm:$0xff] }
 0x36d   : > { %4964 = vmatpush.bf16.msra.mxu2 %v21196_v45  ;;  %4792 = vmatpush.bf16.msra.mxu0 %v21228_v24 }
 0x36e   : > { %v4130_v19 = vmul.f32 %v22351_v54, %v4127_v6  ;;  %v21226_v6 = vld [vmem:[%s28119_s5 + $0x148] sm:$0xff] }
 0x36f   : > { %4950 = vmatpush.bf16.msra.mxu1 %v21188_v40 }
 0x370   : > { %v24511_v28 = vadd.f32 %v22352_v53, %v4130_v19 }
 0x371   : > { %v4122_v8 = vpop.f32.mrf.mxu2  ;;  %4965 = vmatpush.bf16.msra.mxu2 %v21195_v42  ;;  %4793 = vmatpush.bf16.msra.mxu0 %v21227_v62 }
 0x372   : > { %v22150_v38 = vpop.eup %22149  ;;  %v16043_v4 = vmul.f32 -1.442695, %v24511_v28  ;;  %v4123_v20 = vadd.f32 %v4122_v8, %v4105_v58 }
 0x373   : > { %v4144_v57 = vadd.f32 1.0, %v22150_v38  ;;  %4951 = vmatpush.bf16.msra.mxu1 %v21187_v36  ;;  %v21185_v38 = vld [vmem:[%s28119_s5] sm:$0xff] }
 0x374   : > { %22151 = vpow2.f32 %v16043_v4  ;;  %v4128_v35 = vadd.f32 %v4123_v20, %v3841_v27 }
 0x375   : > { %22153 = vrcp.f32 %v4144_v57  ;;  %v4158_v41 = vand.u32 2147483648, %v4144_v57  ;;  %4966 = vmatpush.bf16.msra.mxu2 %v21194_v18  ;;  %v4156_v32 = vand.u32 2147483647, %v4144_v57  ;;  %vm4152_vm13 = vweird.f32 %v4144_v57  ;;  %4794 = vmatpush.bf16.msra.mxu0 %v21226_v6 }
 0x376   : > { %v4131_v52 = vmul.f32 %v22351_v54, %v4128_v35 }
 0x377   : > { %4952 = vmatpush.bf16.msra.mxu1 %v21186_v49  ;;  %v4159_v3 = vor.u32 1.1754944e-38, %v4158_v41  ;;  %vm4157_vm15 = vcmp.eq.f32.partialorder %v4156_v32, 8.507059e+37  ;;  %v21208_v41 = vld [vmem:[%s28119_s5 + $0xb8] sm:$0xff]  ;;  %v21207_v32 = vld [vmem:[%s28119_s5 + $0xb0] sm:$0xff] }
 0x378   : > { %v24539_v23 = vadd.f32 %v22352_v53, %v4131_v52 }
 0x379   : > { %v4124_v10 = vpop.f32.mrf.mxu2  ;;  %4967 = vmatpush.bf16.msra.mxu2 %v21193_v48  ;;  %4795 = vmatpush.bf16.msra.mxu0 %v21225_v59 }
 0x37a   : > { %v22152_v54 = vpop.eup %22151  ;;  %v16044_v22 = vmul.f32 -1.442695, %v24539_v23 }
 0x37b   : > { %v22154_v53 = vpop.eup %22153  ;;  %v4145_v34 = vadd.f32 1.0, %v22152_v54  ;;  %4953 = vmatpush.bf16.msra.mxu1 %v21185_v38 }
 0x37c   : > { %v4148_v21 = vmul.f32 %v22154_v53, %v4144_v57  ;;  %22155 = vpow2.f32 %v16044_v22  ;;  %vm4153_vm12 = vweird.f32 %v22154_v53 }
 0x37d   : > { %22157 = vrcp.f32 %v4145_v34  ;;  %vm4154_vm14 = vmor %vm4152_vm13, %vm4153_vm12  ;;  %v4173_v57 = vand.u32 2147483648, %v4145_v34  ;;  %v4171_v26 = vand.u32 2147483647, %v4145_v34  ;;  %vm4167_vm4 = vweird.f32 %v4145_v34 }
 0x37e   : > { %v4149_v43 = vsub.f32 1.0, %v4148_v21 }
 0x37f   : > { %v4174_v52 = vor.u32 1.1754944e-38, %v4173_v57  ;;  %vm4172_vm7 = vcmp.eq.f32.partialorder %v4171_v26, 8.507059e+37  ;;  %v21277_v26 = vld [vmem:[%s28116_s2 + $0x160] sm:$0xff] }
 0x380   : > { %v4150_v33 = vmul.f32 %v22154_v53, %v4149_v43 }
 0x382   : > { %v22156_v31 = vpop.eup %22155  ;;  %v4151_v58 = vadd.f32 %v22154_v53, %v4150_v33 }
 0x383   : > { %v22158_v19 = vpop.eup %22157  ;;  %v4146_v37 = vadd.f32 1.0, %v22156_v31  ;;  %v21279_v31 = vld [vmem:[%s28116_s2 + $0x170] sm:$0xff] }
 0x384   : > { %v4155_v7 = vsel %vm4154_vm14, %v22154_v53, %v4151_v58  ;;  %v4163_v8 = vmul.f32 %v22158_v19, %v4145_v34  ;;  %vm4168_vm3 = vweird.f32 %v22158_v19 }
 0x385   : > { %v4160_v27 = vsel %vm4157_vm15, %v4159_v3, %v4155_v7  ;;  %22159 = vrcp.f32 %v4146_v37  ;;  %vm4169_vm5 = vmor %vm4167_vm4, %vm4168_vm3  ;;  %v4188_v22 = vand.u32 2147483648, %v4146_v37  ;;  %v4186_v62 = vand.u32 2147483647, %v4146_v37  ;;  %v21278_v7 = vld [vmem:[%s28116_s2 + $0x168] sm:$0xff] }
 0x386   : > { %v4164_v4 = vsub.f32 1.0, %v4163_v8  ;;  %v4192_v20 = vmul.f32 %v4160_v27, %v24478_v5  ;;  %vm4182_vm9 = vweird.f32 %v4146_v37 }
 0x387   : > { %v4189_v43 = vor.u32 1.1754944e-38, %v4188_v22  ;;  %vm4187_vm11 = vcmp.eq.f32.partialorder %v4186_v62, 8.507059e+37  ;;  %v21270_v22 = vld [vmem:[%s28116_s2 + $0x128] sm:$0xff]  ;;  %v21269_v62 = vld [vmem:[%s28116_s2 + $0x120] sm:$0xff] }
 0x388   : > { %v4165_v35 = vmul.f32 %v22158_v19, %v4164_v4  ;;  %v4195_v39 = vsel %vm533_vm6, %v4192_v20, 0.0  ;;  %v21205_v4 = vld [vmem:[%s28119_s5 + $0xa0] sm:$0xff] }
 0x389   : > { %v4198_v10 = vpack.c.bf16 %v4195_v39, %v4195_v39 }
 0x38a   : > { %v4166_v14 = vadd.f32 %v22158_v19, %v4165_v35  ;;  %v21272_v35 = vld [vmem:[%s28116_s2 + $0x138] sm:$0xff] }
 0x38b   : > { %v22160_v45 = vpop.eup %22159  ;;  %v4203_v34 = vunpack.c.l.b16 %v4198_v10  ;;  %v21276_v10 = vld [vmem:[%s28116_s2 + $0x158] sm:$0xff] }
 0x38c   : > { %v4170_v24 = vsel %vm4169_vm5, %v22158_v19, %v4166_v14  ;;  %v4178_v40 = vmul.f32 %v22160_v45, %v4146_v37  ;;  %vm4183_vm8 = vweird.f32 %v22160_v45  ;;  %v21206_v37 = vld [vmem:[%s28119_s5 + $0xa8] sm:$0xff] }
 0x38d   : > { %v4175_v42 = vsel %vm4172_vm7, %v4174_v52, %v4170_v24  ;;  %vm4184_vm10 = vmor %vm4182_vm9, %vm4183_vm8  ;;  %v21264_v52 = vld [vmem:[%s28116_s2 + $0xf8] sm:$0xff] }
 0x38e   : > { %v4193_v54 = vmul.f32 %v4175_v42, %v24511_v28  ;;  %v4179_v5 = vsub.f32 1.0, %v4178_v40  ;;  %v21280_v28 = vld [vmem:[%s28116_s2 + $0x178] sm:$0xff]  ;;  %v21271_v42 = vld [vmem:[%s28116_s2 + $0x130] sm:$0xff] }
 0x38f   : > { %v21204_v40 = vld [vmem:[%s28119_s5 + $0x98] sm:$0xff] }
 0x390   : > { %v4199_v53 = vpack.c.bf16 %v4193_v54, %v4193_v54  ;;  %v4180_v21 = vmul.f32 %v22160_v45, %v4179_v5  ;;  %v21263_v54 = vld [vmem:[%s28116_s2 + $0xf0] sm:$0xff] }
 0x391   : > { %v21203_v5 = vld [vmem:[%s28119_s5 + $0x90] sm:$0xff] }
 0x392   : > { %v4204_v36 = vunpack.c.l.b16 %v4199_v53  ;;  %v4181_v18 = vadd.f32 %v22160_v45, %v4180_v21  ;;  %v21275_v53 = vld [vmem:[%s28116_s2 + $0x150] sm:$0xff]  ;;  %v21202_v21 = vld [vmem:[%s28119_s5 + $0x88] sm:$0xff] }
 0x394   : > { %v24585_v6 = vpack.c.b16 %v4204_v36, %v4203_v34  ;;  %v4185_v49 = vsel %vm4184_vm10, %v22160_v45, %v4181_v18  ;;  %v21274_v34 = vld [vmem:[%s28116_s2 + $0x148] sm:$0xff]  ;;  %v21261_v36 = vld [vmem:[%s28116_s2 + $0xe0] sm:$0xff] }
 0x395   : > { %v4190_v48 = vsel %vm4187_vm11, %v4189_v43, %v4185_v49  ;;  %v21201_v18 = vld [vmem:[%s28119_s5 + $0x80] sm:$0xff]  ;;  %v21268_v43 = vld [vmem:[%s28116_s2 + $0x118] sm:$0xff] }
 0x396   : > { %v4194_v33 = vmul.f32 %v4190_v48, %v24539_v23  ;;  %4427 = vmatmul.bf16.vlgmr.msra.gmra.mxu3 %v24585_v6  ;;  %4768 = vmatmul.bf16.vlgmr.msrb.gmra.mxu2 %v24585_v6  ;;  %v4213_v23 = vshll.u32 %v24585_v6, 16  ;;  %v4223_v38 = vrot.slane %v24585_v6, 1  ;;  %v4211_v20 = vshrl.u32 %v24585_v6, 16  ;;  %v21273_v49 = vld [vmem:[%s28116_s2 + $0x140] sm:$0xff]  ;;  %v21267_v48 = vld [vmem:[%s28116_s2 + $0x110] sm:$0xff] }
 0x397   : > { %4974 = vmatpush.bf16.msra.mxu3 %v21208_v41  ;;  %5264 = vmatpush.bf16.msrb.mxu2 %v21280_v28  ;;  %v21240_v41 = vld [vmem:[%s28116_s2 + $0x38] sm:$0xff] }
 0x398   : > { %v4197_v58 = vsel %vm538_vm2, %v4194_v33, 0.0  ;;  %v4215_v59 = vrot.slane %v4213_v23, 1  ;;  %v21260_v28 = vld [vmem:[%s28116_s2 + $0xd8] sm:$0xff]  ;;  %v21239_v33 = vld [vmem:[%s28116_s2 + $0x30] sm:$0xff]  ;;  %v21287_v23 = vld [vmem:[%s28116_s2 + $0x1a8] sm:$0xff] }
 0x399   : > { %v4200_v19 = vpack.c.bf16 %v4197_v58, %v4197_v58  ;;  %v21266_v58 = vld [vmem:[%s28116_s2 + $0x108] sm:$0xff] }
 0x39a   : > { %v4216_v45 = vor.u32 %v4215_v59, %v4211_v20  ;;  %v21248_v59 = vld [vmem:[%s28116_s2 + $0x78] sm:$0xff]  ;;  %v21247_v20 = vld [vmem:[%s28116_s2 + $0x70] sm:$0xff] }
 0x39b   : > { %v4208_v3 = vunpack.c.l.b16 %v4200_v19  ;;  %4975 = vmatpush.bf16.msra.mxu3 %v21207_v32  ;;  %5265 = vmatpush.bf16.msrb.mxu2 %v21279_v31  ;;  %v21289_v32 = vld [vmem:[%s28116_s2 + $0x1b8] sm:$0xff]  ;;  %v21288_v31 = vld [vmem:[%s28116_s2 + $0x1b0] sm:$0xff]  ;;  %v21238_v19 = vld [vmem:[%s28116_s2 + $0x28] sm:$0xff] }
 0x39d   : > { %v4209_v8 = vpack.c.b16 %v4208_v3, %v4208_v3  ;;  %v21265_v3 = vld [vmem:[%s28116_s2 + $0x100] sm:$0xff] }
 0x39f   : > { %4976 = vmatpush.bf16.msra.mxu3 %v21206_v37  ;;  %v4224_v27 = vrot.slane %v4209_v8, 1  ;;  %v4218_v57 = vshll.u32 %v4209_v8, 16  ;;  %5266 = vmatpush.bf16.msrb.mxu2 %v21278_v7  ;;  %v21237_v37 = vld [vmem:[%s28116_s2 + $0x20] sm:$0xff]  ;;  %v21256_v7 = vld [vmem:[%s28116_s2 + $0xb8] sm:$0xff] }
 0x3a0   : > { %v21257_v8 = vld [vmem:[%s28116_s2 + $0xc0] sm:$0xff] }
 0x3a1   : > { %v24617_v14 = vsel %vm573_vm1, %v4223_v38, %v4224_v27  ;;  %v4220_v39 = vrot.slane %v4218_v57, 1  ;;  %v21286_v38 = vld [vmem:[%s28116_s2 + $0x1a0] sm:$0xff]  ;;  %v21236_v27 = vld [vmem:[%s28116_s2 + $0x18] sm:$0xff]  ;;  %v21235_v57 = vld [vmem:[%s28116_s2 + $0x10] sm:$0xff] }
 0x3a2   : > { %4455 = vmatmul.bf16.vlgmr.msrb.gmra.mxu1 %v24617_v14 }
 0x3a3   : > { %4977 = vmatpush.bf16.msra.mxu3 %v21205_v4  ;;  %v24624_v24 = vsel %vm555_vm0, %v4216_v45, %v4220_v39  ;;  %5246 = vmatpush.bf16.msrb.mxu1 %v21272_v35  ;;  %v21255_v4 = vld [vmem:[%s28116_s2 + $0xb0] sm:$0xff]  ;;  %v21285_v35 = vld [vmem:[%s28116_s2 + $0x198] sm:$0xff]  ;;  %v21246_v45 = vld [vmem:[%s28116_s2 + $0x68] sm:$0xff] }
 0x3a4   : > { %4441 = vmatmul.bf16.vlgmr.msrb.gmra.mxu0 %v24624_v24  ;;  %5267 = vmatpush.bf16.msrb.mxu2 %v21277_v26  ;;  %v21254_v26 = vld [vmem:[%s28116_s2 + $0xa8] sm:$0xff] }
 0x3a5   : > { %5228 = vmatpush.bf16.msrb.mxu0 %v21264_v52  ;;  %v21234_v39 = vld [vmem:[%s28116_s2 + $0x8] sm:$0xff]  ;;  %v21253_v52 = vld [vmem:[%s28116_s2 + $0xa0] sm:$0xff] }
 0x3a6   : > { %4782 = vmatmul.bf16.vlgmr.msrb.gmra.mxu3 %v24624_v24  ;;  %4968 = vmatmul.bf16.vlgmr.msra.gmra.mxu2 %v24008_v17  ;;  %v21262_v17 = vld [vmem:[%s28116_s2 + $0xe8] sm:$0xff] }
 0x3a7   : > { %4978 = vmatpush.bf16.msra.mxu3 %v21204_v40  ;;  %5247 = vmatpush.bf16.msrb.mxu1 %v21271_v42  ;;  %v21245_v40 = vld [vmem:[%s28116_s2 + $0x60] sm:$0xff]  ;;  %v21283_v42 = vld [vmem:[%s28116_s2 + $0x188] sm:$0xff] }
 0x3a8   : > { %5268 = vmatpush.bf16.msrb.mxu2 %v21276_v10  ;;  %v21233_v10 = vld [vmem:[%s28116_s2] sm:$0xff] }
 0x3a9   : > { %5229 = vmatpush.bf16.msrb.mxu0 %v21263_v54  ;;  %v21297_v54 = vld [vmem:[%s28116_s2 + $0x1f8] sm:$0xff] }
 0x3ab   : > { %4979 = vmatpush.bf16.msra.mxu3 %v21203_v5  ;;  %5248 = vmatpush.bf16.msrb.mxu1 %v21270_v22  ;;  %v21252_v5 = vld [vmem:[%s28116_s2 + $0x98] sm:$0xff] }
 0x3ac   : > { %5269 = vmatpush.bf16.msrb.mxu2 %v21275_v53  ;;  %v21244_v22 = vld [vmem:[%s28116_s2 + $0x58] sm:$0xff]  ;;  %v21282_v53 = vld [vmem:[%s28116_s2 + $0x180] sm:$0xff] }
 0x3ad   : > { %5230 = vmatpush.bf16.msrb.mxu0 %v21262_v17  ;;  %v21296_v17 = vld [vmem:[%s28116_s2 + $0x1f0] sm:$0xff] }
 0x3af   : > { %4980 = vmatpush.bf16.msra.mxu3 %v21202_v21  ;;  %5249 = vmatpush.bf16.msrb.mxu1 %v21269_v62  ;;  %v21251_v21 = vld [vmem:[%s28116_s2 + $0x90] sm:$0xff] }
 0x3b0   : > { %5270 = vmatpush.bf16.msrb.mxu2 %v21274_v34  ;;  %v21243_v62 = vld [vmem:[%s28116_s2 + $0x50] sm:$0xff] }
 0x3b1   : > { %5231 = vmatpush.bf16.msrb.mxu0 %v21261_v36  ;;  %v22353_v34 = vld [vmem:[%s22599_s30 + $0x30] sm:$0xff]  ;;  %v21295_v36 = vld [vmem:[%s28116_s2 + $0x1e8] sm:$0xff] }
 0x3b2   : > { %4954 = vmatmul.bf16.vlgmr.msra.gmra.mxu1 %v23969_v47  ;;  %v21259_v47 = vld [vmem:[%s28116_s2 + $0xd0] sm:$0xff] }
 0x3b3   : > { %4981 = vmatpush.bf16.msra.mxu3 %v21201_v18  ;;  %5250 = vmatpush.bf16.msrb.mxu1 %v21268_v43  ;;  %v21250_v18 = vld [vmem:[%s28116_s2 + $0x88] sm:$0xff] }
 0x3b4   : > { %4796 = vmatmul.bf16.vlgmr.msra.gmra.mxu0 %v24617_v14  ;;  %5271 = vmatpush.bf16.msrb.mxu2 %v21273_v49  ;;  %v21242_v43 = vld [vmem:[%s28116_s2 + $0x48] sm:$0xff]  ;;  %v21249_v49 = vld [vmem:[%s28116_s2 + $0x80] sm:$0xff] }
 0x3b5   : > { %5232 = vmatpush.bf16.msrb.mxu0 %v21260_v28  ;;  %v21294_v28 = vld [vmem:[%s28116_s2 + $0x1e0] sm:$0xff] }
 0x3b6   : > { %4982 = vmatmul.bf16.vlgmr.msra.gmra.mxu3 %v24001_v46  ;;  %v21258_v46 = vld [vmem:[%s28116_s2 + $0xc8] sm:$0xff] }
 0x3b7   : > { %5426 = vmatpush.bf16.msrb.mxu3 %v21240_v41  ;;  %5251 = vmatpush.bf16.msrb.mxu1 %v21267_v48  ;;  %v24805_v41 = vld [vmem:[%s22599_s30 + $0x48] sm:$0xff]  ;;  %v21241_v48 = vld [vmem:[%s28116_s2 + $0x40] sm:$0xff] }
 0x3b8   : > { %5708 = vmatpush.bf16.msra.mxu2 %v21289_v32  ;;  %v21293_v32 = vld [vmem:[%s28116_s2 + $0x1d8] sm:$0xff] }
 0x3b9   : > { %5272 = vmatmul.bf16.vlgmr.msrb.gmra.mxu2 %v24262_v13  ;;  %5233 = vmatpush.bf16.msrb.mxu0 %v21259_v47  ;;  %v16675_v47 = vld [vmem:[%s22599_s30 + $0x50] sm:$0x3] }
 0x3bb   : > { %5427 = vmatpush.bf16.msrb.mxu3 %v21239_v33  ;;  %5252 = vmatpush.bf16.msrb.mxu1 %v21266_v58  ;;  %v21305_v33 = vld [vmem:[%s28116_s2 + $0x238] sm:$0xff]  ;;  %v5489_v58 = vunpack.c.l.b16 %v16675_v47 }
 0x3bc   : > { %5709 = vmatpush.bf16.msra.mxu2 %v21288_v31  ;;  %v21304_v31 = vld [vmem:[%s28116_s2 + $0x230] sm:$0xff] }
 0x3bd   : > { %5234 = vmatpush.bf16.msrb.mxu0 %v21258_v46  ;;  %v21303_v46 = vld [vmem:[%s28116_s2 + $0x228] sm:$0xff] }
 0x3bf   : > { %5428 = vmatpush.bf16.msrb.mxu3 %v21238_v19  ;;  %5253 = vmatpush.bf16.msrb.mxu1 %v21265_v3  ;;  %v21292_v19 = vld [vmem:[%s28116_s2 + $0x1d0] sm:$0xff]  ;;  %v5497_v3 = vshll.u32 %v24805_v41, 16 }
 0x3c0   : > { %5710 = vmatpush.bf16.msra.mxu2 %v21287_v23  ;;  %v24836_v23 = vpack.c.b16 %v5489_v58, %v5489_v58 }
 0x3c1   : > { %5235 = vmatpush.bf16.msrb.mxu0 %v21257_v8 }
 0x3c2   : > { %5254 = vmatmul.bf16.vlgmr.msrb.gmra.mxu1 %v24241_v63  ;;  %v5502_v8 = vshll.u32 %v24836_v23, 16 }
 0x3c3   : > { %5429 = vmatpush.bf16.msrb.mxu3 %v21237_v37  ;;  %5462 = vmatpush.bf16.msra.mxu1 %v21256_v7  ;;  %v21291_v37 = vld [vmem:[%s28116_s2 + $0x1c8] sm:$0xff]  ;;  %v5499_v7 = vrot.slane %v5497_v3, 1 }
 0x3c4   : > { %5711 = vmatpush.bf16.msra.mxu2 %v21286_v38  ;;  %5236 = vmatmul.bf16.vlgmr.msrb.gmra.mxu0 %v24208_v51  ;;  %v21284_v51 = vld [vmem:[%s28116_s2 + $0x190] sm:$0xff] }
 0x3c5   : > { %5444 = vmatpush.bf16.msra.mxu0 %v21248_v59  ;;  %v21301_v59 = vld [vmem:[%s28116_s2 + $0x218] sm:$0xff] }
 0x3c7   : > { %5430 = vmatpush.bf16.msrb.mxu3 %v21236_v27  ;;  %5463 = vmatpush.bf16.msra.mxu1 %v21255_v4  ;;  %v5504_v27 = vrot.slane %v5502_v8, 1  ;;  %v21300_v4 = vld [vmem:[%s28116_s2 + $0x210] sm:$0xff] }
 0x3c8   : > { %5712 = vmatpush.bf16.msra.mxu2 %v21285_v35  ;;  %v21298_v35 = vld [vmem:[%s28116_s2 + $0x200] sm:$0xff] }
 0x3c9   : > { %5445 = vmatpush.bf16.msra.mxu0 %v21247_v20  ;;  %5277 = vmatmul.bf16.gmra.mxu2 %v24256_v25 }
 0x3cb   : > { %5431 = vmatpush.bf16.msrb.mxu3 %v21235_v57  ;;  %5464 = vmatpush.bf16.msra.mxu1 %v21254_v26  ;;  %v21299_v57 = vld [vmem:[%s28116_s2 + $0x208] sm:$0xff]  ;;  %v5506_v26 = vshrl.u32 %v24836_v23, 16 }
 0x3cc   : > { %5713 = vmatpush.bf16.msra.mxu2 %v21284_v51 }
 0x3cd   : > { %5446 = vmatpush.bf16.msra.mxu0 %v21246_v45  ;;  %v5511_v45 = vrot.slane %v24805_v41, 1  ;;  %v24874_v51 = vor.u32 %v5506_v26, %v5504_v27 }
 0x3cf   : > { %5432 = vmatpush.bf16.msrb.mxu3 %v21234_v39  ;;  %5465 = vmatpush.bf16.msra.mxu1 %v21253_v52 }
 0x3d0   : > { %5714 = vmatpush.bf16.msra.mxu2 %v21283_v42 }
 0x3d1   : > { %5447 = vmatpush.bf16.msra.mxu0 %v21245_v40  ;;  %v3150_v40 = vadd.f32 %v24284_v30, %v24267_v55  ;;  %v22354_v55 = vld [vmem:[%s28120_s6] ss:$0 sm:$0xff] }
 0x3d2   : > { %5259 = vmatmul.bf16.gmra.mxu1 %v24258_v2 }
 0x3d3   : > { %5433 = vmatpush.bf16.msrb.mxu3 %v21233_v10  ;;  %5466 = vmatpush.bf16.msra.mxu1 %v21252_v5  ;;  %v3164_v10 = vadd.f32 %v24296_v61, %v3150_v40 }
 0x3d4   : > { %5715 = vmatpush.bf16.msra.mxu2 %v21282_v53  ;;  %5241 = vmatmul.bf16.gmra.mxu0 %v24220_v50 }
 0x3d5   : > { %5448 = vmatpush.bf16.msra.mxu0 %v21244_v22 }
 0x3d6   : > { %5434 = vmatmul.bf16.vlgmr.msrb.gmra.mxu3 %v22353_v34 }
 0x3d7   : > { %5726 = vmatpush.bf16.msra.mxu3 %v21297_v54  ;;  %5467 = vmatpush.bf16.msra.mxu1 %v21251_v21 }
 0x3d9   : > { %5449 = vmatpush.bf16.msra.mxu0 %v21243_v62  ;;  %5716 = vmatmul.bf16.vlgmr.msra.gmra.mxu2 %v24805_v41 }
 0x3db   : > { %5727 = vmatpush.bf16.msra.mxu3 %v21296_v17  ;;  %5468 = vmatpush.bf16.msra.mxu1 %v21250_v18  ;;  %v3322_v17 = vadd.f32 %v24290_v56, %v3164_v10 }
 0x3dd   : > { %5450 = vmatpush.bf16.msra.mxu0 %v21242_v43  ;;  %v22355_v43 = vld [vmem:[%s28121_s7] ss:$0 sm:$0xff] }
 0x3df   : > { %5728 = vmatpush.bf16.msra.mxu3 %v21295_v36  ;;  %5469 = vmatpush.bf16.msra.mxu1 %v21249_v49  ;;  %v3336_v36 = vadd.f32 %v24280_v44, %v3322_v17 }
 0x3e1   : > { %5451 = vmatpush.bf16.msra.mxu0 %v21241_v48 }
 0x3e2   : > { %5470 = vmatmul.bf16.vlgmr.msra.gmra.mxu1 %v23681_v12  ;;  %v5495_v12 = vshrl.u32 %v24805_v41, 16 }
 0x3e3   : > { %5729 = vmatpush.bf16.msra.mxu3 %v21294_v28 }
 0x3e4   : > { %5452 = vmatmul.bf16.vlgmr.msra.gmra.mxu0 %v23669_v11  ;;  %v21290_v11 = vld [vmem:[%s28116_s2 + $0x1c0] sm:$0xff]  ;;  %v5500_v38 = vor.u32 %v5499_v7, %v5495_v12 }
 0x3e5   : > { %5744 = vmatpush.bf16.msrb.mxu0 %v21305_v33 }
 0x3e6   : > { %5439 = vmatmul.bf16.gmra.mxu3 %v23644_v9  ;;  %v21302_v9 = vld [vmem:[%s28116_s2 + $0x220] sm:$0xff]  ;;  %v24858_v20 = vsel %vm555_vm0, %v5500_v38, %v5504_v27 }
 0x3e7   : > { %5730 = vmatpush.bf16.msra.mxu3 %v21293_v32 }
 0x3e9   : > { %5745 = vmatpush.bf16.msrb.mxu0 %v21304_v31  ;;  %5721 = vmatmul.bf16.gmra.mxu2 %v24836_v23 }
 0x3eb   : > { %5731 = vmatpush.bf16.msra.mxu3 %v21292_v19 }
 0x3ed   : > { %5746 = vmatpush.bf16.msrb.mxu0 %v21303_v46 }
 0x3ef   : > { %5732 = vmatpush.bf16.msra.mxu3 %v21291_v37 }
 0x3f1   : > { %5747 = vmatpush.bf16.msrb.mxu0 %v21302_v9 }
 0x3f2   : > { %5475 = vmatmul.bf16.gmra.mxu1 %v23676_v15  ;;  %v24872_v15 = vrot.slane %v24836_v23, 1 }
 0x3f3   : > { %5733 = vmatpush.bf16.msra.mxu3 %v21290_v11 }
 0x3f4   : > { %5457 = vmatmul.bf16.gmra.mxu0 %v23683_v16  ;;  %v24878_v39 = vsel %vm573_vm1, %v5511_v45, %v24872_v15 }
 0x3f5   : > { %5748 = vmatpush.bf16.msrb.mxu0 %v21301_v59 }
 0x3f6   : > { %5734 = vmatmul.bf16.vlgmr.msra.gmra.mxu3 %v24858_v20 }
 0x3f9   : > { %5749 = vmatpush.bf16.msrb.mxu0 %v21300_v4 }
 0x3fd   : > { %5750 = vmatpush.bf16.msrb.mxu0 %v21299_v57 }
 0x401   : > { %5751 = vmatpush.bf16.msrb.mxu0 %v21298_v35 }
 0x404   : > { %5752 = vmatmul.bf16.vlgmr.msrb.gmra.mxu0 %v24878_v39 }
 0x406   : > { %5739 = vmatmul.bf16.gmra.mxu3 %v24874_v51 }
 0x414   : > { %5757 = vmatmul.bf16.gmra.mxu0 %v24872_v15 }
 0x419   : > { %v4428_v16 = vpop.f32.mrf.mxu3  ;;  %v4769_v52 = vpop.f32.mrf.mxu2 }
 0x41f   : > { %v4456_v42 = vpop.f32.mrf.mxu1 }
 0x421   : > { %v4430_v54 = vpop.f32.mrf.mxu3  ;;  %v4442_v5 = vpop.f32.mrf.mxu0 }
 0x422   : > { %v4443_v22 = vadd.f32 %v4442_v5, %v4428_v16  ;;  %v24886_v53 = vpop.f32.mrf.mxu2 }
 0x424   : > { %v4457_v21 = vadd.f32 %v4456_v42, %v4443_v22 }
 0x426   : > { %v4461_v62 = vadd.f32 %v4457_v21, %v24294_v29  ;;  %v3350_v29 = vadd.f32 %v24302_v60, %v3336_v36 }
 0x427   : > { %v4458_v34 = vpop.f32.mrf.mxu1 }
 0x428   : > { %v4463_v30 = vmul.f32 %v22354_v55, %v4461_v62 }
 0x429   : > { %v4444_v18 = vpop.f32.mrf.mxu0  ;;  %v4783_v61 = vpop.f32.mrf.mxu3 }
 0x42a   : > { %v4465_v28 = vadd.f32 %v22355_v43, %v4463_v30  ;;  %v4445_v49 = vadd.f32 %v4444_v18, %v4430_v54  ;;  %v4784_v56 = vadd.f32 %v4783_v61, %v4769_v52  ;;  %v4969_v48 = vpop.f32.mrf.mxu2 }
 0x42c   : > { %v16189_v33 = vmul.f32 -1.442695, %v4465_v28  ;;  %v4459_v32 = vadd.f32 %v4458_v34, %v4445_v49 }
 0x42e   : > { %22161 = vpow2.f32 %v16189_v33  ;;  %v4462_v44 = vadd.f32 %v4459_v32, %v3350_v29 }
 0x42f   : > { %v4955_v47 = vpop.f32.mrf.mxu1 }
 0x430   : > { %v4464_v31 = vmul.f32 %v22354_v55, %v4462_v44 }
 0x431   : > { %v24898_v58 = vpop.f32.mrf.mxu3  ;;  %v4797_v19 = vpop.f32.mrf.mxu0 }
 0x432   : > { %v4466_v46 = vadd.f32 %v22355_v43, %v4464_v31  ;;  %v4798_v3 = vadd.f32 %v4797_v19, %v4784_v56  ;;  %v24900_v37 = vpop.f32.mrf.mxu2 }
 0x434   : > { %v22162_v9 = vpop.eup %22161  ;;  %v16190_v12 = vmul.f32 -1.442695, %v4466_v46  ;;  %v4956_v7 = vadd.f32 %v4955_v47, %v4798_v3 }
 0x435   : > { %v4473_v8 = vadd.f32 1.0, %v22162_v9 }
 0x436   : > { %22163 = vpow2.f32 %v16190_v12  ;;  %v4970_v11 = vadd.f32 %v4969_v48, %v4956_v7 }
 0x437   : > { %22165 = vrcp.f32 %v4473_v8  ;;  %v24902_v60 = vpop.f32.mrf.mxu1  ;;  %v4486_v40 = vand.u32 2147483648, %v4473_v8  ;;  %v4484_v54 = vand.u32 2147483647, %v4473_v8  ;;  %vm4480_vm13 = vweird.f32 %v4473_v8 }
 0x439   : > { %v24904_v59 = vpop.f32.mrf.mxu0  ;;  %v4983_v38 = vpop.f32.mrf.mxu3  ;;  %v4487_v34 = vor.u32 1.1754944e-38, %v4486_v40  ;;  %vm4485_vm15 = vcmp.eq.f32.partialorder %v4484_v54, 8.507059e+37 }
 0x43a   : > { %v24906_v27 = vadd.f32 %v4983_v38, %v4970_v11 }
 0x43c   : > { %v5273_v4 = vpop.f32.mrf.mxu2  ;;  %v22164_v57 = vpop.eup %22163 }
 0x43d   : > { %v22166_v35 = vpop.eup %22165  ;;  %v4474_v26 = vadd.f32 1.0, %v22164_v57 }
 0x43e   : > { %v4476_v45 = vmul.f32 %v22166_v35, %v4473_v8  ;;  %vm4481_vm12 = vweird.f32 %v22166_v35 }
 0x43f   : > { %22167 = vrcp.f32 %v4474_v26  ;;  %v5255_v16 = vpop.f32.mrf.mxu1  ;;  %vm4482_vm14 = vmor %vm4480_vm13, %vm4481_vm12  ;;  %v4501_v49 = vand.u32 2147483648, %v4474_v26  ;;  %v4499_v33 = vand.u32 2147483647, %v4474_v26  ;;  %vm4495_vm4 = vweird.f32 %v4474_v26 }
 0x440   : > { %v4477_v52 = vsub.f32 1.0, %v4476_v45 }
 0x441   : > { %v5237_v42 = vpop.f32.mrf.mxu0  ;;  %v4502_v44 = vor.u32 1.1754944e-38, %v4501_v49  ;;  %vm4500_vm7 = vcmp.eq.f32.partialorder %v4499_v33, 8.507059e+37  ;;  %v24919_v31 = vpop.f32.mrf.mxu3  ;;  %v21328_v49 = vld [vmem:[%s28119_s5 + $0x230] sm:$0xff] }
 0x442   : > { %v4478_v10 = vmul.f32 %v22166_v35, %v4477_v52  ;;  %v5256_v5 = vadd.f32 %v5255_v16, %v5237_v42  ;;  %v21311_v52 = vld [vmem:[%s28119_s5 + $0x1a8] sm:$0xff] }
 0x444   : > { %v24908_v22 = vpop.f32.mrf.mxu2  ;;  %v4479_v17 = vadd.f32 %v22166_v35, %v4478_v10  ;;  %v24910_v21 = vadd.f32 %v5273_v4, %v5256_v5  ;;  %v21313_v4 = vld [vmem:[%s28119_s5 + $0x1b8] sm:$0xff]  ;;  %v21310_v10 = vld [vmem:[%s28119_s5 + $0x1a0] sm:$0xff] }
 0x445   : > { %v22168_v62 = vpop.eup %22167  ;;  %6055 = vmatpush.bf16.msrb.mxu1 %v21313_v4  ;;  %v21361_v5 = vld [vmem:[%s28119_s5 + $0xf8] sm:$0xff]  ;;  %v21318_v4 = vld [vmem:[%s28119_s5 + $0x1e0] sm:$0xff] }
 0x446   : > { %v4483_v36 = vsel %vm4482_vm14, %v22166_v35, %v4479_v17  ;;  %v4491_v55 = vmul.f32 %v22168_v62, %v4474_v26  ;;  %vm4496_vm3 = vweird.f32 %v22168_v62  ;;  %v21312_v26 = vld [vmem:[%s28119_s5 + $0x1b0] sm:$0xff]  ;;  %6396 = vmatpush.bf16.msra.mxu0 %v21361_v5  ;;  %v21369_v5 = vld [vmem:[%s28119_s5 + $0x138] sm:$0xff] }
 0x447   : > { %v4488_v30 = vsel %vm4485_vm15, %v4487_v34, %v4483_v36  ;;  %v24912_v18 = vpop.f32.mrf.mxu1  ;;  %vm4497_vm5 = vmor %vm4495_vm4, %vm4496_vm3  ;;  %v21329_v34 = vld [vmem:[%s28119_s5 + $0x238] sm:$0xff] }
 0x448   : > { %v4505_v61 = vmul.f32 %v4488_v30, %v4465_v28  ;;  %v4492_v43 = vsub.f32 1.0, %v4491_v55  ;;  %v21309_v36 = vld [vmem:[%s28119_s5 + $0x198] sm:$0xff]  ;;  %6083 = vmatpush.bf16.msrb.mxu3 %v21329_v34  ;;  %v21360_v30 = vld [vmem:[%s28119_s5 + $0xf0] sm:$0xff] }
 0x449   : > { %v24914_v56 = vpop.f32.mrf.mxu0  ;;  %6056 = vmatpush.bf16.msrb.mxu1 %v21312_v26  ;;  %v21326_v26 = vld [vmem:[%s28119_s5 + $0x220] sm:$0xff]  ;;  %v21317_v34 = vld [vmem:[%s28119_s5 + $0x1d8] sm:$0xff] }
 0x44a   : > { %16191 = vst [vmem:[%s24309_s23 + $0x10] sm:$0xff] %v4505_v61  ;;  %v4493_v48 = vmul.f32 %v22168_v62, %v4492_v43  ;;  %v21320_v43 = vld [vmem:[%s28119_s5 + $0x1f0] sm:$0xff]  ;;  %6397 = vmatpush.bf16.msra.mxu0 %v21360_v30 }
 0x44b   : > { %v21368_v30 = vld [vmem:[%s28119_s5 + $0x130] sm:$0xff] }
 0x44c   : > { %v24917_v29 = vpop.f32.mrf.mxu2  ;;  %v4494_v32 = vadd.f32 %v22168_v62, %v4493_v48  ;;  %v21308_v48 = vld [vmem:[%s28119_s5 + $0x190] sm:$0xff]  ;;  %6084 = vmatpush.bf16.msrb.mxu3 %v21328_v49 }
 0x44d   : > { %6057 = vmatpush.bf16.msrb.mxu1 %v21311_v52  ;;  %v21306_v52 = vld [vmem:[%s28119_s5 + $0x180] sm:$0xff] }
 0x44e   : > { %v4498_v47 = vsel %vm4497_vm5, %v22168_v62, %v4494_v32  ;;  %v21321_v62 = vld [vmem:[%s28119_s5 + $0x1f8] sm:$0xff]  ;;  %v21359_v32 = vld [vmem:[%s28119_s5 + $0xe8] sm:$0xff] }
 0x44f   : > { %v4503_v28 = vsel %vm4500_vm7, %v4502_v44, %v4498_v47  ;;  %v24921_v19 = vpop.f32.mrf.mxu1  ;;  %6069 = vmatpush.bf16.msrb.mxu2 %v21321_v62  ;;  %v21319_v47 = vld [vmem:[%s28119_s5 + $0x1e8] sm:$0xff]  ;;  %6398 = vmatpush.bf16.msra.mxu0 %v21359_v32  ;;  %v21357_v62 = vld [vmem:[%s28119_s5 + $0xd8] sm:$0xff] }
 0x450   : > { %v4506_v3 = vmul.f32 %v4503_v28, %v4466_v46  ;;  %v21327_v28 = vld [vmem:[%s28119_s5 + $0x228] sm:$0xff] }
 0x451   : > { %v24923_v9 = vpop.f32.mrf.mxu0  ;;  %6058 = vmatpush.bf16.msrb.mxu1 %v21310_v10  ;;  %6085 = vmatpush.bf16.msrb.mxu3 %v21327_v28  ;;  %v21355_v28 = vld [vmem:[%s28119_s5 + $0xc8] sm:$0xff] }
 0x452   : > { %16192 = vst [vmem:[%s24309_s23 + $0x18] sm:$0xff] %v4506_v3  ;;  %v24926_v12 = vadd.f32 %v4506_v3, %v4505_v61  ;;  %v21307_v3 = vld [vmem:[%s28119_s5 + $0x188] sm:$0xff] }
 0x453   : > { %6070 = vmatpush.bf16.msrb.mxu2 %v21320_v43  ;;  %v5258_v43 = vadd.f32 %v24912_v18, %v24914_v56  ;;  %v21367_v18 = vld [vmem:[%s28119_s5 + $0x128] sm:$0xff] }
 0x454   : > { %v5280_v7 = vpop.f32.mrf.mxu2 }
 0x455   : > { %6059 = vmatpush.bf16.msrb.mxu1 %v21309_v36  ;;  %6086 = vmatpush.bf16.msrb.mxu3 %v21326_v26  ;;  %v21325_v36 = vld [vmem:[%s28119_s5 + $0x218] sm:$0xff]  ;;  %v5276_v56 = vadd.f32 %v24908_v22, %v5258_v43  ;;  %v21366_v22 = vld [vmem:[%s28119_s5 + $0x120] sm:$0xff] }
 0x456   : > { %v25063_v26 = vld [vmem:[%s28117_s3] ss:$0 sm:$0xff] }
 0x457   : > { %v5262_v11 = vpop.f32.mrf.mxu1  ;;  %6071 = vmatpush.bf16.msrb.mxu2 %v21319_v47 }
 0x458   : > { %v21358_v11 = vld [vmem:[%s28119_s5 + $0xe0] sm:$0xff] }
 0x459   : > { %v24928_v8 = vpop.f32.mrf.mxu3  ;;  %v5244_v38 = vpop.f32.mrf.mxu0  ;;  %6060 = vmatpush.bf16.msrb.mxu1 %v21308_v48  ;;  %6399 = vmatpush.bf16.msra.mxu0 %v21358_v11 }
 0x45a   : > { %6087 = vmatpush.bf16.msrb.mxu3 %v21325_v36  ;;  %v21377_v36 = vld [vmem:[%s28119_s5 + $0x178] sm:$0xff] }
 0x45b   : > { %6072 = vmatpush.bf16.msrb.mxu2 %v21318_v4 }
 0x45c   : > { %v24933_v57 = vpop.f32.mrf.mxu2 }
 0x45d   : > { %6061 = vmatpush.bf16.msrb.mxu1 %v21307_v3  ;;  %6400 = vmatpush.bf16.msra.mxu0 %v21357_v62  ;;  %v21315_v3 = vld [vmem:[%s28119_s5 + $0x1c8] sm:$0xff]  ;;  %v22357_v62 = vld [vmem:[%s28118_s4] ss:$0 sm:$0xff] }
 0x45f   : > { %v24937_v46 = vpop.f32.mrf.mxu1  ;;  %6073 = vmatpush.bf16.msrb.mxu2 %v21317_v34 }
 0x461   : > { %v24935_v35 = vpop.f32.mrf.mxu3  ;;  %v5453_v45 = vpop.f32.mrf.mxu0  ;;  %6062 = vmatpush.bf16.msrb.mxu1 %v21306_v52 }
 0x462   : > { %v5438_v11 = vadd.f32 %v24935_v35, %v5276_v56 }
 0x464   : > { %v24942_v16 = vpop.f32.mrf.mxu2 }
 0x465   : > { %6410 = vmatpush.bf16.msra.mxu1 %v21369_v5  ;;  %v21314_v5 = vld [vmem:[%s28119_s5 + $0x1c0] sm:$0xff] }
 0x467   : > { %v24949_v42 = vpop.f32.mrf.mxu1 }
 0x469   : > { %v24947_v40 = vpop.f32.mrf.mxu3  ;;  %v24954_v54 = vpop.f32.mrf.mxu0  ;;  %6411 = vmatpush.bf16.msra.mxu1 %v21368_v30 }
 0x46a   : > { %v5456_v4 = vadd.f32 %v24954_v54, %v5438_v11 }
 0x46c   : > { %v24959_v17 = vpop.f32.mrf.mxu2 }
 0x46d   : > { %6412 = vmatpush.bf16.msra.mxu1 %v21367_v18 }
 0x46f   : > { %v24973_v61 = vpop.f32.mrf.mxu1 }
 0x471   : > { %v5442_v55 = vpop.f32.mrf.mxu3  ;;  %v24984_v33 = vpop.f32.mrf.mxu0  ;;  %6413 = vmatpush.bf16.msra.mxu1 %v21366_v22 }
 0x472   : > { %v5436_v55 = vadd.f32 %v24928_v8, %v24910_v21  ;;  %v21316_v21 = vld [vmem:[%s28119_s5 + $0x1d0] sm:$0xff] }
 0x473   : > { %v21324_v8 = vld [vmem:[%s28119_s5 + $0x210] sm:$0xff]  ;;  %6074 = vmatpush.bf16.msrb.mxu2 %v21316_v21 }
 0x474   : > { %v5724_v44 = vpop.f32.mrf.mxu2  ;;  %v5454_v49 = vadd.f32 %v5453_v45, %v5436_v55  ;;  %6088 = vmatpush.bf16.msrb.mxu3 %v21324_v8  ;;  %v21337_v55 = vld [vmem:[%s28119_s5 + $0x38] sm:$0xff] }
 0x475   : > { %v21356_v44 = vld [vmem:[%s28119_s5 + $0xd0] sm:$0xff] }
 0x476   : > { %6401 = vmatpush.bf16.msra.mxu0 %v21356_v44  ;;  %v21344_v44 = vld [vmem:[%s28119_s5 + $0x70] sm:$0xff] }
 0x477   : > { %v5478_v38 = vpop.f32.mrf.mxu1  ;;  %6075 = vmatpush.bf16.msrb.mxu2 %v21315_v3  ;;  %v21375_v3 = vld [vmem:[%s28119_s5 + $0x168] sm:$0xff] }
 0x479   : > { %v5735_v7 = vpop.f32.mrf.mxu3  ;;  %v5460_v10 = vpop.f32.mrf.mxu0 }
 0x47a   : > { %v5736_v48 = vadd.f32 %v5735_v7, %v24933_v57  ;;  %v5472_v57 = vadd.f32 %v24937_v46, %v5454_v49  ;;  %v21323_v7 = vld [vmem:[%s28119_s5 + $0x208] sm:$0xff]  ;;  %6402 = vmatpush.bf16.msra.mxu0 %v21355_v28  ;;  %v5261_v46 = vadd.f32 %v24921_v19, %v24923_v9  ;;  %v21354_v10 = vld [vmem:[%s28119_s5 + $0xc0] sm:$0xff]  ;;  %v21345_v9 = vld [vmem:[%s28119_s5 + $0x78] sm:$0xff]  ;;  %v5474_v49 = vadd.f32 %v24949_v42, %v5456_v4 }
 0x47b   : > { %6089 = vmatpush.bf16.msrb.mxu3 %v21323_v7  ;;  %v21322_v19 = vld [vmem:[%s28119_s5 + $0x200] sm:$0xff]  ;;  %6076 = vmatpush.bf16.msrb.mxu2 %v21314_v5  ;;  %v21336_v42 = vld [vmem:[%s28119_s5 + $0x30] sm:$0xff]  ;;  %v21363_v7 = vld [vmem:[%s28119_s5 + $0x108] sm:$0xff] }
 0x47c   : > { %v5279_v43 = vadd.f32 %v24917_v29, %v5261_v46  ;;  %v21376_v29 = vld [vmem:[%s28119_s5 + $0x170] sm:$0xff]  ;;  %v21362_v5 = vld [vmem:[%s28119_s5 + $0x100] sm:$0xff] }
 0x47e   : > { %6403 = vmatpush.bf16.msra.mxu0 %v21354_v10  ;;  %v5441_v21 = vadd.f32 %v24947_v40, %v5279_v43  ;;  %v21374_v10 = vld [vmem:[%s28119_s5 + $0x160] sm:$0xff] }
 0x47f   : > { %6090 = vmatpush.bf16.msrb.mxu3 %v21322_v19  ;;  %6424 = vmatpush.bf16.msra.mxu2 %v21377_v36  ;;  %v21373_v36 = vld [vmem:[%s28119_s5 + $0x158] sm:$0xff] }
 0x480   : > { %v5459_v18 = vadd.f32 %v24984_v33, %v5441_v21 }
 0x481   : > { %v5737_v32 = vpop.f32.mrf.mxu3  ;;  %v5753_v47 = vpop.f32.mrf.mxu0 }
 0x482   : > { %v5754_v45 = vadd.f32 %v5753_v47, %v5736_v48  ;;  %v5738_v54 = vadd.f32 %v5737_v32, %v24942_v16  ;;  %v21365_v16 = vld [vmem:[%s28119_s5 + $0x118] sm:$0xff]  ;;  %6596 = vmatpush.bf16.msrb.mxu0 %v21345_v9  ;;  %v21364_v47 = vld [vmem:[%s28119_s5 + $0x110] sm:$0xff] }
 0x483   : > { %6582 = vmatpush.bf16.msra.mxu3 %v21337_v55  ;;  %6414 = vmatpush.bf16.msra.mxu1 %v21365_v16  ;;  %v21341_v9 = vld [vmem:[%s28119_s5 + $0x58] sm:$0xff] }
 0x484   : > { %v5762_v38 = vadd.f32 %v5754_v45, %v5472_v57  ;;  %6425 = vmatpush.bf16.msra.mxu2 %v21376_v29  ;;  %v21343_v45 = vld [vmem:[%s28119_s5 + $0x68] sm:$0xff]  ;;  %v21333_v55 = vld [vmem:[%s28119_s5 + $0x18] sm:$0xff] }
 0x485   : > { %v21339_v29 = vld [vmem:[%s28119_s5 + $0x48] sm:$0xff] }
 0x486   : > { %v5765_v35 = vmul.f32 %v25063_v26, %v5762_v38  ;;  %6597 = vmatpush.bf16.msrb.mxu0 %v21344_v44  ;;  %v5477_v38 = vadd.f32 %v24973_v61, %v5459_v18  ;;  %v21334_v61 = vld [vmem:[%s28119_s5 + $0x20] sm:$0xff]  ;;  %v21332_v44 = vld [vmem:[%s28119_s5 + $0x10] sm:$0xff] }
 0x487   : > { %6583 = vmatpush.bf16.msra.mxu3 %v21336_v42  ;;  %6415 = vmatpush.bf16.msra.mxu1 %v21364_v47  ;;  %v21371_v42 = vld [vmem:[%s28119_s5 + $0x148] sm:$0xff] }
 0x488   : > { %v25082_v34 = vadd.f32 %v22357_v62, %v5765_v35  ;;  %6426 = vmatpush.bf16.msra.mxu2 %v21375_v3  ;;  %v21342_v35 = vld [vmem:[%s28119_s5 + $0x60] sm:$0xff]  ;;  %v21331_v47 = vld [vmem:[%s28119_s5 + $0x8] sm:$0xff] }
 0x489   : > { %v5740_v52 = vpop.f32.mrf.mxu3  ;;  %v5755_v30 = vpop.f32.mrf.mxu0 }
 0x48a   : > { %v16824_v48 = vmul.f32 -1.442695, %v25082_v34  ;;  %v5756_v32 = vadd.f32 %v5755_v30, %v5738_v54  ;;  %v5741_v56 = vadd.f32 %v5740_v52, %v24959_v17  ;;  %v21335_v17 = vld [vmem:[%s28119_s5 + $0x28] sm:$0xff]  ;;  %6598 = vmatpush.bf16.msrb.mxu0 %v21343_v45 }
 0x48b   : > { %6584 = vmatpush.bf16.msra.mxu3 %v21335_v17  ;;  %6416 = vmatpush.bf16.msra.mxu1 %v21363_v7 }
 0x48c   : > { %22169 = vpow2.f32 %v16824_v48  ;;  %v5763_v8 = vadd.f32 %v5756_v32, %v5474_v49  ;;  %6427 = vmatpush.bf16.msra.mxu2 %v21374_v10  ;;  %v21372_v32 = vld [vmem:[%s28119_s5 + $0x150] sm:$0xff] }
 0x48e   : > { %v5766_v40 = vmul.f32 %v25063_v26, %v5763_v8  ;;  %6599 = vmatpush.bf16.msrb.mxu0 %v21342_v35 }
 0x48f   : > { %6585 = vmatpush.bf16.msra.mxu3 %v21334_v61  ;;  %6417 = vmatpush.bf16.msra.mxu1 %v21362_v5 }
 0x490   : > { %v25115_v28 = vadd.f32 %v22357_v62, %v5766_v40  ;;  %6428 = vmatpush.bf16.msra.mxu2 %v21373_v36 }
 0x491   : > { %v5742_v57 = vpop.f32.mrf.mxu3  ;;  %v5758_v33 = vpop.f32.mrf.mxu0 }
 0x492   : > { %v22170_v11 = vpop.eup %22169  ;;  %v16825_v22 = vmul.f32 -1.442695, %v25115_v28  ;;  %v5759_v46 = vadd.f32 %v5758_v33, %v5741_v56  ;;  %6600 = vmatpush.bf16.msrb.mxu0 %v21341_v9  ;;  %v21338_v33 = vld [vmem:[%s28119_s5 + $0x40] sm:$0xff] }
 0x493   : > { %v5780_v4 = vadd.f32 1.0, %v22170_v11  ;;  %6586 = vmatpush.bf16.msra.mxu3 %v21333_v55 }
 0x494   : > { %22171 = vpow2.f32 %v16825_v22  ;;  %v5764_v52 = vadd.f32 %v5759_v46, %v5477_v38  ;;  %6429 = vmatpush.bf16.msra.mxu2 %v21372_v32  ;;  %v21370_v38 = vld [vmem:[%s28119_s5 + $0x140] sm:$0xff] }
 0x495   : > { %22173 = vrcp.f32 %v5780_v4  ;;  %v5794_v8 = vand.u32 2147483648, %v5780_v4  ;;  %v5792_v56 = vand.u32 2147483647, %v5780_v4  ;;  %vm5788_vm9 = vweird.f32 %v5780_v4  ;;  %v21330_v22 = vld [vmem:[%s28119_s5] sm:$0xff] }
 0x496   : > { %v5767_v19 = vmul.f32 %v25063_v26, %v5764_v52 }
 0x497   : > { %6587 = vmatpush.bf16.msra.mxu3 %v21332_v44  ;;  %v5795_v3 = vor.u32 1.1754944e-38, %v5794_v8  ;;  %vm5793_vm11 = vcmp.eq.f32.partialorder %v5792_v56, 8.507059e+37 }
 0x498   : > { %v25144_v54 = vadd.f32 %v22357_v62, %v5767_v19  ;;  %v21340_v62 = vld [vmem:[%s28119_s5 + $0x50] sm:$0xff]  ;;  %6430 = vmatpush.bf16.msra.mxu2 %v21371_v42  ;;  %v21353_v42 = vld [vmem:[%s28119_s5 + $0xb8] sm:$0xff] }
 0x499   : > { %v5760_v30 = vpop.f32.mrf.mxu0  ;;  %6601 = vmatpush.bf16.msrb.mxu0 %v21340_v62 }
 0x49a   : > { %v22172_v26 = vpop.eup %22171  ;;  %v16826_v16 = vmul.f32 -1.442695, %v25144_v54 }
 0x49b   : > { %v22174_v43 = vpop.eup %22173  ;;  %v5781_v49 = vadd.f32 1.0, %v22172_v26  ;;  %6588 = vmatpush.bf16.msra.mxu3 %v21331_v47 }
 0x49c   : > { %v5784_v48 = vmul.f32 %v22174_v43, %v5780_v4  ;;  %22175 = vpow2.f32 %v16826_v16  ;;  %vm5789_vm8 = vweird.f32 %v22174_v43  ;;  %6431 = vmatpush.bf16.msra.mxu2 %v21370_v38 }
 0x49d   : > { %22177 = vrcp.f32 %v5781_v49  ;;  %6602 = vmatpush.bf16.msrb.mxu0 %v21339_v29  ;;  %vm5790_vm10 = vmor %vm5788_vm9, %vm5789_vm8  ;;  %v5809_v52 = vand.u32 2147483648, %v5781_v49  ;;  %v5807_v61 = vand.u32 2147483647, %v5781_v49  ;;  %vm5803_vm13 = vweird.f32 %v5781_v49 }
 0x49e   : > { %v5785_v21 = vsub.f32 1.0, %v5784_v48 }
 0x49f   : > { %6589 = vmatpush.bf16.msra.mxu3 %v21330_v22  ;;  %v5810_v36 = vor.u32 1.1754944e-38, %v5809_v52  ;;  %vm5808_vm15 = vcmp.eq.f32.partialorder %v5807_v61, 8.507059e+37  ;;  %v21417_v61 = vld [vmem:[%s28116_s2 + $0x138] sm:$0xff] }
 0x4a0   : > { %v5786_v18 = vmul.f32 %v22174_v43, %v5785_v21 }
 0x4a1   : > { %6603 = vmatpush.bf16.msrb.mxu0 %v21338_v33 }
 0x4a2   : > { %v22176_v40 = vpop.eup %22175  ;;  %v5787_v57 = vadd.f32 %v22174_v43, %v5786_v18 }
 0x4a3   : > { %v22178_v45 = vpop.eup %22177  ;;  %v5782_v17 = vadd.f32 1.0, %v22176_v40 }
 0x4a4   : > { %v5791_v7 = vsel %vm5790_vm10, %v22174_v43, %v5787_v57  ;;  %v5799_v11 = vmul.f32 %v22178_v45, %v5781_v49  ;;  %vm5804_vm12 = vweird.f32 %v22178_v45  ;;  %v21352_v57 = vld [vmem:[%s28119_s5 + $0xb0] sm:$0xff] }
 0x4a5   : > { %v5796_v46 = vsel %vm5793_vm11, %v5795_v3, %v5791_v7  ;;  %22179 = vrcp.f32 %v5782_v17  ;;  %vm5805_vm14 = vmor %vm5803_vm13, %vm5804_vm12  ;;  %v5824_v62 = vand.u32 2147483648, %v5782_v17  ;;  %v5822_v44 = vand.u32 2147483647, %v5782_v17  ;;  %v21351_v7 = vld [vmem:[%s28119_s5 + $0xa8] sm:$0xff] }
 0x4a6   : > { %v5800_v4 = vsub.f32 1.0, %v5799_v11  ;;  %v5828_v35 = vmul.f32 %v5796_v46, %v25082_v34  ;;  %vm5818_vm4 = vweird.f32 %v5782_v17  ;;  %v21423_v11 = vld [vmem:[%s28116_s2 + $0x168] sm:$0xff] }
 0x4a7   : > { %v5825_v29 = vor.u32 1.1754944e-38, %v5824_v62  ;;  %vm5823_vm7 = vcmp.eq.f32.partialorder %v5822_v44, 8.507059e+37  ;;  %v21348_v62 = vld [vmem:[%s28119_s5 + $0x90] sm:$0xff]  ;;  %v21347_v44 = vld [vmem:[%s28119_s5 + $0x88] sm:$0xff] }
 0x4a8   : > { %v5801_v10 = vmul.f32 %v22178_v45, %v5800_v4  ;;  %v5831_v9 = vsel %vm533_vm6, %v5828_v35, 0.0  ;;  %v21350_v35 = vld [vmem:[%s28119_s5 + $0xa0] sm:$0xff] }
 0x4a9   : > { %v5834_v16 = vpack.c.bf16 %v5831_v9, %v5831_v9 }
 0x4aa   : > { %v5802_v5 = vadd.f32 %v22178_v45, %v5801_v10 }
 0x4ab   : > { %v22180_v19 = vpop.eup %22179  ;;  %v5839_v49 = vunpack.c.l.b16 %v5834_v16  ;;  %v21416_v16 = vld [vmem:[%s28116_s2 + $0x130] sm:$0xff] }
 0x4ac   : > { %v5806_v55 = vsel %vm5805_vm14, %v22178_v45, %v5802_v5  ;;  %v5814_v30 = vmul.f32 %v22180_v19, %v5782_v17  ;;  %vm5819_vm3 = vweird.f32 %v22180_v19  ;;  %v21424_v45 = vld [vmem:[%s28116_s2 + $0x170] sm:$0xff]  ;;  %v21422_v5 = vld [vmem:[%s28116_s2 + $0x160] sm:$0xff] }
 0x4ad   : > { %v5811_v26 = vsel %vm5808_vm15, %v5810_v36, %v5806_v55  ;;  %vm5820_vm5 = vmor %vm5818_vm4, %vm5819_vm3  ;;  %v21409_v55 = vld [vmem:[%s28116_s2 + $0xf8] sm:$0xff]  ;;  %vm14342_vm4 = vcmask 1040384  }
 0x4ae   : > { %v5829_v34 = vmul.f32 %v5811_v26, %v25115_v28  ;;  %v5815_v43 = vsub.f32 1.0, %v5814_v30  ;;  %v21425_v28 = vld [vmem:[%s28116_s2 + $0x178] sm:$0xff] }
 0x4af   : > { %v21349_v26 = vld [vmem:[%s28119_s5 + $0x98] sm:$0xff] }
 0x4b0   : > { %v5835_v48 = vpack.c.bf16 %v5829_v34, %v5829_v34  ;;  %v5816_v32 = vmul.f32 %v22180_v19, %v5815_v43  ;;  %v21421_v34 = vld [vmem:[%s28116_s2 + $0x158] sm:$0xff]  ;;  %v21408_v43 = vld [vmem:[%s28116_s2 + $0xf0] sm:$0xff] }
 0x4b2   : > { %v5840_v21 = vunpack.c.l.b16 %v5835_v48  ;;  %v5817_v8 = vadd.f32 %v22180_v19, %v5816_v32  ;;  %v21415_v48 = vld [vmem:[%s28116_s2 + $0x128] sm:$0xff]  ;;  %v21420_v32 = vld [vmem:[%s28116_s2 + $0x150] sm:$0xff] }
 0x4b4   : > { %v25190_v47 = vpack.c.b16 %v5840_v21, %v5839_v49  ;;  %v5821_v18 = vsel %vm5820_vm5, %v22180_v19, %v5817_v8  ;;  %v21414_v49 = vld [vmem:[%s28116_s2 + $0x120] sm:$0xff]  ;;  %v21419_v21 = vld [vmem:[%s28116_s2 + $0x148] sm:$0xff]  ;;  %vm14344_vm5 = vcmask 1041408  }
 0x4b5   : > { %v5826_v56 = vsel %vm5823_vm7, %v5825_v29, %v5821_v18  ;;  %v21406_v8 = vld [vmem:[%s28116_s2 + $0xe0] sm:$0xff]  ;;  %v21405_v18 = vld [vmem:[%s28116_s2 + $0xd8] sm:$0xff] }
 0x4b6   : > { %v5830_v40 = vmul.f32 %v5826_v56, %v25144_v54  ;;  %6063 = vmatmul.bf16.vlgmr.msrb.gmra.mxu1 %v25190_v47  ;;  %6404 = vmatmul.bf16.vlgmr.msra.gmra.mxu0 %v25190_v47  ;;  %v5849_v54 = vshll.u32 %v25190_v47, 16  ;;  %v5859_v46 = vrot.slane %v25190_v47, 1  ;;  %v5847_v52 = vshrl.u32 %v25190_v47, 16  ;;  %v21346_v29 = vld [vmem:[%s28119_s5 + $0x80] sm:$0xff] }
 0x4b7   : > { %6610 = vmatpush.bf16.msrb.mxu1 %v21353_v42  ;;  %6900 = vmatpush.bf16.msra.mxu0 %v21425_v28  ;;  %v21413_v42 = vld [vmem:[%s28116_s2 + $0x118] sm:$0xff]  ;;  %v21418_v56 = vld [vmem:[%s28116_s2 + $0x140] sm:$0xff] }
 0x4b8   : > { %v5833_v3 = vsel %vm538_vm2, %v5830_v40, 0.0  ;;  %v5851_v22 = vrot.slane %v5849_v54, 1  ;;  %v21385_v28 = vld [vmem:[%s28116_s2 + $0x38] sm:$0xff]  ;;  %v21412_v40 = vld [vmem:[%s28116_s2 + $0x110] sm:$0xff]  ;;  %v21382_v54 = vld [vmem:[%s28116_s2 + $0x20] sm:$0xff] }
 0x4b9   : > { %v5836_v17 = vpack.c.bf16 %v5833_v3, %v5833_v3  ;;  %v21383_v3 = vld [vmem:[%s28116_s2 + $0x28] sm:$0xff] }
 0x4ba   : > { %v5852_v9 = vor.u32 %v5851_v22, %v5847_v52  ;;  %v21381_v22 = vld [vmem:[%s28116_s2 + $0x18] sm:$0xff]  ;;  %v21433_v52 = vld [vmem:[%s28116_s2 + $0x1b0] sm:$0xff] }
 0x4bb   : > { %v5844_v33 = vunpack.c.l.b16 %v5836_v17  ;;  %6611 = vmatpush.bf16.msrb.mxu1 %v21352_v57  ;;  %6901 = vmatpush.bf16.msra.mxu0 %v21424_v45  ;;  %v21384_v57 = vld [vmem:[%s28116_s2 + $0x30] sm:$0xff]  ;;  %v21403_v17 = vld [vmem:[%s28116_s2 + $0xc8] sm:$0xff] }
 0x4bc   : > { %v21404_v45 = vld [vmem:[%s28116_s2 + $0xd0] sm:$0xff] }
 0x4bd   : > { %v5845_v38 = vpack.c.b16 %v5844_v33, %v5844_v33  ;;  %v21401_v33 = vld [vmem:[%s28116_s2 + $0xb8] sm:$0xff] }
 0x4bf   : > { %6612 = vmatpush.bf16.msrb.mxu1 %v21351_v7  ;;  %v5860_v4 = vrot.slane %v5845_v38, 1  ;;  %v5854_v10 = vshll.u32 %v5845_v38, 16  ;;  %6902 = vmatpush.bf16.msra.mxu0 %v21423_v11  ;;  %v21402_v7 = vld [vmem:[%s28116_s2 + $0xc0] sm:$0xff]  ;;  %v21393_v11 = vld [vmem:[%s28116_s2 + $0x78] sm:$0xff] }
 0x4c0   : > { %v21434_v38 = vld [vmem:[%s28116_s2 + $0x1b8] sm:$0xff] }
 0x4c1   : > { %v25222_v19 = vsel %vm573_vm1, %v5859_v46, %v5860_v4  ;;  %v5856_v36 = vrot.slane %v5854_v10, 1  ;;  %v21400_v46 = vld [vmem:[%s28116_s2 + $0xb0] sm:$0xff]  ;;  %v21399_v10 = vld [vmem:[%s28116_s2 + $0xa8] sm:$0xff] }
 0x4c2   : > { %6091 = vmatmul.bf16.vlgmr.msrb.gmra.mxu3 %v25222_v19  ;;  %v21392_v4 = vld [vmem:[%s28116_s2 + $0x70] sm:$0xff] }
 0x4c3   : > { %6613 = vmatpush.bf16.msrb.mxu1 %v21350_v35  ;;  %v25229_v30 = vsel %vm555_vm0, %v5852_v9, %v5856_v36  ;;  %6882 = vmatpush.bf16.msrb.mxu3 %v21417_v61  ;;  %v21380_v35 = vld [vmem:[%s28116_s2 + $0x10] sm:$0xff]  ;;  %v21391_v61 = vld [vmem:[%s28116_s2 + $0x68] sm:$0xff]  ;;  %v21398_v9 = vld [vmem:[%s28116_s2 + $0xa0] sm:$0xff] }
 0x4c4   : > { %6077 = vmatmul.bf16.vlgmr.msrb.gmra.mxu2 %v25229_v30  ;;  %6903 = vmatpush.bf16.msra.mxu0 %v21422_v5  ;;  %v21379_v5 = vld [vmem:[%s28116_s2 + $0x8] sm:$0xff]  ;;  %v21390_v36 = vld [vmem:[%s28116_s2 + $0x60] sm:$0xff] }
 0x4c5   : > { %6864 = vmatpush.bf16.msrb.mxu2 %v21409_v55  ;;  %v21431_v55 = vld [vmem:[%s28116_s2 + $0x1a0] sm:$0xff] }
 0x4c6   : > { %6418 = vmatmul.bf16.vlgmr.msra.gmra.mxu1 %v25229_v30  ;;  %6604 = vmatmul.bf16.vlgmr.msrb.gmra.mxu0 %v24624_v24  ;;  %v21407_v24 = vld [vmem:[%s28116_s2 + $0xe8] sm:$0xff] }
 0x4c7   : > { %6614 = vmatpush.bf16.msrb.mxu1 %v21349_v26  ;;  %6883 = vmatpush.bf16.msrb.mxu3 %v21416_v16  ;;  %v21378_v26 = vld [vmem:[%s28116_s2] sm:$0xff]  ;;  %v21397_v16 = vld [vmem:[%s28116_s2 + $0x98] sm:$0xff] }
 0x4c8   : > { %6904 = vmatpush.bf16.msra.mxu0 %v21421_v34  ;;  %v21442_v34 = vld [vmem:[%s28116_s2 + $0x1f8] sm:$0xff] }
 0x4c9   : > { %6865 = vmatpush.bf16.msrb.mxu2 %v21408_v43  ;;  %v21389_v43 = vld [vmem:[%s28116_s2 + $0x58] sm:$0xff] }
 0x4cb   : > { %6615 = vmatpush.bf16.msrb.mxu1 %v21348_v62  ;;  %6884 = vmatpush.bf16.msrb.mxu3 %v21415_v48  ;;  %v21430_v62 = vld [vmem:[%s28116_s2 + $0x198] sm:$0xff]  ;;  %v21396_v48 = vld [vmem:[%s28116_s2 + $0x90] sm:$0xff] }
 0x4cc   : > { %6905 = vmatpush.bf16.msra.mxu0 %v21420_v32  ;;  %v21441_v32 = vld [vmem:[%s28116_s2 + $0x1f0] sm:$0xff] }
 0x4cd   : > { %6866 = vmatpush.bf16.msrb.mxu2 %v21407_v24  ;;  %v21388_v24 = vld [vmem:[%s28116_s2 + $0x50] sm:$0xff] }
 0x4cf   : > { %6616 = vmatpush.bf16.msrb.mxu1 %v21347_v44  ;;  %6885 = vmatpush.bf16.msrb.mxu3 %v21414_v49  ;;  %v22358_v44 = vld [vmem:[%s22599_s30 + $0x3c] sm:$0xff]  ;;  %v21429_v49 = vld [vmem:[%s28116_s2 + $0x190] sm:$0xff] }
 0x4d0   : > { %6906 = vmatpush.bf16.msra.mxu0 %v21419_v21  ;;  %v21395_v21 = vld [vmem:[%s28116_s2 + $0x88] sm:$0xff] }
 0x4d1   : > { %6867 = vmatpush.bf16.msrb.mxu2 %v21406_v8  ;;  %v21440_v8 = vld [vmem:[%s28116_s2 + $0x1e8] sm:$0xff] }
 0x4d2   : > { %6590 = vmatmul.bf16.vlgmr.msra.gmra.mxu3 %v24585_v6  ;;  %v21411_v6 = vld [vmem:[%s28116_s2 + $0x108] sm:$0xff] }
 0x4d3   : > { %6617 = vmatpush.bf16.msrb.mxu1 %v21346_v29  ;;  %6886 = vmatpush.bf16.msrb.mxu3 %v21413_v42  ;;  %v21387_v29 = vld [vmem:[%s28116_s2 + $0x48] sm:$0xff] }
 0x4d4   : > { %6432 = vmatmul.bf16.vlgmr.msra.gmra.mxu2 %v25222_v19  ;;  %6907 = vmatpush.bf16.msra.mxu0 %v21418_v56  ;;  %v21428_v42 = vld [vmem:[%s28116_s2 + $0x188] sm:$0xff]  ;;  %v21386_v56 = vld [vmem:[%s28116_s2 + $0x40] sm:$0xff] }
 0x4d5   : > { %6868 = vmatpush.bf16.msrb.mxu2 %v21405_v18  ;;  %v21439_v18 = vld [vmem:[%s28116_s2 + $0x1e0] sm:$0xff] }
 0x4d6   : > { %6618 = vmatmul.bf16.vlgmr.msrb.gmra.mxu1 %v24617_v14  ;;  %v21410_v14 = vld [vmem:[%s28116_s2 + $0x100] sm:$0xff] }
 0x4d7   : > { %7062 = vmatpush.bf16.msra.mxu1 %v21385_v28  ;;  %6887 = vmatpush.bf16.msrb.mxu3 %v21412_v40  ;;  %v21394_v28 = vld [vmem:[%s28116_s2 + $0x80] sm:$0xff]  ;;  %v21450_v40 = vld [vmem:[%s28116_s2 + $0x238] sm:$0xff] }
 0x4d8   : > { %6908 = vmatmul.bf16.vlgmr.msra.gmra.mxu0 %v24878_v39 }
 0x4d9   : > { %6869 = vmatpush.bf16.msrb.mxu2 %v21404_v45  ;;  %7344 = vmatpush.bf16.msrb.mxu0 %v21434_v38  ;;  %v21438_v45 = vld [vmem:[%s28116_s2 + $0x1d8] sm:$0xff]  ;;  %v21436_v38 = vld [vmem:[%s28116_s2 + $0x1c8] sm:$0xff] }
 0x4db   : > { %7063 = vmatpush.bf16.msra.mxu1 %v21384_v57  ;;  %6888 = vmatpush.bf16.msrb.mxu3 %v21411_v6  ;;  %v21427_v57 = vld [vmem:[%s28116_s2 + $0x180] sm:$0xff]  ;;  %v17457_v6 = vld [vmem:[%s22599_s30 + $0x5c] sm:$0x3] }
 0x4dd   : > { %6870 = vmatpush.bf16.msrb.mxu2 %v21403_v17  ;;  %7345 = vmatpush.bf16.msrb.mxu0 %v21433_v52  ;;  %v21426_v17 = vld [vmem:[%s22599_s30 + $0x54] sm:$0xff] }
 0x4df   : > { %7064 = vmatpush.bf16.msra.mxu1 %v21383_v3  ;;  %6889 = vmatpush.bf16.msrb.mxu3 %v21410_v14  ;;  %v21449_v3 = vld [vmem:[%s28116_s2 + $0x230] sm:$0xff]  ;;  %v7125_v14 = vunpack.c.l.b16 %v17457_v6 }
 0x4e1   : > { %6871 = vmatpush.bf16.msrb.mxu2 %v21402_v7  ;;  %v25438_v7 = vpack.c.b16 %v7125_v14, %v7125_v14 }
 0x4e2   : > { %6890 = vmatmul.bf16.vlgmr.msrb.gmra.mxu3 %v24858_v20 }
 0x4e3   : > { %7065 = vmatpush.bf16.msra.mxu1 %v21382_v54  ;;  %7098 = vmatpush.bf16.msra.mxu3 %v21401_v33  ;;  %v21437_v54 = vld [vmem:[%s28116_s2 + $0x1d0] sm:$0xff]  ;;  %v21448_v33 = vld [vmem:[%s28116_s2 + $0x228] sm:$0xff] }
 0x4e4   : > { %6872 = vmatmul.bf16.vlgmr.msrb.gmra.mxu2 %v24805_v41  ;;  %v21432_v41 = vld [vmem:[%s28116_s2 + $0x1a8] sm:$0xff] }
 0x4e5   : > { %7080 = vmatpush.bf16.msra.mxu2 %v21393_v11  ;;  %7346 = vmatpush.bf16.msrb.mxu0 %v21432_v41  ;;  %v7133_v11 = vshll.u32 %v21426_v17, 16  ;;  %v21444_v41 = vld [vmem:[%s28116_s2 + $0x208] sm:$0xff] }
 0x4e7   : > { %7066 = vmatpush.bf16.msra.mxu1 %v21381_v22  ;;  %7099 = vmatpush.bf16.msra.mxu3 %v21400_v46  ;;  %v7135_v22 = vrot.slane %v7133_v11, 1  ;;  %v7138_v46 = vshll.u32 %v25438_v7, 16 }
 0x4e8   : > { %6913 = vmatmul.bf16.gmra.mxu0 %v24872_v15 }
 0x4e9   : > { %7081 = vmatpush.bf16.msra.mxu2 %v21392_v4  ;;  %7347 = vmatpush.bf16.msrb.mxu0 %v21431_v55  ;;  %v21446_v4 = vld [vmem:[%s28116_s2 + $0x218] sm:$0xff]  ;;  %v7140_v52 = vrot.slane %v7138_v46, 1 }
 0x4eb   : > { %7067 = vmatpush.bf16.msra.mxu1 %v21380_v35  ;;  %7100 = vmatpush.bf16.msra.mxu3 %v21399_v10  ;;  %v21445_v10 = vld [vmem:[%s28116_s2 + $0x210] sm:$0xff] }
 0x4ed   : > { %7082 = vmatpush.bf16.msra.mxu2 %v21391_v61  ;;  %7348 = vmatpush.bf16.msrb.mxu0 %v21430_v62 }
 0x4ef   : > { %7068 = vmatpush.bf16.msra.mxu1 %v21379_v5  ;;  %7101 = vmatpush.bf16.msra.mxu3 %v21398_v9  ;;  %v21443_v5 = vld [vmem:[%s28116_s2 + $0x200] sm:$0xff]  ;;  %v7142_v9 = vshrl.u32 %v25438_v7, 16 }
 0x4f1   : > { %7083 = vmatpush.bf16.msra.mxu2 %v21390_v36  ;;  %7349 = vmatpush.bf16.msrb.mxu0 %v21429_v49  ;;  %v25471_v36 = vrot.slane %v25438_v7, 1  ;;  %v25473_v55 = vor.u32 %v7142_v9, %v7140_v52 }
 0x4f2   : > { %6895 = vmatmul.bf16.gmra.mxu3 %v24874_v51 }
 0x4f3   : > { %7069 = vmatpush.bf16.msra.mxu1 %v21378_v26  ;;  %7102 = vmatpush.bf16.msra.mxu3 %v21397_v16 }
 0x4f4   : > { %6877 = vmatmul.bf16.gmra.mxu2 %v24836_v23 }
 0x4f5   : > { %7084 = vmatpush.bf16.msra.mxu2 %v21389_v43  ;;  %7350 = vmatpush.bf16.msrb.mxu0 %v21428_v42 }
 0x4f6   : > { %7070 = vmatmul.bf16.vlgmr.msra.gmra.mxu1 %v22358_v44  ;;  %v4786_v44 = vadd.f32 %v24898_v58, %v24886_v53  ;;  %v22360_v58 = vld [vmem:[%s28121_s7] ss:$0 sm:$0xff] }
 0x4f7   : > { %7362 = vmatpush.bf16.msrb.mxu1 %v21442_v34  ;;  %7103 = vmatpush.bf16.msra.mxu3 %v21396_v48 }
 0x4f9   : > { %7085 = vmatpush.bf16.msra.mxu2 %v21388_v24  ;;  %7351 = vmatpush.bf16.msrb.mxu0 %v21427_v57 }
 0x4fb   : > { %7363 = vmatpush.bf16.msrb.mxu1 %v21441_v32  ;;  %7104 = vmatpush.bf16.msra.mxu3 %v21395_v21  ;;  %v4800_v21 = vadd.f32 %v24904_v59, %v4786_v44 }
 0x4fc   : > { %7352 = vmatmul.bf16.vlgmr.msrb.gmra.mxu0 %v21426_v17 }
 0x4fd   : > { %7086 = vmatpush.bf16.msra.mxu2 %v21387_v29  ;;  %v4958_v42 = vadd.f32 %v24902_v60, %v4800_v21 }
 0x4ff   : > { %7364 = vmatpush.bf16.msrb.mxu1 %v21440_v8  ;;  %7105 = vmatpush.bf16.msra.mxu3 %v21394_v28  ;;  %v4972_v53 = vadd.f32 %v24900_v37, %v4958_v42 }
 0x501   : > { %7087 = vmatpush.bf16.msra.mxu2 %v21386_v56  ;;  %v4986_v60 = vadd.f32 %v24919_v31, %v4972_v53 }
 0x502   : > { %7106 = vmatmul.bf16.vlgmr.msra.gmra.mxu3 %v24262_v13  ;;  %v7131_v13 = vshrl.u32 %v21426_v17, 16 }
 0x503   : > { %7365 = vmatpush.bf16.msrb.mxu1 %v21439_v18 }
 0x504   : > { %7088 = vmatmul.bf16.vlgmr.msra.gmra.mxu2 %v24241_v63  ;;  %v21435_v63 = vld [vmem:[%s28116_s2 + $0x1c0] sm:$0xff]  ;;  %v7136_v35 = vor.u32 %v7135_v22, %v7131_v13 }
 0x505   : > { %7380 = vmatpush.bf16.msrb.mxu2 %v21450_v40  ;;  %v22359_v40 = vld [vmem:[%s28120_s6] ss:$0 sm:$0xff] }
 0x506   : > { %7075 = vmatmul.bf16.gmra.mxu1 %v24220_v50  ;;  %v21447_v50 = vld [vmem:[%s28116_s2 + $0x220] sm:$0xff]  ;;  %v25457_v61 = vsel %vm555_vm0, %v7136_v35, %v7140_v52 }
 0x507   : > { %7366 = vmatpush.bf16.msrb.mxu1 %v21438_v45 }
 0x509   : > { %7381 = vmatpush.bf16.msrb.mxu2 %v21449_v3 }
 0x50b   : > { %7367 = vmatpush.bf16.msrb.mxu1 %v21437_v54 }
 0x50c   : > { %7357 = vmatmul.bf16.gmra.mxu0 %v25438_v7 }
 0x50d   : > { %7382 = vmatpush.bf16.msrb.mxu2 %v21448_v33 }
 0x50f   : > { %7368 = vmatpush.bf16.msrb.mxu1 %v21436_v38 }
 0x511   : > { %7383 = vmatpush.bf16.msrb.mxu2 %v21447_v50 }
 0x512   : > { %7111 = vmatmul.bf16.gmra.mxu3 %v24256_v25  ;;  %v7147_v25 = vrot.slane %v21426_v17, 1 }
 0x513   : > { %7369 = vmatpush.bf16.msrb.mxu1 %v21435_v63 }
 0x514   : > { %7093 = vmatmul.bf16.gmra.mxu2 %v24258_v2  ;;  %v25477_v26 = vsel %vm573_vm1, %v7147_v25, %v25471_v36 }
 0x515   : > { %7384 = vmatpush.bf16.msrb.mxu2 %v21446_v4 }
 0x516   : > { %7370 = vmatmul.bf16.vlgmr.msrb.gmra.mxu1 %v25457_v61 }
 0x519   : > { %7385 = vmatpush.bf16.msrb.mxu2 %v21445_v10 }
 0x51d   : > { %7386 = vmatpush.bf16.msrb.mxu2 %v21444_v41 }
 0x521   : > { %7387 = vmatpush.bf16.msrb.mxu2 %v21443_v5 }
 0x524   : > { %7388 = vmatmul.bf16.vlgmr.msrb.gmra.mxu2 %v25477_v26 }
 0x526   : > { %7375 = vmatmul.bf16.gmra.mxu1 %v25473_v55 }
 0x533   : > { %v6064_v2 = vpop.f32.mrf.mxu1  ;;  %v6405_v16 = vpop.f32.mrf.mxu0 }
 0x534   : > { %7393 = vmatmul.bf16.gmra.mxu2 %v25471_v36 }
 0x53b   : > { %v6066_v34 = vpop.f32.mrf.mxu1  ;;  %v25482_v43 = vpop.f32.mrf.mxu0 }
 0x543   : > { %v6419_v62 = vpop.f32.mrf.mxu1  ;;  %v6605_v48 = vpop.f32.mrf.mxu0 }
 0x544   : > { %v6420_v32 = vadd.f32 %v6419_v62, %v6405_v16 }
 0x545   : > { %v6092_v24 = vpop.f32.mrf.mxu3 }
 0x547   : > { %v6078_v49 = vpop.f32.mrf.mxu2 }
 0x548   : > { %v6079_v8 = vadd.f32 %v6078_v49, %v6064_v2 }
 0x54a   : > { %v6093_v29 = vadd.f32 %v6092_v24, %v6079_v8  ;;  %v22361_v8 = vld [vmem:[%s24309_s23] sm:$0xff] }
 0x54b   : > { %v25489_v18 = vpop.f32.mrf.mxu0  ;;  %v25499_v3 = vpop.f32.mrf.mxu1 }
 0x54c   : > { %v6097_v28 = vadd.f32 %v6093_v29, %v24906_v27  ;;  %v22362_v29 = vld [vmem:[%s24309_s23 + $0x8] sm:$0xff] }
 0x54d   : > { %v6094_v56 = vpop.f32.mrf.mxu3  ;;  %v2869_v42 = vadd.f32 %v22362_v29, %v22361_v8 }
 0x54e   : > { %v6099_v57 = vmul.f32 %v22359_v40, %v6097_v28  ;;  %v22430_v28 = vmov 16.0  }
 0x54f   : > { %v6080_v45 = vpop.f32.mrf.mxu2 }
 0x550   : > { %v6101_v59 = vadd.f32 %v22360_v58, %v6099_v57  ;;  %v6081_v6 = vadd.f32 %v6080_v45, %v6066_v34  ;;  %v4513_v45 = vrot.slane %v24926_v12, 4 }
 0x552   : > { %v16971_v27 = vmul.f32 -1.442695, %v6101_v59  ;;  %v6095_v17 = vadd.f32 %v6094_v56, %v6081_v6 }
 0x553   : > { %v6619_v31 = vpop.f32.mrf.mxu1 }
 0x554   : > { %22181 = vpow2.f32 %v16971_v27  ;;  %v6098_v14 = vadd.f32 %v6095_v17, %v4986_v60  ;;  %v2870_v60 = vrot.slane %v2869_v42, 4 }
 0x555   : > { %v6591_v54 = vpop.f32.mrf.mxu3  ;;  %v6909_v33 = vpop.f32.mrf.mxu0 }
 0x556   : > { %v6100_v11 = vmul.f32 %v22359_v40, %v6098_v14 }
 0x557   : > { %v6433_v38 = vpop.f32.mrf.mxu2 }
 0x558   : > { %v25501_v50 = vadd.f32 %v22360_v58, %v6100_v11  ;;  %v6434_v37 = vadd.f32 %v6433_v38, %v6420_v32 }
 0x55a   : > { %v22182_v13 = vpop.eup %22181  ;;  %v16972_v22 = vmul.f32 -1.442695, %v25501_v50  ;;  %v6592_v46 = vadd.f32 %v6591_v54, %v6434_v37  ;;  %v22363_v54 = vld [vmem:[%s24309_s23 + $0x10] sm:$0xff] }
 0x55b   : > { %v6109_v63 = vadd.f32 1.0, %v22182_v13  ;;  %v25514_v49 = vpop.f32.mrf.mxu1  ;;  %v4510_v11 = vadd.f32 %v22363_v54, %v22361_v8  ;;  %v4514_v13 = vadd.f32 %v4513_v45, %v24926_v12 }
 0x55c   : > { %22183 = vpow2.f32 %v16972_v22  ;;  %v6606_v4 = vadd.f32 %v6605_v48, %v6592_v46 }
 0x55d   : > { %22185 = vrcp.f32 %v6109_v63  ;;  %v25504_v35 = vpop.f32.mrf.mxu3  ;;  %v25506_v52 = vpop.f32.mrf.mxu0  ;;  %v6122_v48 = vand.u32 2147483648, %v6109_v63  ;;  %v6120_v44 = vand.u32 2147483647, %v6109_v63  ;;  %vm6116_vm9 = vweird.f32 %v6109_v63 }
 0x55e   : > { %v25508_v10 = vadd.f32 %v6619_v31, %v6606_v4 }
 0x55f   : > { %v25510_v41 = vpop.f32.mrf.mxu2  ;;  %v6123_v53 = vor.u32 1.1754944e-38, %v6122_v48  ;;  %vm6121_vm11 = vcmp.eq.f32.partialorder %v6120_v44, 8.507059e+37 }
 0x562   : > { %v22184_v5 = vpop.eup %22183 }
 0x563   : > { %v22186_v9 = vpop.eup %22185  ;;  %v6110_v25 = vadd.f32 1.0, %v22184_v5 }
 0x564   : > { %v6112_v2 = vmul.f32 %v22186_v9, %v6109_v63  ;;  %vm6117_vm8 = vweird.f32 %v22186_v9 }
 0x565   : > { %22187 = vrcp.f32 %v6110_v25  ;;  %v6891_v16 = vpop.f32.mrf.mxu3  ;;  %v25512_v34 = vpop.f32.mrf.mxu0  ;;  %vm6118_vm10 = vmor %vm6116_vm9, %vm6117_vm8  ;;  %v6137_v22 = vand.u32 2147483648, %v6110_v25  ;;  %v6135_v4 = vand.u32 2147483647, %v6110_v25  ;;  %vm6131_vm13 = vweird.f32 %v6110_v25 }
 0x566   : > { %v6113_v62 = vsub.f32 1.0, %v6112_v2  ;;  %22189 = vrcp.f32 %v22430_v28 }
 0x567   : > { %v6873_v32 = vpop.f32.mrf.mxu2  ;;  %v6138_v12 = vor.u32 1.1754944e-38, %v6137_v22  ;;  %vm6136_vm15 = vcmp.eq.f32.partialorder %v6135_v4, 8.507059e+37 }
 0x568   : > { %v6114_v24 = vmul.f32 %v22186_v9, %v6113_v62  ;;  %v6892_v21 = vadd.f32 %v6891_v16, %v6873_v32 }
 0x56a   : > { %v6115_v56 = vadd.f32 %v22186_v9, %v6114_v24  ;;  %v25518_v40 = vadd.f32 %v6909_v33, %v6892_v21  ;;  %v22364_v21 = vld [vmem:[%s24309_s23 + $0x18] sm:$0xff] }
 0x56b   : > { %v22188_v57 = vpop.eup %22187  ;;  %v4511_v8 = vadd.f32 %v22364_v21, %v22362_v29 }
 0x56c   : > { %v6119_v58 = vsel %vm6118_vm10, %v22186_v9, %v6115_v56  ;;  %v6127_v6 = vmul.f32 %v22188_v57, %v6110_v25  ;;  %v22190_v33 = vpop.eup %22189  ;;  %vm6132_vm12 = vweird.f32 %v22188_v57  ;;  %v2871_v9 = vadd.f32 %v2870_v60, %v2869_v42 }
 0x56d   : > { %v6124_v27 = vsel %vm6121_vm11, %v6123_v53, %v6119_v58  ;;  %v25521_v17 = vpop.f32.mrf.mxu3  ;;  %v6916_v14 = vpop.f32.mrf.mxu0  ;;  %v2877_v2 = vmul.f32 16.0, %v22190_v33  ;;  %vm6133_vm14 = vmor %vm6131_vm13, %vm6132_vm12  ;;  %vm2881_vm3 = vweird.f32 %v22190_v33 }
 0x56e   : > { %v6141_v38 = vmul.f32 %v6124_v27, %v6101_v59  ;;  %v6128_v37 = vsub.f32 1.0, %v6127_v6  ;;  %v4515_v59 = vrot.slane %v4514_v13, 2  ;;  %v2872_v48 = vrot.slane %v2871_v9, 2 }
 0x56f   : > { %v25525_v46 = vpop.f32.mrf.mxu2  ;;  %v2878_v44 = vsub.f32 1.0, %v2877_v2 }
 0x570   : > { %16973 = vst [vmem:[%s24309_s23 + $0x20] sm:$0xff] %v6141_v38  ;;  %v25528_v63 = vadd.f32 %v6141_v38, %v4510_v11  ;;  %v6129_v31 = vmul.f32 %v22188_v57, %v6128_v37  ;;  %v4516_v56 = vadd.f32 %v4515_v59, %v4514_v13 }
 0x571   : > { %v2879_v58 = vmul.f32 %v22190_v33, %v2878_v44 }
 0x572   : > { %v6130_v16 = vadd.f32 %v22188_v57, %v6129_v31  ;;  %v4517_v60 = vrot.slane %v4516_v56, 1 }
 0x573   : > { %v25530_v5 = vpop.f32.mrf.mxu1  ;;  %v2880_v11 = vadd.f32 %v22190_v33, %v2879_v58  ;;  %v21455_v58 = vld [vmem:[%s28119_s5 + $0x1a0] sm:$0xff] }
 0x574   : > { %v6134_v62 = vsel %vm6133_vm14, %v22188_v57, %v6130_v16  ;;  %v2873_v57 = vadd.f32 %v2872_v48, %v2871_v9  ;;  %v21457_v9 = vld [vmem:[%s28119_s5 + $0x1b0] sm:$0xff] }
 0x575   : > { %v6139_v32 = vsel %vm6136_vm15, %v6138_v12, %v6134_v62  ;;  %v25532_v24 = vpop.f32.mrf.mxu3  ;;  %v25553_v2 = vsel %vm2881_vm3, %v22190_v33, %v2880_v11  ;;  %v21505_v11 = vld [vmem:[%s28119_s5 + $0xf0] sm:$0xff] }
 0x576   : > { %v6142_v28 = vmul.f32 %v6139_v32, %v25501_v50  ;;  %v2874_v14 = vrot.slane %v2873_v57, 1  ;;  %v4518_v50 = vadd.f32 %v4517_v60, %v4516_v56  ;;  %v21456_v56 = vld [vmem:[%s28119_s5 + $0x1a8] sm:$0xff] }
 0x577   : > { %v25536_v42 = vpop.f32.mrf.mxu2 }
 0x578   : > { %16974 = vst [vmem:[%s24309_s23 + $0x28] sm:$0xff] %v6142_v28  ;;  %v25539_v45 = vadd.f32 %v6142_v28, %v4511_v8  ;;  %v6148_v25 = vadd.f32 %v6142_v28, %v6141_v38  ;;  %v21458_v38 = vld [vmem:[%s28119_s5 + $0x1b8] sm:$0xff]  ;;  %v2875_v4 = vadd.f32 %v2874_v14, %v2873_v57  ;;  %v4519_v59 = vmul.f32 %v4518_v50, %v25553_v2 }
 0x579   : > { %v25543_v13 = vpop.f32.mrf.mxu0  ;;  %7691 = vmatpush.bf16.msrb.mxu3 %v21458_v38  ;;  %v21506_v57 = vld [vmem:[%s28119_s5 + $0xf8] sm:$0xff]  ;;  %v21473_v38 = vld [vmem:[%s28119_s5 + $0x230] sm:$0xff] }
 0x57a   : > { %v6149_v6 = vrot.slane %v6148_v25, 4  ;;  %v2883_v62 = vmul.f32 %v25553_v2, %v2875_v4  ;;  %8032 = vmatpush.bf16.msra.mxu2 %v21506_v57  ;;  %v21466_v14 = vld [vmem:[%s28119_s5 + $0x1f8] sm:$0xff]  ;;  %v21453_v4 = vld [vmem:[%s28119_s5 + $0x190] sm:$0xff]  ;;  %v21471_v57 = vld [vmem:[%s28119_s5 + $0x220] sm:$0xff] }
 0x57b   : > { %v25541_v53 = vpop.f32.mrf.mxu1  ;;  %7705 = vmatpush.bf16.msra.mxu0 %v21466_v14  ;;  %v21451_v14 = vld [vmem:[%s28119_s5 + $0x180] sm:$0xff] }
 0x57c   : > { %v6150_v27 = vadd.f32 %v6149_v6, %v6148_v25  ;;  %v14343_v44 = vsel %vm14342_vm4, %v2883_v62, %v4519_v59  ;;  %v21472_v62 = vld [vmem:[%s28119_s5 + $0x228] sm:$0xff] }
 0x57d   : > { %v6898_v54 = vpop.f32.mrf.mxu3  ;;  %7692 = vmatpush.bf16.msrb.mxu3 %v21457_v9 }
 0x57e   : > { %v6151_v29 = vrot.slane %v6150_v27, 2  ;;  %v21474_v54 = vld [vmem:[%s28119_s5 + $0x238] sm:$0xff]  ;;  %8033 = vmatpush.bf16.msra.mxu2 %v21505_v11 }
 0x57f   : > { %v6880_v37 = vpop.f32.mrf.mxu2  ;;  %7719 = vmatpush.bf16.msra.mxu1 %v21474_v54  ;;  %v21514_v11 = vld [vmem:[%s28119_s5 + $0x138] sm:$0xff] }
 0x580   : > { %v6152_v22 = vadd.f32 %v6151_v29, %v6150_v27  ;;  %v21454_v29 = vld [vmem:[%s28119_s5 + $0x198] sm:$0xff]  ;;  %v21465_v37 = vld [vmem:[%s28119_s5 + $0x1f0] sm:$0xff] }
 0x581   : > { %v25562_v8 = vpop.f32.mrf.mxu0  ;;  %7693 = vmatpush.bf16.msrb.mxu3 %v21456_v56  ;;  %7706 = vmatpush.bf16.msra.mxu0 %v21465_v37  ;;  %v21463_v56 = vld [vmem:[%s28119_s5 + $0x1e0] sm:$0xff]  ;;  %v21462_v37 = vld [vmem:[%s28119_s5 + $0x1d8] sm:$0xff] }
 0x582   : > { %v6153_v16 = vrot.slane %v6152_v22, 1 }
 0x583   : > { %v25548_v31 = vpop.f32.mrf.mxu1  ;;  %7720 = vmatpush.bf16.msra.mxu1 %v21473_v38  ;;  %v21470_v38 = vld [vmem:[%s28119_s5 + $0x218] sm:$0xff] }
 0x584   : > { %v6154_v12 = vadd.f32 %v6153_v16, %v6152_v22  ;;  %v21504_v22 = vld [vmem:[%s28119_s5 + $0xe8] sm:$0xff] }
 0x585   : > { %v25557_v48 = vpop.f32.mrf.mxu3  ;;  %7694 = vmatpush.bf16.msrb.mxu3 %v21455_v58  ;;  %8034 = vmatpush.bf16.msra.mxu2 %v21504_v22  ;;  %v21502_v58 = vld [vmem:[%s28119_s5 + $0xd8] sm:$0xff]  ;;  %v21501_v22 = vld [vmem:[%s28119_s5 + $0xd0] sm:$0xff] }
 0x586   : > { %v6155_v32 = vmul.f32 %v6154_v12, %v25553_v2  ;;  %v21464_v12 = vld [vmem:[%s28119_s5 + $0x1e8] sm:$0xff] }
 0x587   : > { %v25560_v21 = vpop.f32.mrf.mxu2  ;;  %7707 = vmatpush.bf16.msra.mxu0 %v21464_v12  ;;  %7721 = vmatpush.bf16.msra.mxu1 %v21472_v62  ;;  %v6894_v12 = vadd.f32 %v25521_v17, %v25525_v46  ;;  %v21512_v17 = vld [vmem:[%s28119_s5 + $0x128] sm:$0xff] }
 0x588   : > { %v25564_v33 = vsel %vm14344_vm5, %v14343_v44, %v6155_v32  ;;  %v21503_v32 = vld [vmem:[%s28119_s5 + $0xe0] sm:$0xff]  ;;  %v21452_v44 = vld [vmem:[%s28119_s5 + $0x188] sm:$0xff] }
 0x589   : > { %v25579_v60 = vpop.f32.mrf.mxu0  ;;  %7695 = vmatpush.bf16.msrb.mxu3 %v21454_v29  ;;  %8035 = vmatpush.bf16.msra.mxu2 %v21503_v32  ;;  %v6912_v46 = vadd.f32 %v25506_v52, %v6894_v12  ;;  %v21482_v12 = vld [vmem:[%s28119_s5 + $0x38] sm:$0xff] }
 0x58b   : > { %v7078_v28 = vpop.f32.mrf.mxu1  ;;  %7708 = vmatpush.bf16.msra.mxu0 %v21463_v56  ;;  %7722 = vmatpush.bf16.msra.mxu1 %v21471_v57  ;;  %v21460_v56 = vld [vmem:[%s28119_s5 + $0x1c8] sm:$0xff]  ;;  %v7074_v52 = vadd.f32 %v25541_v53, %v6912_v46  ;;  %v22365_v53 = vld [vmem:[%s28117_s3] ss:$0 sm:$0xff]  ;;  %v21521_v46 = vld [vmem:[%s28119_s5 + $0x170] sm:$0xff] }
 0x58c   : > { %v21468_v57 = vld [vmem:[%s28119_s5 + $0x208] sm:$0xff] }
 0x58d   : > { %v25569_v25 = vpop.f32.mrf.mxu3  ;;  %7696 = vmatpush.bf16.msrb.mxu3 %v21453_v4  ;;  %8036 = vmatpush.bf16.msra.mxu2 %v21502_v58  ;;  %v7072_v4 = vadd.f32 %v25530_v5, %v25518_v40  ;;  %v21469_v40 = vld [vmem:[%s28119_s5 + $0x210] sm:$0xff]  ;;  %v21500_v5 = vld [vmem:[%s28119_s5 + $0xc8] sm:$0xff]  ;;  %v21499_v58 = vld [vmem:[%s28119_s5 + $0xc0] sm:$0xff] }
 0x58f   : > { %v25577_v6 = vpop.f32.mrf.mxu2  ;;  %7709 = vmatpush.bf16.msra.mxu0 %v21462_v37  ;;  %7723 = vmatpush.bf16.msra.mxu1 %v21470_v38  ;;  %v7090_v62 = vadd.f32 %v25560_v21, %v7072_v4  ;;  %v21467_v4 = vld [vmem:[%s28119_s5 + $0x200] sm:$0xff] }
 0x590   : > { %v7092_v37 = vadd.f32 %v25577_v6, %v7074_v52 }
 0x591   : > { %v7360_v16 = vpop.f32.mrf.mxu0  ;;  %7697 = vmatpush.bf16.msrb.mxu3 %v21452_v44  ;;  %8037 = vmatpush.bf16.msra.mxu2 %v21501_v22  ;;  %v21461_v44 = vld [vmem:[%s28119_s5 + $0x1d0] sm:$0xff]  ;;  %v21459_v22 = vld [vmem:[%s28119_s5 + $0x1c0] sm:$0xff] }
 0x592   : > { %v21513_v16 = vld [vmem:[%s28119_s5 + $0x130] sm:$0xff] }
 0x593   : > { %v7371_v27 = vpop.f32.mrf.mxu1  ;;  %7710 = vmatpush.bf16.msra.mxu0 %v21461_v44  ;;  %7724 = vmatpush.bf16.msra.mxu1 %v21469_v40  ;;  %v7110_v44 = vadd.f32 %v25569_v25, %v7092_v37  ;;  %v21488_v25 = vld [vmem:[%s28119_s5 + $0x68] sm:$0xff] }
 0x594   : > { %v7372_v32 = vadd.f32 %v7371_v27, %v25543_v13  ;;  %v7108_v13 = vadd.f32 %v25557_v48, %v7090_v62  ;;  %v21490_v48 = vld [vmem:[%s28119_s5 + $0x78] sm:$0xff]  ;;  %v21489_v62 = vld [vmem:[%s28119_s5 + $0x70] sm:$0xff] }
 0x595   : > { %v25593_v50 = vpop.f32.mrf.mxu3  ;;  %7698 = vmatpush.bf16.msrb.mxu3 %v21451_v14  ;;  %8038 = vmatpush.bf16.msra.mxu2 %v21500_v5 }
 0x597   : > { %v25607_v9 = vpop.f32.mrf.mxu2  ;;  %7711 = vmatpush.bf16.msra.mxu0 %v21460_v56  ;;  %7725 = vmatpush.bf16.msra.mxu1 %v21468_v57  ;;  %v21520_v57 = vld [vmem:[%s28119_s5 + $0x168] sm:$0xff] }
 0x599   : > { %8046 = vmatpush.bf16.msra.mxu3 %v21514_v11  ;;  %v6897_v11 = vadd.f32 %v25532_v24, %v25536_v42  ;;  %8039 = vmatpush.bf16.msra.mxu2 %v21499_v58  ;;  %v22366_v42 = vld [vmem:[%s28118_s4] ss:$0 sm:$0xff]  ;;  %v21480_v58 = vld [vmem:[%s28119_s5 + $0x28] sm:$0xff] }
 0x59b   : > { %v25609_v59 = vpop.f32.mrf.mxu1  ;;  %7712 = vmatpush.bf16.msra.mxu0 %v21459_v22  ;;  %7726 = vmatpush.bf16.msra.mxu1 %v21467_v4  ;;  %v21479_v22 = vld [vmem:[%s28119_s5 + $0x20] sm:$0xff] }
 0x59c   : > { %v7374_v24 = vadd.f32 %v25609_v59, %v25562_v8  ;;  %v21510_v8 = vld [vmem:[%s28119_s5 + $0x118] sm:$0xff]  ;;  %v6915_v59 = vadd.f32 %v25512_v34, %v6897_v11  ;;  %v21481_v34 = vld [vmem:[%s28119_s5 + $0x30] sm:$0xff]  ;;  %v21507_v4 = vld [vmem:[%s28119_s5 + $0x100] sm:$0xff] }
 0x59d   : > { %v7114_v28 = vpop.f32.mrf.mxu3  ;;  %8047 = vmatpush.bf16.msra.mxu3 %v21513_v16  ;;  %8232 = vmatpush.bf16.msrb.mxu2 %v21490_v48  ;;  %v21522_v16 = vld [vmem:[%s28119_s5 + $0x178] sm:$0xff] }
 0x59f   : > { %v7096_v54 = vpop.f32.mrf.mxu2  ;;  %8060 = vmatpush.bf16.msrb.mxu0 %v21522_v16  ;;  %8218 = vmatpush.bf16.msrb.mxu1 %v21482_v12  ;;  %v21518_v12 = vld [vmem:[%s28119_s5 + $0x158] sm:$0xff] }
 0x5a0   : > { %v21511_v54 = vld [vmem:[%s28119_s5 + $0x120] sm:$0xff] }
 0x5a1   : > { %8048 = vmatpush.bf16.msra.mxu3 %v21512_v17  ;;  %8233 = vmatpush.bf16.msrb.mxu2 %v21489_v62  ;;  %v21478_v62 = vld [vmem:[%s28119_s5 + $0x18] sm:$0xff] }
 0x5a3   : > { %v25638_v29 = vpop.f32.mrf.mxu1  ;;  %8061 = vmatpush.bf16.msrb.mxu0 %v21521_v46  ;;  %8219 = vmatpush.bf16.msrb.mxu1 %v21481_v34 }
 0x5a5   : > { %8049 = vmatpush.bf16.msra.mxu3 %v21511_v54  ;;  %8234 = vmatpush.bf16.msrb.mxu2 %v21488_v25  ;;  %v21516_v25 = vld [vmem:[%s28119_s5 + $0x148] sm:$0xff] }
 0x5a7   : > { %v7389_v28 = vpop.f32.mrf.mxu2  ;;  %8062 = vmatpush.bf16.msrb.mxu0 %v21520_v57  ;;  %8220 = vmatpush.bf16.msrb.mxu1 %v21480_v58 }
 0x5a8   : > { %v7390_v21 = vadd.f32 %v7389_v28, %v7372_v32  ;;  %v7077_v28 = vadd.f32 %v25548_v31, %v6915_v59 }
 0x5a9   : > { %8050 = vmatpush.bf16.msra.mxu3 %v21510_v8 }
 0x5aa   : > { %v7398_v14 = vadd.f32 %v7390_v21, %v7108_v13  ;;  %v21509_v13 = vld [vmem:[%s28119_s5 + $0x110] sm:$0xff]  ;;  %v7095_v31 = vadd.f32 %v25607_v9, %v7077_v28  ;;  %v7377_v21 = vadd.f32 %v25638_v29, %v25579_v60  ;;  %v21487_v9 = vld [vmem:[%s28119_s5 + $0x60] sm:$0xff]  ;;  %v21508_v29 = vld [vmem:[%s28119_s5 + $0x108] sm:$0xff] }
 0x5ab   : > { %v7378_v27 = vpop.f32.mrf.mxu1  ;;  %8235 = vmatpush.bf16.msrb.mxu2 %v21487_v9  ;;  %8221 = vmatpush.bf16.msrb.mxu1 %v21479_v22  ;;  %v21477_v28 = vld [vmem:[%s28119_s5 + $0x10] sm:$0xff] }
 0x5ac   : > { %v7401_v38 = vmul.f32 %v22365_v53, %v7398_v14  ;;  %v7113_v14 = vadd.f32 %v25593_v50, %v7095_v31  ;;  %v21486_v50 = vld [vmem:[%s28119_s5 + $0x58] sm:$0xff]  ;;  %v21483_v31 = vld [vmem:[%s28119_s5 + $0x40] sm:$0xff] }
 0x5ad   : > { %8051 = vmatpush.bf16.msra.mxu3 %v21509_v13  ;;  %v21476_v13 = vld [vmem:[%s28119_s5 + $0x8] sm:$0xff] }
 0x5ae   : > { %v25705_v6 = vadd.f32 %v22366_v42, %v7401_v38  ;;  %v21519_v38 = vld [vmem:[%s28119_s5 + $0x160] sm:$0xff] }
 0x5af   : > { %v7391_v32 = vpop.f32.mrf.mxu2  ;;  %8063 = vmatpush.bf16.msrb.mxu0 %v21519_v38  ;;  %8236 = vmatpush.bf16.msrb.mxu2 %v21486_v50 }
 0x5b0   : > { %v17606_v40 = vmul.f32 -1.442695, %v25705_v6  ;;  %v7392_v5 = vadd.f32 %v7391_v32, %v7374_v24  ;;  %v21485_v32 = vld [vmem:[%s28119_s5 + $0x50] sm:$0xff]  ;;  %8222 = vmatpush.bf16.msrb.mxu1 %v21478_v62 }
 0x5b1   : > { %8052 = vmatpush.bf16.msra.mxu3 %v21508_v29 }
 0x5b2   : > { %22191 = vpow2.f32 %v17606_v40  ;;  %v7399_v17 = vadd.f32 %v7392_v5, %v7110_v44  ;;  %v21517_v5 = vld [vmem:[%s28119_s5 + $0x150] sm:$0xff] }
 0x5b3   : > { %8064 = vmatpush.bf16.msrb.mxu0 %v21518_v12  ;;  %8237 = vmatpush.bf16.msrb.mxu2 %v21485_v32 }
 0x5b4   : > { %v7402_v27 = vmul.f32 %v22365_v53, %v7399_v17  ;;  %v21484_v17 = vld [vmem:[%s28119_s5 + $0x48] sm:$0xff]  ;;  %8223 = vmatpush.bf16.msrb.mxu1 %v21477_v28 }
 0x5b5   : > { %8053 = vmatpush.bf16.msra.mxu3 %v21507_v4 }
 0x5b6   : > { %v25738_v56 = vadd.f32 %v22366_v42, %v7402_v27 }
 0x5b7   : > { %v7394_v60 = vpop.f32.mrf.mxu2  ;;  %8065 = vmatpush.bf16.msrb.mxu0 %v21517_v5  ;;  %8238 = vmatpush.bf16.msrb.mxu2 %v21484_v17 }
 0x5b8   : > { %v22192_v52 = vpop.eup %22191  ;;  %v17607_v48 = vmul.f32 -1.442695, %v25738_v56  ;;  %v7395_v54 = vadd.f32 %v7394_v60, %v7377_v21  ;;  %8224 = vmatpush.bf16.msrb.mxu1 %v21476_v13 }
 0x5b9   : > { %v7416_v11 = vadd.f32 1.0, %v22192_v52 }
 0x5ba   : > { %22193 = vpow2.f32 %v17607_v48  ;;  %v7400_v37 = vadd.f32 %v7395_v54, %v7113_v14  ;;  %v21515_v48 = vld [vmem:[%s28119_s5 + $0x140] sm:$0xff] }
 0x5bb   : > { %22195 = vrcp.f32 %v7416_v11  ;;  %v7430_v34 = vand.u32 2147483648, %v7416_v11  ;;  %v7428_v27 = vand.u32 2147483647, %v7416_v11  ;;  %vm7424_vm8 = vweird.f32 %v7416_v11  ;;  %8066 = vmatpush.bf16.msrb.mxu0 %v21516_v25  ;;  %8239 = vmatpush.bf16.msrb.mxu2 %v21483_v31  ;;  %v21475_v54 = vld [vmem:[%s28119_s5] sm:$0xff]  ;;  %v21498_v31 = vld [vmem:[%s28119_s5 + $0xb8] sm:$0xff] }
 0x5bc   : > { %v7403_v24 = vmul.f32 %v22365_v53, %v7400_v37  ;;  %8225 = vmatpush.bf16.msrb.mxu1 %v21475_v54  ;;  %v21568_v54 = vld [vmem:[%s28116_s2 + $0x168] sm:$0xff] }
 0x5bd   : > { %v7431_v60 = vor.u32 1.1754944e-38, %v7430_v34  ;;  %vm7429_vm10 = vcmp.eq.f32.partialorder %v7428_v27, 8.507059e+37 }
 0x5be   : > { %v25766_v16 = vadd.f32 %v22366_v42, %v7403_v24 }
 0x5bf   : > { %v7396_v8 = vpop.f32.mrf.mxu2  ;;  %8067 = vmatpush.bf16.msrb.mxu0 %v21515_v48  ;;  %v21496_v48 = vld [vmem:[%s28119_s5 + $0xa8] sm:$0xff] }
 0x5c0   : > { %v22194_v53 = vpop.eup %22193  ;;  %v17608_v59 = vmul.f32 -1.442695, %v25766_v16 }
 0x5c1   : > { %v22196_v42 = vpop.eup %22195  ;;  %v7417_v44 = vadd.f32 1.0, %v22194_v53 }
 0x5c2   : > { %v7420_v40 = vmul.f32 %v22196_v42, %v7416_v11  ;;  %22197 = vpow2.f32 %v17608_v59  ;;  %vm7425_vm7 = vweird.f32 %v22196_v42 }
 0x5c3   : > { %22199 = vrcp.f32 %v7417_v44  ;;  %vm7426_vm9 = vmor %vm7424_vm8, %vm7425_vm7  ;;  %v7445_v22 = vand.u32 2147483648, %v7417_v44  ;;  %v7443_v4 = vand.u32 2147483647, %v7417_v44  ;;  %vm7439_vm12 = vweird.f32 %v7417_v44 }
 0x5c4   : > { %v7421_v46 = vsub.f32 1.0, %v7420_v40 }
 0x5c5   : > { %v7446_v32 = vor.u32 1.1754944e-38, %v7445_v22  ;;  %vm7444_vm14 = vcmp.eq.f32.partialorder %v7443_v4, 8.507059e+37 }
 0x5c6   : > { %v7422_v21 = vmul.f32 %v22196_v42, %v7421_v46 }
 0x5c8   : > { %v22198_v57 = vpop.eup %22197  ;;  %v7423_v58 = vadd.f32 %v22196_v42, %v7422_v21 }
 0x5c9   : > { %v22200_v9 = vpop.eup %22199  ;;  %v7418_v29 = vadd.f32 1.0, %v22198_v57 }
 0x5ca   : > { %v7427_v52 = vsel %vm7426_vm9, %v22196_v42, %v7423_v58  ;;  %v7435_v14 = vmul.f32 %v22200_v9, %v7417_v44  ;;  %vm7440_vm11 = vweird.f32 %v22200_v9 }
 0x5cb   : > { %v7432_v37 = vsel %vm7429_vm10, %v7431_v60, %v7427_v52  ;;  %22201 = vrcp.f32 %v7418_v29  ;;  %vm7441_vm13 = vmor %vm7439_vm12, %vm7440_vm11  ;;  %v7460_v5 = vand.u32 2147483648, %v7418_v29  ;;  %v7458_v46 = vand.u32 2147483647, %v7418_v29  ;;  %v21569_v60 = vld [vmem:[%s28116_s2 + $0x170] sm:$0xff] }
 0x5cc   : > { %v7436_v11 = vsub.f32 1.0, %v7435_v14  ;;  %v7464_v38 = vmul.f32 %v7432_v37, %v25705_v6  ;;  %vm7454_vm3 = vweird.f32 %v7418_v29 }
 0x5cd   : > { %v7461_v13 = vor.u32 1.1754944e-38, %v7460_v5  ;;  %vm7459_vm5 = vcmp.eq.f32.partialorder %v7458_v46, 8.507059e+37  ;;  %v21566_v5 = vld [vmem:[%s28116_s2 + $0x158] sm:$0xff]  ;;  %v21560_v46 = vld [vmem:[%s28116_s2 + $0x128] sm:$0xff] }
 0x5ce   : > { %v7437_v50 = vmul.f32 %v22200_v9, %v7436_v11  ;;  %v7467_v62 = vsel %vm533_vm6, %v7464_v38, 0.0 }
 0x5cf   : > { %v7470_v42 = vpack.c.bf16 %v7467_v62, %v7467_v62  ;;  %v21567_v62 = vld [vmem:[%s28116_s2 + $0x160] sm:$0xff] }
 0x5d0   : > { %v7438_v24 = vadd.f32 %v22200_v9, %v7437_v50  ;;  %v21495_v50 = vld [vmem:[%s28119_s5 + $0xa0] sm:$0xff] }
 0x5d1   : > { %v22202_v12 = vpop.eup %22201  ;;  %v7475_v44 = vunpack.c.l.b16 %v7470_v42 }
 0x5d2   : > { %v7442_v8 = vsel %vm7441_vm13, %v22200_v9, %v7438_v24  ;;  %v7450_v53 = vmul.f32 %v22202_v12, %v7418_v29  ;;  %vm7455_vm15 = vweird.f32 %v22202_v12  ;;  %v21497_v9 = vld [vmem:[%s28119_s5 + $0xb0] sm:$0xff] }
 0x5d3   : > { %v7447_v59 = vsel %vm7444_vm14, %v7446_v32, %v7442_v8  ;;  %vm7456_vm4 = vmor %vm7454_vm3, %vm7455_vm15  ;;  %vm14346_vm15 = vcmask 1042432  }
 0x5d4   : > { %v7465_v40 = vmul.f32 %v7447_v59, %v25738_v56  ;;  %v7451_v6 = vsub.f32 1.0, %v7450_v53  ;;  %v21570_v56 = vld [vmem:[%s28116_s2 + $0x178] sm:$0xff] }
 0x5d5   : > { %v21554_v59 = vld [vmem:[%s28116_s2 + $0xf8] sm:$0xff] }
 0x5d6   : > { %v7471_v28 = vpack.c.bf16 %v7465_v40, %v7465_v40  ;;  %v7452_v17 = vmul.f32 %v22202_v12, %v7451_v6  ;;  %v21494_v40 = vld [vmem:[%s28119_s5 + $0x98] sm:$0xff]  ;;  %v21561_v6 = vld [vmem:[%s28116_s2 + $0x130] sm:$0xff] }
 0x5d8   : > { %v7476_v34 = vunpack.c.l.b16 %v7471_v28  ;;  %v7453_v25 = vadd.f32 %v22202_v12, %v7452_v17  ;;  %v21553_v28 = vld [vmem:[%s28116_s2 + $0xf0] sm:$0xff] }
 0x5d9   : > { %v21493_v17 = vld [vmem:[%s28119_s5 + $0x90] sm:$0xff] }
 0x5da   : > { %v25812_v21 = vpack.c.b16 %v7476_v34, %v7475_v44  ;;  %v7457_v27 = vsel %vm7456_vm4, %v22202_v12, %v7453_v25  ;;  %v21562_v12 = vld [vmem:[%s28116_s2 + $0x138] sm:$0xff]  ;;  %v21565_v44 = vld [vmem:[%s28116_s2 + $0x150] sm:$0xff]  ;;  %v21492_v34 = vld [vmem:[%s28119_s5 + $0x88] sm:$0xff] }
 0x5db   : > { %v7462_v57 = vsel %vm7459_vm5, %v7461_v13, %v7457_v27  ;;  %v21559_v25 = vld [vmem:[%s28116_s2 + $0x120] sm:$0xff]  ;;  %v21564_v13 = vld [vmem:[%s28116_s2 + $0x148] sm:$0xff]  ;;  %v21558_v27 = vld [vmem:[%s28116_s2 + $0x118] sm:$0xff] }
 0x5dc   : > { %v7466_v58 = vmul.f32 %v7462_v57, %v25766_v16  ;;  %7699 = vmatmul.bf16.vlgmr.msrb.gmra.mxu3 %v25812_v21  ;;  %8040 = vmatmul.bf16.vlgmr.msra.gmra.mxu2 %v25812_v21  ;;  %v7485_v16 = vshll.u32 %v25812_v21, 16  ;;  %v7495_v38 = vrot.slane %v25812_v21, 1  ;;  %v7483_v4 = vshrl.u32 %v25812_v21, 16  ;;  %v21530_v57 = vld [vmem:[%s28116_s2 + $0x38] sm:$0xff] }
 0x5dd   : > { %8246 = vmatpush.bf16.msrb.mxu3 %v21498_v31  ;;  %8536 = vmatpush.bf16.msra.mxu2 %v21570_v56  ;;  %v21551_v31 = vld [vmem:[%s28116_s2 + $0xe0] sm:$0xff] }
 0x5de   : > { %v7469_v29 = vsel %vm538_vm2, %v7466_v58, 0.0  ;;  %v7487_v11 = vrot.slane %v7485_v16, 1  ;;  %v21491_v56 = vld [vmem:[%s28119_s5 + $0x80] sm:$0xff]  ;;  %v21550_v58 = vld [vmem:[%s28116_s2 + $0xd8] sm:$0xff]  ;;  %v21578_v16 = vld [vmem:[%s28116_s2 + $0x1b0] sm:$0xff] }
 0x5df   : > { %v7472_v52 = vpack.c.bf16 %v7469_v29, %v7469_v29  ;;  %v21529_v29 = vld [vmem:[%s28116_s2 + $0x30] sm:$0xff] }
 0x5e0   : > { %v7488_v8 = vor.u32 %v7487_v11, %v7483_v4  ;;  %v21527_v11 = vld [vmem:[%s28116_s2 + $0x20] sm:$0xff] }
 0x5e1   : > { %v7480_v14 = vunpack.c.l.b16 %v7472_v52  ;;  %8247 = vmatpush.bf16.msrb.mxu3 %v21497_v9  ;;  %8537 = vmatpush.bf16.msra.mxu2 %v21569_v60  ;;  %v21563_v9 = vld [vmem:[%s28116_s2 + $0x140] sm:$0xff]  ;;  %v21557_v60 = vld [vmem:[%s28116_s2 + $0x110] sm:$0xff]  ;;  %v21579_v52 = vld [vmem:[%s28116_s2 + $0x1b8] sm:$0xff] }
 0x5e2   : > { %v21576_v4 = vld [vmem:[%s28116_s2 + $0x1a0] sm:$0xff] }
 0x5e3   : > { %v7481_v37 = vpack.c.b16 %v7480_v14, %v7480_v14  ;;  %v21556_v14 = vld [vmem:[%s28116_s2 + $0x108] sm:$0xff] }
 0x5e5   : > { %8248 = vmatpush.bf16.msrb.mxu3 %v21496_v48  ;;  %v7496_v22 = vrot.slane %v7481_v37, 1  ;;  %v7490_v24 = vshll.u32 %v7481_v37, 16  ;;  %8538 = vmatpush.bf16.msra.mxu2 %v21568_v54  ;;  %v21528_v48 = vld [vmem:[%s28116_s2 + $0x28] sm:$0xff]  ;;  %v21555_v37 = vld [vmem:[%s28116_s2 + $0x100] sm:$0xff] }
 0x5e6   : > { %v21577_v54 = vld [vmem:[%s28116_s2 + $0x1a8] sm:$0xff] }
 0x5e7   : > { %v25844_v32 = vsel %vm573_vm1, %v7495_v38, %v7496_v22  ;;  %v7492_v53 = vrot.slane %v7490_v24, 1  ;;  %v21546_v38 = vld [vmem:[%s28116_s2 + $0xb8] sm:$0xff]  ;;  %v21547_v22 = vld [vmem:[%s28116_s2 + $0xc0] sm:$0xff] }
 0x5e8   : > { %7727 = vmatmul.bf16.vlgmr.msra.gmra.mxu1 %v25844_v32  ;;  %v21526_v24 = vld [vmem:[%s28116_s2 + $0x18] sm:$0xff] }
 0x5e9   : > { %8249 = vmatpush.bf16.msrb.mxu3 %v21495_v50  ;;  %v25851_v42 = vsel %vm555_vm0, %v7488_v8, %v7492_v53  ;;  %8518 = vmatpush.bf16.msra.mxu1 %v21562_v12  ;;  %v21538_v50 = vld [vmem:[%s28116_s2 + $0x78] sm:$0xff]  ;;  %v21545_v12 = vld [vmem:[%s28116_s2 + $0xb0] sm:$0xff] }
 0x5ea   : > { %7713 = vmatmul.bf16.vlgmr.msra.gmra.mxu0 %v25851_v42  ;;  %8539 = vmatpush.bf16.msra.mxu2 %v21567_v62  ;;  %v21537_v62 = vld [vmem:[%s28116_s2 + $0x70] sm:$0xff] }
 0x5eb   : > { %8500 = vmatpush.bf16.msra.mxu0 %v21554_v59  ;;  %v22367_v8 = vld [vmem:[%s22599_s30 + $0x54] sm:$0xff] }
 0x5ec   : > { %8054 = vmatmul.bf16.vlgmr.msra.gmra.mxu3 %v25851_v42  ;;  %8240 = vmatmul.bf16.vlgmr.msrb.gmra.mxu2 %v25229_v30  ;;  %v21552_v30 = vld [vmem:[%s28116_s2 + $0xe8] sm:$0xff]  ;;  %v21525_v53 = vld [vmem:[%s28116_s2 + $0x10] sm:$0xff]  ;;  %v21575_v59 = vld [vmem:[%s28116_s2 + $0x198] sm:$0xff] }
 0x5ed   : > { %8250 = vmatpush.bf16.msrb.mxu3 %v21494_v40  ;;  %8519 = vmatpush.bf16.msra.mxu1 %v21561_v6  ;;  %v21544_v40 = vld [vmem:[%s28116_s2 + $0xa8] sm:$0xff] }
 0x5ee   : > { %8540 = vmatpush.bf16.msra.mxu2 %v21566_v5  ;;  %v21536_v6 = vld [vmem:[%s28116_s2 + $0x68] sm:$0xff]  ;;  %v21574_v5 = vld [vmem:[%s28116_s2 + $0x190] sm:$0xff] }
 0x5ef   : > { %8501 = vmatpush.bf16.msra.mxu0 %v21553_v28  ;;  %v21524_v28 = vld [vmem:[%s28116_s2 + $0x8] sm:$0xff] }
 0x5f1   : > { %8251 = vmatpush.bf16.msrb.mxu3 %v21493_v17  ;;  %8520 = vmatpush.bf16.msra.mxu1 %v21560_v46  ;;  %v21543_v17 = vld [vmem:[%s28116_s2 + $0xa0] sm:$0xff] }
 0x5f2   : > { %8541 = vmatpush.bf16.msra.mxu2 %v21565_v44  ;;  %v21535_v46 = vld [vmem:[%s28116_s2 + $0x60] sm:$0xff]  ;;  %v21573_v44 = vld [vmem:[%s28116_s2 + $0x188] sm:$0xff] }
 0x5f3   : > { %8502 = vmatpush.bf16.msra.mxu0 %v21552_v30  ;;  %v21523_v30 = vld [vmem:[%s28116_s2] sm:$0xff] }
 0x5f5   : > { %8252 = vmatpush.bf16.msrb.mxu3 %v21492_v34  ;;  %8521 = vmatpush.bf16.msra.mxu1 %v21559_v25  ;;  %v21587_v34 = vld [vmem:[%s28116_s2 + $0x1f8] sm:$0xff] }
 0x5f6   : > { %8542 = vmatpush.bf16.msra.mxu2 %v21564_v13  ;;  %v21542_v25 = vld [vmem:[%s28116_s2 + $0x98] sm:$0xff] }
 0x5f7   : > { %8503 = vmatpush.bf16.msra.mxu0 %v21551_v31  ;;  %v21534_v13 = vld [vmem:[%s28116_s2 + $0x58] sm:$0xff]  ;;  %v21572_v31 = vld [vmem:[%s28116_s2 + $0x180] sm:$0xff] }
 0x5f8   : > { %8226 = vmatmul.bf16.vlgmr.msrb.gmra.mxu1 %v25190_v47  ;;  %v21549_v47 = vld [vmem:[%s28116_s2 + $0xd0] sm:$0xff] }
 0x5f9   : > { %8253 = vmatpush.bf16.msrb.mxu3 %v21491_v56  ;;  %8522 = vmatpush.bf16.msra.mxu1 %v21558_v27  ;;  %v21586_v56 = vld [vmem:[%s28116_s2 + $0x1f0] sm:$0xff] }
 0x5fa   : > { %8068 = vmatmul.bf16.vlgmr.msrb.gmra.mxu0 %v25844_v32  ;;  %8543 = vmatpush.bf16.msra.mxu2 %v21563_v9  ;;  %v21541_v27 = vld [vmem:[%s28116_s2 + $0x90] sm:$0xff]  ;;  %v21585_v9 = vld [vmem:[%s28116_s2 + $0x1e8] sm:$0xff] }
 0x5fb   : > { %8504 = vmatpush.bf16.msra.mxu0 %v21550_v58  ;;  %v22368_v58 = vld [vmem:[%s22599_s30 + $0x48] sm:$0xff] }
 0x5fc   : > { %8254 = vmatmul.bf16.vlgmr.msrb.gmra.mxu3 %v25222_v19  ;;  %v21548_v19 = vld [vmem:[%s28116_s2 + $0xc8] sm:$0xff] }
 0x5fd   : > { %8698 = vmatpush.bf16.msra.mxu3 %v21530_v57  ;;  %8523 = vmatpush.bf16.msra.mxu1 %v21557_v60  ;;  %v21533_v57 = vld [vmem:[%s28116_s2 + $0x50] sm:$0xff]  ;;  %v21540_v60 = vld [vmem:[%s28116_s2 + $0x88] sm:$0xff] }
 0x5fe   : > { %8979 = vmatpush.bf16.msrb.mxu2 %v21579_v52  ;;  %v21571_v52 = vld [vmem:[%s26027_s21] sm:$0xff] }
 0x5ff   : > { %8544 = vmatmul.bf16.vlgmr.msra.gmra.mxu2 %v25477_v26  ;;  %8505 = vmatpush.bf16.msra.mxu0 %v21549_v47  ;;  %v21584_v47 = vld [vmem:[%s28116_s2 + $0x1e0] sm:$0xff] }
 0x601   : > { %8699 = vmatpush.bf16.msra.mxu3 %v21529_v29  ;;  %8524 = vmatpush.bf16.msra.mxu1 %v21556_v14  ;;  %v21532_v29 = vld [vmem:[%s28116_s2 + $0x48] sm:$0xff]  ;;  %v21531_v14 = vld [vmem:[%s28116_s2 + $0x40] sm:$0xff] }
 0x602   : > { %8980 = vmatpush.bf16.msrb.mxu2 %v21578_v16  ;;  %v21539_v16 = vld [vmem:[%s28116_s2 + $0x80] sm:$0xff] }
 0x603   : > { %8506 = vmatpush.bf16.msra.mxu0 %v21548_v19  ;;  %v21583_v19 = vld [vmem:[%s28116_s2 + $0x1d8] sm:$0xff] }
 0x605   : > { %8700 = vmatpush.bf16.msra.mxu3 %v21528_v48  ;;  %8525 = vmatpush.bf16.msra.mxu1 %v21555_v37  ;;  %v21595_v48 = vld [vmem:[%s28116_s2 + $0x238] sm:$0xff]  ;;  %v21594_v37 = vld [vmem:[%s28116_s2 + $0x230] sm:$0xff] }
 0x606   : > { %8981 = vmatpush.bf16.msrb.mxu2 %v21577_v54  ;;  %v8754_v54 = vld [vmem:[%s26027_s21 + $0x8] sm:$0x3] }
 0x607   : > { %8507 = vmatpush.bf16.msra.mxu0 %v21547_v22  ;;  %v21593_v22 = vld [vmem:[%s28116_s2 + $0x228] sm:$0xff] }
 0x608   : > { %8526 = vmatmul.bf16.vlgmr.msra.gmra.mxu1 %v25457_v61 }
 0x609   : > { %8701 = vmatpush.bf16.msra.mxu3 %v21527_v11  ;;  %8734 = vmatpush.bf16.msrb.mxu1 %v21546_v38  ;;  %v8760_v11 = vunpack.c.l.b16 %v8754_v54  ;;  %v21582_v38 = vld [vmem:[%s28116_s2 + $0x1d0] sm:$0xff] }
 0x60a   : > { %8982 = vmatpush.bf16.msrb.mxu2 %v21576_v4  ;;  %8508 = vmatmul.bf16.vlgmr.msra.gmra.mxu0 %v22367_v8  ;;  %v8768_v4 = vshll.u32 %v21571_v52, 16  ;;  %v21591_v8 = vld [vmem:[%s28116_s2 + $0x218] sm:$0xff] }
 0x60b   : > { %8716 = vmatpush.bf16.msrb.mxu0 %v21538_v50  ;;  %v26068_v50 = vpack.c.b16 %v8760_v11, %v8760_v11 }
 0x60d   : > { %8702 = vmatpush.bf16.msra.mxu3 %v21526_v24  ;;  %8735 = vmatpush.bf16.msrb.mxu1 %v21545_v12  ;;  %v21581_v24 = vld [vmem:[%s28116_s2 + $0x1c8] sm:$0xff]  ;;  %v8770_v12 = vrot.slane %v8768_v4, 1 }
 0x60e   : > { %8983 = vmatpush.bf16.msrb.mxu2 %v21575_v59 }
 0x60f   : > { %8717 = vmatpush.bf16.msrb.mxu0 %v21537_v62  ;;  %8549 = vmatmul.bf16.gmra.mxu2 %v25471_v36  ;;  %v8773_v62 = vshll.u32 %v26068_v50, 16 }
 0x611   : > { %8703 = vmatpush.bf16.msra.mxu3 %v21525_v53  ;;  %8736 = vmatpush.bf16.msrb.mxu1 %v21544_v40  ;;  %v8775_v59 = vrot.slane %v8773_v62, 1  ;;  %v21590_v40 = vld [vmem:[%s28116_s2 + $0x210] sm:$0xff] }
 0x612   : > { %8984 = vmatpush.bf16.msrb.mxu2 %v21574_v5  ;;  %v21589_v5 = vld [vmem:[%s28116_s2 + $0x208] sm:$0xff] }
 0x613   : > { %8718 = vmatpush.bf16.msrb.mxu0 %v21536_v6 }
 0x615   : > { %8704 = vmatpush.bf16.msra.mxu3 %v21524_v28  ;;  %8737 = vmatpush.bf16.msrb.mxu1 %v21543_v17  ;;  %v21588_v28 = vld [vmem:[%s28116_s2 + $0x200] sm:$0xff]  ;;  %v8777_v17 = vshrl.u32 %v26068_v50, 16 }
 0x616   : > { %8985 = vmatpush.bf16.msrb.mxu2 %v21573_v44 }
 0x617   : > { %8719 = vmatpush.bf16.msrb.mxu0 %v21535_v46  ;;  %v8782_v46 = vrot.slane %v21571_v52, 1  ;;  %v26103_v44 = vor.u32 %v8777_v17, %v8775_v59 }
 0x618   : > { %8531 = vmatmul.bf16.gmra.mxu1 %v25473_v55 }
 0x619   : > { %8705 = vmatpush.bf16.msra.mxu3 %v21523_v30  ;;  %8738 = vmatpush.bf16.msrb.mxu1 %v21542_v25  ;;  %v6422_v25 = vadd.f32 %v25499_v3, %v25482_v43  ;;  %v22369_v43 = vld [vmem:[%s28120_s6] ss:$0 sm:$0xff] }
 0x61a   : > { %8986 = vmatpush.bf16.msrb.mxu2 %v21572_v31  ;;  %8513 = vmatmul.bf16.gmra.mxu0 %v25438_v7 }
 0x61b   : > { %8720 = vmatpush.bf16.msrb.mxu0 %v21534_v13  ;;  %v6436_v31 = vadd.f32 %v25510_v41, %v6422_v25 }
 0x61c   : > { %8706 = vmatmul.bf16.vlgmr.msra.gmra.mxu3 %v22368_v58 }
 0x61d   : > { %8997 = vmatpush.bf16.msrb.mxu3 %v21587_v34  ;;  %8739 = vmatpush.bf16.msrb.mxu1 %v21541_v27 }
 0x61f   : > { %8721 = vmatpush.bf16.msrb.mxu0 %v21533_v57  ;;  %8987 = vmatmul.bf16.vlgmr.msrb.gmra.mxu2 %v21571_v52 }
 0x621   : > { %8998 = vmatpush.bf16.msrb.mxu3 %v21586_v56  ;;  %8740 = vmatpush.bf16.msrb.mxu1 %v21540_v60 }
 0x623   : > { %8722 = vmatpush.bf16.msrb.mxu0 %v21532_v29 }
 0x625   : > { %8999 = vmatpush.bf16.msrb.mxu3 %v21585_v9  ;;  %8741 = vmatpush.bf16.msrb.mxu1 %v21539_v16  ;;  %v6594_v9 = vadd.f32 %v25504_v35, %v6436_v31 }
 0x627   : > { %8723 = vmatpush.bf16.msrb.mxu0 %v21531_v14  ;;  %v22370_v14 = vld [vmem:[%s28121_s7] ss:$0 sm:$0xff] }
 0x628   : > { %8742 = vmatmul.bf16.vlgmr.msrb.gmra.mxu1 %v24878_v39  ;;  %v8766_v39 = vshrl.u32 %v21571_v52, 16 }
 0x629   : > { %9000 = vmatpush.bf16.msrb.mxu3 %v21584_v47  ;;  %v6608_v47 = vadd.f32 %v25489_v18, %v6594_v9 }
 0x62a   : > { %8724 = vmatmul.bf16.vlgmr.msrb.gmra.mxu0 %v24858_v20  ;;  %v21580_v20 = vld [vmem:[%s28116_s2 + $0x1c0] sm:$0xff]  ;;  %v8771_v53 = vor.u32 %v8770_v12, %v8766_v39 }
 0x62b   : > { %9015 = vmatpush.bf16.msra.mxu0 %v21595_v48 }
 0x62c   : > { %8711 = vmatmul.bf16.gmra.mxu3 %v24836_v23  ;;  %v21592_v23 = vld [vmem:[%s28116_s2 + $0x220] sm:$0xff]  ;;  %v26088_v6 = vsel %vm555_vm0, %v8771_v53, %v8775_v59 }
 0x62d   : > { %9001 = vmatpush.bf16.msrb.mxu3 %v21583_v19 }
 0x62f   : > { %9016 = vmatpush.bf16.msra.mxu0 %v21594_v37  ;;  %8992 = vmatmul.bf16.gmra.mxu2 %v26068_v50 }
 0x631   : > { %9002 = vmatpush.bf16.msrb.mxu3 %v21582_v38 }
 0x633   : > { %9017 = vmatpush.bf16.msra.mxu0 %v21593_v22 }
 0x635   : > { %9003 = vmatpush.bf16.msrb.mxu3 %v21581_v24 }
 0x637   : > { %9018 = vmatpush.bf16.msra.mxu0 %v21592_v23 }
 0x638   : > { %8747 = vmatmul.bf16.gmra.mxu1 %v24872_v15  ;;  %v26101_v15 = vrot.slane %v26068_v50, 1 }
 0x639   : > { %9004 = vmatpush.bf16.msrb.mxu3 %v21580_v20 }
 0x63a   : > { %8729 = vmatmul.bf16.gmra.mxu0 %v24874_v51  ;;  %v26107_v30 = vsel %vm573_vm1, %v8782_v46, %v26101_v15 }
 0x63b   : > { %9019 = vmatpush.bf16.msra.mxu0 %v21591_v8 }
 0x63c   : > { %9005 = vmatmul.bf16.vlgmr.msrb.gmra.mxu3 %v26088_v6 }
 0x63f   : > { %9020 = vmatpush.bf16.msra.mxu0 %v21590_v40 }
 0x643   : > { %9021 = vmatpush.bf16.msra.mxu0 %v21589_v5 }
 0x647   : > { %9022 = vmatpush.bf16.msra.mxu0 %v21588_v28 }
 0x64a   : > { %9023 = vmatmul.bf16.vlgmr.msra.gmra.mxu0 %v26107_v30 }
 0x64c   : > { %9010 = vmatmul.bf16.gmra.mxu3 %v26103_v44 }
 0x65a   : > { %9028 = vmatmul.bf16.gmra.mxu0 %v26101_v15 }
 0x65f   : > { %v7700_v51 = vpop.f32.mrf.mxu3  ;;  %v8041_v34 = vpop.f32.mrf.mxu2 }
 0x665   : > { %v7728_v13 = vpop.f32.mrf.mxu1 }
 0x667   : > { %v7702_v56 = vpop.f32.mrf.mxu3  ;;  %v7714_v27 = vpop.f32.mrf.mxu0 }
 0x668   : > { %v7715_v57 = vadd.f32 %v7714_v27, %v7700_v51  ;;  %v26115_v58 = vpop.f32.mrf.mxu2 }
 0x66a   : > { %v7729_v60 = vadd.f32 %v7728_v13, %v7715_v57 }
 0x66c   : > { %v7733_v29 = vadd.f32 %v7729_v60, %v25508_v10  ;;  %v6622_v10 = vadd.f32 %v25514_v49, %v6608_v47 }
 0x66d   : > { %v7730_v52 = vpop.f32.mrf.mxu1 }
 0x66e   : > { %v7735_v3 = vmul.f32 %v22369_v43, %v7733_v29 }
 0x66f   : > { %v7716_v16 = vpop.f32.mrf.mxu0  ;;  %v8055_v41 = vpop.f32.mrf.mxu3 }
 0x670   : > { %v7737_v48 = vadd.f32 %v22370_v14, %v7735_v3  ;;  %v7717_v19 = vadd.f32 %v7716_v16, %v7702_v56  ;;  %v8056_v35 = vadd.f32 %v8055_v41, %v8041_v34  ;;  %v8241_v54 = vpop.f32.mrf.mxu2 }
 0x672   : > { %v17753_v37 = vmul.f32 -1.442695, %v7737_v48  ;;  %v7731_v11 = vadd.f32 %v7730_v52, %v7717_v19 }
 0x674   : > { %22203 = vpow2.f32 %v17753_v37  ;;  %v7734_v18 = vadd.f32 %v7731_v11, %v6622_v10 }
 0x675   : > { %v8227_v38 = vpop.f32.mrf.mxu1 }
 0x676   : > { %v7736_v22 = vmul.f32 %v22369_v43, %v7734_v18 }
 0x677   : > { %v26127_v4 = vpop.f32.mrf.mxu3  ;;  %v8069_v24 = vpop.f32.mrf.mxu0 }
 0x678   : > { %v7738_v23 = vadd.f32 %v22370_v14, %v7736_v22  ;;  %v8070_v39 = vadd.f32 %v8069_v24, %v8056_v35  ;;  %v26129_v12 = vpop.f32.mrf.mxu2 }
 0x67a   : > { %v22204_v62 = vpop.eup %22203  ;;  %v17754_v20 = vmul.f32 -1.442695, %v7738_v23  ;;  %v8228_v8 = vadd.f32 %v8227_v38, %v8070_v39 }
 0x67b   : > { %v7745_v53 = vadd.f32 1.0, %v22204_v62 }
 0x67c   : > { %22205 = vpow2.f32 %v17754_v20  ;;  %v8242_v59 = vadd.f32 %v8241_v54, %v8228_v8 }
 0x67d   : > { %22207 = vrcp.f32 %v7745_v53  ;;  %v26131_v49 = vpop.f32.mrf.mxu1  ;;  %v7758_v56 = vand.u32 2147483648, %v7745_v53  ;;  %v7756_v9 = vand.u32 2147483647, %v7745_v53  ;;  %vm7752_vm8 = vweird.f32 %v7745_v53 }
 0x67f   : > { %v26133_v40 = vpop.f32.mrf.mxu0  ;;  %v8255_v5 = vpop.f32.mrf.mxu3  ;;  %v7759_v3 = vor.u32 1.1754944e-38, %v7758_v56  ;;  %vm7757_vm10 = vcmp.eq.f32.partialorder %v7756_v9, 8.507059e+37  ;;  %v21603_v56 = vld [vmem:[%s28119_s5 + $0x1b8] sm:$0xff] }
 0x680   : > { %v26135_v28 = vadd.f32 %v8255_v5, %v8242_v59  ;;  %9326 = vmatpush.bf16.msra.mxu1 %v21603_v56  ;;  %v21609_v56 = vld [vmem:[%s28119_s5 + $0x1e8] sm:$0xff] }
 0x682   : > { %v8545_v17 = vpop.f32.mrf.mxu2  ;;  %v22206_v46 = vpop.eup %22205 }
 0x683   : > { %v22208_v51 = vpop.eup %22207  ;;  %v7746_v34 = vadd.f32 1.0, %v22206_v46 }
 0x684   : > { %v7748_v25 = vmul.f32 %v22208_v51, %v7745_v53  ;;  %vm7753_vm7 = vweird.f32 %v22208_v51 }
 0x685   : > { %22209 = vrcp.f32 %v7746_v34  ;;  %v8527_v13 = vpop.f32.mrf.mxu1  ;;  %vm7754_vm9 = vmor %vm7752_vm8, %vm7753_vm7  ;;  %v7773_v37 = vand.u32 2147483648, %v7746_v34  ;;  %v7771_v38 = vand.u32 2147483647, %v7746_v34  ;;  %vm7767_vm12 = vweird.f32 %v7746_v34 }
 0x686   : > { %v7749_v31 = vsub.f32 1.0, %v7748_v25 }
 0x687   : > { %v8509_v27 = vpop.f32.mrf.mxu0  ;;  %v7774_v39 = vor.u32 1.1754944e-38, %v7773_v37  ;;  %vm7772_vm14 = vcmp.eq.f32.partialorder %v7771_v38, 8.507059e+37  ;;  %v21600_v37 = vld [vmem:[%s28119_s5 + $0x1a0] sm:$0xff] }
 0x688   : > { %v7750_v57 = vmul.f32 %v22208_v51, %v7749_v31  ;;  %v8528_v60 = vadd.f32 %v8527_v13, %v8509_v27 }
 0x68a   : > { %v26137_v29 = vpop.f32.mrf.mxu2  ;;  %v7751_v52 = vadd.f32 %v22208_v51, %v7750_v57  ;;  %v26139_v47 = vadd.f32 %v8545_v17, %v8528_v60 }
 0x68b   : > { %v22210_v43 = vpop.eup %22209 }
 0x68c   : > { %v7755_v16 = vsel %vm7754_vm9, %v22208_v51, %v7751_v52  ;;  %v7763_v41 = vmul.f32 %v22210_v43, %v7746_v34  ;;  %vm7768_vm11 = vweird.f32 %v22210_v43  ;;  %v21602_v52 = vld [vmem:[%s28119_s5 + $0x1b0] sm:$0xff] }
 0x68d   : > { %v7760_v14 = vsel %vm7757_vm10, %v7759_v3, %v7755_v16  ;;  %v26141_v19 = vpop.f32.mrf.mxu1  ;;  %vm7769_vm13 = vmor %vm7767_vm12, %vm7768_vm11  ;;  %9327 = vmatpush.bf16.msra.mxu1 %v21602_v52  ;;  %v21648_v52 = vld [vmem:[%s28119_s5 + $0xe0] sm:$0xff] }
 0x68e   : > { %v7777_v35 = vmul.f32 %v7760_v14, %v7737_v48  ;;  %v7764_v54 = vsub.f32 1.0, %v7763_v41  ;;  %v26151_v48 = vpop.f32.mrf.mxu3  ;;  %v21601_v14 = vld [vmem:[%s28119_s5 + $0x1a8] sm:$0xff] }
 0x68f   : > { %v26143_v10 = vpop.f32.mrf.mxu0 }
 0x690   : > { %17755 = vst [vmem:[%s24309_s23 + $0x30] sm:$0xff] %v7777_v35  ;;  %v26147_v11 = vadd.f32 %v7777_v35, %v25528_v63  ;;  %v7765_v18 = vmul.f32 %v22210_v43, %v7764_v54 }
 0x691   : > { %9328 = vmatpush.bf16.msra.mxu1 %v21601_v14  ;;  %v21608_v14 = vld [vmem:[%s28119_s5 + $0x1e0] sm:$0xff] }
 0x692   : > { %v26149_v22 = vpop.f32.mrf.mxu2  ;;  %v7766_v24 = vadd.f32 %v22210_v43, %v7765_v18 }
 0x694   : > { %v7770_v62 = vsel %vm7769_vm13, %v22210_v43, %v7766_v24  ;;  %v21611_v24 = vld [vmem:[%s28119_s5 + $0x1f8] sm:$0xff] }
 0x695   : > { %v7775_v20 = vsel %vm7772_vm14, %v7774_v39, %v7770_v62  ;;  %v26153_v8 = vpop.f32.mrf.mxu1  ;;  %9329 = vmatpush.bf16.msra.mxu1 %v21600_v37  ;;  %v21619_v39 = vld [vmem:[%s28119_s5 + $0x238] sm:$0xff]  ;;  %9340 = vmatpush.bf16.msra.mxu2 %v21611_v24  ;;  %v21616_v37 = vld [vmem:[%s28119_s5 + $0x220] sm:$0xff] }
 0x696   : > { %v7778_v53 = vmul.f32 %v7775_v20, %v7738_v23  ;;  %v21599_v62 = vld [vmem:[%s28119_s5 + $0x198] sm:$0xff]  ;;  %9354 = vmatpush.bf16.msra.mxu3 %v21619_v39 }
 0x697   : > { %v26155_v63 = vpop.f32.mrf.mxu0  ;;  %v21659_v39 = vld [vmem:[%s28119_s5 + $0x138] sm:$0xff] }
 0x698   : > { %17756 = vst [vmem:[%s24309_s23 + $0x38] sm:$0xff] %v7778_v53  ;;  %v26159_v59 = vadd.f32 %v7778_v53, %v25539_v45  ;;  %v7784_v5 = vadd.f32 %v7778_v53, %v7777_v35  ;;  %v21650_v53 = vld [vmem:[%s28119_s5 + $0xf0] sm:$0xff] }
 0x699   : > { %9330 = vmatpush.bf16.msra.mxu1 %v21599_v62  ;;  %v21647_v62 = vld [vmem:[%s28119_s5 + $0xd8] sm:$0xff] }
 0x69a   : > { %v8552_v17 = vpop.f32.mrf.mxu2  ;;  %v7785_v46 = vrot.slane %v7784_v5, 4 }
 0x69b   : > { %v21610_v17 = vld [vmem:[%s28119_s5 + $0x1f0] sm:$0xff] }
 0x69c   : > { %v7786_v51 = vadd.f32 %v7785_v46, %v7784_v5  ;;  %v21618_v46 = vld [vmem:[%s28119_s5 + $0x230] sm:$0xff]  ;;  %9341 = vmatpush.bf16.msra.mxu2 %v21610_v17 }
 0x69d   : > { %v8534_v25 = vpop.f32.mrf.mxu1  ;;  %9355 = vmatpush.bf16.msra.mxu3 %v21618_v46  ;;  %v21658_v46 = vld [vmem:[%s28119_s5 + $0x130] sm:$0xff] }
 0x69e   : > { %v7787_v13 = vrot.slane %v7786_v51, 2 }
 0x69f   : > { %v26161_v34 = vpop.f32.mrf.mxu3  ;;  %v8516_v31 = vpop.f32.mrf.mxu0 }
 0x6a0   : > { %v7788_v23 = vadd.f32 %v7787_v13, %v7786_v51  ;;  %v21598_v51 = vld [vmem:[%s28119_s5 + $0x190] sm:$0xff]  ;;  %v21649_v13 = vld [vmem:[%s28119_s5 + $0xe8] sm:$0xff]  ;;  %9342 = vmatpush.bf16.msra.mxu2 %v21609_v56  ;;  %v8708_v17 = vadd.f32 %v26161_v34, %v26139_v47 }
 0x6a1   : > { %9331 = vmatpush.bf16.msra.mxu1 %v21598_v51  ;;  %v8530_v51 = vadd.f32 %v26141_v19, %v26143_v10  ;;  %v21606_v47 = vld [vmem:[%s28119_s5 + $0x1d0] sm:$0xff]  ;;  %v21657_v19 = vld [vmem:[%s28119_s5 + $0x128] sm:$0xff] }
 0x6a2   : > { %v26166_v27 = vpop.f32.mrf.mxu2  ;;  %v7789_v57 = vrot.slane %v7788_v23, 1  ;;  %v21614_v34 = vld [vmem:[%s28119_s5 + $0x210] sm:$0xff] }
 0x6a3   : > { %v8548_v10 = vadd.f32 %v26137_v29, %v8530_v51  ;;  %v21656_v29 = vld [vmem:[%s28119_s5 + $0x120] sm:$0xff]  ;;  %v21627_v51 = vld [vmem:[%s28119_s5 + $0x38] sm:$0xff] }
 0x6a4   : > { %v7790_v45 = vadd.f32 %v7789_v57, %v7788_v23  ;;  %v21617_v23 = vld [vmem:[%s28119_s5 + $0x228] sm:$0xff]  ;;  %9343 = vmatpush.bf16.msra.mxu2 %v21608_v14 }
 0x6a5   : > { %v26170_v60 = vpop.f32.mrf.mxu1  ;;  %v21597_v57 = vld [vmem:[%s28119_s5 + $0x188] sm:$0xff]  ;;  %9356 = vmatpush.bf16.msra.mxu3 %v21617_v23  ;;  %v21646_v23 = vld [vmem:[%s28119_s5 + $0xd0] sm:$0xff] }
 0x6a6   : > { %v7791_v43 = vmul.f32 %v7790_v45, %v25553_v2  ;;  %9332 = vmatpush.bf16.msra.mxu1 %v21597_v57 }
 0x6a7   : > { %v26168_v9 = vpop.f32.mrf.mxu3  ;;  %v8725_v3 = vpop.f32.mrf.mxu0 }
 0x6a8   : > { %v26177_v16 = vsel %vm14346_vm15, %v25564_v33, %v7791_v43  ;;  %v21651_v33 = vld [vmem:[%s28119_s5 + $0xf8] sm:$0xff]  ;;  %v8710_v14 = vadd.f32 %v26168_v9, %v8548_v10  ;;  %v21654_v10 = vld [vmem:[%s28119_s5 + $0x110] sm:$0xff] }
 0x6a9   : > { %9667 = vmatpush.bf16.msrb.mxu0 %v21651_v33  ;;  %v21596_v33 = vld [vmem:[%s28119_s5 + $0x180] sm:$0xff]  ;;  %9357 = vmatpush.bf16.msra.mxu3 %v21616_v37 }
 0x6aa   : > { %v26179_v41 = vpop.f32.mrf.mxu2  ;;  %9333 = vmatpush.bf16.msra.mxu1 %v21596_v33 }
 0x6ad   : > { %v26186_v54 = vpop.f32.mrf.mxu1  ;;  %9668 = vmatpush.bf16.msrb.mxu0 %v21650_v53  ;;  %v21615_v53 = vld [vmem:[%s28119_s5 + $0x218] sm:$0xff] }
 0x6ae   : > { %9681 = vmatpush.bf16.msrb.mxu1 %v21659_v39  ;;  %9358 = vmatpush.bf16.msra.mxu3 %v21615_v53  ;;  %v22372_v53 = vld [vmem:[%s28118_s4] ss:$0 sm:$0xff] }
 0x6af   : > { %v26184_v35 = vpop.f32.mrf.mxu3  ;;  %v26191_v18 = vpop.f32.mrf.mxu0 }
 0x6b0   : > { %v8728_v33 = vadd.f32 %v26191_v18, %v8710_v14  ;;  %v21665_v14 = vld [vmem:[%s28119_s5 + $0x168] sm:$0xff] }
 0x6b1   : > { %9669 = vmatpush.bf16.msrb.mxu0 %v21649_v13  ;;  %v8726_v13 = vadd.f32 %v8725_v3, %v8708_v17 }
 0x6b2   : > { %v26196_v38 = vpop.f32.mrf.mxu2  ;;  %9682 = vmatpush.bf16.msrb.mxu1 %v21658_v46  ;;  %9359 = vmatpush.bf16.msra.mxu3 %v21614_v34  ;;  %v21667_v46 = vld [vmem:[%s28119_s5 + $0x178] sm:$0xff]  ;;  %v21634_v34 = vld [vmem:[%s28119_s5 + $0x70] sm:$0xff] }
 0x6b5   : > { %v26210_v5 = vpop.f32.mrf.mxu1  ;;  %9670 = vmatpush.bf16.msrb.mxu0 %v21648_v52  ;;  %v21605_v52 = vld [vmem:[%s28119_s5 + $0x1c8] sm:$0xff] }
 0x6b6   : > { %9683 = vmatpush.bf16.msrb.mxu1 %v21657_v19 }
 0x6b7   : > { %v8714_v20 = vpop.f32.mrf.mxu3  ;;  %v26221_v25 = vpop.f32.mrf.mxu0 }
 0x6b8   : > { %v21607_v20 = vld [vmem:[%s28119_s5 + $0x1d8] sm:$0xff] }
 0x6b9   : > { %9671 = vmatpush.bf16.msrb.mxu0 %v21647_v62  ;;  %9344 = vmatpush.bf16.msra.mxu2 %v21607_v20  ;;  %v21644_v62 = vld [vmem:[%s28119_s5 + $0xc0] sm:$0xff] }
 0x6ba   : > { %v8995_v31 = vpop.f32.mrf.mxu2  ;;  %9684 = vmatpush.bf16.msrb.mxu1 %v21656_v29  ;;  %v21604_v20 = vld [vmem:[%s28119_s5 + $0x1c0] sm:$0xff] }
 0x6bd   : > { %v8750_v43 = vpop.f32.mrf.mxu1  ;;  %9672 = vmatpush.bf16.msrb.mxu0 %v21646_v23  ;;  %9345 = vmatpush.bf16.msra.mxu2 %v21606_v47 }
 0x6be   : > { %v21613_v43 = vld [vmem:[%s28119_s5 + $0x208] sm:$0xff] }
 0x6bf   : > { %v9006_v45 = vpop.f32.mrf.mxu3  ;;  %v8732_v24 = vpop.f32.mrf.mxu0  ;;  %9360 = vmatpush.bf16.msra.mxu3 %v21613_v43 }
 0x6c0   : > { %v9007_v31 = vadd.f32 %v9006_v45, %v26166_v27  ;;  %v8744_v27 = vadd.f32 %v26170_v60, %v8726_v13  ;;  %v21645_v45 = vld [vmem:[%s28119_s5 + $0xc8] sm:$0xff]  ;;  %v8533_v60 = vadd.f32 %v26153_v8, %v26155_v63  ;;  %v26300_v24 = vld [vmem:[%s28117_s3] ss:$0 sm:$0xff]  ;;  %v21635_v63 = vld [vmem:[%s28119_s5 + $0x78] sm:$0xff] }
 0x6c1   : > { %9673 = vmatpush.bf16.msrb.mxu0 %v21645_v45  ;;  %9346 = vmatpush.bf16.msra.mxu2 %v21605_v52  ;;  %v21612_v8 = vld [vmem:[%s28119_s5 + $0x200] sm:$0xff]  ;;  %v21633_v52 = vld [vmem:[%s28119_s5 + $0x68] sm:$0xff] }
 0x6c3   : > { %9361 = vmatpush.bf16.msra.mxu3 %v21612_v8  ;;  %v21664_v8 = vld [vmem:[%s28119_s5 + $0x160] sm:$0xff] }
 0x6c5   : > { %9674 = vmatpush.bf16.msrb.mxu0 %v21644_v62  ;;  %9347 = vmatpush.bf16.msra.mxu2 %v21604_v20  ;;  %v21632_v62 = vld [vmem:[%s28119_s5 + $0x60] sm:$0xff] }
 0x6c7   : > { %v9008_v56 = vpop.f32.mrf.mxu3  ;;  %v9024_v57 = vpop.f32.mrf.mxu0  ;;  %9853 = vmatpush.bf16.msrb.mxu3 %v21627_v51 }
 0x6c8   : > { %v9025_v3 = vadd.f32 %v9024_v57, %v9007_v31  ;;  %v9009_v18 = vadd.f32 %v9008_v56, %v26179_v41  ;;  %v21655_v41 = vld [vmem:[%s28119_s5 + $0x118] sm:$0xff]  ;;  %v8551_v31 = vadd.f32 %v26149_v22, %v8533_v60  ;;  %v8746_v56 = vadd.f32 %v26186_v54, %v8728_v33  ;;  %v21666_v22 = vld [vmem:[%s28119_s5 + $0x170] sm:$0xff] }
 0x6c9   : > { %9867 = vmatpush.bf16.msra.mxu0 %v21635_v63  ;;  %9695 = vmatpush.bf16.msrb.mxu2 %v21667_v46  ;;  %v21626_v54 = vld [vmem:[%s28119_s5 + $0x30] sm:$0xff]  ;;  %v21652_v63 = vld [vmem:[%s28119_s5 + $0x100] sm:$0xff]  ;;  %v21631_v46 = vld [vmem:[%s28119_s5 + $0x58] sm:$0xff] }
 0x6ca   : > { %v9033_v37 = vadd.f32 %v9025_v3, %v8744_v27  ;;  %9685 = vmatpush.bf16.msrb.mxu1 %v21655_v41  ;;  %v8713_v57 = vadd.f32 %v26184_v35, %v8551_v31  ;;  %v21623_v41 = vld [vmem:[%s28119_s5 + $0x18] sm:$0xff] }
 0x6cb   : > { %9854 = vmatpush.bf16.msrb.mxu3 %v21626_v54 }
 0x6cc   : > { %v9036_v9 = vmul.f32 %v26300_v24, %v9033_v37  ;;  %v8731_v27 = vadd.f32 %v26221_v25, %v8713_v57  ;;  %v21653_v37 = vld [vmem:[%s28119_s5 + $0x108] sm:$0xff]  ;;  %v21662_v57 = vld [vmem:[%s28119_s5 + $0x150] sm:$0xff] }
 0x6cd   : > { %9868 = vmatpush.bf16.msra.mxu0 %v21634_v34  ;;  %9696 = vmatpush.bf16.msrb.mxu2 %v21666_v22 }
 0x6ce   : > { %v26319_v17 = vadd.f32 %v22372_v53, %v9036_v9  ;;  %9686 = vmatpush.bf16.msrb.mxu1 %v21654_v10  ;;  %v8749_v60 = vadd.f32 %v26210_v5, %v8731_v27  ;;  %v21624_v5 = vld [vmem:[%s28119_s5 + $0x20] sm:$0xff]  ;;  %v21629_v10 = vld [vmem:[%s28119_s5 + $0x48] sm:$0xff] }
 0x6cf   : > { %v9011_v39 = vpop.f32.mrf.mxu3  ;;  %v9026_v13 = vpop.f32.mrf.mxu0  ;;  %v21661_v27 = vld [vmem:[%s28119_s5 + $0x148] sm:$0xff] }
 0x6d0   : > { %v18385_v23 = vmul.f32 -1.442695, %v26319_v17  ;;  %v9027_v47 = vadd.f32 %v9026_v13, %v9009_v18  ;;  %v9012_v3 = vadd.f32 %v9011_v39, %v26196_v38  ;;  %v21625_v38 = vld [vmem:[%s28119_s5 + $0x28] sm:$0xff]  ;;  %v21663_v13 = vld [vmem:[%s28119_s5 + $0x158] sm:$0xff] }
 0x6d1   : > { %9869 = vmatpush.bf16.msra.mxu0 %v21633_v52  ;;  %9697 = vmatpush.bf16.msrb.mxu2 %v21665_v14 }
 0x6d2   : > { %22211 = vpow2.f32 %v18385_v23  ;;  %v9034_v19 = vadd.f32 %v9027_v47, %v8746_v56  ;;  %9855 = vmatpush.bf16.msrb.mxu3 %v21625_v38  ;;  %9687 = vmatpush.bf16.msrb.mxu1 %v21653_v37 }
 0x6d4   : > { %v9037_v35 = vmul.f32 %v26300_v24, %v9034_v19  ;;  %v21622_v19 = vld [vmem:[%s28119_s5 + $0x10] sm:$0xff] }
 0x6d5   : > { %9870 = vmatpush.bf16.msra.mxu0 %v21632_v62  ;;  %9698 = vmatpush.bf16.msrb.mxu2 %v21664_v8 }
 0x6d6   : > { %v26352_v43 = vadd.f32 %v22372_v53, %v9037_v35  ;;  %9856 = vmatpush.bf16.msrb.mxu3 %v21624_v5  ;;  %9688 = vmatpush.bf16.msrb.mxu1 %v21652_v63 }
 0x6d7   : > { %v9013_v45 = vpop.f32.mrf.mxu3  ;;  %v9029_v25 = vpop.f32.mrf.mxu0 }
 0x6d8   : > { %v22212_v29 = vpop.eup %22211  ;;  %v18386_v33 = vmul.f32 -1.442695, %v26352_v43  ;;  %v9030_v9 = vadd.f32 %v9029_v25, %v9012_v3  ;;  %v21621_v3 = vld [vmem:[%s28119_s5 + $0x8] sm:$0xff] }
 0x6d9   : > { %v9051_v39 = vadd.f32 1.0, %v22212_v29  ;;  %9871 = vmatpush.bf16.msra.mxu0 %v21631_v46  ;;  %9699 = vmatpush.bf16.msrb.mxu2 %v21663_v13  ;;  %v21628_v29 = vld [vmem:[%s28119_s5 + $0x40] sm:$0xff] }
 0x6da   : > { %22213 = vpow2.f32 %v18386_v33  ;;  %v9035_v20 = vadd.f32 %v9030_v9, %v8749_v60  ;;  %9857 = vmatpush.bf16.msrb.mxu3 %v21623_v41  ;;  %v21660_v9 = vld [vmem:[%s28119_s5 + $0x140] sm:$0xff] }
 0x6db   : > { %22215 = vrcp.f32 %v9051_v39  ;;  %v9065_v54 = vand.u32 2147483648, %v9051_v39  ;;  %v9063_v45 = vand.u32 2147483647, %v9051_v39  ;;  %vm9059_vm4 = vweird.f32 %v9051_v39 }
 0x6dc   : > { %v9038_v18 = vmul.f32 %v26300_v24, %v9035_v20 }
 0x6dd   : > { %9700 = vmatpush.bf16.msrb.mxu2 %v21662_v57  ;;  %v9066_v25 = vor.u32 1.1754944e-38, %v9065_v54  ;;  %vm9064_vm7 = vcmp.eq.f32.partialorder %v9063_v45, 8.507059e+37 }
 0x6de   : > { %v26381_v51 = vadd.f32 %v22372_v53, %v9038_v18  ;;  %v21630_v53 = vld [vmem:[%s28119_s5 + $0x50] sm:$0xff]  ;;  %9858 = vmatpush.bf16.msrb.mxu3 %v21622_v19 }
 0x6df   : > { %v9031_v31 = vpop.f32.mrf.mxu0  ;;  %9872 = vmatpush.bf16.msra.mxu0 %v21630_v53 }
 0x6e0   : > { %v22214_v24 = vpop.eup %22213  ;;  %v18387_v56 = vmul.f32 -1.442695, %v26381_v51 }
 0x6e1   : > { %v22216_v23 = vpop.eup %22215  ;;  %v9052_v47 = vadd.f32 1.0, %v22214_v24  ;;  %9701 = vmatpush.bf16.msrb.mxu2 %v21661_v27 }
 0x6e2   : > { %v9055_v34 = vmul.f32 %v22216_v23, %v9051_v39  ;;  %22217 = vpow2.f32 %v18387_v56  ;;  %vm9060_vm3 = vweird.f32 %v22216_v23  ;;  %9859 = vmatpush.bf16.msrb.mxu3 %v21621_v3  ;;  %v21620_v39 = vld [vmem:[%s28119_s5] sm:$0xff] }
 0x6e3   : > { %22219 = vrcp.f32 %v9052_v47  ;;  %9873 = vmatpush.bf16.msra.mxu0 %v21629_v10  ;;  %vm9061_vm5 = vmor %vm9059_vm4, %vm9060_vm3  ;;  %v9080_v5 = vand.u32 2147483648, %v9052_v47  ;;  %v9078_v18 = vand.u32 2147483647, %v9052_v47  ;;  %vm9074_vm9 = vweird.f32 %v9052_v47 }
 0x6e4   : > { %v9056_v22 = vsub.f32 1.0, %v9055_v34 }
 0x6e5   : > { %9702 = vmatpush.bf16.msrb.mxu2 %v21660_v9  ;;  %v9081_v31 = vor.u32 1.1754944e-38, %v9080_v5  ;;  %vm9079_vm11 = vcmp.eq.f32.partialorder %v9078_v18, 8.507059e+37  ;;  %v21641_v9 = vld [vmem:[%s28119_s5 + $0xa8] sm:$0xff] }
 0x6e6   : > { %v9057_v35 = vmul.f32 %v22216_v23, %v9056_v22  ;;  %9860 = vmatpush.bf16.msrb.mxu3 %v21620_v39  ;;  %v21713_v39 = vld [vmem:[%s28116_s2 + $0x168] sm:$0xff] }
 0x6e7   : > { %9874 = vmatpush.bf16.msra.mxu0 %v21628_v29 }
 0x6e8   : > { %v22218_v52 = vpop.eup %22217  ;;  %v9058_v14 = vadd.f32 %v22216_v23, %v9057_v35  ;;  %v21643_v35 = vld [vmem:[%s28119_s5 + $0xb8] sm:$0xff] }
 0x6e9   : > { %v22220_v38 = vpop.eup %22219  ;;  %v9053_v37 = vadd.f32 1.0, %v22218_v52 }
 0x6ea   : > { %v9062_v60 = vsel %vm9061_vm5, %v22216_v23, %v9058_v14  ;;  %v9070_v33 = vmul.f32 %v22220_v38, %v9052_v47  ;;  %vm9075_vm8 = vweird.f32 %v22220_v38 }
 0x6eb   : > { %v9067_v62 = vsel %vm9064_vm7, %v9066_v25, %v9062_v60  ;;  %22221 = vrcp.f32 %v9053_v37  ;;  %vm9076_vm10 = vmor %vm9074_vm9, %vm9075_vm8  ;;  %v9095_v57 = vand.u32 2147483648, %v9053_v37  ;;  %v9093_v54 = vand.u32 2147483647, %v9053_v37  ;;  %v21642_v25 = vld [vmem:[%s28119_s5 + $0xb0] sm:$0xff] }
 0x6ec   : > { %v9071_v20 = vsub.f32 1.0, %v9070_v33  ;;  %v9099_v8 = vmul.f32 %v9067_v62, %v26319_v17  ;;  %vm9089_vm13 = vweird.f32 %v9053_v37 }
 0x6ed   : > { %v9096_v3 = vor.u32 1.1754944e-38, %v9095_v57  ;;  %vm9094_vm15 = vcmp.eq.f32.partialorder %v9093_v54, 8.507059e+37  ;;  %v21711_v57 = vld [vmem:[%s28116_s2 + $0x158] sm:$0xff]  ;;  %v21705_v54 = vld [vmem:[%s28116_s2 + $0x128] sm:$0xff] }
 0x6ee   : > { %v9072_v63 = vmul.f32 %v22220_v38, %v9071_v20  ;;  %v9102_v41 = vsel %vm533_vm6, %v9099_v8, 0.0 }
 0x6ef   : > { %v9105_v53 = vpack.c.bf16 %v9102_v41, %v9102_v41  ;;  %v21712_v41 = vld [vmem:[%s28116_s2 + $0x160] sm:$0xff] }
 0x6f0   : > { %v9073_v46 = vadd.f32 %v22220_v38, %v9072_v63  ;;  %v21640_v63 = vld [vmem:[%s28119_s5 + $0xa0] sm:$0xff] }
 0x6f1   : > { %v22222_v13 = vpop.eup %22221  ;;  %v9110_v47 = vunpack.c.l.b16 %v9105_v53 }
 0x6f2   : > { %v9077_v24 = vsel %vm9076_vm10, %v22220_v38, %v9073_v46  ;;  %v9085_v56 = vmul.f32 %v22222_v13, %v9053_v37  ;;  %vm9090_vm12 = vweird.f32 %v22222_v13  ;;  %v21714_v37 = vld [vmem:[%s28116_s2 + $0x170] sm:$0xff] }
 0x6f3   : > { %v9082_v23 = vsel %vm9079_vm11, %v9081_v31, %v9077_v24  ;;  %vm9091_vm14 = vmor %vm9089_vm13, %vm9090_vm12  ;;  %vm14348_vm12 = vcmask 1043456  }
 0x6f4   : > { %v9100_v17 = vmul.f32 %v9082_v23, %v26352_v43  ;;  %v9086_v34 = vsub.f32 1.0, %v9085_v56  ;;  %v21715_v43 = vld [vmem:[%s28116_s2 + $0x178] sm:$0xff] }
 0x6f5   : > { %v21699_v23 = vld [vmem:[%s28116_s2 + $0xf8] sm:$0xff] }
 0x6f6   : > { %v9106_v19 = vpack.c.bf16 %v9100_v17, %v9100_v17  ;;  %v9087_v22 = vmul.f32 %v22222_v13, %v9086_v34  ;;  %v21639_v17 = vld [vmem:[%s28119_s5 + $0x98] sm:$0xff]  ;;  %v21706_v34 = vld [vmem:[%s28116_s2 + $0x130] sm:$0xff] }
 0x6f8   : > { %v9111_v10 = vunpack.c.l.b16 %v9106_v19  ;;  %v9088_v27 = vadd.f32 %v22222_v13, %v9087_v22  ;;  %v21698_v19 = vld [vmem:[%s28116_s2 + $0xf0] sm:$0xff] }
 0x6f9   : > { %v21638_v22 = vld [vmem:[%s28119_s5 + $0x90] sm:$0xff] }
 0x6fa   : > { %v26427_v45 = vpack.c.b16 %v9111_v10, %v9110_v47  ;;  %v9092_v52 = vsel %vm9091_vm14, %v22222_v13, %v9088_v27  ;;  %v21707_v13 = vld [vmem:[%s28116_s2 + $0x138] sm:$0xff]  ;;  %v21710_v47 = vld [vmem:[%s28116_s2 + $0x150] sm:$0xff]  ;;  %v21637_v10 = vld [vmem:[%s28119_s5 + $0x88] sm:$0xff] }
 0x6fb   : > { %v9097_v14 = vsel %vm9094_vm15, %v9096_v3, %v9092_v52  ;;  %v21704_v27 = vld [vmem:[%s28116_s2 + $0x120] sm:$0xff]  ;;  %v21709_v3 = vld [vmem:[%s28116_s2 + $0x148] sm:$0xff]  ;;  %v21703_v52 = vld [vmem:[%s28116_s2 + $0x118] sm:$0xff] }
 0x6fc   : > { %v9101_v38 = vmul.f32 %v9097_v14, %v26381_v51  ;;  %9334 = vmatmul.bf16.vlgmr.msra.gmra.mxu1 %v26427_v45  ;;  %9675 = vmatmul.bf16.vlgmr.msrb.gmra.mxu0 %v26427_v45  ;;  %v9120_v51 = vshll.u32 %v26427_v45, 16  ;;  %v9130_v8 = vrot.slane %v26427_v45, 1  ;;  %v9118_v18 = vshrl.u32 %v26427_v45, 16  ;;  %v21675_v14 = vld [vmem:[%s28116_s2 + $0x38] sm:$0xff] }
 0x6fd   : > { %9881 = vmatpush.bf16.msra.mxu1 %v21643_v35  ;;  %10171 = vmatpush.bf16.msrb.mxu0 %v21715_v43  ;;  %v21696_v35 = vld [vmem:[%s28116_s2 + $0xe0] sm:$0xff] }
 0x6fe   : > { %v9104_v29 = vsel %vm538_vm2, %v9101_v38, 0.0  ;;  %v9122_v20 = vrot.slane %v9120_v51, 1  ;;  %v21636_v43 = vld [vmem:[%s28119_s5 + $0x80] sm:$0xff]  ;;  %v21695_v38 = vld [vmem:[%s28116_s2 + $0xd8] sm:$0xff]  ;;  %v21673_v51 = vld [vmem:[%s28116_s2 + $0x28] sm:$0xff] }
 0x6ff   : > { %v9107_v60 = vpack.c.bf16 %v9104_v29, %v9104_v29  ;;  %v21674_v29 = vld [vmem:[%s28116_s2 + $0x30] sm:$0xff] }
 0x700   : > { %v9123_v24 = vor.u32 %v9122_v20, %v9118_v18  ;;  %v21683_v20 = vld [vmem:[%s28116_s2 + $0x78] sm:$0xff]  ;;  %v21682_v18 = vld [vmem:[%s28116_s2 + $0x70] sm:$0xff] }
 0x701   : > { %v9115_v33 = vunpack.c.l.b16 %v9107_v60  ;;  %9882 = vmatpush.bf16.msra.mxu1 %v21642_v25  ;;  %10172 = vmatpush.bf16.msrb.mxu0 %v21714_v37  ;;  %v21708_v25 = vld [vmem:[%s28116_s2 + $0x140] sm:$0xff]  ;;  %v21702_v37 = vld [vmem:[%s28116_s2 + $0x110] sm:$0xff] }
 0x702   : > { %v21694_v60 = vld [vmem:[%s28116_s2 + $0xd0] sm:$0xff] }
 0x703   : > { %v9116_v62 = vpack.c.b16 %v9115_v33, %v9115_v33  ;;  %v21693_v33 = vld [vmem:[%s28116_s2 + $0xc8] sm:$0xff] }
 0x705   : > { %9883 = vmatpush.bf16.msra.mxu1 %v21641_v9  ;;  %v9131_v5 = vrot.slane %v9116_v62, 1  ;;  %v9125_v46 = vshll.u32 %v9116_v62, 16  ;;  %10173 = vmatpush.bf16.msrb.mxu0 %v21713_v39  ;;  %v21672_v9 = vld [vmem:[%s28116_s2 + $0x20] sm:$0xff]  ;;  %v21691_v39 = vld [vmem:[%s28116_s2 + $0xb8] sm:$0xff] }
 0x706   : > { %v21692_v62 = vld [vmem:[%s28116_s2 + $0xc0] sm:$0xff] }
 0x707   : > { %v26459_v31 = vsel %vm573_vm1, %v9130_v8, %v9131_v5  ;;  %v9127_v56 = vrot.slane %v9125_v46, 1  ;;  %v21724_v8 = vld [vmem:[%s28116_s2 + $0x1b8] sm:$0xff]  ;;  %v22373_v46 = vld [vmem:[%s26027_s21] sm:$0xff] }
 0x708   : > { %9362 = vmatmul.bf16.vlgmr.msra.gmra.mxu3 %v26459_v31  ;;  %v21671_v5 = vld [vmem:[%s28116_s2 + $0x18] sm:$0xff] }
 0x709   : > { %9884 = vmatpush.bf16.msra.mxu1 %v21640_v63  ;;  %v26466_v53 = vsel %vm555_vm0, %v9123_v24, %v9127_v56  ;;  %10153 = vmatpush.bf16.msra.mxu3 %v21707_v13  ;;  %v21690_v63 = vld [vmem:[%s28116_s2 + $0xb0] sm:$0xff]  ;;  %v21689_v24 = vld [vmem:[%s28116_s2 + $0xa8] sm:$0xff] }
 0x70a   : > { %9348 = vmatmul.bf16.vlgmr.msra.gmra.mxu2 %v26466_v53  ;;  %10174 = vmatpush.bf16.msrb.mxu0 %v21712_v41  ;;  %v21670_v13 = vld [vmem:[%s28116_s2 + $0x10] sm:$0xff]  ;;  %v21681_v56 = vld [vmem:[%s28116_s2 + $0x68] sm:$0xff] }
 0x70b   : > { %10135 = vmatpush.bf16.msra.mxu2 %v21699_v23  ;;  %v21723_v41 = vld [vmem:[%s28116_s2 + $0x1b0] sm:$0xff]  ;;  %v21722_v23 = vld [vmem:[%s28116_s2 + $0x1a8] sm:$0xff] }
 0x70c   : > { %9689 = vmatmul.bf16.vlgmr.msrb.gmra.mxu1 %v26466_v53  ;;  %9875 = vmatmul.bf16.vlgmr.msra.gmra.mxu0 %v25851_v42  ;;  %v21697_v42 = vld [vmem:[%s28116_s2 + $0xe8] sm:$0xff] }
 0x70d   : > { %9885 = vmatpush.bf16.msra.mxu1 %v21639_v17  ;;  %10154 = vmatpush.bf16.msra.mxu3 %v21706_v34  ;;  %v21669_v17 = vld [vmem:[%s28116_s2 + $0x8] sm:$0xff]  ;;  %v21688_v34 = vld [vmem:[%s28116_s2 + $0xa0] sm:$0xff] }
 0x70e   : > { %10175 = vmatpush.bf16.msrb.mxu0 %v21711_v57  ;;  %v21680_v57 = vld [vmem:[%s28116_s2 + $0x60] sm:$0xff] }
 0x70f   : > { %10136 = vmatpush.bf16.msra.mxu2 %v21698_v19  ;;  %v21721_v19 = vld [vmem:[%s28116_s2 + $0x1a0] sm:$0xff] }
 0x711   : > { %9886 = vmatpush.bf16.msra.mxu1 %v21638_v22  ;;  %10155 = vmatpush.bf16.msra.mxu3 %v21705_v54  ;;  %v21668_v22 = vld [vmem:[%s28116_s2] sm:$0xff]  ;;  %v21687_v54 = vld [vmem:[%s28116_s2 + $0x98] sm:$0xff] }
 0x712   : > { %10176 = vmatpush.bf16.msrb.mxu0 %v21710_v47  ;;  %v21732_v47 = vld [vmem:[%s28116_s2 + $0x1f8] sm:$0xff] }
 0x713   : > { %10137 = vmatpush.bf16.msra.mxu2 %v21697_v42  ;;  %v21679_v42 = vld [vmem:[%s28116_s2 + $0x58] sm:$0xff] }
 0x715   : > { %9887 = vmatpush.bf16.msra.mxu1 %v21637_v10  ;;  %10156 = vmatpush.bf16.msra.mxu3 %v21704_v27  ;;  %v21720_v10 = vld [vmem:[%s28116_s2 + $0x198] sm:$0xff]  ;;  %v21686_v27 = vld [vmem:[%s28116_s2 + $0x90] sm:$0xff] }
 0x716   : > { %10177 = vmatpush.bf16.msrb.mxu0 %v21709_v3  ;;  %v21731_v3 = vld [vmem:[%s28116_s2 + $0x1f0] sm:$0xff] }
 0x717   : > { %10138 = vmatpush.bf16.msra.mxu2 %v21696_v35  ;;  %v21678_v35 = vld [vmem:[%s28116_s2 + $0x50] sm:$0xff] }
 0x718   : > { %9861 = vmatmul.bf16.vlgmr.msrb.gmra.mxu3 %v25812_v21  ;;  %v21701_v21 = vld [vmem:[%s28116_s2 + $0x108] sm:$0xff] }
 0x719   : > { %9888 = vmatpush.bf16.msra.mxu1 %v21636_v43  ;;  %10157 = vmatpush.bf16.msra.mxu3 %v21703_v52  ;;  %v22374_v43 = vld [vmem:[%s22599_s30 + $0x54] sm:$0xff] }
 0x71a   : > { %9703 = vmatmul.bf16.vlgmr.msrb.gmra.mxu2 %v26459_v31  ;;  %10178 = vmatpush.bf16.msrb.mxu0 %v21708_v25  ;;  %v21719_v52 = vld [vmem:[%s28116_s2 + $0x190] sm:$0xff]  ;;  %v21677_v25 = vld [vmem:[%s28116_s2 + $0x48] sm:$0xff] }
 0x71b   : > { %10139 = vmatpush.bf16.msra.mxu2 %v21695_v38  ;;  %v21730_v38 = vld [vmem:[%s28116_s2 + $0x1e8] sm:$0xff] }
 0x71c   : > { %9889 = vmatmul.bf16.vlgmr.msra.gmra.mxu1 %v25844_v32  ;;  %v21700_v32 = vld [vmem:[%s28116_s2 + $0x100] sm:$0xff] }
 0x71d   : > { %10333 = vmatpush.bf16.msrb.mxu1 %v21675_v14  ;;  %10158 = vmatpush.bf16.msra.mxu3 %v21702_v37  ;;  %v21685_v14 = vld [vmem:[%s28116_s2 + $0x88] sm:$0xff] }
 0x71e   : > { %10179 = vmatmul.bf16.vlgmr.msrb.gmra.mxu0 %v26107_v30  ;;  %v21718_v37 = vld [vmem:[%s28116_s2 + $0x188] sm:$0xff] }
 0x71f   : > { %10140 = vmatpush.bf16.msra.mxu2 %v21694_v60  ;;  %10615 = vmatpush.bf16.msra.mxu0 %v21724_v8  ;;  %v21729_v60 = vld [vmem:[%s28116_s2 + $0x1e0] sm:$0xff]  ;;  %v21727_v8 = vld [vmem:[%s28116_s2 + $0x1d0] sm:$0xff] }
 0x721   : > { %10334 = vmatpush.bf16.msrb.mxu1 %v21674_v29  ;;  %10159 = vmatpush.bf16.msra.mxu3 %v21701_v21  ;;  %v21684_v29 = vld [vmem:[%s28116_s2 + $0x80] sm:$0xff] }
 0x722   : > { %v21676_v21 = vld [vmem:[%s28116_s2 + $0x40] sm:$0xff] }
 0x723   : > { %10141 = vmatpush.bf16.msra.mxu2 %v21693_v33  ;;  %10616 = vmatpush.bf16.msra.mxu0 %v21723_v41  ;;  %v21717_v33 = vld [vmem:[%s28116_s2 + $0x180] sm:$0xff] }
 0x725   : > { %10335 = vmatpush.bf16.msrb.mxu1 %v21673_v51  ;;  %10160 = vmatpush.bf16.msra.mxu3 %v21700_v32  ;;  %v21740_v51 = vld [vmem:[%s28116_s2 + $0x238] sm:$0xff] }
 0x726   : > { %v21728_v32 = vld [vmem:[%s28116_s2 + $0x1d8] sm:$0xff] }
 0x727   : > { %10142 = vmatpush.bf16.msra.mxu2 %v21692_v62  ;;  %10617 = vmatpush.bf16.msra.mxu0 %v21722_v23  ;;  %v26666_v62 = vld [vmem:[%s26027_s21 + $0xc] sm:$0xff] }
 0x728   : > { %10161 = vmatmul.bf16.vlgmr.msra.gmra.mxu3 %v26088_v6 }
 0x729   : > { %10336 = vmatpush.bf16.msrb.mxu1 %v21672_v9  ;;  %10369 = vmatpush.bf16.msrb.mxu3 %v21691_v39  ;;  %v19018_v9 = vld [vmem:[%s26027_s21 + $0x14] sm:$0x3] }
 0x72a   : > { %10143 = vmatmul.bf16.vlgmr.msra.gmra.mxu2 %v22373_v46  ;;  %v21739_v39 = vld [vmem:[%s28116_s2 + $0x230] sm:$0xff]  ;;  %v10402_v46 = vshrl.u32 %v26666_v62, 16 }
 0x72b   : > { %10351 = vmatpush.bf16.msrb.mxu2 %v21683_v20  ;;  %10618 = vmatpush.bf16.msra.mxu0 %v21721_v19  ;;  %v10396_v20 = vunpack.c.l.b16 %v19018_v9  ;;  %v21733_v19 = vld [vmem:[%s28116_s2 + $0x200] sm:$0xff] }
 0x72c   : > { %v22375_v9 = vld [vmem:[%s28120_s6] ss:$0 sm:$0xff] }
 0x72d   : > { %10337 = vmatpush.bf16.msrb.mxu1 %v21671_v5  ;;  %10370 = vmatpush.bf16.msrb.mxu3 %v21690_v63  ;;  %v21738_v5 = vld [vmem:[%s28116_s2 + $0x228] sm:$0xff]  ;;  %v26678_v63 = vpack.c.b16 %v10396_v20, %v10396_v20 }
 0x72e   : > { %10184 = vmatmul.bf16.gmra.mxu0 %v26101_v15 }
 0x72f   : > { %10352 = vmatpush.bf16.msrb.mxu2 %v21682_v18  ;;  %10619 = vmatpush.bf16.msra.mxu0 %v21720_v10  ;;  %v10404_v18 = vshll.u32 %v26666_v62, 16  ;;  %v10409_v41 = vshll.u32 %v26678_v63, 16 }
 0x731   : > { %10338 = vmatpush.bf16.msrb.mxu1 %v21670_v13  ;;  %10371 = vmatpush.bf16.msrb.mxu3 %v21689_v24  ;;  %v10406_v13 = vrot.slane %v10404_v18, 1  ;;  %v21736_v24 = vld [vmem:[%s28116_s2 + $0x218] sm:$0xff]  ;;  %v10411_v23 = vrot.slane %v10409_v41, 1 }
 0x733   : > { %10353 = vmatpush.bf16.msrb.mxu2 %v21681_v56  ;;  %10620 = vmatpush.bf16.msra.mxu0 %v21719_v52  ;;  %v10407_v56 = vor.u32 %v10406_v13, %v10402_v46 }
 0x735   : > { %10339 = vmatpush.bf16.msrb.mxu1 %v21669_v17  ;;  %10372 = vmatpush.bf16.msrb.mxu3 %v21688_v34  ;;  %v21735_v17 = vld [vmem:[%s28116_s2 + $0x210] sm:$0xff]  ;;  %v26699_v34 = vsel %vm555_vm0, %v10407_v56, %v10411_v23 }
 0x737   : > { %10354 = vmatpush.bf16.msrb.mxu2 %v21680_v57  ;;  %10621 = vmatpush.bf16.msra.mxu0 %v21718_v37  ;;  %v21734_v57 = vld [vmem:[%s28116_s2 + $0x208] sm:$0xff] }
 0x738   : > { %10166 = vmatmul.bf16.gmra.mxu3 %v26103_v44 }
 0x739   : > { %10340 = vmatpush.bf16.msrb.mxu1 %v21668_v22  ;;  %10373 = vmatpush.bf16.msrb.mxu3 %v21687_v54  ;;  %v10413_v22 = vshrl.u32 %v26678_v63, 16  ;;  %v26714_v54 = vrot.slane %v26678_v63, 1 }
 0x73a   : > { %10148 = vmatmul.bf16.gmra.mxu2 %v26068_v50 }
 0x73b   : > { %10355 = vmatpush.bf16.msrb.mxu2 %v21679_v42  ;;  %10622 = vmatpush.bf16.msra.mxu0 %v21717_v33 }
 0x73c   : > { %10341 = vmatmul.bf16.vlgmr.msrb.gmra.mxu1 %v22374_v43 }
 0x73d   : > { %10633 = vmatpush.bf16.msra.mxu1 %v21732_v47  ;;  %10374 = vmatpush.bf16.msrb.mxu3 %v21686_v27  ;;  %v26716_v47 = vor.u32 %v10413_v22, %v10411_v23 }
 0x73e   : > { %10623 = vmatmul.bf16.vlgmr.msra.gmra.mxu0 %v26666_v62 }
 0x73f   : > { %10356 = vmatpush.bf16.msrb.mxu2 %v21678_v35 }
 0x741   : > { %10634 = vmatpush.bf16.msra.mxu1 %v21731_v3  ;;  %10375 = vmatpush.bf16.msrb.mxu3 %v21685_v14 }
 0x743   : > { %10357 = vmatpush.bf16.msrb.mxu2 %v21677_v25 }
 0x745   : > { %10635 = vmatpush.bf16.msra.mxu1 %v21730_v38  ;;  %10376 = vmatpush.bf16.msrb.mxu3 %v21684_v29  ;;  %v8058_v38 = vadd.f32 %v26127_v4, %v26115_v58  ;;  %v22376_v4 = vld [vmem:[%s28121_s7] ss:$0 sm:$0xff] }
 0x747   : > { %10358 = vmatpush.bf16.msrb.mxu2 %v21676_v21  ;;  %v8072_v37 = vadd.f32 %v26133_v40, %v8058_v38 }
 0x748   : > { %10377 = vmatmul.bf16.vlgmr.msrb.gmra.mxu3 %v25477_v26  ;;  %v21726_v26 = vld [vmem:[%s28116_s2 + $0x1c8] sm:$0xff] }
 0x749   : > { %10636 = vmatpush.bf16.msra.mxu1 %v21729_v60  ;;  %v8230_v21 = vadd.f32 %v26131_v49, %v8072_v37 }
 0x74a   : > { %10359 = vmatmul.bf16.vlgmr.msrb.gmra.mxu2 %v25457_v61  ;;  %v21725_v61 = vld [vmem:[%s28116_s2 + $0x1c0] sm:$0xff] }
 0x74b   : > { %10651 = vmatpush.bf16.msra.mxu2 %v21740_v51  ;;  %v8244_v58 = vadd.f32 %v26129_v12, %v8230_v21 }
 0x74c   : > { %10346 = vmatmul.bf16.gmra.mxu1 %v25438_v7  ;;  %v21737_v7 = vld [vmem:[%s28116_s2 + $0x220] sm:$0xff] }
 0x74d   : > { %10637 = vmatpush.bf16.msra.mxu1 %v21728_v32  ;;  %v8258_v49 = vadd.f32 %v26151_v48, %v8244_v58 }
 0x74e   : > { %10628 = vmatmul.bf16.gmra.mxu0 %v26678_v63 }
 0x74f   : > { %10652 = vmatpush.bf16.msra.mxu2 %v21739_v39 }
 0x751   : > { %10638 = vmatpush.bf16.msra.mxu1 %v21727_v8 }
 0x753   : > { %10653 = vmatpush.bf16.msra.mxu2 %v21738_v5 }
 0x755   : > { %10639 = vmatpush.bf16.msra.mxu1 %v21726_v26 }
 0x757   : > { %10654 = vmatpush.bf16.msra.mxu2 %v21737_v7 }
 0x758   : > { %10382 = vmatmul.bf16.gmra.mxu3 %v25471_v36  ;;  %v10418_v36 = vrot.slane %v26666_v62, 1 }
 0x759   : > { %10640 = vmatpush.bf16.msra.mxu1 %v21725_v61 }
 0x75a   : > { %10364 = vmatmul.bf16.gmra.mxu2 %v25473_v55  ;;  %v26720_v42 = vsel %vm573_vm1, %v10418_v36, %v26714_v54 }
 0x75b   : > { %10655 = vmatpush.bf16.msra.mxu2 %v21736_v24 }
 0x75c   : > { %10641 = vmatmul.bf16.vlgmr.msra.gmra.mxu1 %v26699_v34 }
 0x75f   : > { %10656 = vmatpush.bf16.msra.mxu2 %v21735_v17 }
 0x763   : > { %10657 = vmatpush.bf16.msra.mxu2 %v21734_v57 }
 0x767   : > { %10658 = vmatpush.bf16.msra.mxu2 %v21733_v19 }
 0x76a   : > { %10659 = vmatmul.bf16.vlgmr.msra.gmra.mxu2 %v26720_v42 }
 0x76c   : > { %10646 = vmatmul.bf16.gmra.mxu1 %v26716_v47 }
 0x779   : > { %v9335_v55 = vpop.f32.mrf.mxu1  ;;  %v9676_v10 = vpop.f32.mrf.mxu0 }
 0x77a   : > { %10664 = vmatmul.bf16.gmra.mxu2 %v26714_v54 }
 0x781   : > { %v9337_v27 = vpop.f32.mrf.mxu1  ;;  %v26725_v3 = vpop.f32.mrf.mxu0 }
 0x789   : > { %v9690_v35 = vpop.f32.mrf.mxu1  ;;  %v9876_v43 = vpop.f32.mrf.mxu0 }
 0x78a   : > { %v9691_v52 = vadd.f32 %v9690_v35, %v9676_v10 }
 0x78b   : > { %v9363_v14 = vpop.f32.mrf.mxu3 }
 0x78d   : > { %v9349_v25 = vpop.f32.mrf.mxu2 }
 0x78e   : > { %v9350_v29 = vadd.f32 %v9349_v25, %v9335_v55 }
 0x790   : > { %v9364_v60 = vadd.f32 %v9363_v14, %v9350_v29 }
 0x791   : > { %v26732_v33 = vpop.f32.mrf.mxu0  ;;  %v26742_v5 = vpop.f32.mrf.mxu1 }
 0x792   : > { %v9368_v51 = vadd.f32 %v9364_v60, %v26135_v28 }
 0x793   : > { %v9365_v32 = vpop.f32.mrf.mxu3 }
 0x794   : > { %v9370_v39 = vmul.f32 %v22375_v9, %v9368_v51 }
 0x795   : > { %v9351_v20 = vpop.f32.mrf.mxu2 }
 0x796   : > { %v9372_v40 = vadd.f32 %v22376_v4, %v9370_v39  ;;  %v9352_v8 = vadd.f32 %v9351_v20, %v9337_v27 }
 0x798   : > { %v18532_v28 = vmul.f32 -1.442695, %v9372_v40  ;;  %v9366_v18 = vadd.f32 %v9365_v32, %v9352_v8 }
 0x799   : > { %v9890_v57 = vpop.f32.mrf.mxu1 }
 0x79a   : > { %22223 = vpow2.f32 %v18532_v28  ;;  %v9369_v26 = vadd.f32 %v9366_v18, %v8258_v49 }
 0x79b   : > { %v9862_v7 = vpop.f32.mrf.mxu3  ;;  %v10180_v46 = vpop.f32.mrf.mxu0 }
 0x79c   : > { %v9371_v13 = vmul.f32 %v22375_v9, %v9369_v26 }
 0x79d   : > { %v9704_v41 = vpop.f32.mrf.mxu2 }
 0x79e   : > { %v9373_v61 = vadd.f32 %v22376_v4, %v9371_v13  ;;  %v9705_v12 = vadd.f32 %v9704_v41, %v9691_v52 }
 0x7a0   : > { %v22224_v24 = vpop.eup %22223  ;;  %v18533_v56 = vmul.f32 -1.442695, %v9373_v61  ;;  %v9863_v23 = vadd.f32 %v9862_v7, %v9705_v12 }
 0x7a1   : > { %v9380_v17 = vadd.f32 1.0, %v22224_v24  ;;  %v26754_v21 = vpop.f32.mrf.mxu1 }
 0x7a2   : > { %22225 = vpow2.f32 %v18533_v56  ;;  %v9877_v19 = vadd.f32 %v9876_v43, %v9863_v23 }
 0x7a3   : > { %22227 = vrcp.f32 %v9380_v17  ;;  %v26744_v48 = vpop.f32.mrf.mxu3  ;;  %v26746_v22 = vpop.f32.mrf.mxu0  ;;  %v9393_v37 = vand.u32 2147483648, %v9380_v17  ;;  %v9391_v60 = vand.u32 2147483647, %v9380_v17  ;;  %vm9387_vm4 = vweird.f32 %v9380_v17 }
 0x7a4   : > { %v26748_v36 = vadd.f32 %v9890_v57, %v9877_v19 }
 0x7a5   : > { %v26750_v55 = vpop.f32.mrf.mxu2  ;;  %v9394_v20 = vor.u32 1.1754944e-38, %v9393_v37  ;;  %vm9392_vm7 = vcmp.eq.f32.partialorder %v9391_v60, 8.507059e+37 }
 0x7a8   : > { %v22226_v10 = vpop.eup %22225 }
 0x7a9   : > { %v22228_v27 = vpop.eup %22227  ;;  %v9381_v35 = vadd.f32 1.0, %v22226_v10 }
 0x7aa   : > { %v9383_v52 = vmul.f32 %v22228_v27, %v9380_v17  ;;  %vm9388_vm3 = vweird.f32 %v22228_v27 }
 0x7ab   : > { %22229 = vrcp.f32 %v9381_v35  ;;  %v10162_v14 = vpop.f32.mrf.mxu3  ;;  %v26752_v38 = vpop.f32.mrf.mxu0  ;;  %vm9389_vm5 = vmor %vm9387_vm4, %vm9388_vm3  ;;  %v9408_v7 = vand.u32 2147483648, %v9381_v35  ;;  %v9406_v12 = vand.u32 2147483647, %v9381_v35  ;;  %vm9402_vm9 = vweird.f32 %v9381_v35 }
 0x7ac   : > { %v9384_v25 = vsub.f32 1.0, %v9383_v52 }
 0x7ad   : > { %v10144_v43 = vpop.f32.mrf.mxu2  ;;  %v9409_v23 = vor.u32 1.1754944e-38, %v9408_v7  ;;  %vm9407_vm11 = vcmp.eq.f32.partialorder %v9406_v12, 8.507059e+37  ;;  %v21745_v12 = vld [vmem:[%s28119_s5 + $0x1a0] sm:$0xff] }
 0x7ae   : > { %v9385_v29 = vmul.f32 %v22228_v27, %v9384_v25  ;;  %v10163_v51 = vadd.f32 %v10162_v14, %v10144_v43 }
 0x7b0   : > { %v9386_v32 = vadd.f32 %v22228_v27, %v9385_v29  ;;  %v26756_v9 = vadd.f32 %v10180_v46, %v10163_v51 }
 0x7b1   : > { %v22230_v39 = vpop.eup %22229 }
 0x7b2   : > { %v9390_v58 = vsel %vm9389_vm5, %v22228_v27, %v9386_v32  ;;  %v9398_v4 = vmul.f32 %v22230_v39, %v9381_v35  ;;  %vm9403_vm8 = vweird.f32 %v22230_v39 }
 0x7b3   : > { %v9395_v8 = vsel %vm9392_vm7, %v9394_v20, %v9390_v58  ;;  %v26758_v49 = vpop.f32.mrf.mxu3  ;;  %v10187_v28 = vpop.f32.mrf.mxu0  ;;  %vm9404_vm10 = vmor %vm9402_vm9, %vm9403_vm8 }
 0x7b4   : > { %v9412_v18 = vmul.f32 %v9395_v8, %v9372_v40  ;;  %v9399_v26 = vsub.f32 1.0, %v9398_v4 }
 0x7b5   : > { %v26760_v13 = vpop.f32.mrf.mxu2 }
 0x7b6   : > { %18534 = vst [vmem:[%s24309_s23 + $0x40] sm:$0xff] %v9412_v18  ;;  %v26764_v46 = vadd.f32 %v9412_v18, %v26147_v11  ;;  %v9400_v41 = vmul.f32 %v22230_v39, %v9399_v26  ;;  %v21746_v26 = vld [vmem:[%s28119_s5 + $0x1a8] sm:$0xff] }
 0x7b8   : > { %v9401_v56 = vadd.f32 %v22230_v39, %v9400_v41  ;;  %v21796_v41 = vld [vmem:[%s28119_s5 + $0xf8] sm:$0xff] }
 0x7b9   : > { %v26766_v24 = vpop.f32.mrf.mxu1  ;;  %11303 = vmatpush.bf16.msrb.mxu2 %v21796_v41  ;;  %v21753_v41 = vld [vmem:[%s28119_s5 + $0x1e0] sm:$0xff] }
 0x7ba   : > { %v9405_v17 = vsel %vm9404_vm10, %v22230_v39, %v9401_v56 }
 0x7bb   : > { %v9410_v40 = vsel %vm9407_vm11, %v9409_v23, %v9405_v17  ;;  %v26768_v57 = vpop.f32.mrf.mxu3  ;;  %v26778_v29 = vpop.f32.mrf.mxu0  ;;  %v21756_v17 = vld [vmem:[%s28119_s5 + $0x1f8] sm:$0xff] }
 0x7bc   : > { %v9413_v19 = vmul.f32 %v9410_v40, %v9373_v61  ;;  %v21748_v61 = vld [vmem:[%s28119_s5 + $0x1b8] sm:$0xff]  ;;  %10976 = vmatpush.bf16.msrb.mxu0 %v21756_v17 }
 0x7bd   : > { %v26770_v10 = vpop.f32.mrf.mxu2  ;;  %10962 = vmatpush.bf16.msra.mxu3 %v21748_v61  ;;  %v21764_v40 = vld [vmem:[%s28119_s5 + $0x238] sm:$0xff] }
 0x7be   : > { %18535 = vst [vmem:[%s24309_s23 + $0x48] sm:$0xff] %v9413_v19  ;;  %v26774_v11 = vadd.f32 %v9413_v19, %v26159_v59  ;;  %v9419_v27 = vadd.f32 %v9413_v19, %v9412_v18  ;;  %v21747_v59 = vld [vmem:[%s28119_s5 + $0x1b0] sm:$0xff]  ;;  %10990 = vmatpush.bf16.msrb.mxu1 %v21764_v40  ;;  %v21792_v17 = vld [vmem:[%s28119_s5 + $0xd8] sm:$0xff]  ;;  %v21741_v40 = vld [vmem:[%s28119_s5 + $0x180] sm:$0xff] }
 0x7bf   : > { %v21795_v19 = vld [vmem:[%s28119_s5 + $0xf0] sm:$0xff] }
 0x7c0   : > { %v9420_v14 = vrot.slane %v9419_v27, 4  ;;  %11304 = vmatpush.bf16.msrb.mxu2 %v21795_v19 }
 0x7c1   : > { %v26776_v52 = vpop.f32.mrf.mxu1  ;;  %10963 = vmatpush.bf16.msra.mxu3 %v21747_v59 }
 0x7c2   : > { %v9421_v25 = vadd.f32 %v9420_v14, %v9419_v27  ;;  %v21744_v27 = vld [vmem:[%s28119_s5 + $0x198] sm:$0xff] }
 0x7c3   : > { %v10169_v35 = vpop.f32.mrf.mxu3  ;;  %v26793_v8 = vpop.f32.mrf.mxu0 }
 0x7c4   : > { %v9422_v37 = vrot.slane %v9421_v25, 2  ;;  %v21763_v35 = vld [vmem:[%s28119_s5 + $0x230] sm:$0xff] }
 0x7c5   : > { %v10151_v43 = vpop.f32.mrf.mxu2  ;;  %10964 = vmatpush.bf16.msra.mxu3 %v21746_v26  ;;  %10991 = vmatpush.bf16.msrb.mxu1 %v21763_v35  ;;  %v21752_v35 = vld [vmem:[%s28119_s5 + $0x1d8] sm:$0xff] }
 0x7c6   : > { %v9423_v60 = vadd.f32 %v9422_v37, %v9421_v25  ;;  %v21755_v25 = vld [vmem:[%s28119_s5 + $0x1f0] sm:$0xff]  ;;  %v21794_v37 = vld [vmem:[%s28119_s5 + $0xe8] sm:$0xff] }
 0x7c7   : > { %v21743_v43 = vld [vmem:[%s28119_s5 + $0x190] sm:$0xff]  ;;  %10977 = vmatpush.bf16.msrb.mxu0 %v21755_v25  ;;  %11305 = vmatpush.bf16.msrb.mxu2 %v21794_v37  ;;  %v21760_v37 = vld [vmem:[%s28119_s5 + $0x218] sm:$0xff] }
 0x7c8   : > { %v9424_v32 = vrot.slane %v9423_v60, 1 }
 0x7c9   : > { %v26783_v51 = vpop.f32.mrf.mxu1  ;;  %10965 = vmatpush.bf16.msra.mxu3 %v21745_v12  ;;  %v21761_v12 = vld [vmem:[%s28119_s5 + $0x220] sm:$0xff] }
 0x7ca   : > { %v9425_v39 = vadd.f32 %v9424_v32, %v9423_v60  ;;  %v21754_v32 = vld [vmem:[%s28119_s5 + $0x1e8] sm:$0xff] }
 0x7cb   : > { %v26788_v20 = vpop.f32.mrf.mxu3  ;;  %10978 = vmatpush.bf16.msrb.mxu0 %v21754_v32  ;;  %v21803_v32 = vld [vmem:[%s28119_s5 + $0x130] sm:$0xff] }
 0x7cc   : > { %v9426_v58 = vmul.f32 %v9425_v39, %v25553_v2  ;;  %v21762_v39 = vld [vmem:[%s28119_s5 + $0x228] sm:$0xff] }
 0x7cd   : > { %v26791_v4 = vpop.f32.mrf.mxu2  ;;  %10966 = vmatpush.bf16.msra.mxu3 %v21744_v27  ;;  %10992 = vmatpush.bf16.msrb.mxu1 %v21762_v39  ;;  %v21804_v27 = vld [vmem:[%s28119_s5 + $0x138] sm:$0xff]  ;;  %v10165_v39 = vadd.f32 %v26758_v49, %v26760_v13  ;;  %v21802_v49 = vld [vmem:[%s28119_s5 + $0x128] sm:$0xff] }
 0x7ce   : > { %v26796_v28 = vsel %vm14348_vm12, %v26177_v16, %v9426_v58  ;;  %v26811_v16 = vpop.f32.mrf.mxu0  ;;  %v21793_v58 = vld [vmem:[%s28119_s5 + $0xe0] sm:$0xff] }
 0x7cf   : > { %11306 = vmatpush.bf16.msrb.mxu2 %v21793_v58  ;;  %10979 = vmatpush.bf16.msrb.mxu0 %v21753_v41  ;;  %v10183_v13 = vadd.f32 %v26746_v22, %v10165_v39  ;;  %v21812_v39 = vld [vmem:[%s28119_s5 + $0x178] sm:$0xff] }
 0x7d1   : > { %v10349_v18 = vpop.f32.mrf.mxu1  ;;  %10967 = vmatpush.bf16.msra.mxu3 %v21743_v43  ;;  %10993 = vmatpush.bf16.msrb.mxu1 %v21761_v12  ;;  %v21791_v43 = vld [vmem:[%s28119_s5 + $0xd0] sm:$0xff]  ;;  %v21750_v12 = vld [vmem:[%s28119_s5 + $0x1c8] sm:$0xff]  ;;  %v10345_v22 = vadd.f32 %v26776_v52, %v10183_v13  ;;  %v22377_v52 = vld [vmem:[%s28117_s3] ss:$0 sm:$0xff] }
 0x7d2   : > { %v21742_v18 = vld [vmem:[%s28119_s5 + $0x188] sm:$0xff] }
 0x7d3   : > { %v26801_v7 = vpop.f32.mrf.mxu3  ;;  %11307 = vmatpush.bf16.msrb.mxu2 %v21792_v17  ;;  %10980 = vmatpush.bf16.msrb.mxu0 %v21752_v35  ;;  %v21758_v17 = vld [vmem:[%s28119_s5 + $0x208] sm:$0xff]  ;;  %v10168_v35 = vadd.f32 %v26768_v57, %v26770_v10  ;;  %v22378_v10 = vld [vmem:[%s28118_s4] ss:$0 sm:$0xff] }
 0x7d5   : > { %v26809_v56 = vpop.f32.mrf.mxu2  ;;  %10968 = vmatpush.bf16.msra.mxu3 %v21742_v18  ;;  %10994 = vmatpush.bf16.msrb.mxu1 %v21760_v37 }
 0x7d6   : > { %v10631_v60 = vpop.f32.mrf.mxu0  ;;  %v10363_v37 = vadd.f32 %v26809_v56, %v10345_v22  ;;  %v21770_v22 = vld [vmem:[%s28119_s5 + $0x28] sm:$0xff] }
 0x7d7   : > { %v10343_v60 = vadd.f32 %v26766_v24, %v26756_v9  ;;  %11308 = vmatpush.bf16.msrb.mxu2 %v21791_v43  ;;  %v21759_v9 = vld [vmem:[%s28119_s5 + $0x210] sm:$0xff]  ;;  %v21790_v24 = vld [vmem:[%s28119_s5 + $0xc8] sm:$0xff] }
 0x7d9   : > { %v10642_v23 = vpop.f32.mrf.mxu1  ;;  %10969 = vmatpush.bf16.msra.mxu3 %v21741_v40  ;;  %v10361_v58 = vadd.f32 %v26791_v4, %v10343_v60  ;;  %10995 = vmatpush.bf16.msrb.mxu1 %v21759_v9  ;;  %v21789_v40 = vld [vmem:[%s28119_s5 + $0xc0] sm:$0xff]  ;;  %v10381_v9 = vadd.f32 %v26801_v7, %v10363_v37  ;;  %v21778_v7 = vld [vmem:[%s28119_s5 + $0x68] sm:$0xff] }
 0x7da   : > { %v10643_v18 = vadd.f32 %v10642_v23, %v26778_v29  ;;  %v21749_v60 = vld [vmem:[%s28119_s5 + $0x1c0] sm:$0xff] }
 0x7db   : > { %v26825_v14 = vpop.f32.mrf.mxu3  ;;  %v10379_v29 = vadd.f32 %v26788_v20, %v10361_v58  ;;  %11309 = vmatpush.bf16.msrb.mxu2 %v21790_v24  ;;  %v21780_v20 = vld [vmem:[%s28119_s5 + $0x78] sm:$0xff] }
 0x7dc   : > { %v21772_v58 = vld [vmem:[%s28119_s5 + $0x38] sm:$0xff] }
 0x7dd   : > { %v26839_v61 = vpop.f32.mrf.mxu2  ;;  %11317 = vmatpush.bf16.msrb.mxu3 %v21804_v27  ;;  %10996 = vmatpush.bf16.msrb.mxu1 %v21758_v17  ;;  %v21801_v27 = vld [vmem:[%s28119_s5 + $0x120] sm:$0xff] }
 0x7df   : > { %11310 = vmatpush.bf16.msrb.mxu2 %v21789_v40  ;;  %v21810_v40 = vld [vmem:[%s28119_s5 + $0x168] sm:$0xff] }
 0x7e1   : > { %v26841_v59 = vpop.f32.mrf.mxu1  ;;  %11318 = vmatpush.bf16.msrb.mxu3 %v21803_v32  ;;  %v21757_v32 = vld [vmem:[%s28119_s5 + $0x200] sm:$0xff] }
 0x7e2   : > { %v10645_v57 = vadd.f32 %v26841_v59, %v26793_v8  ;;  %10997 = vmatpush.bf16.msrb.mxu1 %v21757_v32  ;;  %v21800_v8 = vld [vmem:[%s28119_s5 + $0x118] sm:$0xff]  ;;  %v10186_v59 = vadd.f32 %v26752_v38, %v10168_v35  ;;  %v21771_v38 = vld [vmem:[%s28119_s5 + $0x30] sm:$0xff]  ;;  %v21769_v32 = vld [vmem:[%s28119_s5 + $0x20] sm:$0xff] }
 0x7e3   : > { %v10385_v26 = vpop.f32.mrf.mxu3  ;;  %11503 = vmatpush.bf16.msra.mxu2 %v21780_v20 }
 0x7e4   : > { %v21751_v26 = vld [vmem:[%s28119_s5 + $0x1d0] sm:$0xff] }
 0x7e5   : > { %v10367_v19 = vpop.f32.mrf.mxu2  ;;  %10981 = vmatpush.bf16.msrb.mxu0 %v21751_v26  ;;  %11319 = vmatpush.bf16.msrb.mxu3 %v21802_v49  ;;  %v10348_v49 = vadd.f32 %v26783_v51, %v10186_v59 }
 0x7e6   : > { %11489 = vmatpush.bf16.msra.mxu1 %v21772_v58 }
 0x7e7   : > { %v10366_v51 = vadd.f32 %v26839_v61, %v10348_v49  ;;  %v21777_v61 = vld [vmem:[%s28119_s5 + $0x60] sm:$0xff]  ;;  %v21807_v49 = vld [vmem:[%s28119_s5 + $0x150] sm:$0xff] }
 0x7e9   : > { %v26870_v25 = vpop.f32.mrf.mxu1  ;;  %10982 = vmatpush.bf16.msrb.mxu0 %v21750_v12  ;;  %11320 = vmatpush.bf16.msrb.mxu3 %v21801_v27  ;;  %v10384_v20 = vadd.f32 %v26825_v14, %v10366_v51  ;;  %v21776_v14 = vld [vmem:[%s28119_s5 + $0x58] sm:$0xff]  ;;  %v21766_v51 = vld [vmem:[%s28119_s5 + $0x8] sm:$0xff] }
 0x7ea   : > { %11490 = vmatpush.bf16.msra.mxu1 %v21771_v38 }
 0x7ed   : > { %v10660_v41 = vpop.f32.mrf.mxu2  ;;  %10983 = vmatpush.bf16.msrb.mxu0 %v21749_v60  ;;  %11321 = vmatpush.bf16.msrb.mxu3 %v21800_v8  ;;  %v21809_v60 = vld [vmem:[%s28119_s5 + $0x160] sm:$0xff]  ;;  %v21775_v8 = vld [vmem:[%s28119_s5 + $0x50] sm:$0xff] }
 0x7ee   : > { %v10661_v4 = vadd.f32 %v10660_v41, %v10643_v18  ;;  %v21779_v18 = vld [vmem:[%s28119_s5 + $0x70] sm:$0xff]  ;;  %11491 = vmatpush.bf16.msra.mxu1 %v21770_v22 }
 0x7ef   : > { %11504 = vmatpush.bf16.msra.mxu2 %v21779_v18  ;;  %v21808_v18 = vld [vmem:[%s28119_s5 + $0x158] sm:$0xff] }
 0x7f0   : > { %v10669_v19 = vadd.f32 %v10661_v4, %v10379_v29  ;;  %v21811_v29 = vld [vmem:[%s28119_s5 + $0x170] sm:$0xff] }
 0x7f1   : > { %v10649_v23 = vpop.f32.mrf.mxu1  ;;  %11331 = vmatpush.bf16.msra.mxu0 %v21812_v39  ;;  %v21799_v4 = vld [vmem:[%s28119_s5 + $0x110] sm:$0xff] }
 0x7f2   : > { %v10672_v43 = vmul.f32 %v22377_v52, %v10669_v19  ;;  %v10648_v23 = vadd.f32 %v26870_v25, %v26811_v16  ;;  %11322 = vmatpush.bf16.msrb.mxu3 %v21799_v4  ;;  %v21798_v25 = vld [vmem:[%s28119_s5 + $0x108] sm:$0xff]  ;;  %11492 = vmatpush.bf16.msra.mxu1 %v21769_v32 }
 0x7f3   : > { %11505 = vmatpush.bf16.msra.mxu2 %v21778_v7  ;;  %v21806_v4 = vld [vmem:[%s28119_s5 + $0x148] sm:$0xff] }
 0x7f4   : > { %v26937_v56 = vadd.f32 %v22378_v10, %v10672_v43 }
 0x7f5   : > { %v10662_v26 = vpop.f32.mrf.mxu2  ;;  %11332 = vmatpush.bf16.msra.mxu0 %v21811_v29  ;;  %v21774_v29 = vld [vmem:[%s28119_s5 + $0x48] sm:$0xff] }
 0x7f6   : > { %v19167_v24 = vmul.f32 -1.442695, %v26937_v56  ;;  %v10663_v41 = vadd.f32 %v10662_v26, %v10645_v57  ;;  %11323 = vmatpush.bf16.msrb.mxu3 %v21798_v25  ;;  %v21797_v57 = vld [vmem:[%s28119_s5 + $0x100] sm:$0xff]  ;;  %v21768_v26 = vld [vmem:[%s28119_s5 + $0x18] sm:$0xff] }
 0x7f7   : > { %11506 = vmatpush.bf16.msra.mxu2 %v21777_v61  ;;  %11493 = vmatpush.bf16.msra.mxu1 %v21768_v26 }
 0x7f8   : > { %22231 = vpow2.f32 %v19167_v24  ;;  %v10670_v13 = vadd.f32 %v10663_v41, %v10381_v9 }
 0x7f9   : > { %11333 = vmatpush.bf16.msra.mxu0 %v21810_v40 }
 0x7fa   : > { %v10673_v12 = vmul.f32 %v22377_v52, %v10670_v13  ;;  %11324 = vmatpush.bf16.msrb.mxu3 %v21797_v57  ;;  %v21767_v13 = vld [vmem:[%s28119_s5 + $0x10] sm:$0xff] }
 0x7fb   : > { %11507 = vmatpush.bf16.msra.mxu2 %v21776_v14  ;;  %11494 = vmatpush.bf16.msra.mxu1 %v21767_v13 }
 0x7fc   : > { %v26970_v17 = vadd.f32 %v22378_v10, %v10673_v12 }
 0x7fd   : > { %v10665_v16 = vpop.f32.mrf.mxu2  ;;  %11334 = vmatpush.bf16.msra.mxu0 %v21809_v60 }
 0x7fe   : > { %v22232_v19 = vpop.eup %22231  ;;  %v19168_v27 = vmul.f32 -1.442695, %v26970_v17  ;;  %v10666_v35 = vadd.f32 %v10665_v16, %v10648_v23  ;;  %v21773_v23 = vld [vmem:[%s28119_s5 + $0x40] sm:$0xff] }
 0x7ff   : > { %v10687_v37 = vadd.f32 1.0, %v22232_v19  ;;  %11508 = vmatpush.bf16.msra.mxu2 %v21775_v8  ;;  %11495 = vmatpush.bf16.msra.mxu1 %v21766_v51 }
 0x800   : > { %22233 = vpow2.f32 %v19168_v27  ;;  %v10671_v43 = vadd.f32 %v10666_v35, %v10384_v20  ;;  %v21805_v35 = vld [vmem:[%s28119_s5 + $0x140] sm:$0xff] }
 0x801   : > { %22235 = vrcp.f32 %v10687_v37  ;;  %11335 = vmatpush.bf16.msra.mxu0 %v21808_v18  ;;  %v10701_v7 = vand.u32 2147483648, %v10687_v37  ;;  %v10699_v40 = vand.u32 2147483647, %v10687_v37  ;;  %vm10695_vm14 = vweird.f32 %v10687_v37 }
 0x802   : > { %v10674_v39 = vmul.f32 %v22377_v52, %v10671_v43  ;;  %v21765_v43 = vld [vmem:[%s28119_s5] sm:$0xff] }
 0x803   : > { %11509 = vmatpush.bf16.msra.mxu2 %v21774_v29  ;;  %v10702_v25 = vor.u32 1.1754944e-38, %v10701_v7  ;;  %vm10700_vm3 = vcmp.eq.f32.partialorder %v10699_v40, 8.507059e+37  ;;  %11496 = vmatpush.bf16.msra.mxu1 %v21765_v43  ;;  %v21786_v43 = vld [vmem:[%s28119_s5 + $0xa8] sm:$0xff] }
 0x804   : > { %v26998_v58 = vadd.f32 %v22378_v10, %v10674_v39 }
 0x805   : > { %v10667_v59 = vpop.f32.mrf.mxu2  ;;  %11336 = vmatpush.bf16.msra.mxu0 %v21807_v49 }
 0x806   : > { %v22234_v52 = vpop.eup %22233  ;;  %v19169_v9 = vmul.f32 -1.442695, %v26998_v58 }
 0x807   : > { %v22236_v10 = vpop.eup %22235  ;;  %v10688_v24 = vadd.f32 1.0, %v22234_v52  ;;  %11510 = vmatpush.bf16.msra.mxu2 %v21773_v23 }
 0x808   : > { %v10691_v41 = vmul.f32 %v22236_v10, %v10687_v37  ;;  %22237 = vpow2.f32 %v19169_v9  ;;  %vm10696_vm13 = vweird.f32 %v22236_v10 }
 0x809   : > { %22239 = vrcp.f32 %v10688_v24  ;;  %11337 = vmatpush.bf16.msra.mxu0 %v21806_v4  ;;  %vm10697_vm15 = vmor %vm10695_vm14, %vm10696_vm13  ;;  %v10716_v14 = vand.u32 2147483648, %v10688_v24  ;;  %v10714_v39 = vand.u32 2147483647, %v10688_v24  ;;  %vm10710_vm5 = vweird.f32 %v10688_v24 }
 0x80a   : > { %v10692_v38 = vsub.f32 1.0, %v10691_v41 }
 0x80b   : > { %v10717_v59 = vor.u32 1.1754944e-38, %v10716_v14  ;;  %vm10715_vm8 = vcmp.eq.f32.partialorder %v10714_v39, 8.507059e+37  ;;  %v21785_v39 = vld [vmem:[%s28119_s5 + $0xa0] sm:$0xff] }
 0x80c   : > { %v10693_v12 = vmul.f32 %v22236_v10, %v10692_v38 }
 0x80d   : > { %11338 = vmatpush.bf16.msra.mxu0 %v21805_v35 }
 0x80e   : > { %v22238_v22 = vpop.eup %22237  ;;  %v10694_v61 = vadd.f32 %v22236_v10, %v10693_v12  ;;  %v21788_v12 = vld [vmem:[%s28119_s5 + $0xb8] sm:$0xff] }
 0x80f   : > { %v22240_v16 = vpop.eup %22239  ;;  %v10689_v19 = vadd.f32 1.0, %v22238_v22 }
 0x810   : > { %v10698_v20 = vsel %vm10697_vm15, %v22236_v10, %v10694_v61  ;;  %v10706_v27 = vmul.f32 %v22240_v16, %v10688_v24  ;;  %vm10711_vm4 = vweird.f32 %v22240_v16 }
 0x811   : > { %v10703_v60 = vsel %vm10700_vm3, %v10702_v25, %v10698_v20  ;;  %22241 = vrcp.f32 %v10689_v19  ;;  %vm10712_vm7 = vmor %vm10710_vm5, %vm10711_vm4  ;;  %v10731_v13 = vand.u32 2147483648, %v10689_v19  ;;  %v10729_v7 = vand.u32 2147483647, %v10689_v19  ;;  %v21787_v25 = vld [vmem:[%s28119_s5 + $0xb0] sm:$0xff] }
 0x812   : > { %v10707_v37 = vsub.f32 1.0, %v10706_v27  ;;  %v10735_v32 = vmul.f32 %v10703_v60, %v26937_v56  ;;  %vm10725_vm10 = vweird.f32 %v10689_v19  ;;  %v21858_v60 = vld [vmem:[%s28116_s2 + $0x168] sm:$0xff] }
 0x813   : > { %v10732_v23 = vor.u32 1.1754944e-38, %v10731_v13  ;;  %vm10730_vm12 = vcmp.eq.f32.partialorder %v10729_v7, 8.507059e+37  ;;  %v21851_v13 = vld [vmem:[%s28116_s2 + $0x130] sm:$0xff] }
 0x814   : > { %v10708_v57 = vmul.f32 %v22240_v16, %v10707_v37  ;;  %v10738_v8 = vsel %vm533_vm6, %v10735_v32, 0.0  ;;  %v21783_v7 = vld [vmem:[%s28119_s5 + $0x90] sm:$0xff] }
 0x815   : > { %v10741_v41 = vpack.c.bf16 %v10738_v8, %v10738_v8  ;;  %v21852_v8 = vld [vmem:[%s28116_s2 + $0x138] sm:$0xff] }
 0x816   : > { %v10709_v18 = vadd.f32 %v22240_v16, %v10708_v57 }
 0x817   : > { %v22242_v26 = vpop.eup %22241  ;;  %v10746_v24 = vunpack.c.l.b16 %v10741_v41  ;;  %v21844_v41 = vld [vmem:[%s28116_s2 + $0xf8] sm:$0xff] }
 0x818   : > { %v10713_v52 = vsel %vm10712_vm7, %v22240_v16, %v10709_v18  ;;  %v10721_v9 = vmul.f32 %v22242_v26, %v10689_v19  ;;  %vm10726_vm9 = vweird.f32 %v22242_v26  ;;  %v21859_v19 = vld [vmem:[%s28116_s2 + $0x170] sm:$0xff] }
 0x819   : > { %v10718_v10 = vsel %vm10715_vm8, %v10717_v59, %v10713_v52  ;;  %vm10727_vm11 = vmor %vm10725_vm10, %vm10726_vm9  ;;  %v21857_v59 = vld [vmem:[%s28116_s2 + $0x160] sm:$0xff]  ;;  %vm14350_vm9 = vcmask 1044480  }
 0x81a   : > { %v10736_v49 = vmul.f32 %v10718_v10, %v26970_v17  ;;  %v10722_v56 = vsub.f32 1.0, %v10721_v9  ;;  %v21860_v17 = vld [vmem:[%s28116_s2 + $0x178] sm:$0xff] }
 0x81c   : > { %v10742_v29 = vpack.c.bf16 %v10736_v49, %v10736_v49  ;;  %v10723_v38 = vmul.f32 %v22242_v26, %v10722_v56  ;;  %v21784_v56 = vld [vmem:[%s28119_s5 + $0x98] sm:$0xff] }
 0x81e   : > { %v10747_v4 = vunpack.c.l.b16 %v10742_v29  ;;  %v10724_v51 = vadd.f32 %v22242_v26, %v10723_v38  ;;  %v21856_v29 = vld [vmem:[%s28116_s2 + $0x158] sm:$0xff]  ;;  %v21843_v38 = vld [vmem:[%s28116_s2 + $0xf0] sm:$0xff] }
 0x820   : > { %v27044_v40 = vpack.c.b16 %v10747_v4, %v10746_v24  ;;  %v10728_v22 = vsel %vm10727_vm11, %v22242_v26, %v10724_v51  ;;  %v21850_v24 = vld [vmem:[%s28116_s2 + $0x128] sm:$0xff]  ;;  %v21855_v4 = vld [vmem:[%s28116_s2 + $0x150] sm:$0xff] }
 0x821   : > { %v10733_v61 = vsel %vm10730_vm12, %v10732_v23, %v10728_v22  ;;  %v21782_v51 = vld [vmem:[%s28119_s5 + $0x88] sm:$0xff]  ;;  %v21849_v23 = vld [vmem:[%s28116_s2 + $0x120] sm:$0xff] }
 0x822   : > { %v10737_v16 = vmul.f32 %v10733_v61, %v26998_v58  ;;  %10970 = vmatmul.bf16.vlgmr.msra.gmra.mxu3 %v27044_v40  ;;  %11311 = vmatmul.bf16.vlgmr.msrb.gmra.mxu2 %v27044_v40  ;;  %v10756_v58 = vshll.u32 %v27044_v40, 16  ;;  %v10766_v14 = vrot.slane %v27044_v40, 1  ;;  %v10754_v18 = vshrl.u32 %v27044_v40, 16  ;;  %v21781_v22 = vld [vmem:[%s28119_s5 + $0x80] sm:$0xff]  ;;  %v21848_v61 = vld [vmem:[%s28116_s2 + $0x118] sm:$0xff] }
 0x823   : > { %11517 = vmatpush.bf16.msra.mxu3 %v21788_v12  ;;  %11807 = vmatpush.bf16.msrb.mxu2 %v21860_v17  ;;  %v21854_v12 = vld [vmem:[%s28116_s2 + $0x148] sm:$0xff]  ;;  %v21841_v17 = vld [vmem:[%s28116_s2 + $0xe0] sm:$0xff] }
 0x824   : > { %v10740_v20 = vsel %vm538_vm2, %v10737_v16, 0.0  ;;  %v10758_v32 = vrot.slane %v10756_v58, 1  ;;  %v21820_v16 = vld [vmem:[%s28116_s2 + $0x38] sm:$0xff] }
 0x825   : > { %v10743_v27 = vpack.c.bf16 %v10740_v20, %v10740_v20  ;;  %v21847_v20 = vld [vmem:[%s28116_s2 + $0x110] sm:$0xff]  ;;  %v21869_v58 = vld [vmem:[%s28116_s2 + $0x1b8] sm:$0xff] }
 0x826   : > { %v10759_v9 = vor.u32 %v10758_v32, %v10754_v18  ;;  %v21845_v32 = vld [vmem:[%s28116_s2 + $0x100] sm:$0xff]  ;;  %v21828_v18 = vld [vmem:[%s28116_s2 + $0x78] sm:$0xff] }
 0x827   : > { %v10751_v35 = vunpack.c.l.b16 %v10743_v27  ;;  %11518 = vmatpush.bf16.msra.mxu3 %v21787_v25  ;;  %11808 = vmatpush.bf16.msrb.mxu2 %v21859_v19  ;;  %v21840_v25 = vld [vmem:[%s28116_s2 + $0xd8] sm:$0xff]  ;;  %v21853_v19 = vld [vmem:[%s28116_s2 + $0x140] sm:$0xff]  ;;  %v21819_v27 = vld [vmem:[%s28116_s2 + $0x30] sm:$0xff] }
 0x829   : > { %v10752_v37 = vpack.c.b16 %v10751_v35, %v10751_v35  ;;  %v21868_v35 = vld [vmem:[%s28116_s2 + $0x1b0] sm:$0xff] }
 0x82b   : > { %11519 = vmatpush.bf16.msra.mxu3 %v21786_v43  ;;  %v10767_v57 = vrot.slane %v10752_v37, 1  ;;  %v10761_v26 = vshll.u32 %v10752_v37, 16  ;;  %11809 = vmatpush.bf16.msrb.mxu2 %v21858_v60  ;;  %v21846_v43 = vld [vmem:[%s28116_s2 + $0x108] sm:$0xff] }
 0x82c   : > { %v21818_v60 = vld [vmem:[%s28116_s2 + $0x28] sm:$0xff] }
 0x82d   : > { %v27076_v52 = vsel %vm573_vm1, %v10766_v14, %v10767_v57  ;;  %v10763_v10 = vrot.slane %v10761_v26, 1  ;;  %v21867_v37 = vld [vmem:[%s28116_s2 + $0x1a8] sm:$0xff]  ;;  %v21817_v14 = vld [vmem:[%s28116_s2 + $0x20] sm:$0xff]  ;;  %v21836_v57 = vld [vmem:[%s28116_s2 + $0xb8] sm:$0xff] }
 0x82e   : > { %10998 = vmatmul.bf16.vlgmr.msrb.gmra.mxu1 %v27076_v52  ;;  %v21866_v26 = vld [vmem:[%s28116_s2 + $0x1a0] sm:$0xff] }
 0x82f   : > { %11520 = vmatpush.bf16.msra.mxu3 %v21785_v39  ;;  %v27083_v49 = vsel %vm555_vm0, %v10759_v9, %v10763_v10  ;;  %11789 = vmatpush.bf16.msrb.mxu1 %v21852_v8  ;;  %v21837_v39 = vld [vmem:[%s28116_s2 + $0xc0] sm:$0xff]  ;;  %v21816_v8 = vld [vmem:[%s28116_s2 + $0x18] sm:$0xff]  ;;  %v21827_v9 = vld [vmem:[%s28116_s2 + $0x70] sm:$0xff] }
 0x830   : > { %10984 = vmatmul.bf16.vlgmr.msrb.gmra.mxu0 %v27083_v49  ;;  %11810 = vmatpush.bf16.msrb.mxu2 %v21857_v59  ;;  %v21835_v59 = vld [vmem:[%s28116_s2 + $0xb0] sm:$0xff] }
 0x831   : > { %11771 = vmatpush.bf16.msrb.mxu0 %v21844_v41  ;;  %v21815_v10 = vld [vmem:[%s28116_s2 + $0x10] sm:$0xff]  ;;  %v21865_v41 = vld [vmem:[%s28116_s2 + $0x198] sm:$0xff] }
 0x832   : > { %11325 = vmatmul.bf16.vlgmr.msrb.gmra.mxu3 %v27083_v49  ;;  %11511 = vmatmul.bf16.vlgmr.msra.gmra.mxu2 %v26466_v53  ;;  %v21842_v53 = vld [vmem:[%s28116_s2 + $0xe8] sm:$0xff] }
 0x833   : > { %11521 = vmatpush.bf16.msra.mxu3 %v21784_v56  ;;  %11790 = vmatpush.bf16.msrb.mxu1 %v21851_v13  ;;  %v21834_v56 = vld [vmem:[%s28116_s2 + $0xa8] sm:$0xff] }
 0x834   : > { %11811 = vmatpush.bf16.msrb.mxu2 %v21856_v29  ;;  %v21826_v13 = vld [vmem:[%s28116_s2 + $0x68] sm:$0xff] }
 0x835   : > { %11772 = vmatpush.bf16.msrb.mxu0 %v21843_v38  ;;  %v21814_v29 = vld [vmem:[%s28116_s2 + $0x8] sm:$0xff]  ;;  %v21833_v38 = vld [vmem:[%s28116_s2 + $0xa0] sm:$0xff] }
 0x837   : > { %11522 = vmatpush.bf16.msra.mxu3 %v21783_v7  ;;  %11791 = vmatpush.bf16.msrb.mxu1 %v21850_v24  ;;  %v21825_v7 = vld [vmem:[%s28116_s2 + $0x60] sm:$0xff]  ;;  %v21863_v24 = vld [vmem:[%s28116_s2 + $0x188] sm:$0xff] }
 0x838   : > { %11812 = vmatpush.bf16.msrb.mxu2 %v21855_v4  ;;  %v21813_v4 = vld [vmem:[%s28116_s2] sm:$0xff] }
 0x839   : > { %11773 = vmatpush.bf16.msrb.mxu0 %v21842_v53  ;;  %v21877_v53 = vld [vmem:[%s28116_s2 + $0x1f8] sm:$0xff] }
 0x83b   : > { %11523 = vmatpush.bf16.msra.mxu3 %v21782_v51  ;;  %11792 = vmatpush.bf16.msrb.mxu1 %v21849_v23  ;;  %v21832_v51 = vld [vmem:[%s28116_s2 + $0x98] sm:$0xff] }
 0x83c   : > { %11813 = vmatpush.bf16.msrb.mxu2 %v21854_v12  ;;  %v21824_v23 = vld [vmem:[%s28116_s2 + $0x58] sm:$0xff]  ;;  %v21862_v12 = vld [vmem:[%s28116_s2 + $0x180] sm:$0xff] }
 0x83d   : > { %11774 = vmatpush.bf16.msrb.mxu0 %v21841_v17  ;;  %v21876_v17 = vld [vmem:[%s28116_s2 + $0x1f0] sm:$0xff] }
 0x83e   : > { %11497 = vmatmul.bf16.vlgmr.msra.gmra.mxu1 %v26427_v45  ;;  %v21839_v45 = vld [vmem:[%s28116_s2 + $0xd0] sm:$0xff] }
 0x83f   : > { %11524 = vmatpush.bf16.msra.mxu3 %v21781_v22  ;;  %11793 = vmatpush.bf16.msrb.mxu1 %v21848_v61  ;;  %v21831_v22 = vld [vmem:[%s28116_s2 + $0x90] sm:$0xff] }
 0x840   : > { %11339 = vmatmul.bf16.vlgmr.msra.gmra.mxu0 %v27076_v52  ;;  %11814 = vmatpush.bf16.msrb.mxu2 %v21853_v19  ;;  %v21823_v61 = vld [vmem:[%s28116_s2 + $0x50] sm:$0xff]  ;;  %v21830_v19 = vld [vmem:[%s28116_s2 + $0x88] sm:$0xff] }
 0x841   : > { %11775 = vmatpush.bf16.msrb.mxu0 %v21840_v25  ;;  %v21875_v25 = vld [vmem:[%s28116_s2 + $0x1e8] sm:$0xff] }
 0x842   : > { %11525 = vmatmul.bf16.vlgmr.msra.gmra.mxu3 %v26459_v31  ;;  %v21838_v31 = vld [vmem:[%s28116_s2 + $0xc8] sm:$0xff] }
 0x843   : > { %11969 = vmatpush.bf16.msrb.mxu3 %v21820_v16  ;;  %11794 = vmatpush.bf16.msrb.mxu1 %v21847_v20  ;;  %v22379_v16 = vld [vmem:[%s26027_s21] sm:$0xff]  ;;  %v21822_v20 = vld [vmem:[%s28116_s2 + $0x48] sm:$0xff] }
 0x844   : > { %12251 = vmatpush.bf16.msra.mxu2 %v21869_v58  ;;  %v21874_v58 = vld [vmem:[%s28116_s2 + $0x1e0] sm:$0xff] }
 0x845   : > { %11815 = vmatmul.bf16.vlgmr.msrb.gmra.mxu2 %v26720_v42  ;;  %11776 = vmatpush.bf16.msrb.mxu0 %v21839_v45  ;;  %v21829_v45 = vld [vmem:[%s28116_s2 + $0x80] sm:$0xff] }
 0x847   : > { %11970 = vmatpush.bf16.msrb.mxu3 %v21819_v27  ;;  %11795 = vmatpush.bf16.msrb.mxu1 %v21846_v43  ;;  %v21861_v27 = vld [vmem:[%s26027_s21 + $0x18] sm:$0xff] }
 0x848   : > { %12252 = vmatpush.bf16.msra.mxu2 %v21868_v35  ;;  %v21821_v35 = vld [vmem:[%s28116_s2 + $0x40] sm:$0xff]  ;;  %v21885_v43 = vld [vmem:[%s28116_s2 + $0x238] sm:$0xff] }
 0x849   : > { %11777 = vmatpush.bf16.msrb.mxu0 %v21838_v31  ;;  %v19800_v31 = vld [vmem:[%s26027_s21 + $0x20] sm:$0x3] }
 0x84b   : > { %11971 = vmatpush.bf16.msrb.mxu3 %v21818_v60  ;;  %11796 = vmatpush.bf16.msrb.mxu1 %v21845_v32  ;;  %v21873_v60 = vld [vmem:[%s28116_s2 + $0x1d8] sm:$0xff]  ;;  %v12032_v32 = vunpack.c.l.b16 %v19800_v31 }
 0x84c   : > { %12253 = vmatpush.bf16.msra.mxu2 %v21867_v37  ;;  %v21884_v37 = vld [vmem:[%s28116_s2 + $0x230] sm:$0xff] }
 0x84d   : > { %11778 = vmatpush.bf16.msrb.mxu0 %v21837_v39  ;;  %v27292_v39 = vpack.c.b16 %v12032_v32, %v12032_v32 }
 0x84e   : > { %11797 = vmatmul.bf16.vlgmr.msrb.gmra.mxu1 %v26699_v34 }
 0x84f   : > { %11972 = vmatpush.bf16.msrb.mxu3 %v21817_v14  ;;  %12005 = vmatpush.bf16.msra.mxu1 %v21836_v57  ;;  %v21872_v14 = vld [vmem:[%s28116_s2 + $0x1d0] sm:$0xff]  ;;  %v21883_v57 = vld [vmem:[%s28116_s2 + $0x228] sm:$0xff] }
 0x850   : > { %12254 = vmatpush.bf16.msra.mxu2 %v21866_v26  ;;  %11779 = vmatmul.bf16.vlgmr.msrb.gmra.mxu0 %v26666_v62  ;;  %v21864_v62 = vld [vmem:[%s28116_s2 + $0x190] sm:$0xff]  ;;  %v21871_v26 = vld [vmem:[%s28116_s2 + $0x1c8] sm:$0xff] }
 0x851   : > { %11987 = vmatpush.bf16.msra.mxu0 %v21828_v18  ;;  %v12040_v18 = vshll.u32 %v21861_v27, 16 }
 0x853   : > { %11973 = vmatpush.bf16.msrb.mxu3 %v21816_v8  ;;  %12006 = vmatpush.bf16.msra.mxu1 %v21835_v59  ;;  %v12042_v8 = vrot.slane %v12040_v18, 1  ;;  %v12045_v59 = vshll.u32 %v27292_v39, 16 }
 0x854   : > { %12255 = vmatpush.bf16.msra.mxu2 %v21865_v41 }
 0x855   : > { %11988 = vmatpush.bf16.msra.mxu0 %v21827_v9  ;;  %11820 = vmatmul.bf16.gmra.mxu2 %v26714_v54  ;;  %v21881_v9 = vld [vmem:[%s28116_s2 + $0x218] sm:$0xff]  ;;  %v12047_v41 = vrot.slane %v12045_v59, 1 }
 0x857   : > { %11974 = vmatpush.bf16.msrb.mxu3 %v21815_v10  ;;  %12007 = vmatpush.bf16.msra.mxu1 %v21834_v56  ;;  %v21880_v56 = vld [vmem:[%s28116_s2 + $0x210] sm:$0xff] }
 0x858   : > { %12256 = vmatpush.bf16.msra.mxu2 %v21864_v62  ;;  %v21879_v62 = vld [vmem:[%s28116_s2 + $0x208] sm:$0xff] }
 0x859   : > { %11989 = vmatpush.bf16.msra.mxu0 %v21826_v13 }
 0x85b   : > { %11975 = vmatpush.bf16.msrb.mxu3 %v21814_v29  ;;  %12008 = vmatpush.bf16.msra.mxu1 %v21833_v38  ;;  %v21878_v29 = vld [vmem:[%s28116_s2 + $0x200] sm:$0xff]  ;;  %v12049_v38 = vshrl.u32 %v27292_v39, 16 }
 0x85c   : > { %12257 = vmatpush.bf16.msra.mxu2 %v21863_v24 }
 0x85d   : > { %11990 = vmatpush.bf16.msra.mxu0 %v21825_v7  ;;  %v12054_v7 = vrot.slane %v21861_v27, 1  ;;  %v27327_v24 = vor.u32 %v12049_v38, %v12047_v41 }
 0x85e   : > { %11802 = vmatmul.bf16.gmra.mxu1 %v26716_v47 }
 0x85f   : > { %11976 = vmatpush.bf16.msrb.mxu3 %v21813_v4  ;;  %12009 = vmatpush.bf16.msra.mxu1 %v21832_v51  ;;  %v9693_v51 = vadd.f32 %v26742_v5, %v26725_v3  ;;  %v22380_v3 = vld [vmem:[%s28120_s6] ss:$0 sm:$0xff] }
 0x860   : > { %12258 = vmatpush.bf16.msra.mxu2 %v21862_v12  ;;  %11784 = vmatmul.bf16.gmra.mxu0 %v26678_v63 }
 0x861   : > { %11991 = vmatpush.bf16.msra.mxu0 %v21824_v23  ;;  %v9707_v12 = vadd.f32 %v26750_v55, %v9693_v51 }
 0x862   : > { %11977 = vmatmul.bf16.vlgmr.msrb.gmra.mxu3 %v22379_v16 }
 0x863   : > { %12269 = vmatpush.bf16.msra.mxu3 %v21877_v53  ;;  %12010 = vmatpush.bf16.msra.mxu1 %v21831_v22 }
 0x865   : > { %11992 = vmatpush.bf16.msra.mxu0 %v21823_v61  ;;  %12259 = vmatmul.bf16.vlgmr.msra.gmra.mxu2 %v21861_v27 }
 0x867   : > { %12270 = vmatpush.bf16.msra.mxu3 %v21876_v17  ;;  %12011 = vmatpush.bf16.msra.mxu1 %v21830_v19 }
 0x869   : > { %11993 = vmatpush.bf16.msra.mxu0 %v21822_v20 }
 0x86b   : > { %12271 = vmatpush.bf16.msra.mxu3 %v21875_v25  ;;  %12012 = vmatpush.bf16.msra.mxu1 %v21829_v45  ;;  %v9865_v25 = vadd.f32 %v26744_v48, %v9707_v12 }
 0x86d   : > { %11994 = vmatpush.bf16.msra.mxu0 %v21821_v35  ;;  %v22381_v35 = vld [vmem:[%s28121_s7] ss:$0 sm:$0xff] }
 0x86e   : > { %12013 = vmatmul.bf16.vlgmr.msra.gmra.mxu1 %v26107_v30  ;;  %v12038_v30 = vshrl.u32 %v21861_v27, 16 }
 0x86f   : > { %12272 = vmatpush.bf16.msra.mxu3 %v21874_v58  ;;  %v9879_v58 = vadd.f32 %v26732_v33, %v9865_v25 }
 0x870   : > { %11995 = vmatmul.bf16.vlgmr.msra.gmra.mxu0 %v26088_v6  ;;  %v21870_v6 = vld [vmem:[%s28116_s2 + $0x1c0] sm:$0xff]  ;;  %v12043_v10 = vor.u32 %v12042_v8, %v12038_v30 }
 0x871   : > { %12287 = vmatpush.bf16.msrb.mxu0 %v21885_v43 }
 0x872   : > { %11982 = vmatmul.bf16.gmra.mxu3 %v26068_v50  ;;  %v21882_v50 = vld [vmem:[%s28116_s2 + $0x220] sm:$0xff]  ;;  %v27312_v13 = vsel %vm555_vm0, %v12043_v10, %v12047_v41 }
 0x873   : > { %12273 = vmatpush.bf16.msra.mxu3 %v21873_v60 }
 0x875   : > { %12288 = vmatpush.bf16.msrb.mxu0 %v21884_v37  ;;  %12264 = vmatmul.bf16.gmra.mxu2 %v27292_v39 }
 0x877   : > { %12274 = vmatpush.bf16.msra.mxu3 %v21872_v14 }
 0x879   : > { %12289 = vmatpush.bf16.msrb.mxu0 %v21883_v57 }
 0x87b   : > { %12275 = vmatpush.bf16.msra.mxu3 %v21871_v26 }
 0x87d   : > { %12290 = vmatpush.bf16.msrb.mxu0 %v21882_v50 }
 0x87e   : > { %12018 = vmatmul.bf16.gmra.mxu1 %v26101_v15  ;;  %v27325_v15 = vrot.slane %v27292_v39, 1 }
 0x87f   : > { %12276 = vmatpush.bf16.msra.mxu3 %v21870_v6 }
 0x880   : > { %12000 = vmatmul.bf16.gmra.mxu0 %v26103_v44  ;;  %v27331_v4 = vsel %vm573_vm1, %v12054_v7, %v27325_v15 }
 0x881   : > { %12291 = vmatpush.bf16.msrb.mxu0 %v21881_v9 }
 0x882   : > { %12277 = vmatmul.bf16.vlgmr.msra.gmra.mxu3 %v27312_v13 }
 0x885   : > { %12292 = vmatpush.bf16.msrb.mxu0 %v21880_v56 }
 0x889   : > { %12293 = vmatpush.bf16.msrb.mxu0 %v21879_v62 }
 0x88d   : > { %12294 = vmatpush.bf16.msrb.mxu0 %v21878_v29 }
 0x890   : > { %12295 = vmatmul.bf16.vlgmr.msrb.gmra.mxu0 %v27331_v4 }
 0x892   : > { %12282 = vmatmul.bf16.gmra.mxu3 %v27327_v24 }
 0x8a0   : > { %12300 = vmatmul.bf16.gmra.mxu0 %v27325_v15 }
 0x8a5   : > { %v10971_v44 = vpop.f32.mrf.mxu3  ;;  %v11312_v53 = vpop.f32.mrf.mxu2 }
 0x8ab   : > { %v10999_v23 = vpop.f32.mrf.mxu1 }
 0x8ad   : > { %v10973_v17 = vpop.f32.mrf.mxu3  ;;  %v10985_v22 = vpop.f32.mrf.mxu0 }
 0x8ae   : > { %v10986_v61 = vadd.f32 %v10985_v22, %v10971_v44  ;;  %v27339_v16 = vpop.f32.mrf.mxu2 }
 0x8b0   : > { %v11000_v19 = vadd.f32 %v10999_v23, %v10986_v61 }
 0x8b2   : > { %v11004_v20 = vadd.f32 %v11000_v19, %v26748_v36  ;;  %v9893_v36 = vadd.f32 %v26754_v21, %v9879_v58 }
 0x8b3   : > { %v11001_v27 = vpop.f32.mrf.mxu1 }
 0x8b4   : > { %v11006_v5 = vmul.f32 %v22380_v3, %v11004_v20 }
 0x8b5   : > { %v10987_v45 = vpop.f32.mrf.mxu0  ;;  %v11326_v55 = vpop.f32.mrf.mxu3 }
 0x8b6   : > { %v11008_v43 = vadd.f32 %v22381_v35, %v11006_v5  ;;  %v10988_v60 = vadd.f32 %v10987_v45, %v10973_v17  ;;  %v11327_v48 = vadd.f32 %v11326_v55, %v11312_v53  ;;  %v11512_v31 = vpop.f32.mrf.mxu2 }
 0x8b8   : > { %v19314_v37 = vmul.f32 -1.442695, %v11008_v43  ;;  %v11002_v32 = vadd.f32 %v11001_v27, %v10988_v60 }
 0x8ba   : > { %22243 = vpow2.f32 %v19314_v37  ;;  %v11005_v33 = vadd.f32 %v11002_v32, %v9893_v36 }
 0x8bb   : > { %v11498_v14 = vpop.f32.mrf.mxu1 }
 0x8bc   : > { %v11007_v57 = vmul.f32 %v22380_v3, %v11005_v33 }
 0x8bd   : > { %v27351_v18 = vpop.f32.mrf.mxu3  ;;  %v11340_v26 = vpop.f32.mrf.mxu0 }
 0x8be   : > { %v11009_v50 = vadd.f32 %v22381_v35, %v11007_v57  ;;  %v11341_v30 = vadd.f32 %v11340_v26, %v11327_v48  ;;  %v27353_v8 = vpop.f32.mrf.mxu2 }
 0x8c0   : > { %v22244_v59 = vpop.eup %22243  ;;  %v19315_v6 = vmul.f32 -1.442695, %v11009_v50  ;;  %v11499_v9 = vadd.f32 %v11498_v14, %v11341_v30 }
 0x8c1   : > { %v11016_v10 = vadd.f32 1.0, %v22244_v59 }
 0x8c2   : > { %22245 = vpow2.f32 %v19315_v6  ;;  %v11513_v41 = vadd.f32 %v11512_v31, %v11499_v9 }
 0x8c3   : > { %22247 = vrcp.f32 %v11016_v10  ;;  %v27355_v21 = vpop.f32.mrf.mxu1  ;;  %v11029_v17 = vand.u32 2147483648, %v11016_v10  ;;  %v11027_v25 = vand.u32 2147483647, %v11016_v10  ;;  %vm11023_vm14 = vweird.f32 %v11016_v10 }
 0x8c5   : > { %v27357_v56 = vpop.f32.mrf.mxu0  ;;  %v11526_v62 = vpop.f32.mrf.mxu3  ;;  %v11030_v5 = vor.u32 1.1754944e-38, %v11029_v17  ;;  %vm11028_vm3 = vcmp.eq.f32.partialorder %v11027_v25, 8.507059e+37  ;;  %v21893_v17 = vld [vmem:[%s28119_s5 + $0x1b8] sm:$0xff] }
 0x8c6   : > { %v27359_v29 = vadd.f32 %v11526_v62, %v11513_v41  ;;  %12598 = vmatpush.bf16.msrb.mxu1 %v21893_v17  ;;  %v21899_v17 = vld [vmem:[%s28119_s5 + $0x1e8] sm:$0xff] }
 0x8c8   : > { %v11816_v38 = vpop.f32.mrf.mxu2  ;;  %v22246_v7 = vpop.eup %22245 }
 0x8c9   : > { %v22248_v44 = vpop.eup %22247  ;;  %v11017_v53 = vadd.f32 1.0, %v22246_v7 }
 0x8ca   : > { %v11019_v51 = vmul.f32 %v22248_v44, %v11016_v10  ;;  %vm11024_vm13 = vweird.f32 %v22248_v44 }
 0x8cb   : > { %22249 = vrcp.f32 %v11017_v53  ;;  %v11798_v23 = vpop.f32.mrf.mxu1  ;;  %vm11025_vm15 = vmor %vm11023_vm14, %vm11024_vm13  ;;  %v11044_v37 = vand.u32 2147483648, %v11017_v53  ;;  %v11042_v14 = vand.u32 2147483647, %v11017_v53  ;;  %vm11038_vm5 = vweird.f32 %v11017_v53 }
 0x8cc   : > { %v11020_v12 = vsub.f32 1.0, %v11019_v51 }
 0x8cd   : > { %v11780_v22 = vpop.f32.mrf.mxu0  ;;  %v11045_v30 = vor.u32 1.1754944e-38, %v11044_v37  ;;  %vm11043_vm8 = vcmp.eq.f32.partialorder %v11042_v14, 8.507059e+37  ;;  %v21890_v37 = vld [vmem:[%s28119_s5 + $0x1a0] sm:$0xff] }
 0x8ce   : > { %v11021_v61 = vmul.f32 %v22248_v44, %v11020_v12  ;;  %v11799_v19 = vadd.f32 %v11798_v23, %v11780_v22 }
 0x8d0   : > { %v27361_v20 = vpop.f32.mrf.mxu2  ;;  %v11022_v27 = vadd.f32 %v22248_v44, %v11021_v61  ;;  %v27363_v58 = vadd.f32 %v11816_v38, %v11799_v19 }
 0x8d1   : > { %v22250_v3 = vpop.eup %22249 }
 0x8d2   : > { %v11026_v45 = vsel %vm11025_vm15, %v22248_v44, %v11022_v27  ;;  %v11034_v55 = vmul.f32 %v22250_v3, %v11017_v53  ;;  %vm11039_vm4 = vweird.f32 %v22250_v3  ;;  %v21892_v27 = vld [vmem:[%s28119_s5 + $0x1b0] sm:$0xff] }
 0x8d3   : > { %v11031_v35 = vsel %vm11028_vm3, %v11030_v5, %v11026_v45  ;;  %v27365_v60 = vpop.f32.mrf.mxu1  ;;  %vm11040_vm7 = vmor %vm11038_vm5, %vm11039_vm4  ;;  %12599 = vmatpush.bf16.msrb.mxu1 %v21892_v27  ;;  %v21938_v27 = vld [vmem:[%s28119_s5 + $0xe0] sm:$0xff] }
 0x8d4   : > { %v11048_v48 = vmul.f32 %v11031_v35, %v11008_v43  ;;  %v11035_v31 = vsub.f32 1.0, %v11034_v55  ;;  %v27375_v43 = vpop.f32.mrf.mxu3  ;;  %v21891_v35 = vld [vmem:[%s28119_s5 + $0x1a8] sm:$0xff] }
 0x8d5   : > { %v27367_v36 = vpop.f32.mrf.mxu0 }
 0x8d6   : > { %19316 = vst [vmem:[%s24309_s23 + $0x50] sm:$0xff] %v11048_v48  ;;  %v27371_v32 = vadd.f32 %v11048_v48, %v26764_v46  ;;  %v11036_v33 = vmul.f32 %v22250_v3, %v11035_v31 }
 0x8d7   : > { %12600 = vmatpush.bf16.msrb.mxu1 %v21891_v35  ;;  %v21898_v35 = vld [vmem:[%s28119_s5 + $0x1e0] sm:$0xff] }
 0x8d8   : > { %v27373_v57 = vpop.f32.mrf.mxu2  ;;  %v11037_v26 = vadd.f32 %v22250_v3, %v11036_v33 }
 0x8da   : > { %v11041_v59 = vsel %vm11040_vm7, %v22250_v3, %v11037_v26  ;;  %v21901_v26 = vld [vmem:[%s28119_s5 + $0x1f8] sm:$0xff] }
 0x8db   : > { %v11046_v6 = vsel %vm11043_vm8, %v11045_v30, %v11041_v59  ;;  %v27377_v9 = vpop.f32.mrf.mxu1  ;;  %12601 = vmatpush.bf16.msrb.mxu1 %v21890_v37  ;;  %v21909_v30 = vld [vmem:[%s28119_s5 + $0x238] sm:$0xff]  ;;  %12612 = vmatpush.bf16.msrb.mxu2 %v21901_v26  ;;  %v21906_v37 = vld [vmem:[%s28119_s5 + $0x220] sm:$0xff] }
 0x8dc   : > { %v11049_v10 = vmul.f32 %v11046_v6, %v11009_v50  ;;  %v21889_v59 = vld [vmem:[%s28119_s5 + $0x198] sm:$0xff]  ;;  %12626 = vmatpush.bf16.msrb.mxu3 %v21909_v30 }
 0x8dd   : > { %v27379_v46 = vpop.f32.mrf.mxu0  ;;  %v21949_v30 = vld [vmem:[%s28119_s5 + $0x138] sm:$0xff] }
 0x8de   : > { %19317 = vst [vmem:[%s24309_s23 + $0x58] sm:$0xff] %v11049_v10  ;;  %v27383_v41 = vadd.f32 %v11049_v10, %v26774_v11  ;;  %v11055_v62 = vadd.f32 %v11049_v10, %v11048_v48  ;;  %v21940_v10 = vld [vmem:[%s28119_s5 + $0xf0] sm:$0xff] }
 0x8df   : > { %12602 = vmatpush.bf16.msrb.mxu1 %v21889_v59  ;;  %v21937_v59 = vld [vmem:[%s28119_s5 + $0xd8] sm:$0xff] }
 0x8e0   : > { %v11823_v38 = vpop.f32.mrf.mxu2  ;;  %v11056_v7 = vrot.slane %v11055_v62, 4 }
 0x8e1   : > { %v21900_v38 = vld [vmem:[%s28119_s5 + $0x1f0] sm:$0xff] }
 0x8e2   : > { %v11057_v44 = vadd.f32 %v11056_v7, %v11055_v62  ;;  %v21908_v7 = vld [vmem:[%s28119_s5 + $0x230] sm:$0xff]  ;;  %12613 = vmatpush.bf16.msrb.mxu2 %v21900_v38 }
 0x8e3   : > { %v11805_v51 = vpop.f32.mrf.mxu1  ;;  %12627 = vmatpush.bf16.msrb.mxu3 %v21908_v7  ;;  %v21948_v7 = vld [vmem:[%s28119_s5 + $0x130] sm:$0xff] }
 0x8e4   : > { %v11058_v23 = vrot.slane %v11057_v44, 2 }
 0x8e5   : > { %v27385_v53 = vpop.f32.mrf.mxu3  ;;  %v11787_v12 = vpop.f32.mrf.mxu0 }
 0x8e6   : > { %v11059_v50 = vadd.f32 %v11058_v23, %v11057_v44  ;;  %v21888_v44 = vld [vmem:[%s28119_s5 + $0x190] sm:$0xff]  ;;  %v21939_v23 = vld [vmem:[%s28119_s5 + $0xe8] sm:$0xff]  ;;  %12614 = vmatpush.bf16.msrb.mxu2 %v21899_v17  ;;  %v11979_v38 = vadd.f32 %v27385_v53, %v27363_v58 }
 0x8e7   : > { %12603 = vmatpush.bf16.msrb.mxu1 %v21888_v44  ;;  %v11801_v44 = vadd.f32 %v27365_v60, %v27367_v36  ;;  %v21896_v58 = vld [vmem:[%s28119_s5 + $0x1d0] sm:$0xff]  ;;  %v21947_v60 = vld [vmem:[%s28119_s5 + $0x128] sm:$0xff] }
 0x8e8   : > { %v27390_v22 = vpop.f32.mrf.mxu2  ;;  %v11060_v61 = vrot.slane %v11059_v50, 1  ;;  %v21904_v53 = vld [vmem:[%s28119_s5 + $0x210] sm:$0xff] }
 0x8e9   : > { %v11819_v36 = vadd.f32 %v27361_v20, %v11801_v44  ;;  %v21946_v20 = vld [vmem:[%s28119_s5 + $0x120] sm:$0xff]  ;;  %v21917_v44 = vld [vmem:[%s28119_s5 + $0x38] sm:$0xff] }
 0x8ea   : > { %v11061_v11 = vadd.f32 %v11060_v61, %v11059_v50  ;;  %v21907_v50 = vld [vmem:[%s28119_s5 + $0x228] sm:$0xff]  ;;  %12615 = vmatpush.bf16.msrb.mxu2 %v21898_v35 }
 0x8eb   : > { %v27394_v19 = vpop.f32.mrf.mxu1  ;;  %v21887_v61 = vld [vmem:[%s28119_s5 + $0x188] sm:$0xff]  ;;  %12628 = vmatpush.bf16.msrb.mxu3 %v21907_v50  ;;  %v21936_v50 = vld [vmem:[%s28119_s5 + $0xd0] sm:$0xff] }
 0x8ec   : > { %v11062_v3 = vmul.f32 %v11061_v11, %v25553_v2  ;;  %12604 = vmatpush.bf16.msrb.mxu1 %v21887_v61 }
 0x8ed   : > { %v27392_v25 = vpop.f32.mrf.mxu3  ;;  %v11996_v5 = vpop.f32.mrf.mxu0 }
 0x8ee   : > { %v27401_v45 = vsel %vm14350_vm9, %v26796_v28, %v11062_v3  ;;  %v21941_v28 = vld [vmem:[%s28119_s5 + $0xf8] sm:$0xff]  ;;  %v11981_v35 = vadd.f32 %v27392_v25, %v11819_v36  ;;  %v21944_v36 = vld [vmem:[%s28119_s5 + $0x110] sm:$0xff] }
 0x8ef   : > { %12939 = vmatpush.bf16.msra.mxu0 %v21941_v28  ;;  %v21886_v28 = vld [vmem:[%s28119_s5 + $0x180] sm:$0xff]  ;;  %12629 = vmatpush.bf16.msrb.mxu3 %v21906_v37 }
 0x8f0   : > { %v27403_v55 = vpop.f32.mrf.mxu2  ;;  %12605 = vmatpush.bf16.msrb.mxu1 %v21886_v28 }
 0x8f3   : > { %v27410_v31 = vpop.f32.mrf.mxu1  ;;  %12940 = vmatpush.bf16.msra.mxu0 %v21940_v10  ;;  %v21905_v10 = vld [vmem:[%s28119_s5 + $0x218] sm:$0xff] }
 0x8f4   : > { %12953 = vmatpush.bf16.msra.mxu1 %v21949_v30  ;;  %12630 = vmatpush.bf16.msrb.mxu3 %v21905_v10  ;;  %v22383_v10 = vld [vmem:[%s28118_s4] ss:$0 sm:$0xff] }
 0x8f5   : > { %v27408_v48 = vpop.f32.mrf.mxu3  ;;  %v27415_v33 = vpop.f32.mrf.mxu0 }
 0x8f6   : > { %v11999_v28 = vadd.f32 %v27415_v33, %v11981_v35  ;;  %v21955_v35 = vld [vmem:[%s28119_s5 + $0x168] sm:$0xff] }
 0x8f7   : > { %12941 = vmatpush.bf16.msra.mxu0 %v21939_v23  ;;  %v11997_v23 = vadd.f32 %v11996_v5, %v11979_v38 }
 0x8f8   : > { %v27420_v14 = vpop.f32.mrf.mxu2  ;;  %12954 = vmatpush.bf16.msra.mxu1 %v21948_v7  ;;  %12631 = vmatpush.bf16.msrb.mxu3 %v21904_v53  ;;  %v21957_v7 = vld [vmem:[%s28119_s5 + $0x178] sm:$0xff]  ;;  %v21924_v53 = vld [vmem:[%s28119_s5 + $0x70] sm:$0xff] }
 0x8fb   : > { %v27434_v62 = vpop.f32.mrf.mxu1  ;;  %12942 = vmatpush.bf16.msra.mxu0 %v21938_v27  ;;  %v21895_v27 = vld [vmem:[%s28119_s5 + $0x1c8] sm:$0xff] }
 0x8fc   : > { %12955 = vmatpush.bf16.msra.mxu1 %v21947_v60 }
 0x8fd   : > { %v11985_v6 = vpop.f32.mrf.mxu3  ;;  %v27445_v51 = vpop.f32.mrf.mxu0 }
 0x8fe   : > { %v21897_v6 = vld [vmem:[%s28119_s5 + $0x1d8] sm:$0xff] }
 0x8ff   : > { %12943 = vmatpush.bf16.msra.mxu0 %v21937_v59  ;;  %12616 = vmatpush.bf16.msrb.mxu2 %v21897_v6  ;;  %v21934_v59 = vld [vmem:[%s28119_s5 + $0xc0] sm:$0xff] }
 0x900   : > { %v12267_v12 = vpop.f32.mrf.mxu2  ;;  %12956 = vmatpush.bf16.msra.mxu1 %v21946_v20  ;;  %v21894_v6 = vld [vmem:[%s28119_s5 + $0x1c0] sm:$0xff] }
 0x903   : > { %v12021_v3 = vpop.f32.mrf.mxu1  ;;  %12944 = vmatpush.bf16.msra.mxu0 %v21936_v50  ;;  %12617 = vmatpush.bf16.msrb.mxu2 %v21896_v58 }
 0x904   : > { %v21903_v3 = vld [vmem:[%s28119_s5 + $0x208] sm:$0xff] }
 0x905   : > { %v12278_v11 = vpop.f32.mrf.mxu3  ;;  %v12003_v26 = vpop.f32.mrf.mxu0  ;;  %12632 = vmatpush.bf16.msrb.mxu3 %v21903_v3 }
 0x906   : > { %v12279_v12 = vadd.f32 %v12278_v11, %v27390_v22  ;;  %v12015_v22 = vadd.f32 %v27394_v19, %v11997_v23  ;;  %v21935_v11 = vld [vmem:[%s28119_s5 + $0xc8] sm:$0xff]  ;;  %v11804_v19 = vadd.f32 %v27377_v9, %v27379_v46  ;;  %v27524_v26 = vld [vmem:[%s28117_s3] ss:$0 sm:$0xff]  ;;  %v21925_v46 = vld [vmem:[%s28119_s5 + $0x78] sm:$0xff] }
 0x907   : > { %12945 = vmatpush.bf16.msra.mxu0 %v21935_v11  ;;  %12618 = vmatpush.bf16.msrb.mxu2 %v21895_v27  ;;  %v21902_v9 = vld [vmem:[%s28119_s5 + $0x200] sm:$0xff]  ;;  %v21923_v27 = vld [vmem:[%s28119_s5 + $0x68] sm:$0xff] }
 0x909   : > { %12633 = vmatpush.bf16.msrb.mxu3 %v21902_v9  ;;  %v21954_v9 = vld [vmem:[%s28119_s5 + $0x160] sm:$0xff] }
 0x90b   : > { %12946 = vmatpush.bf16.msra.mxu0 %v21934_v59  ;;  %12619 = vmatpush.bf16.msrb.mxu2 %v21894_v6  ;;  %v21922_v59 = vld [vmem:[%s28119_s5 + $0x60] sm:$0xff] }
 0x90d   : > { %v12280_v17 = vpop.f32.mrf.mxu3  ;;  %v12296_v61 = vpop.f32.mrf.mxu0  ;;  %13125 = vmatpush.bf16.msra.mxu3 %v21917_v44 }
 0x90e   : > { %v12297_v5 = vadd.f32 %v12296_v61, %v12279_v12  ;;  %v12281_v33 = vadd.f32 %v12280_v17, %v27403_v55  ;;  %v21945_v55 = vld [vmem:[%s28119_s5 + $0x118] sm:$0xff]  ;;  %v11822_v12 = vadd.f32 %v27373_v57, %v11804_v19  ;;  %v12017_v17 = vadd.f32 %v27410_v31, %v11999_v28  ;;  %v21956_v57 = vld [vmem:[%s28119_s5 + $0x170] sm:$0xff] }
 0x90f   : > { %13139 = vmatpush.bf16.msrb.mxu0 %v21925_v46  ;;  %12967 = vmatpush.bf16.msra.mxu2 %v21957_v7  ;;  %v21916_v31 = vld [vmem:[%s28119_s5 + $0x30] sm:$0xff]  ;;  %v21942_v46 = vld [vmem:[%s28119_s5 + $0x100] sm:$0xff]  ;;  %v21921_v7 = vld [vmem:[%s28119_s5 + $0x58] sm:$0xff] }
 0x910   : > { %v12305_v37 = vadd.f32 %v12297_v5, %v12015_v22  ;;  %12957 = vmatpush.bf16.msra.mxu1 %v21945_v55  ;;  %v11984_v61 = vadd.f32 %v27408_v48, %v11822_v12  ;;  %v21913_v55 = vld [vmem:[%s28119_s5 + $0x18] sm:$0xff] }
 0x911   : > { %13126 = vmatpush.bf16.msra.mxu3 %v21916_v31 }
 0x912   : > { %v12308_v25 = vmul.f32 %v27524_v26, %v12305_v37  ;;  %v12002_v22 = vadd.f32 %v27445_v51, %v11984_v61  ;;  %v21943_v37 = vld [vmem:[%s28119_s5 + $0x108] sm:$0xff]  ;;  %v21952_v61 = vld [vmem:[%s28119_s5 + $0x150] sm:$0xff] }
 0x913   : > { %13140 = vmatpush.bf16.msrb.mxu0 %v21924_v53  ;;  %12968 = vmatpush.bf16.msra.mxu2 %v21956_v57 }
 0x914   : > { %v27543_v38 = vadd.f32 %v22383_v10, %v12308_v25  ;;  %12958 = vmatpush.bf16.msra.mxu1 %v21944_v36  ;;  %v12020_v19 = vadd.f32 %v27434_v62, %v12002_v22  ;;  %v21914_v62 = vld [vmem:[%s28119_s5 + $0x20] sm:$0xff]  ;;  %v21919_v36 = vld [vmem:[%s28119_s5 + $0x48] sm:$0xff] }
 0x915   : > { %v12283_v30 = vpop.f32.mrf.mxu3  ;;  %v12298_v23 = vpop.f32.mrf.mxu0  ;;  %v21951_v22 = vld [vmem:[%s28119_s5 + $0x148] sm:$0xff] }
 0x916   : > { %v19949_v50 = vmul.f32 -1.442695, %v27543_v38  ;;  %v12299_v58 = vadd.f32 %v12298_v23, %v12281_v33  ;;  %v12284_v5 = vadd.f32 %v12283_v30, %v27420_v14  ;;  %v21915_v14 = vld [vmem:[%s28119_s5 + $0x28] sm:$0xff]  ;;  %v21953_v23 = vld [vmem:[%s28119_s5 + $0x158] sm:$0xff] }
 0x917   : > { %13141 = vmatpush.bf16.msrb.mxu0 %v21923_v27  ;;  %12969 = vmatpush.bf16.msra.mxu2 %v21955_v35 }
 0x918   : > { %22251 = vpow2.f32 %v19949_v50  ;;  %v12306_v60 = vadd.f32 %v12299_v58, %v12017_v17  ;;  %13127 = vmatpush.bf16.msra.mxu3 %v21915_v14  ;;  %12959 = vmatpush.bf16.msra.mxu1 %v21943_v37 }
 0x91a   : > { %v12309_v48 = vmul.f32 %v27524_v26, %v12306_v60  ;;  %v21912_v60 = vld [vmem:[%s28119_s5 + $0x10] sm:$0xff] }
 0x91b   : > { %13142 = vmatpush.bf16.msrb.mxu0 %v21922_v59  ;;  %12970 = vmatpush.bf16.msra.mxu2 %v21954_v9 }
 0x91c   : > { %v27576_v3 = vadd.f32 %v22383_v10, %v12309_v48  ;;  %13128 = vmatpush.bf16.msra.mxu3 %v21914_v62  ;;  %12960 = vmatpush.bf16.msra.mxu1 %v21942_v46 }
 0x91d   : > { %v12285_v11 = vpop.f32.mrf.mxu3  ;;  %v12301_v51 = vpop.f32.mrf.mxu0 }
 0x91e   : > { %v22252_v20 = vpop.eup %22251  ;;  %v19950_v28 = vmul.f32 -1.442695, %v27576_v3  ;;  %v12302_v25 = vadd.f32 %v12301_v51, %v12284_v5  ;;  %v21911_v5 = vld [vmem:[%s28119_s5 + $0x8] sm:$0xff] }
 0x91f   : > { %v12323_v30 = vadd.f32 1.0, %v22252_v20  ;;  %13143 = vmatpush.bf16.msrb.mxu0 %v21921_v7  ;;  %12971 = vmatpush.bf16.msra.mxu2 %v21953_v23  ;;  %v21918_v20 = vld [vmem:[%s28119_s5 + $0x40] sm:$0xff] }
 0x920   : > { %22253 = vpow2.f32 %v19950_v28  ;;  %v12307_v6 = vadd.f32 %v12302_v25, %v12020_v19  ;;  %13129 = vmatpush.bf16.msra.mxu3 %v21913_v55  ;;  %v21950_v25 = vld [vmem:[%s28119_s5 + $0x140] sm:$0xff] }
 0x921   : > { %22255 = vrcp.f32 %v12323_v30  ;;  %v12337_v31 = vand.u32 2147483648, %v12323_v30  ;;  %v12335_v11 = vand.u32 2147483647, %v12323_v30  ;;  %vm12331_vm11 = vweird.f32 %v12323_v30 }
 0x922   : > { %v12310_v33 = vmul.f32 %v27524_v26, %v12307_v6 }
 0x923   : > { %12972 = vmatpush.bf16.msra.mxu2 %v21952_v61  ;;  %v12338_v51 = vor.u32 1.1754944e-38, %v12337_v31  ;;  %vm12336_vm13 = vcmp.eq.f32.partialorder %v12335_v11, 8.507059e+37 }
 0x924   : > { %v27605_v44 = vadd.f32 %v22383_v10, %v12310_v33  ;;  %v21920_v10 = vld [vmem:[%s28119_s5 + $0x50] sm:$0xff]  ;;  %13130 = vmatpush.bf16.msra.mxu3 %v21912_v60 }
 0x925   : > { %v12303_v12 = vpop.f32.mrf.mxu0  ;;  %13144 = vmatpush.bf16.msrb.mxu0 %v21920_v10 }
 0x926   : > { %v22254_v26 = vpop.eup %22253  ;;  %v19951_v17 = vmul.f32 -1.442695, %v27605_v44 }
 0x927   : > { %v22256_v50 = vpop.eup %22255  ;;  %v12324_v58 = vadd.f32 1.0, %v22254_v26  ;;  %12973 = vmatpush.bf16.msra.mxu2 %v21951_v22 }
 0x928   : > { %v12327_v53 = vmul.f32 %v22256_v50, %v12323_v30  ;;  %22257 = vpow2.f32 %v19951_v17  ;;  %vm12332_vm10 = vweird.f32 %v22256_v50  ;;  %13131 = vmatpush.bf16.msra.mxu3 %v21911_v5  ;;  %v21910_v30 = vld [vmem:[%s28119_s5] sm:$0xff] }
 0x929   : > { %22259 = vrcp.f32 %v12324_v58  ;;  %13145 = vmatpush.bf16.msrb.mxu0 %v21919_v36  ;;  %vm12333_vm12 = vmor %vm12331_vm11, %vm12332_vm10  ;;  %v12352_v62 = vand.u32 2147483648, %v12324_v58  ;;  %v12350_v33 = vand.u32 2147483647, %v12324_v58  ;;  %vm12346_vm15 = vweird.f32 %v12324_v58 }
 0x92a   : > { %v12328_v57 = vsub.f32 1.0, %v12327_v53 }
 0x92b   : > { %12974 = vmatpush.bf16.msra.mxu2 %v21950_v25  ;;  %v12353_v12 = vor.u32 1.1754944e-38, %v12352_v62  ;;  %vm12351_vm4 = vcmp.eq.f32.partialorder %v12350_v33, 8.507059e+37 }
 0x92c   : > { %v12329_v48 = vmul.f32 %v22256_v50, %v12328_v57  ;;  %13132 = vmatpush.bf16.msra.mxu3 %v21910_v30  ;;  %v22003_v30 = vld [vmem:[%s28116_s2 + $0x168] sm:$0xff] }
 0x92d   : > { %13146 = vmatpush.bf16.msrb.mxu0 %v21918_v20 }
 0x92e   : > { %v22258_v27 = vpop.eup %22257  ;;  %v12330_v35 = vadd.f32 %v22256_v50, %v12329_v48  ;;  %v21933_v48 = vld [vmem:[%s28119_s5 + $0xb8] sm:$0xff] }
 0x92f   : > { %v22260_v14 = vpop.eup %22259  ;;  %v12325_v37 = vadd.f32 1.0, %v22258_v27 }
 0x930   : > { %v12334_v19 = vsel %vm12333_vm12, %v22256_v50, %v12330_v35  ;;  %v12342_v28 = vmul.f32 %v22260_v14, %v12324_v58  ;;  %vm12347_vm14 = vweird.f32 %v22260_v14 }
 0x931   : > { %v12339_v59 = vsel %vm12336_vm13, %v12338_v51, %v12334_v19  ;;  %22261 = vrcp.f32 %v12325_v37  ;;  %vm12348_vm3 = vmor %vm12346_vm15, %vm12347_vm14  ;;  %v12367_v61 = vand.u32 2147483648, %v12325_v37  ;;  %v12365_v31 = vand.u32 2147483647, %v12325_v37  ;;  %v21932_v51 = vld [vmem:[%s28119_s5 + $0xb0] sm:$0xff] }
 0x932   : > { %v12343_v6 = vsub.f32 1.0, %v12342_v28  ;;  %v12371_v9 = vmul.f32 %v12339_v59, %v27543_v38  ;;  %vm12361_vm7 = vweird.f32 %v12325_v37 }
 0x933   : > { %v12368_v5 = vor.u32 1.1754944e-38, %v12367_v61  ;;  %vm12366_vm9 = vcmp.eq.f32.partialorder %v12365_v31, 8.507059e+37  ;;  %v22001_v61 = vld [vmem:[%s28116_s2 + $0x158] sm:$0xff]  ;;  %v21995_v31 = vld [vmem:[%s28116_s2 + $0x128] sm:$0xff] }
 0x934   : > { %v12344_v46 = vmul.f32 %v22260_v14, %v12343_v6  ;;  %v12374_v55 = vsel %vm533_vm6, %v12371_v9, 0.0 }
 0x935   : > { %v12377_v10 = vpack.c.bf16 %v12374_v55, %v12374_v55  ;;  %v22002_v55 = vld [vmem:[%s28116_s2 + $0x160] sm:$0xff] }
 0x936   : > { %v12345_v7 = vadd.f32 %v22260_v14, %v12344_v46  ;;  %v21930_v46 = vld [vmem:[%s28119_s5 + $0xa0] sm:$0xff] }
 0x937   : > { %v22262_v23 = vpop.eup %22261  ;;  %v12382_v58 = vunpack.c.l.b16 %v12377_v10 }
 0x938   : > { %v12349_v26 = vsel %vm12348_vm3, %v22260_v14, %v12345_v7  ;;  %v12357_v17 = vmul.f32 %v22262_v23, %v12325_v37  ;;  %vm12362_vm5 = vweird.f32 %v22262_v23  ;;  %v22004_v37 = vld [vmem:[%s28116_s2 + $0x170] sm:$0xff] }
 0x939   : > { %v12354_v50 = vsel %vm12351_vm4, %v12353_v12, %v12349_v26  ;;  %vm12363_vm8 = vmor %vm12361_vm7, %vm12362_vm5  ;;  %vm14352_vm5 = vcmask 1045504  }
 0x93a   : > { %v12372_v38 = vmul.f32 %v12354_v50, %v27576_v3  ;;  %v12358_v53 = vsub.f32 1.0, %v12357_v17  ;;  %v22005_v3 = vld [vmem:[%s28116_s2 + $0x178] sm:$0xff] }
 0x93b   : > { %v21989_v50 = vld [vmem:[%s28116_s2 + $0xf8] sm:$0xff] }
 0x93c   : > { %v12378_v60 = vpack.c.bf16 %v12372_v38, %v12372_v38  ;;  %v12359_v57 = vmul.f32 %v22262_v23, %v12358_v53  ;;  %v21929_v38 = vld [vmem:[%s28119_s5 + $0x98] sm:$0xff]  ;;  %v21996_v53 = vld [vmem:[%s28116_s2 + $0x130] sm:$0xff] }
 0x93e   : > { %v12383_v36 = vunpack.c.l.b16 %v12378_v60  ;;  %v12360_v22 = vadd.f32 %v22262_v23, %v12359_v57  ;;  %v21988_v60 = vld [vmem:[%s28116_s2 + $0xf0] sm:$0xff] }
 0x93f   : > { %v21928_v57 = vld [vmem:[%s28119_s5 + $0x90] sm:$0xff] }
 0x940   : > { %v12384_v11 = vpack.c.b16 %v12383_v36, %v12382_v58  ;;  %v12364_v27 = vsel %vm12363_vm8, %v22262_v23, %v12360_v22  ;;  %v21997_v23 = vld [vmem:[%s28116_s2 + $0x138] sm:$0xff]  ;;  %v22000_v58 = vld [vmem:[%s28116_s2 + $0x150] sm:$0xff]  ;;  %v21927_v36 = vld [vmem:[%s28119_s5 + $0x88] sm:$0xff] }
 0x941   : > { %v12369_v35 = vsel %vm12366_vm9, %v12368_v5, %v12364_v27  ;;  %v21994_v22 = vld [vmem:[%s28116_s2 + $0x120] sm:$0xff]  ;;  %v21999_v5 = vld [vmem:[%s28116_s2 + $0x148] sm:$0xff]  ;;  %v21965_v27 = vld [vmem:[%s28116_s2 + $0x38] sm:$0xff] }
 0x942   : > { %v12373_v14 = vmul.f32 %v12369_v35, %v27605_v44  ;;  %12606 = vmatmul.bf16.vlgmr.msrb.gmra.mxu1 %v12384_v11  ;;  %12947 = vmatmul.bf16.vlgmr.msra.gmra.mxu0 %v12384_v11  ;;  %v12392_v28 = vshll.u32 %v12384_v11, 16  ;;  %v21931_v44 = vld [vmem:[%s28119_s5 + $0xa8] sm:$0xff]  ;;  %v12402_v9 = vrot.slane %v12384_v11, 1  ;;  %v12390_v33 = vshrl.u32 %v12384_v11, 16  ;;  %v21993_v11 = vld [vmem:[%s28116_s2 + $0x118] sm:$0xff] }
 0x943   : > { %13153 = vmatpush.bf16.msrb.mxu1 %v21933_v48  ;;  %13443 = vmatpush.bf16.msra.mxu0 %v22005_v3  ;;  %v21986_v48 = vld [vmem:[%s28116_s2 + $0xe0] sm:$0xff]  ;;  %v21985_v35 = vld [vmem:[%s28116_s2 + $0xd8] sm:$0xff] }
 0x944   : > { %v12376_v20 = vsel %vm538_vm2, %v12373_v14, 0.0  ;;  %v12394_v6 = vrot.slane %v12392_v28, 1  ;;  %v21926_v3 = vld [vmem:[%s28119_s5 + $0x80] sm:$0xff]  ;;  %v21983_v28 = vld [vmem:[%s28116_s2 + $0xc8] sm:$0xff] }
 0x945   : > { %v12379_v19 = vpack.c.bf16 %v12376_v20, %v12376_v20  ;;  %v21998_v14 = vld [vmem:[%s28116_s2 + $0x140] sm:$0xff]  ;;  %v21984_v20 = vld [vmem:[%s28116_s2 + $0xd0] sm:$0xff] }
 0x946   : > { %v12395_v26 = vor.u32 %v12394_v6, %v12390_v33  ;;  %v21961_v6 = vld [vmem:[%s28116_s2 + $0x18] sm:$0xff]  ;;  %v21960_v33 = vld [vmem:[%s28116_s2 + $0x10] sm:$0xff] }
 0x947   : > { %v12387_v25 = vunpack.c.l.b16 %v12379_v19  ;;  %13154 = vmatpush.bf16.msrb.mxu1 %v21932_v51  ;;  %13444 = vmatpush.bf16.msra.mxu0 %v22004_v37  ;;  %v21992_v51 = vld [vmem:[%s28116_s2 + $0x110] sm:$0xff]  ;;  %v21963_v19 = vld [vmem:[%s28116_s2 + $0x28] sm:$0xff] }
 0x948   : > { %v21964_v37 = vld [vmem:[%s28116_s2 + $0x30] sm:$0xff] }
 0x949   : > { %v12388_v59 = vpack.c.b16 %v12387_v25, %v12387_v25  ;;  %v21962_v25 = vld [vmem:[%s28116_s2 + $0x20] sm:$0xff] }
 0x94b   : > { %13155 = vmatpush.bf16.msrb.mxu1 %v21931_v44  ;;  %v12403_v62 = vrot.slane %v12388_v59, 1  ;;  %v12397_v7 = vshll.u32 %v12388_v59, 16  ;;  %13445 = vmatpush.bf16.msra.mxu0 %v22003_v30  ;;  %v21981_v44 = vld [vmem:[%s28116_s2 + $0xb8] sm:$0xff] }
 0x94c   : > { %v21973_v30 = vld [vmem:[%s28116_s2 + $0x78] sm:$0xff] }
 0x94d   : > { %v12404_v12 = vsel %vm573_vm1, %v12402_v9, %v12403_v62  ;;  %v12399_v17 = vrot.slane %v12397_v7, 1  ;;  %v22014_v59 = vld [vmem:[%s28116_s2 + $0x1b8] sm:$0xff]  ;;  %v21980_v9 = vld [vmem:[%s28116_s2 + $0xb0] sm:$0xff] }
 0x94e   : > { %12634 = vmatmul.bf16.vlgmr.msrb.gmra.mxu3 %v12404_v12  ;;  %v21972_v62 = vld [vmem:[%s28116_s2 + $0x70] sm:$0xff] }
 0x94f   : > { %13156 = vmatpush.bf16.msrb.mxu1 %v21930_v46  ;;  %v12400_v10 = vsel %vm555_vm0, %v12395_v26, %v12399_v17  ;;  %13425 = vmatpush.bf16.msrb.mxu3 %v21997_v23  ;;  %v22384_v46 = vld [vmem:[%s26027_s21 + $0x18] sm:$0xff]  ;;  %v22013_v7 = vld [vmem:[%s28116_s2 + $0x1b0] sm:$0xff]  ;;  %v21971_v23 = vld [vmem:[%s28116_s2 + $0x68] sm:$0xff] }
 0x950   : > { %12620 = vmatmul.bf16.vlgmr.msrb.gmra.mxu2 %v12400_v10  ;;  %13446 = vmatpush.bf16.msra.mxu0 %v22002_v55  ;;  %v22012_v55 = vld [vmem:[%s28116_s2 + $0x1a8] sm:$0xff]  ;;  %v21978_v26 = vld [vmem:[%s28116_s2 + $0xa0] sm:$0xff] }
 0x951   : > { %13407 = vmatpush.bf16.msrb.mxu2 %v21989_v50  ;;  %v21970_v17 = vld [vmem:[%s28116_s2 + $0x60] sm:$0xff] }
 0x952   : > { %12961 = vmatmul.bf16.vlgmr.msra.gmra.mxu1 %v12400_v10  ;;  %13147 = vmatmul.bf16.vlgmr.msrb.gmra.mxu0 %v27083_v49  ;;  %v21987_v49 = vld [vmem:[%s28116_s2 + $0xe8] sm:$0xff]  ;;  %v22011_v50 = vld [vmem:[%s28116_s2 + $0x1a0] sm:$0xff]  ;;  %v21977_v10 = vld [vmem:[%s28116_s2 + $0x98] sm:$0xff] }
 0x953   : > { %13157 = vmatpush.bf16.msrb.mxu1 %v21929_v38  ;;  %13426 = vmatpush.bf16.msrb.mxu3 %v21996_v53  ;;  %v22022_v38 = vld [vmem:[%s28116_s2 + $0x1f8] sm:$0xff] }
 0x954   : > { %13447 = vmatpush.bf16.msra.mxu0 %v22001_v61  ;;  %v21969_v53 = vld [vmem:[%s28116_s2 + $0x58] sm:$0xff] }
 0x955   : > { %13408 = vmatpush.bf16.msrb.mxu2 %v21988_v60  ;;  %v22010_v61 = vld [vmem:[%s28116_s2 + $0x198] sm:$0xff]  ;;  %v21976_v60 = vld [vmem:[%s28116_s2 + $0x90] sm:$0xff] }
 0x957   : > { %13158 = vmatpush.bf16.msrb.mxu1 %v21928_v57  ;;  %13427 = vmatpush.bf16.msrb.mxu3 %v21995_v31  ;;  %v22021_v57 = vld [vmem:[%s28116_s2 + $0x1f0] sm:$0xff] }
 0x958   : > { %13448 = vmatpush.bf16.msra.mxu0 %v22000_v58  ;;  %v21968_v31 = vld [vmem:[%s28116_s2 + $0x50] sm:$0xff] }
 0x959   : > { %13409 = vmatpush.bf16.msrb.mxu2 %v21987_v49  ;;  %v22385_v58 = vld [vmem:[%s26027_s21 + $0xc] sm:$0xff] }
 0x95a   : > { %v22009_v49 = vld [vmem:[%s28116_s2 + $0x190] sm:$0xff] }
 0x95b   : > { %13159 = vmatpush.bf16.msrb.mxu1 %v21927_v36  ;;  %13428 = vmatpush.bf16.msrb.mxu3 %v21994_v22  ;;  %v21975_v36 = vld [vmem:[%s28116_s2 + $0x88] sm:$0xff] }
 0x95c   : > { %13449 = vmatpush.bf16.msra.mxu0 %v21999_v5  ;;  %v22008_v22 = vld [vmem:[%s28116_s2 + $0x188] sm:$0xff]  ;;  %v21974_v5 = vld [vmem:[%s28116_s2 + $0x80] sm:$0xff] }
 0x95d   : > { %13410 = vmatpush.bf16.msrb.mxu2 %v21986_v48  ;;  %v22019_v48 = vld [vmem:[%s28116_s2 + $0x1e0] sm:$0xff] }
 0x95e   : > { %13133 = vmatmul.bf16.vlgmr.msra.gmra.mxu3 %v27044_v40  ;;  %v21991_v40 = vld [vmem:[%s28116_s2 + $0x108] sm:$0xff] }
 0x95f   : > { %13160 = vmatpush.bf16.msrb.mxu1 %v21926_v3  ;;  %13429 = vmatpush.bf16.msrb.mxu3 %v21993_v11  ;;  %v21966_v3 = vld [vmem:[%s28116_s2 + $0x40] sm:$0xff]  ;;  %v22030_v11 = vld [vmem:[%s28116_s2 + $0x238] sm:$0xff] }
 0x960   : > { %12975 = vmatmul.bf16.vlgmr.msra.gmra.mxu2 %v12404_v12  ;;  %13450 = vmatpush.bf16.msra.mxu0 %v21998_v14  ;;  %v21959_v12 = vld [vmem:[%s28116_s2 + $0x8] sm:$0xff] }
 0x961   : > { %13411 = vmatpush.bf16.msrb.mxu2 %v21985_v35  ;;  %v22018_v35 = vld [vmem:[%s28116_s2 + $0x1d8] sm:$0xff]  ;;  %v20582_v14 = vld [vmem:[%s26027_s21 + $0x2c] sm:$0x3] }
 0x962   : > { %13161 = vmatmul.bf16.vlgmr.msrb.gmra.mxu1 %v27076_v52  ;;  %v21990_v52 = vld [vmem:[%s28116_s2 + $0x100] sm:$0xff] }
 0x963   : > { %13605 = vmatpush.bf16.msra.mxu1 %v21965_v27  ;;  %13430 = vmatpush.bf16.msrb.mxu3 %v21992_v51  ;;  %v22007_v27 = vld [vmem:[%s28116_s2 + $0x180] sm:$0xff]  ;;  %v22029_v51 = vld [vmem:[%s28116_s2 + $0x230] sm:$0xff] }
 0x964   : > { %13451 = vmatmul.bf16.vlgmr.msra.gmra.mxu0 %v27331_v4  ;;  %v21982_v4 = vld [vmem:[%s28116_s2 + $0xc0] sm:$0xff] }
 0x965   : > { %13412 = vmatpush.bf16.msrb.mxu2 %v21984_v20  ;;  %13887 = vmatpush.bf16.msrb.mxu0 %v22014_v59  ;;  %v13668_v20 = vunpack.c.l.b16 %v20582_v14 }
 0x967   : > { %13606 = vmatpush.bf16.msra.mxu1 %v21964_v37  ;;  %13431 = vmatpush.bf16.msrb.mxu3 %v21991_v40  ;;  %v22006_v37 = vld [vmem:[%s26027_s21 + $0x24] sm:$0xff]  ;;  %v22017_v40 = vld [vmem:[%s28116_s2 + $0x1d0] sm:$0xff]  ;;  %s14598_s21 = sshll.u32 %s28210_s14, 2 }
 0x968   : > { %s522_s11 = sadd.s32 %s14598_s21, %s14597_s29  ;;  %s515_s29 = scalar_lea.vmem %s28123_s9, %s14596_s27 }
 0x969   : > { %13413 = vmatpush.bf16.msrb.mxu2 %v21983_v28  ;;  %13888 = vmatpush.bf16.msrb.mxu0 %v22013_v7  ;;  %v13670_v28 = vpack.c.b16 %v13668_v20, %v13668_v20  ;;  %s14599_s25 = sshll.u32 %s522_s11, 3 }
 0x96a   : > { %s524_s20 = scalar_lea.vmem %s28124_s10, %s14599_s25 }
 0x96b   : > { %13607 = vmatpush.bf16.msra.mxu1 %v21963_v19  ;;  %13432 = vmatpush.bf16.msrb.mxu3 %v21990_v52  ;;  %v22028_v19 = vld [vmem:[%s28116_s2 + $0x228] sm:$0xff]  ;;  %v13676_v52 = vshll.u32 %v22006_v37, 16  ;;  %v13685_v7 = vshrl.u32 %v13670_v28, 16 }
 0x96d   : > { %13414 = vmatpush.bf16.msrb.mxu2 %v21982_v4  ;;  %13889 = vmatpush.bf16.msrb.mxu0 %v22012_v55  ;;  %v13681_v4 = vshll.u32 %v13670_v28, 16 }
 0x96e   : > { %13433 = vmatmul.bf16.vlgmr.msrb.gmra.mxu3 %v27312_v13  ;;  %v21979_v13 = vld [vmem:[%s28116_s2 + $0xa8] sm:$0xff] }
 0x96f   : > { %13608 = vmatpush.bf16.msra.mxu1 %v21962_v25  ;;  %13641 = vmatpush.bf16.msra.mxu3 %v21981_v44  ;;  %v22016_v25 = vld [vmem:[%s28116_s2 + $0x1c8] sm:$0xff]  ;;  %v13678_v44 = vrot.slane %v13676_v52, 1 }
 0x970   : > { %13415 = vmatmul.bf16.vlgmr.msrb.gmra.mxu2 %v22384_v46  ;;  %v22024_v46 = vld [vmem:[%s28116_s2 + $0x208] sm:$0xff] }
 0x971   : > { %13623 = vmatpush.bf16.msra.mxu2 %v21973_v30  ;;  %13890 = vmatpush.bf16.msrb.mxu0 %v22011_v50  ;;  %v22026_v30 = vld [vmem:[%s28116_s2 + $0x218] sm:$0xff] }
 0x973   : > { %13609 = vmatpush.bf16.msra.mxu1 %v21961_v6  ;;  %13642 = vmatpush.bf16.msra.mxu3 %v21980_v9  ;;  %v13683_v6 = vrot.slane %v13681_v4, 1  ;;  %v22025_v9 = vld [vmem:[%s28116_s2 + $0x210] sm:$0xff] }
 0x974   : > { %13456 = vmatmul.bf16.gmra.mxu0 %v27325_v15  ;;  %v21958_v15 = vld [vmem:[%s28116_s2] sm:$0xff] }
 0x975   : > { %13624 = vmatpush.bf16.msra.mxu2 %v21972_v62  ;;  %13891 = vmatpush.bf16.msrb.mxu0 %v22010_v61  ;;  %v13687_v55 = vor.u32 %v13685_v7, %v13683_v6 }
 0x977   : > { %13610 = vmatpush.bf16.msra.mxu1 %v21960_v33  ;;  %13643 = vmatpush.bf16.msra.mxu3 %v21979_v13  ;;  %v22023_v33 = vld [vmem:[%s28116_s2 + $0x200] sm:$0xff]  ;;  %v13690_v13 = vrot.slane %v22006_v37, 1 }
 0x979   : > { %13625 = vmatpush.bf16.msra.mxu2 %v21971_v23  ;;  %13892 = vmatpush.bf16.msrb.mxu0 %v22009_v49  ;;  %v13691_v23 = vrot.slane %v13670_v28, 1 }
 0x97b   : > { %13611 = vmatpush.bf16.msra.mxu1 %v21959_v12  ;;  %13644 = vmatpush.bf16.msra.mxu3 %v21978_v26 }
 0x97d   : > { %13626 = vmatpush.bf16.msra.mxu2 %v21970_v17  ;;  %13893 = vmatpush.bf16.msrb.mxu0 %v22008_v22 }
 0x97e   : > { %13438 = vmatmul.bf16.gmra.mxu3 %v27327_v24  ;;  %v22020_v24 = vld [vmem:[%s28116_s2 + $0x1e8] sm:$0xff] }
 0x97f   : > { %13612 = vmatpush.bf16.msra.mxu1 %v21958_v15  ;;  %13645 = vmatpush.bf16.msra.mxu3 %v21977_v10 }
 0x980   : > { %13420 = vmatmul.bf16.gmra.mxu2 %v27292_v39  ;;  %v21967_v39 = vld [vmem:[%s28116_s2 + $0x48] sm:$0xff] }
 0x981   : > { %13627 = vmatpush.bf16.msra.mxu2 %v21969_v53  ;;  %13894 = vmatpush.bf16.msrb.mxu0 %v22007_v27  ;;  %v11329_v53 = vadd.f32 %v27351_v18, %v27339_v16 }
 0x982   : > { %13613 = vmatmul.bf16.vlgmr.msra.gmra.mxu1 %v22385_v58 }
 0x983   : > { %13905 = vmatpush.bf16.msrb.mxu1 %v22022_v38  ;;  %13646 = vmatpush.bf16.msra.mxu3 %v21976_v60  ;;  %v11343_v60 = vadd.f32 %v27357_v56, %v11329_v53 }
 0x984   : > { %13895 = vmatmul.bf16.vlgmr.msrb.gmra.mxu0 %v22006_v37 }
 0x985   : > { %13628 = vmatpush.bf16.msra.mxu2 %v21968_v31  ;;  %v11501_v49 = vadd.f32 %v27355_v21, %v11343_v60 }
 0x987   : > { %13906 = vmatpush.bf16.msrb.mxu1 %v22021_v57  ;;  %13647 = vmatpush.bf16.msra.mxu3 %v21975_v36  ;;  %v11515_v56 = vadd.f32 %v27353_v8, %v11501_v49 }
 0x989   : > { %13629 = vmatpush.bf16.msra.mxu2 %v21967_v39 }
 0x98b   : > { %13907 = vmatpush.bf16.msrb.mxu1 %v22020_v24  ;;  %13648 = vmatpush.bf16.msra.mxu3 %v21974_v5  ;;  %v27917_v5 = vld [vmem:[%s28120_s6] ss:$0 sm:$0xff] }
 0x98d   : > { %13630 = vmatpush.bf16.msra.mxu2 %v21966_v3  ;;  %v11529_v3 = vadd.f32 %v27375_v43, %v11515_v56 }
 0x98e   : > { %13649 = vmatmul.bf16.vlgmr.msra.gmra.mxu3 %v26720_v42  ;;  %v22027_v42 = vld [vmem:[%s28116_s2 + $0x220] sm:$0xff] }
 0x98f   : > { %13908 = vmatpush.bf16.msrb.mxu1 %v22019_v48  ;;  %v27924_v48 = vld [vmem:[%s28121_s7] ss:$0 sm:$0xff] }
 0x990   : > { %13631 = vmatmul.bf16.vlgmr.msra.gmra.mxu2 %v26699_v34  ;;  %v22015_v34 = vld [vmem:[%s28116_s2 + $0x1c0] sm:$0xff] }
 0x991   : > { %13923 = vmatpush.bf16.msrb.mxu2 %v22030_v11 }
 0x992   : > { %13618 = vmatmul.bf16.gmra.mxu1 %v26678_v63  ;;  %v13674_v63 = vshrl.u32 %v22006_v37, 16 }
 0x993   : > { %13909 = vmatpush.bf16.msrb.mxu1 %v22018_v35 }
 0x994   : > { %v13679_v59 = vor.u32 %v13678_v44, %v13674_v63  ;;  %13900 = vmatmul.bf16.gmra.mxu0 %v13670_v28 }
 0x995   : > { %13924 = vmatpush.bf16.msrb.mxu2 %v22029_v51 }
 0x996   : > { %v13684_v62 = vsel %vm555_vm0, %v13679_v59, %v13683_v6 }
 0x997   : > { %13910 = vmatpush.bf16.msrb.mxu1 %v22017_v40 }
 0x999   : > { %13925 = vmatpush.bf16.msrb.mxu2 %v22028_v19 }
 0x99b   : > { %13911 = vmatpush.bf16.msrb.mxu1 %v22016_v25 }
 0x99d   : > { %13926 = vmatpush.bf16.msrb.mxu2 %v22027_v42 }
 0x99e   : > { %13654 = vmatmul.bf16.gmra.mxu3 %v26714_v54  ;;  %v13692_v54 = vsel %vm573_vm1, %v13690_v13, %v13691_v23 }
 0x99f   : > { %13912 = vmatpush.bf16.msrb.mxu1 %v22015_v34 }
 0x9a0   : > { %13636 = vmatmul.bf16.gmra.mxu2 %v26716_v47 }
 0x9a1   : > { %13927 = vmatpush.bf16.msrb.mxu2 %v22026_v30 }
 0x9a2   : > { %13913 = vmatmul.bf16.vlgmr.msrb.gmra.mxu1 %v13684_v62 }
 0x9a5   : > { %13928 = vmatpush.bf16.msrb.mxu2 %v22025_v9 }
 0x9a9   : > { %13929 = vmatpush.bf16.msrb.mxu2 %v22024_v46 }
 0x9ad   : > { %13930 = vmatpush.bf16.msrb.mxu2 %v22023_v33 }
 0x9b0   : > { %13931 = vmatmul.bf16.vlgmr.msrb.gmra.mxu2 %v13692_v54 }
 0x9b2   : > { %13918 = vmatmul.bf16.gmra.mxu1 %v13687_v55 }
 0x9bf   : > { %v12607_v12 = vpop.f32.mrf.mxu1  ;;  %v12948_v26 = vpop.f32.mrf.mxu0 }
 0x9c0   : > { %13936 = vmatmul.bf16.gmra.mxu2 %v13691_v23 }
 0x9c7   : > { %v12609_v17 = vpop.f32.mrf.mxu1  ;;  %v12950_v50 = vpop.f32.mrf.mxu0 }
 0x9cf   : > { %v12962_v47 = vpop.f32.mrf.mxu1  ;;  %v13148_v15 = vpop.f32.mrf.mxu0 }
 0x9d0   : > { %v12963_v10 = vadd.f32 %v12962_v47, %v12948_v26 }
 0x9d1   : > { %v12635_v38 = vpop.f32.mrf.mxu3 }
 0x9d3   : > { %v12621_v61 = vpop.f32.mrf.mxu2 }
 0x9d4   : > { %v12622_v57 = vadd.f32 %v12621_v61, %v12607_v12 }
 0x9d6   : > { %v12636_v31 = vadd.f32 %v12635_v38, %v12622_v57 }
 0x9d7   : > { %v12964_v58 = vpop.f32.mrf.mxu1  ;;  %v13150_v39 = vpop.f32.mrf.mxu0 }
 0x9d8   : > { %v12640_v36 = vadd.f32 %v12636_v31, %v27359_v29  ;;  %v12965_v24 = vadd.f32 %v12964_v58, %v12950_v50 }
 0x9d9   : > { %v12637_v22 = vpop.f32.mrf.mxu3 }
 0x9da   : > { %v12642_v16 = vmul.f32 %v27917_v5, %v12640_v36 }
 0x9db   : > { %v12623_v18 = vpop.f32.mrf.mxu2 }
 0x9dc   : > { %v12644_v21 = vadd.f32 %v27924_v48, %v12642_v16  ;;  %v12624_v29 = vadd.f32 %v12623_v18, %v12609_v17 }
 0x9de   : > { %v20096_v11 = vmul.f32 -1.442695, %v12644_v21  ;;  %v12638_v27 = vadd.f32 %v12637_v22, %v12624_v29 }
 0x9df   : > { %v13162_v52 = vpop.f32.mrf.mxu1 }
 0x9e0   : > { %22263 = vpow2.f32 %v20096_v11  ;;  %v12641_v35 = vadd.f32 %v12638_v27, %v11529_v3 }
 0x9e1   : > { %v13134_v14 = vpop.f32.mrf.mxu3  ;;  %v13452_v51 = vpop.f32.mrf.mxu0 }
 0x9e2   : > { %v12643_v37 = vmul.f32 %v27917_v5, %v12641_v35 }
 0x9e3   : > { %v12976_v20 = vpop.f32.mrf.mxu2 }
 0x9e4   : > { %v27930_v8 = vadd.f32 %v27924_v48, %v12643_v37  ;;  %v12977_v40 = vadd.f32 %v12976_v20, %v12963_v10 }
 0x9e6   : > { %v22264_v19 = vpop.eup %22263  ;;  %v20097_v28 = vmul.f32 -1.442695, %v27930_v8  ;;  %v13135_v25 = vadd.f32 %v13134_v14, %v12977_v40 }
 0x9e7   : > { %v12652_v42 = vadd.f32 1.0, %v22264_v19  ;;  %v13164_v33 = vpop.f32.mrf.mxu1 }
 0x9e8   : > { %22265 = vpow2.f32 %v20097_v28  ;;  %v13149_v43 = vadd.f32 %v13148_v15, %v13135_v25 }
 0x9e9   : > { %22267 = vrcp.f32 %v12652_v42  ;;  %v13136_v63 = vpop.f32.mrf.mxu3  ;;  %v27933_v44 = vpop.f32.mrf.mxu0  ;;  %v12665_v12 = vand.u32 2147483648, %v12652_v42  ;;  %v12663_v50 = vand.u32 2147483647, %v12652_v42  ;;  %vm12659_vm11 = vweird.f32 %v12652_v42 }
 0x9ea   : > { %v27935_v4 = vadd.f32 %v13162_v52, %v13149_v43 }
 0x9eb   : > { %v12978_v34 = vpop.f32.mrf.mxu2  ;;  %v12666_v53 = vor.u32 1.1754944e-38, %v12665_v12  ;;  %vm12664_vm13 = vcmp.eq.f32.partialorder %v12663_v50, 8.507059e+37  ;;  %v22038_v50 = vld [vmem:[%s28119_s5 + $0x1b8] sm:$0xff] }
 0x9ec   : > { %v12979_v30 = vadd.f32 %v12978_v34, %v12965_v24  ;;  %14241 = vmatpush.bf16.msrb.mxu3 %v22038_v50  ;;  %v22031_v50 = vld [vmem:[%s28119_s5 + $0x180] sm:$0xff] }
 0x9ee   : > { %v22266_v59 = vpop.eup %22265  ;;  %v13137_v6 = vadd.f32 %v13136_v63, %v12979_v30 }
 0x9ef   : > { %v22268_v9 = vpop.eup %22267  ;;  %v12653_v62 = vadd.f32 1.0, %v22266_v59 }
 0x9f0   : > { %v12655_v46 = vmul.f32 %v22268_v9, %v12652_v42  ;;  %v13151_v7 = vadd.f32 %v13150_v39, %v13137_v6  ;;  %vm12660_vm10 = vweird.f32 %v22268_v9 }
 0x9f1   : > { %22269 = vrcp.f32 %v12653_v62  ;;  %v13434_v13 = vpop.f32.mrf.mxu3  ;;  %v27937_v23 = vpop.f32.mrf.mxu0  ;;  %vm12661_vm12 = vmor %vm12659_vm11, %vm12660_vm10  ;;  %v12680_v24 = vand.u32 2147483648, %v12653_v62  ;;  %v12678_v18 = vand.u32 2147483647, %v12653_v62  ;;  %vm12674_vm15 = vweird.f32 %v12653_v62 }
 0x9f2   : > { %v12656_v55 = vsub.f32 1.0, %v12655_v46  ;;  %v27939_v54 = vadd.f32 %v13164_v33, %v13151_v7 }
 0x9f3   : > { %v13416_v26 = vpop.f32.mrf.mxu2  ;;  %v12681_v3 = vor.u32 1.1754944e-38, %v12680_v24  ;;  %vm12679_vm4 = vcmp.eq.f32.partialorder %v12678_v18, 8.507059e+37 }
 0x9f4   : > { %v12657_v17 = vmul.f32 %v22268_v9, %v12656_v55  ;;  %v13435_v47 = vadd.f32 %v13434_v13, %v13416_v26 }
 0x9f6   : > { %v12658_v15 = vadd.f32 %v22268_v9, %v12657_v17  ;;  %v27941_v10 = vadd.f32 %v13452_v51, %v13435_v47 }
 0x9f7   : > { %v22270_v38 = vpop.eup %22269 }
 0x9f8   : > { %v12662_v61 = vsel %vm12661_vm12, %v22268_v9, %v12658_v15  ;;  %v12670_v60 = vmul.f32 %v22270_v38, %v12653_v62  ;;  %vm12675_vm14 = vweird.f32 %v22270_v38 }
 0x9f9   : > { %v12667_v57 = vsel %vm12664_vm13, %v12666_v53, %v12662_v61  ;;  %v13436_v31 = vpop.f32.mrf.mxu3  ;;  %v13459_v58 = vpop.f32.mrf.mxu0  ;;  %vm12676_vm3 = vmor %vm12674_vm15, %vm12675_vm14 }
 0x9fa   : > { %v12684_v49 = vmul.f32 %v12667_v57, %v12644_v21  ;;  %v12671_v36 = vsub.f32 1.0, %v12670_v60  ;;  %v22036_v57 = vld [vmem:[%s28119_s5 + $0x1a8] sm:$0xff] }
 0x9fb   : > { %v13418_v39 = vpop.f32.mrf.mxu2 }
 0x9fc   : > { %20098 = vst [vmem:[%s24309_s23 + $0x60] sm:$0xff] %v12684_v49  ;;  %v27945_v22 = vadd.f32 %v12684_v49, %v27371_v32  ;;  %v12672_v16 = vmul.f32 %v22270_v38, %v12671_v36  ;;  %v13437_v53 = vadd.f32 %v13436_v31, %v13418_v39  ;;  %v22035_v31 = vld [vmem:[%s28119_s5 + $0x1a0] sm:$0xff]  ;;  %v22054_v39 = vld [vmem:[%s28119_s5 + $0x238] sm:$0xff] }
 0x9fd   : > { %14269 = vmatpush.bf16.msra.mxu1 %v22054_v39 }
 0x9fe   : > { %v12673_v29 = vadd.f32 %v22270_v38, %v12672_v16 }
 0x9ff   : > { %v13614_v56 = vpop.f32.mrf.mxu1 }
 0xa00   : > { %v12677_v11 = vsel %vm12676_vm3, %v22270_v38, %v12673_v29  ;;  %v22037_v38 = vld [vmem:[%s28119_s5 + $0x1b0] sm:$0xff] }
 0xa01   : > { %v12682_v27 = vsel %vm12679_vm4, %v12681_v3, %v12677_v11  ;;  %v13439_v21 = vpop.f32.mrf.mxu3  ;;  %v13896_v25 = vpop.f32.mrf.mxu0  ;;  %14242 = vmatpush.bf16.msrb.mxu3 %v22037_v38  ;;  %v22046_v11 = vld [vmem:[%s28119_s5 + $0x1f8] sm:$0xff]  ;;  %v22049_v38 = vld [vmem:[%s28119_s5 + $0x210] sm:$0xff] }
 0xa02   : > { %v12685_v35 = vmul.f32 %v12682_v27, %v27930_v8  ;;  %14255 = vmatpush.bf16.msra.mxu0 %v22046_v11 }
 0xa03   : > { %v13421_v14 = vpop.f32.mrf.mxu2 }
 0xa04   : > { %20099 = vst [vmem:[%s24309_s23 + $0x68] sm:$0xff] %v12685_v35  ;;  %v27950_v51 = vadd.f32 %v12685_v35, %v27383_v41  ;;  %v12691_v32 = vadd.f32 %v12685_v35, %v12684_v49  ;;  %v13455_v49 = vadd.f32 %v27933_v44, %v13437_v53  ;;  %v22388_v44 = vld [vmem:[%s28117_s3] ss:$0 sm:$0xff] }
 0xa05   : > { %14243 = vmatpush.bf16.msrb.mxu3 %v22036_v57  ;;  %v22389_v35 = vld [vmem:[%s28118_s4] ss:$0 sm:$0xff]  ;;  %v22041_v57 = vld [vmem:[%s28119_s5 + $0x1d0] sm:$0xff] }
 0xa06   : > { %v12692_v20 = vrot.slane %v12691_v32, 4 }
 0xa07   : > { %v13616_v37 = vpop.f32.mrf.mxu1 }
 0xa08   : > { %v12693_v40 = vadd.f32 %v12692_v20, %v12691_v32 }
 0xa09   : > { %v13441_v19 = vpop.f32.mrf.mxu3  ;;  %v13898_v6 = vpop.f32.mrf.mxu0  ;;  %14244 = vmatpush.bf16.msrb.mxu3 %v22035_v31 }
 0xa0a   : > { %v12694_v28 = vrot.slane %v12693_v40, 2 }
 0xa0b   : > { %v13423_v52 = vpop.f32.mrf.mxu2 }
 0xa0c   : > { %v12695_v42 = vadd.f32 %v12694_v28, %v12693_v40  ;;  %v22045_v52 = vld [vmem:[%s28119_s5 + $0x1f0] sm:$0xff] }
 0xa0d   : > { %14256 = vmatpush.bf16.msra.mxu0 %v22045_v52 }
 0xa0e   : > { %v12696_v63 = vrot.slane %v12695_v42, 1 }
 0xa0f   : > { %v13619_v43 = vpop.f32.mrf.mxu1 }
 0xa10   : > { %v12697_v34 = vadd.f32 %v12696_v63, %v12695_v42  ;;  %v22033_v63 = vld [vmem:[%s28119_s5 + $0x190] sm:$0xff] }
 0xa11   : > { %v13650_v30 = vpop.f32.mrf.mxu3  ;;  %v13901_v33 = vpop.f32.mrf.mxu0 }
 0xa12   : > { %v12698_v8 = vmul.f32 %v12697_v34, %v25553_v2 }
 0xa13   : > { %v13632_v59 = vpop.f32.mrf.mxu2 }
 0xa14   : > { %v27954_v41 = vsel %vm14352_vm5, %v27401_v45, %v12698_v8  ;;  %v13615_v45 = vadd.f32 %v13614_v56, %v27941_v10  ;;  %v13617_v10 = vadd.f32 %v13616_v37, %v13455_v49  ;;  %v13440_v56 = vadd.f32 %v13439_v21, %v13421_v14  ;;  %v22034_v21 = vld [vmem:[%s28119_s5 + $0x198] sm:$0xff]  ;;  %v22053_v14 = vld [vmem:[%s28119_s5 + $0x230] sm:$0xff] }
 0xa15   : > { %14245 = vmatpush.bf16.msrb.mxu3 %v22034_v21  ;;  %14270 = vmatpush.bf16.msra.mxu1 %v22053_v14 }
 0xa16   : > { %v13633_v61 = vadd.f32 %v13632_v59, %v13615_v45  ;;  %v13458_v20 = vadd.f32 %v27937_v23, %v13440_v56  ;;  %v22052_v23 = vld [vmem:[%s28119_s5 + $0x228] sm:$0xff] }
 0xa17   : > { %v13621_v9 = vpop.f32.mrf.mxu1 }
 0xa18   : > { %v13651_v36 = vadd.f32 %v13650_v30, %v13633_v61  ;;  %v22051_v9 = vld [vmem:[%s28119_s5 + $0x220] sm:$0xff] }
 0xa19   : > { %v13652_v62 = vpop.f32.mrf.mxu3  ;;  %v13903_v12 = vpop.f32.mrf.mxu0  ;;  %14246 = vmatpush.bf16.msrb.mxu3 %v22033_v63  ;;  %14271 = vmatpush.bf16.msra.mxu1 %v22052_v23 }
 0xa1a   : > { %v22043_v12 = vld [vmem:[%s28119_s5 + $0x1e0] sm:$0xff] }
 0xa1b   : > { %v13634_v46 = vpop.f32.mrf.mxu2 }
 0xa1c   : > { %v13635_v29 = vadd.f32 %v13634_v46, %v13617_v10 }
 0xa1d   : > { %14272 = vmatpush.bf16.msra.mxu1 %v22051_v9 }
 0xa1e   : > { %v13653_v40 = vadd.f32 %v13652_v62, %v13635_v29  ;;  %v22039_v29 = vld [vmem:[%s28119_s5 + $0x1c0] sm:$0xff] }
 0xa1f   : > { %v13914_v7 = vpop.f32.mrf.mxu1 }
 0xa20   : > { %v13915_v60 = vadd.f32 %v13914_v7, %v13896_v25  ;;  %v13620_v25 = vadd.f32 %v13619_v43, %v13458_v20  ;;  %v22044_v43 = vld [vmem:[%s28119_s5 + $0x1e8] sm:$0xff] }
 0xa21   : > { %v27956_v13 = vpop.f32.mrf.mxu3  ;;  %14257 = vmatpush.bf16.msra.mxu0 %v22044_v43 }
 0xa23   : > { %v13637_v55 = vpop.f32.mrf.mxu2 }
 0xa24   : > { %v13638_v34 = vadd.f32 %v13637_v55, %v13620_v25 }
 0xa25   : > { %14258 = vmatpush.bf16.msra.mxu0 %v22043_v12 }
 0xa27   : > { %v13916_v26 = vpop.f32.mrf.mxu1 }
 0xa28   : > { %v13917_v27 = vadd.f32 %v13916_v26, %v13898_v6  ;;  %v22032_v6 = vld [vmem:[%s28119_s5 + $0x188] sm:$0xff] }
 0xa29   : > { %v13657_v17 = vpop.f32.mrf.mxu3  ;;  %14247 = vmatpush.bf16.msrb.mxu3 %v22032_v6 }
 0xa2b   : > { %v13639_v47 = vpop.f32.mrf.mxu2 }
 0xa2d   : > { %14248 = vmatpush.bf16.msrb.mxu3 %v22031_v50 }
 0xa2f   : > { %v13919_v15 = vpop.f32.mrf.mxu1 }
 0xa30   : > { %v13920_v30 = vadd.f32 %v13919_v15, %v13901_v33  ;;  %v13656_v33 = vadd.f32 %v27956_v13, %v13638_v34  ;;  %v22050_v13 = vld [vmem:[%s28119_s5 + $0x218] sm:$0xff] }
 0xa31   : > { %14273 = vmatpush.bf16.msra.mxu1 %v22050_v13  ;;  %v22042_v15 = vld [vmem:[%s28119_s5 + $0x1d8] sm:$0xff] }
 0xa32   : > { %14259 = vmatpush.bf16.msra.mxu0 %v22042_v15 }
 0xa33   : > { %v13932_v58 = vpop.f32.mrf.mxu2 }
 0xa34   : > { %v13933_v24 = vadd.f32 %v13932_v58, %v13915_v60 }
 0xa35   : > { %14274 = vmatpush.bf16.msra.mxu1 %v22049_v38 }
 0xa36   : > { %v13941_v18 = vadd.f32 %v13933_v24, %v13651_v36  ;;  %14260 = vmatpush.bf16.msra.mxu0 %v22041_v57  ;;  %v22048_v24 = vld [vmem:[%s28119_s5 + $0x208] sm:$0xff] }
 0xa37   : > { %v13921_v16 = vpop.f32.mrf.mxu1 }
 0xa38   : > { %v13944_v3 = vmul.f32 %v22388_v44, %v13941_v18  ;;  %v22040_v16 = vld [vmem:[%s28119_s5 + $0x1c8] sm:$0xff]  ;;  %v22047_v18 = vld [vmem:[%s28119_s5 + $0x200] sm:$0xff] }
 0xa39   : > { %14275 = vmatpush.bf16.msra.mxu1 %v22048_v24 }
 0xa3a   : > { %v27984_v32 = vadd.f32 %v22389_v35, %v13944_v3  ;;  %14261 = vmatpush.bf16.msra.mxu0 %v22040_v16 }
 0xa3b   : > { %v13934_v37 = vpop.f32.mrf.mxu2 }
 0xa3c   : > { %v20731_v19 = vmul.f32 -1.442695, %v27984_v32  ;;  %v13935_v28 = vadd.f32 %v13934_v37, %v13917_v27 }
 0xa3d   : > { %14276 = vmatpush.bf16.msra.mxu1 %v22047_v18 }
 0xa3e   : > { %22271 = vpow2.f32 %v20731_v19  ;;  %v13942_v42 = vadd.f32 %v13935_v28, %v13653_v40  ;;  %14262 = vmatpush.bf16.msra.mxu0 %v22039_v29  ;;  %v14015_v40 = vstv %s14014_s24 }
 0xa3f   : > { %vm28055_vm12 = vcmp.eq.s32.totalorder %v14015_v40, 1 }
 0xa40   : > { %v13945_v8 = vmul.f32 %v22388_v44, %v13942_v42 }
 0xa42   : > { %v28006_v59 = vadd.f32 %v22389_v35, %v13945_v8 }
 0xa43   : > { %v13937_v62 = vpop.f32.mrf.mxu2 }
 0xa44   : > { %v22272_v46 = vpop.eup %22271  ;;  %v20732_v7 = vmul.f32 -1.442695, %v28006_v59  ;;  %v13938_v55 = vadd.f32 %v13937_v62, %v13920_v30 }
 0xa45   : > { %v13959_v26 = vadd.f32 1.0, %v22272_v46 }
 0xa46   : > { %22273 = vpow2.f32 %v20732_v7  ;;  %v13943_v17 = vadd.f32 %v13938_v55, %v13656_v33 }
 0xa47   : > { %22275 = vrcp.f32 %v13959_v26  ;;  %v13973_v31 = vand.u32 2147483648, %v13959_v26  ;;  %v13971_v56 = vand.u32 2147483647, %v13959_v26  ;;  %vm13967_vm8 = vweird.f32 %v13959_v26 }
 0xa48   : > { %v13946_v47 = vmul.f32 %v22388_v44, %v13943_v17 }
 0xa49   : > { %v13974_v27 = vor.u32 1.1754944e-38, %v13973_v31  ;;  %vm13972_vm10 = vcmp.eq.f32.partialorder %v13971_v56, 8.507059e+37 }
 0xa4a   : > { %v28028_v45 = vadd.f32 %v22389_v35, %v13946_v47 }
 0xa4b   : > { %v13939_v53 = vpop.f32.mrf.mxu2 }
 0xa4c   : > { %v22274_v61 = vpop.eup %22273  ;;  %v20733_v60 = vmul.f32 -1.442695, %v28028_v45 }
 0xa4d   : > { %v22276_v58 = vpop.eup %22275  ;;  %v13960_v49 = vadd.f32 1.0, %v22274_v61 }
 0xa4e   : > { %v13963_v36 = vmul.f32 %v22276_v58, %v13959_v26  ;;  %22277 = vpow2.f32 %v20733_v60  ;;  %vm13968_vm7 = vweird.f32 %v22276_v58 }
 0xa4f   : > { %22279 = vrcp.f32 %v13960_v49  ;;  %vm13969_vm9 = vmor %vm13967_vm8, %vm13968_vm7  ;;  %v13988_v28 = vand.u32 2147483648, %v13960_v49  ;;  %v13986_v25 = vand.u32 2147483647, %v13960_v49  ;;  %vm13982_vm13 = vweird.f32 %v13960_v49 }
 0xa50   : > { %v13964_v10 = vsub.f32 1.0, %v13963_v36 }
 0xa51   : > { %v13989_v30 = vor.u32 1.1754944e-38, %v13988_v28  ;;  %vm13987_vm15 = vcmp.eq.f32.partialorder %v13986_v25, 8.507059e+37 }
 0xa52   : > { %v13965_v39 = vmul.f32 %v22276_v58, %v13964_v10 }
 0xa54   : > { %v22278_v44 = vpop.eup %22277  ;;  %v13966_v3 = vadd.f32 %v22276_v58, %v13965_v39 }
 0xa55   : > { %v22280_v11 = vpop.eup %22279  ;;  %v13961_v35 = vadd.f32 1.0, %v22278_v44 }
 0xa56   : > { %v13970_v21 = vsel %vm13969_vm9, %v22276_v58, %v13966_v3  ;;  %v13978_v14 = vmul.f32 %v22280_v11, %v13960_v49  ;;  %vm13983_vm11 = vweird.f32 %v22280_v11 }
 0xa57   : > { %v13975_v37 = vsel %vm13972_vm10, %v13974_v27, %v13970_v21  ;;  %22281 = vrcp.f32 %v13961_v35  ;;  %vm13984_vm14 = vmor %vm13982_vm13, %vm13983_vm11  ;;  %v14003_v46 = vand.u32 2147483648, %v13961_v35  ;;  %v14001_v55 = vand.u32 2147483647, %v13961_v35 }
 0xa58   : > { %v14007_v20 = vmul.f32 %v13975_v37, %v27984_v32  ;;  %v13979_v19 = vsub.f32 1.0, %v13978_v14  ;;  %vm13997_vm3 = vweird.f32 %v13961_v35 }
 0xa59   : > { %v14004_v13 = vor.u32 1.1754944e-38, %v14003_v46  ;;  %vm14002_vm5 = vcmp.eq.f32.partialorder %v14001_v55, 8.507059e+37 }
 0xa5a   : > { %v13980_v52 = vmul.f32 %v22280_v11, %v13979_v19  ;;  %v14010_v42 = vsel %vm533_vm6, %v14007_v20, 0.0 }
 0xa5b   : > { %v14017_v32 = vsel %vm28055_vm12, %v14010_v42, 0.0 }
 0xa5c   : > { %v13981_v23 = vadd.f32 %v22280_v11, %v13980_v52  ;;  %v14020_v62 = vpack.c.bf16 %v14017_v32, %v14017_v32 }
 0xa5d   : > { %v22282_v34 = vpop.eup %22281 }
 0xa5e   : > { %v13985_v8 = vsel %vm13984_vm14, %v22280_v11, %v13981_v23  ;;  %v13993_v43 = vmul.f32 %v22282_v34, %v13961_v35  ;;  %vm13998_vm6 = vweird.f32 %v22282_v34  ;;  %v14025_v17 = vunpack.c.l.b16 %v14020_v62 }
 0xa5f   : > { %v13990_v6 = vsel %vm13987_vm15, %v13989_v30, %v13985_v8  ;;  %vm13999_vm4 = vmor %vm13997_vm3, %vm13998_vm6 }
 0xa60   : > { %v14008_v9 = vmul.f32 %v13990_v6, %v28006_v59  ;;  %v13994_v0 = vsub.f32 1.0, %v13993_v43 }
 0xa62   : > { %v14018_v33 = vsel %vm28055_vm12, %v14008_v9, 0.0  ;;  %v13995_v7 = vmul.f32 %v22282_v34, %v13994_v0 }
 0xa63   : > { %v14021_v12 = vpack.c.bf16 %v14018_v33, %v14018_v33 }
 0xa64   : > { %v13996_v26 = vadd.f32 %v22282_v34, %v13995_v7 }
 0xa65   : > { %v14026_v50 = vunpack.c.l.b16 %v14021_v12 }
 0xa66   : > { %v14000_v47 = vsel %vm13999_vm4, %v22282_v34, %v13996_v26 }
 0xa67   : > { %v14005_v15 = vsel %vm14002_vm5, %v14004_v13, %v14000_v47  ;;  %v14027_v59 = vpack.c.b16 %v14026_v50, %v14025_v17 }
 0xa68   : > { %v14009_v38 = vmul.f32 %v14005_v15, %v28028_v45 }
 0xa69   : > { %14249 = vmatmul.bf16.vlgmr.msrb.gmra.mxu3 %v14027_v59  ;;  %v14035_v57 = vshll.u32 %v14027_v59, 16  ;;  %v14045_v24 = vrot.slane %v14027_v59, 1  ;;  %v14033_v10 = vshrl.u32 %v14027_v59, 16 }
 0xa6a   : > { %v14012_v53 = vsel %vm538_vm2, %v14009_v38, 0.0 }
 0xa6b   : > { %v14019_v61 = vsel %vm28055_vm12, %v14012_v53, 0.0  ;;  %v14037_v36 = vrot.slane %v14035_v57, 1 }
 0xa6c   : > { %v14022_v60 = vpack.c.bf16 %v14019_v61, %v14019_v61 }
 0xa6d   : > { %v14038_v39 = vor.u32 %v14037_v36, %v14033_v10 }
 0xa6e   : > { %v14030_v58 = vunpack.c.l.b16 %v14022_v60 }
 0xa70   : > { %v14031_v49 = vpack.c.b16 %v14030_v58, %v14030_v58 }
 0xa72   : > { %v14046_v16 = vrot.slane %v14031_v49, 1  ;;  %v14040_v18 = vshll.u32 %v14031_v49, 16 }
 0xa74   : > { %v14047_v31 = vsel %vm573_vm1, %v14045_v24, %v14046_v16  ;;  %v14042_v45 = vrot.slane %v14040_v18, 1 }
 0xa75   : > { %14277 = vmatmul.bf16.vlgmr.msra.gmra.mxu1 %v14047_v31 }
 0xa76   : > { %v14043_v1 = vsel %vm555_vm0, %v14038_v39, %v14042_v45 }
 0xa77   : > { %14263 = vmatmul.bf16.vlgmr.msra.gmra.mxu0 %v14043_v1 }
 0xaec   : > { %v14250_v56 = vpop.f32.mrf.mxu3 }
 0xaf2   : > { %v14278_v29 = vpop.f32.mrf.mxu1 }
 0xaf4   : > { %v14264_v44 = vpop.f32.mrf.mxu0  ;;  %v14252_v21 = vpop.f32.mrf.mxu3 }
 0xaf5   : > { %v14265_v3 = vadd.f32 %v14264_v44, %v14250_v56 }
 0xaf7   : > { %v14279_v11 = vadd.f32 %v14278_v29, %v14265_v3 }
 0xaf9   : > { %v14283_v27 = vadd.f32 %v14279_v11, %v27935_v4 }
 0xafa   : > { %v14280_v40 = vpop.f32.mrf.mxu1 }
 0xafb   : > { %v14285_v35 = vmul.f32 %v27917_v5, %v14283_v27 }
 0xafc   : > { %v14266_v14 = vpop.f32.mrf.mxu0 }
 0xafd   : > { %v14287_v37 = vadd.f32 %v27924_v48, %v14285_v35  ;;  %v14267_v20 = vadd.f32 %v14266_v14, %v14252_v21 }
 0xaff   : > { %v20878_v19 = vmul.f32 -1.442695, %v14287_v37  ;;  %v14281_v28 = vadd.f32 %v14280_v40, %v14267_v20 }
 0xb01   : > { %22283 = vpow2.f32 %v20878_v19  ;;  %v14284_v52 = vadd.f32 %v14281_v28, %v27939_v54 }
 0xb03   : > { %v14286_v25 = vmul.f32 %v27917_v5, %v14284_v52 }
 0xb05   : > { %v14288_v4 = vadd.f32 %v27924_v48, %v14286_v25 }
 0xb07   : > { %v22284_v42 = vpop.eup %22283  ;;  %v20879_v63 = vmul.f32 -1.442695, %v14288_v4 }
 0xb08   : > { %v14295_v23 = vadd.f32 1.0, %v22284_v42 }
 0xb09   : > { %22285 = vpow2.f32 %v20879_v63 }
 0xb0a   : > { %22287 = vrcp.f32 %v14295_v23  ;;  %v14308_v5 = vand.u32 2147483648, %v14295_v23  ;;  %v14306_v48 = vand.u32 2147483647, %v14295_v23  ;;  %vm14302_vm2 = vweird.f32 %v14295_v23 }
 0xb0c   : > { %v14309_v0 = vor.u32 1.1754944e-38, %v14308_v5  ;;  %vm14307_vm8 = vcmp.eq.f32.partialorder %v14306_v48, 8.507059e+37 }
 0xb0f   : > { %v22286_v34 = vpop.eup %22285 }
 0xb10   : > { %v22288_v30 = vpop.eup %22287  ;;  %v14296_v32 = vadd.f32 1.0, %v22286_v34 }
 0xb11   : > { %v14298_v8 = vmul.f32 %v22288_v30, %v14295_v23  ;;  %vm14303_vm0 = vweird.f32 %v22288_v30 }
 0xb12   : > { %22289 = vrcp.f32 %v14296_v32  ;;  %vm14304_vm7 = vmor %vm14302_vm2, %vm14303_vm0  ;;  %v14323_v12 = vand.u32 2147483648, %v14296_v32  ;;  %v14321_v50 = vand.u32 2147483647, %v14296_v32  ;;  %vm14317_vm10 = vweird.f32 %v14296_v32 }
 0xb13   : > { %v14299_v54 = vsub.f32 1.0, %v14298_v8 }
 0xb14   : > { %v14324_v47 = vor.u32 1.1754944e-38, %v14323_v12  ;;  %vm14322_vm12 = vcmp.eq.f32.partialorder %v14321_v50, 8.507059e+37 }
 0xb15   : > { %v14300_v43 = vmul.f32 %v22288_v30, %v14299_v54 }
 0xb17   : > { %v14301_v6 = vadd.f32 %v22288_v30, %v14300_v43 }
 0xb18   : > { %v22290_v9 = vpop.eup %22289 }
 0xb19   : > { %v14305_v62 = vsel %vm14304_vm7, %v22288_v30, %v14301_v6  ;;  %v14313_v46 = vmul.f32 %v22290_v9, %v14296_v32  ;;  %vm14318_vm9 = vweird.f32 %v22290_v9 }
 0xb1a   : > { %v14310_v33 = vsel %vm14307_vm8, %v14309_v0, %v14305_v62  ;;  %vm14319_vm11 = vmor %vm14317_vm10, %vm14318_vm9 }
 0xb1b   : > { %v14327_v7 = vmul.f32 %v14310_v33, %v14287_v37  ;;  %v14314_v55 = vsub.f32 1.0, %v14313_v46 }
 0xb1d   : > { %20880 = vst [vmem:[%s24309_s23 + $0x70] sm:$0xff] %v14327_v7  ;;  %v14332_v26 = vadd.f32 %v14327_v7, %v27945_v22  ;;  %v14315_v17 = vmul.f32 %v22290_v9, %v14314_v55 }
 0xb1f   : > { %14357 = vst [vmem:[%s524_s20] sm:$0xff] %v14332_v26  ;;  %v14316_v13 = vadd.f32 %v22290_v9, %v14315_v17 }
 0xb21   : > { %v14320_v15 = vsel %vm14319_vm11, %v22290_v9, %v14316_v13 }
 0xb22   : > { %v14325_v59 = vsel %vm14322_vm12, %v14324_v47, %v14320_v15 }
 0xb23   : > { %v14328_v38 = vmul.f32 %v14325_v59, %v14288_v4 }
 0xb25   : > { %20881 = vst [vmem:[%s24309_s23 + $0x78] sm:$0xff] %v14328_v38  ;;  %v14333_v53 = vadd.f32 %v14328_v38, %v27950_v51  ;;  %v14334_v61 = vadd.f32 %v14328_v38, %v14327_v7 }
 0xb27   : > { %v14335_v60 = vrot.slane %v14334_v61, 4  ;;  %14358 = vst [vmem:[%s524_s20 + $0x8] sm:$0xff] %v14333_v53 }
 0xb29   : > { %v14336_v22 = vadd.f32 %v14335_v60, %v14334_v61 }
 0xb2b   : > { %v14337_v57 = vrot.slane %v14336_v22, 2 }
 0xb2d   : > { %v14338_v58 = vadd.f32 %v14337_v57, %v14336_v22 }
 0xb2f   : > { %v14339_v49 = vrot.slane %v14338_v58, 1 }
 0xb31   : > { %v14340_v36 = vadd.f32 %v14339_v49, %v14338_v58 }
 0xb33   : > { %v14341_v24 = vmul.f32 %v14340_v36, %v25553_v2 }
 0xb35   : > { %v14355_v51 = vsel %vm573_vm1, %v27954_v41, %v14341_v24 }
 0xb36   : > { %14356 = vst [vmem:[%s515_s29] sm:$0xff] %v14355_v51 }
 0xb37 PF: > { %s21_s17 = sadd.s32 1, %s22428_s17   ;;  %s28199_s13 = smov %s22420_s15 }
 0xb38   : > { %p18_p11 = scmp.ge.s32.totalorder %s21_s17, 6   ;;  %s28200_s14 = smov %s22424_s16 }
 0xb39   : > { %s28201_s15 = smov %s28204_s18  ;;  %s28202_s16 = smov %s28208_s19 }
 0xb3a   :  { %20 = sbr.rel (!%p18_p11) target bundleno = 3 (0x3), region = 130 }

</bundles_post_ra>
